<compile_context>
chip_gen: v7x
topology: tpu7x:2x2x1
jax: 0.10.0
libtpu: 0.0.40
codegen_flags: <defaults>
</compile_context>

<pallas_src>
import functools

import jax
import jax.numpy as jnp
from jax import lax
from jax.experimental import pallas as pl
from jax.experimental.pallas import tpu as pltpu


N_RES_BLOCKS = 14
N_STEPS = N_RES_BLOCKS + 2          # head + 14 ResBlocks + tail
C_MID = 64
C_IN = 3
C_IN_PAD = 8                        # input channels padded 3 -> 8 (zero weights => exact)
C_TAIL = 21 * 21                    # 441
C_TAIL_PAD = 512                    # lane-dense output; padded channels masked via -1e30 bias
NEG_BIG = -1e30


# ----------------------------------------------------------------------------
# Fused Pallas kernel: one grid step = (image b, layer step l)
# ----------------------------------------------------------------------------
def _fused_kernel(x_ref, hw_ref, hb_ref, w1_ref, b1_ref, w2_ref, b2_ref,
                  tw_ref, tb_ref, o_ref, xbuf, hbuf, *, H, W):
    """l == 0           : zero scratch; head conv(3->64)+ReLU into xbuf interior
       1 <= l <= 14     : ResBlock l-1: xbuf += conv2(relu(conv1(xbuf)))
       l == 15          : tail conv+avgpool+softmax via window sums + matvec.
    The padded activation (xbuf) and the ResBlock intermediate (hbuf) stay in
    VMEM across the whole layer sweep; only the final (1,512) softmax row is
    written back to HBM."""
    l = pl.program_id(1)
    HW = H * W

    def conv_taps(src_ref, weight_for_tap):
        # 9 shifted (HW, C_MID) x (C_MID, C_MID) MXU matmuls accumulated into
        # one f32 accumulator.
        acc = jnp.zeros((HW, C_MID), jnp.float32)
        for t in range(9):
            dh, dw = t // 3, t % 3
            patch = src_ref[dh:dh + H, dw:dw + W, :].reshape(HW, C_MID)
            acc = acc + jnp.dot(patch, weight_for_tap(t),
                                preferred_element_type=jnp.float32)
        return acc

    # ---------------- head: Conv(3->64) + ReLU --------------------------------
    @pl.when(l == 0)
    def _head():
        xbuf[...] = jnp.zeros_like(xbuf)      # zero borders stay zero afterwards
        hbuf[...] = jnp.zeros_like(hbuf)
        acc = jnp.zeros((HW, C_MID), jnp.float32)
        for t in range(9):
            dh, dw = t // 3, t % 3
            patch = x_ref[0, dh:dh + H, dw:dw + W, :].reshape(HW, C_IN_PAD)
            acc = acc + jnp.dot(patch, hw_ref[t],
                                preferred_element_type=jnp.float32)
        y = jnp.maximum(acc + hb_ref[...], 0.0)
        xbuf[1:H + 1, 1:W + 1, :] = y.reshape(H, W, C_MID)

    # ---------------- body: ResBlock (two convs + residual, fused) ------------
    @pl.when(jnp.logical_and(l >= 1, l <= N_RES_BLOCKS))
    def _resblock():
        h = conv_taps(xbuf, lambda t: w1_ref[0, t])
        h = jnp.maximum(h + b1_ref[0], 0.0)
        hbuf[1:H + 1, 1:W + 1, :] = h.reshape(H, W, C_MID)

        y = conv_taps(hbuf, lambda t: w2_ref[0, t])
        y = y + b2_ref[0]
        res = xbuf[1:H + 1, 1:W + 1, :].reshape(HW, C_MID)
        xbuf[1:H + 1, 1:W + 1, :] = (res + y).reshape(H, W, C_MID)

    # ---------------- tail: conv(64->441) + avgpool + softmax -----------------
    @pl.when(l == N_STEPS - 1)
    def _tail():
        # conv -> global-avg-pool is linear: per-tap spatial window sums of the
        # padded activation, then a tiny (1,64)x(64,512) matvec per tap.
        acc = jnp.zeros((1, C_TAIL_PAD), jnp.float32)
        for t in range(9):
            dh, dw = t // 3, t % 3
            patch = xbuf[dh:dh + H, dw:dw + W, :].reshape(HW, C_MID)
            s = jnp.sum(patch, axis=0, keepdims=True)            # (1, 64)
            acc = acc + jnp.dot(s, tw_ref[t],
                                preferred_element_type=jnp.float32)
        logits = acc * (1.0 / HW) + tb_ref[...]   # padded channels get -1e30 bias
        m = jnp.max(logits, axis=-1, keepdims=True)
        e = jnp.exp(logits - m)
        o_ref[0] = e / jnp.sum(e, axis=-1, keepdims=True)   # exact softmax (sums to 1)


# ----------------------------------------------------------------------------
# Wrapper: one pallas_call for the whole network
# ----------------------------------------------------------------------------
def _fused_forward(x_pad, head_w, head_b, w1, b1, w2, b2, tail_w, tail_b, *, H, W):
    B = x_pad.shape[0]
    nb = N_RES_BLOCKS

    def wsel(b, l):
        return (jnp.clip(l - 1, 0, nb - 1), 0, 0, 0)

    def bsel(b, l):
        return (jnp.clip(l - 1, 0, nb - 1), 0, 0)

    kernel = functools.partial(_fused_kernel, H=H, W=W)

    return pl.pallas_call(
        kernel,
        out_shape=jax.ShapeDtypeStruct((B, 1, C_TAIL_PAD), jnp.float32),
        grid=(B, N_STEPS),
        in_specs=[
            # input image (spatially padded, channels padded to 8); constant
            # over the layer axis so it is DMA'd once per image
            pl.BlockSpec((1, H + 2, W + 2, C_IN_PAD), lambda b, l: (b, 0, 0, 0)),
            # head conv weights / bias (constant block index -> fetched rarely)
            pl.BlockSpec((9, C_IN_PAD, C_MID), lambda b, l: (0, 0, 0)),
            pl.BlockSpec((1, C_MID), lambda b, l: (0, 0)),
            # per-ResBlock weights/biases streamed by layer step
            pl.BlockSpec((1, 9, C_MID, C_MID), wsel),
            pl.BlockSpec((1, 1, C_MID), bsel),
            pl.BlockSpec((1, 9, C_MID, C_MID), wsel),
            pl.BlockSpec((1, 1, C_MID), bsel),
            # tail conv weights / bias
            pl.BlockSpec((9, C_MID, C_TAIL_PAD), lambda b, l: (0, 0, 0)),
            pl.BlockSpec((1, C_TAIL_PAD), lambda b, l: (0, 0)),
        ],
        out_specs=pl.BlockSpec((1, 1, C_TAIL_PAD), lambda b, l: (b, 0, 0)),
        scratch_shapes=[
            pltpu.VMEM((H + 2, W + 2, C_MID), jnp.float32),   # activation (padded)
            pltpu.VMEM((H + 2, W + 2, C_MID), jnp.float32),   # ResBlock intermediate
        ],
        compiler_params=pltpu.CompilerParams(
            dimension_semantics=("parallel", "arbitrary"),
            vmem_limit_bytes=32 * 1024 * 1024,
        ),
    )(x_pad, head_w, head_b, w1, b1, w2, b2, tail_w, tail_b)


# ----------------------------------------------------------------------------
# Parameters (deterministic synthetic init) + forward
# ----------------------------------------------------------------------------
def init_params(key):
    def conv_init(k, cin, cout):
        k1, k2 = jax.random.split(k)
        scale = (9.0 * cin) ** -0.5
        w = jax.random.normal(k1, (3, 3, cin, cout), jnp.float32) * scale
        b = jax.random.normal(k2, (cout,), jnp.float32) * 0.01
        return w, b

    keys = jax.random.split(key, 2 + 2 * N_RES_BLOCKS)
    head_w, head_b = conv_init(keys[0], C_IN, C_MID)
    tail_w, tail_b = conv_init(keys[1], C_MID, C_TAIL)

    w1s, b1s, w2s, b2s = [], [], [], []
    for i in range(N_RES_BLOCKS):
        w1, b1 = conv_init(keys[2 + 2 * i], C_MID, C_MID)
        w2, b2 = conv_init(keys[3 + 2 * i], C_MID, C_MID)
        w1s.append(w1); b1s.append(b1); w2s.append(w2); b2s.append(b2)

    return {
        "head_w": head_w, "head_b": head_b,
        "body_w1": jnp.stack(w1s), "body_b1": jnp.stack(b1s),
        "body_w2": jnp.stack(w2s), "body_b2": jnp.stack(b2s),
        "tail_w": tail_w, "tail_b": tail_b,
    }


@jax.jit
def kernel_estimate_forward(x_nchw, params):
    B, C, H, W = x_nchw.shape
    # layout: NCHW -> NHWC, pad channels 3->8 and spatial by 1 (zero pad)
    x = jnp.transpose(x_nchw, (0, 2, 3, 1)).astype(jnp.float32)
    x = jnp.pad(x, ((0, 0), (1, 1), (1, 1), (0, C_IN_PAD - C)))

    head_w = jnp.pad(params["head_w"],
                     ((0, 0), (0, 0), (0, C_IN_PAD - C), (0, 0)))
    head_w = head_w.reshape(9, C_IN_PAD, C_MID)
    head_b = params["head_b"].reshape(1, C_MID)

    w1 = params["body_w1"].reshape(N_RES_BLOCKS, 9, C_MID, C_MID)
    w2 = params["body_w2"].reshape(N_RES_BLOCKS, 9, C_MID, C_MID)
    b1 = params["body_b1"].reshape(N_RES_BLOCKS, 1, C_MID)
    b2 = params["body_b2"].reshape(N_RES_BLOCKS, 1, C_MID)

    tail_w = jnp.pad(params["tail_w"],
                     ((0, 0), (0, 0), (0, 0), (0, C_TAIL_PAD - C_TAIL)))
    tail_w = tail_w.reshape(9, C_MID, C_TAIL_PAD)
    tail_b = jnp.pad(params["tail_b"], ((0, C_TAIL_PAD - C_TAIL),),
                     constant_values=NEG_BIG).reshape(1, C_TAIL_PAD)

    out = _fused_forward(x, head_w, head_b, w1, b1, w2, b2, tail_w, tail_b,
                         H=H, W=W)
    return out[:, :, :C_TAIL].reshape(B, 1, 21, 21)


# ----------------------------------------------------------------------------
# Pure-JAX reference (same semantics) for a sanity comparison
# ----------------------------------------------------------------------------
@jax.jit
def reference_forward(x_nchw, params):
    x = jnp.transpose(x_nchw, (0, 2, 3, 1)).astype(jnp.float32)   # NHWC

    def conv(x, w, b):
        dn = lax.conv_dimension_numbers(x.shape, w.shape, ("NHWC", "HWIO", "NHWC"))
        y = lax.conv_general_dilated(x, w, (1, 1), "SAME", dimension_numbers=dn,
                                     precision=lax.Precision.HIGHEST)
        return y + b

    x = jax.nn.relu(conv(x, params["head_w"], params["head_b"]))
    for i in range(N_RES_BLOCKS):
        h = jax.nn.relu(conv(x, params["body_w1"][i], params["body_b1"][i]))
        x = x + conv(h, params["body_w2"][i], params["body_b2"][i])
    y = conv(x, params["tail_w"], params["tail_b"])      # (B, H, W, 441)
    v = jnp.mean(y, axis=(1, 2))                         # global avg pool -> (B, 441)
    p = jax.nn.softmax(v, axis=-1)
    return p.reshape(-1, 1, 21, 21)


if __name__ == "__main__":
    key = jax.random.PRNGKey(0)
    k_param, k_x = jax.random.split(key)

    params = init_params(k_param)
    x = jax.random.normal(k_x, (2, 3, 16, 16), jnp.float32)   # NCHW like PyTorch

    out = kernel_estimate_forward(x, params)
    out = jax.block_until_ready(out)

    assert out.shape == (2, 1, 21, 21), out.shape
    # softmax'd kernel estimates should each sum to ~1
    sums = jnp.sum(out.reshape(2, -1), axis=-1)
    assert bool(jnp.all(jnp.abs(sums - 1.0) < 1e-4)), sums
    assert bool(jnp.all(jnp.isfinite(out)))

    # sanity comparison against pure-JAX reference (both f32; typical
    # max-abs-diff ~1e-5 — the bound is deliberately slack to absorb any
    # precision-path differences between Mosaic and XLA convolutions)
    ref = jax.block_until_ready(reference_forward(x, params))
    max_diff = float(jnp.max(jnp.abs(out - ref)))
    assert max_diff < 1e-1, max_diff

    print("KERNEL_OK")
</pallas_src>

<mosaic_0001>
module attributes {stable_mosaic.version = 11 : i64} {
  func.func @_fused_kernel(%arg0: i32, %arg1: i32, %arg2: memref<1x18x18x8xf32, #tpu.memory_space<vmem>>, %arg3: memref<9x8x64xf32, #tpu.memory_space<vmem>>, %arg4: memref<1x64xf32, #tpu.memory_space<vmem>>, %arg5: memref<1x9x64x64xf32, #tpu.memory_space<vmem>>, %arg6: memref<1x1x64xf32, #tpu.memory_space<vmem>>, %arg7: memref<1x9x64x64xf32, #tpu.memory_space<vmem>>, %arg8: memref<1x1x64xf32, #tpu.memory_space<vmem>>, %arg9: memref<9x64x512xf32, #tpu.memory_space<vmem>>, %arg10: memref<1x512xf32, #tpu.memory_space<vmem>>, %arg11: memref<1x1x512xf32, #tpu.memory_space<vmem>>, %arg12: memref<18x18x64xf32, #tpu.memory_space<vmem>>, %arg13: memref<18x18x64xf32, #tpu.memory_space<vmem>>) attributes {dimension_semantics = [#tpu.dimension_semantics<parallel>, #tpu.dimension_semantics<arbitrary>], iteration_bounds = array<i64: 2, 16>, scalar_prefetch = 0 : i64, scratch_operands = 2 : i64, tpu.core_type = #tpu.core_type<tc>, window_params = [{transform_indices = @transform_0, window_bounds = array<i64: 1, 18, 18, 8>}, {pipeline_mode = #tpu.pipeline_mode<synchronous>, transform_indices = @transform_1, window_bounds = array<i64: 9, 8, 64>}, {pipeline_mode = #tpu.pipeline_mode<synchronous>, transform_indices = @transform_2, window_bounds = array<i64: 1, 64>}, {transform_indices = @transform_3, window_bounds = array<i64: 1, 9, 64, 64>}, {transform_indices = @transform_4, window_bounds = array<i64: 1, 1, 64>}, {transform_indices = @transform_5, window_bounds = array<i64: 1, 9, 64, 64>}, {transform_indices = @transform_6, window_bounds = array<i64: 1, 1, 64>}, {pipeline_mode = #tpu.pipeline_mode<synchronous>, transform_indices = @transform_7, window_bounds = array<i64: 9, 64, 512>}, {pipeline_mode = #tpu.pipeline_mode<synchronous>, transform_indices = @transform_8, window_bounds = array<i64: 1, 512>}, {transform_indices = @transform_9, window_bounds = array<i64: 1, 1, 512>}]} {
    %c0_i32 = arith.constant 0 : i32
    %0 = arith.cmpi eq, %arg1, %c0_i32 : i32
    %1 = arith.extui %0 : i1 to i32
    %c0_i32_0 = arith.constant 0 : i32
    %2 = arith.cmpi ne, %1, %c0_i32_0 : i32
    scf.if %2 {
      %cst = arith.constant 0.000000e+00 : f32
      %11 = vector.broadcast %cst : f32 to vector<18x18x64xf32>
      %c0 = arith.constant 0 : index
      %c0_3 = arith.constant 0 : index
      %c0_4 = arith.constant 0 : index
      %12 = vector.load %arg12[%c0, %c0_3, %c0_4] : memref<18x18x64xf32, #tpu.memory_space<vmem>>, vector<18x18x64xf32>
      tpu.vector_store %arg12[%c0, %c0_3, %c0_4], %11 {strides = array<i32>} : memref<18x18x64xf32, #tpu.memory_space<vmem>>, vector<18x18x64xf32>,
      %cst_5 = arith.constant 0.000000e+00 : f32
      %13 = vector.broadcast %cst_5 : f32 to vector<18x18x64xf32>
      %c0_6 = arith.constant 0 : index
      %c0_7 = arith.constant 0 : index
      %c0_8 = arith.constant 0 : index
      %14 = vector.load %arg13[%c0_6, %c0_7, %c0_8] : memref<18x18x64xf32, #tpu.memory_space<vmem>>, vector<18x18x64xf32>
      tpu.vector_store %arg13[%c0_6, %c0_7, %c0_8], %13 {strides = array<i32>} : memref<18x18x64xf32, #tpu.memory_space<vmem>>, vector<18x18x64xf32>,
      %cst_9 = arith.constant 0.000000e+00 : f32
      %15 = vector.broadcast %cst_9 : f32 to vector<256x64xf32>
      %c0_10 = arith.constant 0 : index
      %c0_11 = arith.constant 0 : index
      %c0_12 = arith.constant 0 : index
      %c0_13 = arith.constant 0 : index
      %16 = vector.load %arg2[%c0_10, %c0_11, %c0_12, %c0_13] : memref<1x18x18x8xf32, #tpu.memory_space<vmem>>, vector<1x16x16x8xf32>
      %17 = vector.shape_cast %16 : vector<1x16x16x8xf32> to vector<16x16x8xf32>
      %18 = vector.shape_cast %17 : vector<16x16x8xf32> to vector<256x8xf32>
      %c0_14 = arith.constant 0 : index
      %c0_15 = arith.constant 0 : index
      %c0_16 = arith.constant 0 : index
      %19 = vector.load %arg3[%c0_14, %c0_15, %c0_16] : memref<9x8x64xf32, #tpu.memory_space<vmem>>, vector<1x8x64xf32>
      %20 = vector.shape_cast %19 : vector<1x8x64xf32> to vector<8x64xf32>
      %cst_17 = arith.constant dense<0.000000e+00> : vector<256x64xf32>
      %21 = tpu.matmul %18, %20, %cst_17 {dimension_numbers = #tpu.dot_dimension_numbers<[1], [0], [0], [1], [0, 0, 1, 1], [], []>} : vector<256x8xf32>, vector<8x64xf32>, vector<256x64xf32> -> vector<256x64xf32>
      %22 = arith.addf %15, %21 : vector<256x64xf32>
      %c0_18 = arith.constant 0 : index
      %c0_19 = arith.constant 0 : index
      %c1 = arith.constant 1 : index
      %c0_20 = arith.constant 0 : index
      %23 = vector.load %arg2[%c0_18, %c0_19, %c1, %c0_20] : memref<1x18x18x8xf32, #tpu.memory_space<vmem>>, vector<1x16x16x8xf32>
      %24 = vector.shape_cast %23 : vector<1x16x16x8xf32> to vector<16x16x8xf32>
      %25 = vector.shape_cast %24 : vector<16x16x8xf32> to vector<256x8xf32>
      %c1_21 = arith.constant 1 : index
      %c0_22 = arith.constant 0 : index
      %c0_23 = arith.constant 0 : index
      %26 = vector.load %arg3[%c1_21, %c0_22, %c0_23] : memref<9x8x64xf32, #tpu.memory_space<vmem>>, vector<1x8x64xf32>
      %27 = vector.shape_cast %26 : vector<1x8x64xf32> to vector<8x64xf32>
      %cst_24 = arith.constant dense<0.000000e+00> : vector<256x64xf32>
      %28 = tpu.matmul %25, %27, %cst_24 {dimension_numbers = #tpu.dot_dimension_numbers<[1], [0], [0], [1], [0, 0, 1, 1], [], []>} : vector<256x8xf32>, vector<8x64xf32>, vector<256x64xf32> -> vector<256x64xf32>
      %29 = arith.addf %22, %28 : vector<256x64xf32>
      %c0_25 = arith.constant 0 : index
      %c0_26 = arith.constant 0 : index
      %c2 = arith.constant 2 : index
      %c0_27 = arith.constant 0 : index
      %30 = vector.load %arg2[%c0_25, %c0_26, %c2, %c0_27] : memref<1x18x18x8xf32, #tpu.memory_space<vmem>>, vector<1x16x16x8xf32>
      %31 = vector.shape_cast %30 : vector<1x16x16x8xf32> to vector<16x16x8xf32>
      %32 = vector.shape_cast %31 : vector<16x16x8xf32> to vector<256x8xf32>
      %c2_28 = arith.constant 2 : index
      %c0_29 = arith.constant 0 : index
      %c0_30 = arith.constant 0 : index
      %33 = vector.load %arg3[%c2_28, %c0_29, %c0_30] : memref<9x8x64xf32, #tpu.memory_space<vmem>>, vector<1x8x64xf32>
      %34 = vector.shape_cast %33 : vector<1x8x64xf32> to vector<8x64xf32>
      %cst_31 = arith.constant dense<0.000000e+00> : vector<256x64xf32>
      %35 = tpu.matmul %32, %34, %cst_31 {dimension_numbers = #tpu.dot_dimension_numbers<[1], [0], [0], [1], [0, 0, 1, 1], [], []>} : vector<256x8xf32>, vector<8x64xf32>, vector<256x64xf32> -> vector<256x64xf32>
      %36 = arith.addf %29, %35 : vector<256x64xf32>
      %c0_32 = arith.constant 0 : index
      %c1_33 = arith.constant 1 : index
      %c0_34 = arith.constant 0 : index
      %c0_35 = arith.constant 0 : index
      %37 = vector.load %arg2[%c0_32, %c1_33, %c0_34, %c0_35] : memref<1x18x18x8xf32, #tpu.memory_space<vmem>>, vector<1x16x16x8xf32>
      %38 = vector.shape_cast %37 : vector<1x16x16x8xf32> to vector<16x16x8xf32>
      %39 = vector.shape_cast %38 : vector<16x16x8xf32> to vector<256x8xf32>
      %c3 = arith.constant 3 : index
      %c0_36 = arith.constant 0 : index
      %c0_37 = arith.constant 0 : index
      %40 = vector.load %arg3[%c3, %c0_36, %c0_37] : memref<9x8x64xf32, #tpu.memory_space<vmem>>, vector<1x8x64xf32>
      %41 = vector.shape_cast %40 : vector<1x8x64xf32> to vector<8x64xf32>
      %cst_38 = arith.constant dense<0.000000e+00> : vector<256x64xf32>
      %42 = tpu.matmul %39, %41, %cst_38 {dimension_numbers = #tpu.dot_dimension_numbers<[1], [0], [0], [1], [0, 0, 1, 1], [], []>} : vector<256x8xf32>, vector<8x64xf32>, vector<256x64xf32> -> vector<256x64xf32>
      %43 = arith.addf %36, %42 : vector<256x64xf32>
      %c0_39 = arith.constant 0 : index
      %c1_40 = arith.constant 1 : index
      %c1_41 = arith.constant 1 : index
      %c0_42 = arith.constant 0 : index
      %44 = vector.load %arg2[%c0_39, %c1_40, %c1_41, %c0_42] : memref<1x18x18x8xf32, #tpu.memory_space<vmem>>, vector<1x16x16x8xf32>
      %45 = vector.shape_cast %44 : vector<1x16x16x8xf32> to vector<16x16x8xf32>
      %46 = vector.shape_cast %45 : vector<16x16x8xf32> to vector<256x8xf32>
      %c4 = arith.constant 4 : index
      %c0_43 = arith.constant 0 : index
      %c0_44 = arith.constant 0 : index
      %47 = vector.load %arg3[%c4, %c0_43, %c0_44] : memref<9x8x64xf32, #tpu.memory_space<vmem>>, vector<1x8x64xf32>
      %48 = vector.shape_cast %47 : vector<1x8x64xf32> to vector<8x64xf32>
      %cst_45 = arith.constant dense<0.000000e+00> : vector<256x64xf32>
      %49 = tpu.matmul %46, %48, %cst_45 {dimension_numbers = #tpu.dot_dimension_numbers<[1], [0], [0], [1], [0, 0, 1, 1], [], []>} : vector<256x8xf32>, vector<8x64xf32>, vector<256x64xf32> -> vector<256x64xf32>
      %50 = arith.addf %43, %49 : vector<256x64xf32>
      %c0_46 = arith.constant 0 : index
      %c1_47 = arith.constant 1 : index
      %c2_48 = arith.constant 2 : index
      %c0_49 = arith.constant 0 : index
      %51 = vector.load %arg2[%c0_46, %c1_47, %c2_48, %c0_49] : memref<1x18x18x8xf32, #tpu.memory_space<vmem>>, vector<1x16x16x8xf32>
      %52 = vector.shape_cast %51 : vector<1x16x16x8xf32> to vector<16x16x8xf32>
      %53 = vector.shape_cast %52 : vector<16x16x8xf32> to vector<256x8xf32>
      %c5 = arith.constant 5 : index
      %c0_50 = arith.constant 0 : index
      %c0_51 = arith.constant 0 : index
      %54 = vector.load %arg3[%c5, %c0_50, %c0_51] : memref<9x8x64xf32, #tpu.memory_space<vmem>>, vector<1x8x64xf32>
      %55 = vector.shape_cast %54 : vector<1x8x64xf32> to vector<8x64xf32>
      %cst_52 = arith.constant dense<0.000000e+00> : vector<256x64xf32>
      %56 = tpu.matmul %53, %55, %cst_52 {dimension_numbers = #tpu.dot_dimension_numbers<[1], [0], [0], [1], [0, 0, 1, 1], [], []>} : vector<256x8xf32>, vector<8x64xf32>, vector<256x64xf32> -> vector<256x64xf32>
      %57 = arith.addf %50, %56 : vector<256x64xf32>
      %c0_53 = arith.constant 0 : index
      %c2_54 = arith.constant 2 : index
      %c0_55 = arith.constant 0 : index
      %c0_56 = arith.constant 0 : index
      %58 = vector.load %arg2[%c0_53, %c2_54, %c0_55, %c0_56] : memref<1x18x18x8xf32, #tpu.memory_space<vmem>>, vector<1x16x16x8xf32>
      %59 = vector.shape_cast %58 : vector<1x16x16x8xf32> to vector<16x16x8xf32>
      %60 = vector.shape_cast %59 : vector<16x16x8xf32> to vector<256x8xf32>
      %c6 = arith.constant 6 : index
      %c0_57 = arith.constant 0 : index
      %c0_58 = arith.constant 0 : index
      %61 = vector.load %arg3[%c6, %c0_57, %c0_58] : memref<9x8x64xf32, #tpu.memory_space<vmem>>, vector<1x8x64xf32>
      %62 = vector.shape_cast %61 : vector<1x8x64xf32> to vector<8x64xf32>
      %cst_59 = arith.constant dense<0.000000e+00> : vector<256x64xf32>
      %63 = tpu.matmul %60, %62, %cst_59 {dimension_numbers = #tpu.dot_dimension_numbers<[1], [0], [0], [1], [0, 0, 1, 1], [], []>} : vector<256x8xf32>, vector<8x64xf32>, vector<256x64xf32> -> vector<256x64xf32>
      %64 = arith.addf %57, %63 : vector<256x64xf32>
      %c0_60 = arith.constant 0 : index
      %c2_61 = arith.constant 2 : index
      %c1_62 = arith.constant 1 : index
      %c0_63 = arith.constant 0 : index
      %65 = vector.load %arg2[%c0_60, %c2_61, %c1_62, %c0_63] : memref<1x18x18x8xf32, #tpu.memory_space<vmem>>, vector<1x16x16x8xf32>
      %66 = vector.shape_cast %65 : vector<1x16x16x8xf32> to vector<16x16x8xf32>
      %67 = vector.shape_cast %66 : vector<16x16x8xf32> to vector<256x8xf32>
      %c7 = arith.constant 7 : index
      %c0_64 = arith.constant 0 : index
      %c0_65 = arith.constant 0 : index
      %68 = vector.load %arg3[%c7, %c0_64, %c0_65] : memref<9x8x64xf32, #tpu.memory_space<vmem>>, vector<1x8x64xf32>
      %69 = vector.shape_cast %68 : vector<1x8x64xf32> to vector<8x64xf32>
      %cst_66 = arith.constant dense<0.000000e+00> : vector<256x64xf32>
      %70 = tpu.matmul %67, %69, %cst_66 {dimension_numbers = #tpu.dot_dimension_numbers<[1], [0], [0], [1], [0, 0, 1, 1], [], []>} : vector<256x8xf32>, vector<8x64xf32>, vector<256x64xf32> -> vector<256x64xf32>
      %71 = arith.addf %64, %70 : vector<256x64xf32>
      %c0_67 = arith.constant 0 : index
      %c2_68 = arith.constant 2 : index
      %c2_69 = arith.constant 2 : index
      %c0_70 = arith.constant 0 : index
      %72 = vector.load %arg2[%c0_67, %c2_68, %c2_69, %c0_70] : memref<1x18x18x8xf32, #tpu.memory_space<vmem>>, vector<1x16x16x8xf32>
      %73 = vector.shape_cast %72 : vector<1x16x16x8xf32> to vector<16x16x8xf32>
      %74 = vector.shape_cast %73 : vector<16x16x8xf32> to vector<256x8xf32>
      %c8 = arith.constant 8 : index
      %c0_71 = arith.constant 0 : index
      %c0_72 = arith.constant 0 : index
      %75 = vector.load %arg3[%c8, %c0_71, %c0_72] : memref<9x8x64xf32, #tpu.memory_space<vmem>>, vector<1x8x64xf32>
      %76 = vector.shape_cast %75 : vector<1x8x64xf32> to vector<8x64xf32>
      %cst_73 = arith.constant dense<0.000000e+00> : vector<256x64xf32>
      %77 = tpu.matmul %74, %76, %cst_73 {dimension_numbers = #tpu.dot_dimension_numbers<[1], [0], [0], [1], [0, 0, 1, 1], [], []>} : vector<256x8xf32>, vector<8x64xf32>, vector<256x64xf32> -> vector<256x64xf32>
      %78 = arith.addf %71, %77 : vector<256x64xf32>
      %c0_74 = arith.constant 0 : index
      %c0_75 = arith.constant 0 : index
      %79 = vector.load %arg4[%c0_74, %c0_75] : memref<1x64xf32, #tpu.memory_space<vmem>>, vector<1x64xf32>
      %80 = vector.broadcast %79 : vector<1x64xf32> to vector<256x64xf32>
      %81 = arith.addf %78, %80 : vector<256x64xf32>
      %cst_76 = arith.constant 0.000000e+00 : f32
      %82 = vector.broadcast %cst_76 : f32 to vector<256x64xf32>
      %83 = arith.maximumf %81, %82 : vector<256x64xf32>
      %84 = vector.shape_cast %83 : vector<256x64xf32> to vector<16x16x64xf32>
      %c1_77 = arith.constant 1 : index
      %c1_78 = arith.constant 1 : index
      %c0_79 = arith.constant 0 : index
      %85 = vector.load %arg12[%c1_77, %c1_78, %c0_79] : memref<18x18x64xf32, #tpu.memory_space<vmem>>, vector<16x16x64xf32>
      tpu.vector_store %arg12[%c1_77, %c1_78, %c0_79], %84 {strides = array<i32>} : memref<18x18x64xf32, #tpu.memory_space<vmem>>, vector<16x16x64xf32>,
    } else {
    }
    %c1_i32 = arith.constant 1 : i32
    %3 = arith.cmpi sge, %arg1, %c1_i32 : i32
    %c14_i32 = arith.constant 14 : i32
    %4 = arith.cmpi sle, %arg1, %c14_i32 : i32
    %5 = arith.andi %3, %4 : i1
    %6 = arith.extui %5 : i1 to i32
    %c0_i32_1 = arith.constant 0 : i32
    %7 = arith.cmpi ne, %6, %c0_i32_1 : i32
    scf.if %7 {
      %cst = arith.constant 0.000000e+00 : f32
      %11 = vector.broadcast %cst : f32 to vector<256x64xf32>
      %c0 = arith.constant 0 : index
      %c0_3 = arith.constant 0 : index
      %c0_4 = arith.constant 0 : index
      %12 = vector.load %arg12[%c0, %c0_3, %c0_4] : memref<18x18x64xf32, #tpu.memory_space<vmem>>, vector<16x16x64xf32>
      %13 = vector.shape_cast %12 : vector<16x16x64xf32> to vector<256x64xf32>
      %c0_5 = arith.constant 0 : index
      %c0_6 = arith.constant 0 : index
      %c0_7 = arith.constant 0 : index
      %c0_8 = arith.constant 0 : index
      %14 = vector.load %arg5[%c0_5, %c0_6, %c0_7, %c0_8] : memref<1x9x64x64xf32, #tpu.memory_space<vmem>>, vector<1x1x64x64xf32>
      %15 = vector.shape_cast %14 : vector<1x1x64x64xf32> to vector<64x64xf32>
      %cst_9 = arith.constant dense<0.000000e+00> : vector<256x64xf32>
      %16 = tpu.matmul %13, %15, %cst_9 {dimension_numbers = #tpu.dot_dimension_numbers<[1], [0], [0], [1], [0, 0, 1, 1], [], []>} : vector<256x64xf32>, vector<64x64xf32>, vector<256x64xf32> -> vector<256x64xf32>
      %17 = arith.addf %11, %16 : vector<256x64xf32>
      %c0_10 = arith.constant 0 : index
      %c1 = arith.constant 1 : index
      %c0_11 = arith.constant 0 : index
      %18 = vector.load %arg12[%c0_10, %c1, %c0_11] : memref<18x18x64xf32, #tpu.memory_space<vmem>>, vector<16x16x64xf32>
      %19 = vector.shape_cast %18 : vector<16x16x64xf32> to vector<256x64xf32>
      %c0_12 = arith.constant 0 : index
      %c1_13 = arith.constant 1 : index
      %c0_14 = arith.constant 0 : index
      %c0_15 = arith.constant 0 : index
      %20 = vector.load %arg5[%c0_12, %c1_13, %c0_14, %c0_15] : memref<1x9x64x64xf32, #tpu.memory_space<vmem>>, vector<1x1x64x64xf32>
      %21 = vector.shape_cast %20 : vector<1x1x64x64xf32> to vector<64x64xf32>
      %cst_16 = arith.constant dense<0.000000e+00> : vector<256x64xf32>
      %22 = tpu.matmul %19, %21, %cst_16 {dimension_numbers = #tpu.dot_dimension_numbers<[1], [0], [0], [1], [0, 0, 1, 1], [], []>} : vector<256x64xf32>, vector<64x64xf32>, vector<256x64xf32> -> vector<256x64xf32>
      %23 = arith.addf %17, %22 : vector<256x64xf32>
      %c0_17 = arith.constant 0 : index
      %c2 = arith.constant 2 : index
      %c0_18 = arith.constant 0 : index
      %24 = vector.load %arg12[%c0_17, %c2, %c0_18] : memref<18x18x64xf32, #tpu.memory_space<vmem>>, vector<16x16x64xf32>
      %25 = vector.shape_cast %24 : vector<16x16x64xf32> to vector<256x64xf32>
      %c0_19 = arith.constant 0 : index
      %c2_20 = arith.constant 2 : index
      %c0_21 = arith.constant 0 : index
      %c0_22 = arith.constant 0 : index
      %26 = vector.load %arg5[%c0_19, %c2_20, %c0_21, %c0_22] : memref<1x9x64x64xf32, #tpu.memory_space<vmem>>, vector<1x1x64x64xf32>
      %27 = vector.shape_cast %26 : vector<1x1x64x64xf32> to vector<64x64xf32>
      %cst_23 = arith.constant dense<0.000000e+00> : vector<256x64xf32>
      %28 = tpu.matmul %25, %27, %cst_23 {dimension_numbers = #tpu.dot_dimension_numbers<[1], [0], [0], [1], [0, 0, 1, 1], [], []>} : vector<256x64xf32>, vector<64x64xf32>, vector<256x64xf32> -> vector<256x64xf32>
      %29 = arith.addf %23, %28 : vector<256x64xf32>
      %c1_24 = arith.constant 1 : index
      %c0_25 = arith.constant 0 : index
      %c0_26 = arith.constant 0 : index
      %30 = vector.load %arg12[%c1_24, %c0_25, %c0_26] : memref<18x18x64xf32, #tpu.memory_space<vmem>>, vector<16x16x64xf32>
      %31 = vector.shape_cast %30 : vector<16x16x64xf32> to vector<256x64xf32>
      %c0_27 = arith.constant 0 : index
      %c3 = arith.constant 3 : index
      %c0_28 = arith.constant 0 : index
      %c0_29 = arith.constant 0 : index
      %32 = vector.load %arg5[%c0_27, %c3, %c0_28, %c0_29] : memref<1x9x64x64xf32, #tpu.memory_space<vmem>>, vector<1x1x64x64xf32>
      %33 = vector.shape_cast %32 : vector<1x1x64x64xf32> to vector<64x64xf32>
      %cst_30 = arith.constant dense<0.000000e+00> : vector<256x64xf32>
      %34 = tpu.matmul %31, %33, %cst_30 {dimension_numbers = #tpu.dot_dimension_numbers<[1], [0], [0], [1], [0, 0, 1, 1], [], []>} : vector<256x64xf32>, vector<64x64xf32>, vector<256x64xf32> -> vector<256x64xf32>
      %35 = arith.addf %29, %34 : vector<256x64xf32>
      %c1_31 = arith.constant 1 : index
      %c1_32 = arith.constant 1 : index
      %c0_33 = arith.constant 0 : index
      %36 = vector.load %arg12[%c1_31, %c1_32, %c0_33] : memref<18x18x64xf32, #tpu.memory_space<vmem>>, vector<16x16x64xf32>
      %37 = vector.shape_cast %36 : vector<16x16x64xf32> to vector<256x64xf32>
      %c0_34 = arith.constant 0 : index
      %c4 = arith.constant 4 : index
      %c0_35 = arith.constant 0 : index
      %c0_36 = arith.constant 0 : index
      %38 = vector.load %arg5[%c0_34, %c4, %c0_35, %c0_36] : memref<1x9x64x64xf32, #tpu.memory_space<vmem>>, vector<1x1x64x64xf32>
      %39 = vector.shape_cast %38 : vector<1x1x64x64xf32> to vector<64x64xf32>
      %cst_37 = arith.constant dense<0.000000e+00> : vector<256x64xf32>
      %40 = tpu.matmul %37, %39, %cst_37 {dimension_numbers = #tpu.dot_dimension_numbers<[1], [0], [0], [1], [0, 0, 1, 1], [], []>} : vector<256x64xf32>, vector<64x64xf32>, vector<256x64xf32> -> vector<256x64xf32>
      %41 = arith.addf %35, %40 : vector<256x64xf32>
      %c1_38 = arith.constant 1 : index
      %c2_39 = arith.constant 2 : index
      %c0_40 = arith.constant 0 : index
      %42 = vector.load %arg12[%c1_38, %c2_39, %c0_40] : memref<18x18x64xf32, #tpu.memory_space<vmem>>, vector<16x16x64xf32>
      %43 = vector.shape_cast %42 : vector<16x16x64xf32> to vector<256x64xf32>
      %c0_41 = arith.constant 0 : index
      %c5 = arith.constant 5 : index
      %c0_42 = arith.constant 0 : index
      %c0_43 = arith.constant 0 : index
      %44 = vector.load %arg5[%c0_41, %c5, %c0_42, %c0_43] : memref<1x9x64x64xf32, #tpu.memory_space<vmem>>, vector<1x1x64x64xf32>
      %45 = vector.shape_cast %44 : vector<1x1x64x64xf32> to vector<64x64xf32>
      %cst_44 = arith.constant dense<0.000000e+00> : vector<256x64xf32>
      %46 = tpu.matmul %43, %45, %cst_44 {dimension_numbers = #tpu.dot_dimension_numbers<[1], [0], [0], [1], [0, 0, 1, 1], [], []>} : vector<256x64xf32>, vector<64x64xf32>, vector<256x64xf32> -> vector<256x64xf32>
      %47 = arith.addf %41, %46 : vector<256x64xf32>
      %c2_45 = arith.constant 2 : index
      %c0_46 = arith.constant 0 : index
      %c0_47 = arith.constant 0 : index
      %48 = vector.load %arg12[%c2_45, %c0_46, %c0_47] : memref<18x18x64xf32, #tpu.memory_space<vmem>>, vector<16x16x64xf32>
      %49 = vector.shape_cast %48 : vector<16x16x64xf32> to vector<256x64xf32>
      %c0_48 = arith.constant 0 : index
      %c6 = arith.constant 6 : index
      %c0_49 = arith.constant 0 : index
      %c0_50 = arith.constant 0 : index
      %50 = vector.load %arg5[%c0_48, %c6, %c0_49, %c0_50] : memref<1x9x64x64xf32, #tpu.memory_space<vmem>>, vector<1x1x64x64xf32>
      %51 = vector.shape_cast %50 : vector<1x1x64x64xf32> to vector<64x64xf32>
      %cst_51 = arith.constant dense<0.000000e+00> : vector<256x64xf32>
      %52 = tpu.matmul %49, %51, %cst_51 {dimension_numbers = #tpu.dot_dimension_numbers<[1], [0], [0], [1], [0, 0, 1, 1], [], []>} : vector<256x64xf32>, vector<64x64xf32>, vector<256x64xf32> -> vector<256x64xf32>
      %53 = arith.addf %47, %52 : vector<256x64xf32>
      %c2_52 = arith.constant 2 : index
      %c1_53 = arith.constant 1 : index
      %c0_54 = arith.constant 0 : index
      %54 = vector.load %arg12[%c2_52, %c1_53, %c0_54] : memref<18x18x64xf32, #tpu.memory_space<vmem>>, vector<16x16x64xf32>
      %55 = vector.shape_cast %54 : vector<16x16x64xf32> to vector<256x64xf32>
      %c0_55 = arith.constant 0 : index
      %c7 = arith.constant 7 : index
      %c0_56 = arith.constant 0 : index
      %c0_57 = arith.constant 0 : index
      %56 = vector.load %arg5[%c0_55, %c7, %c0_56, %c0_57] : memref<1x9x64x64xf32, #tpu.memory_space<vmem>>, vector<1x1x64x64xf32>
      %57 = vector.shape_cast %56 : vector<1x1x64x64xf32> to vector<64x64xf32>
      %cst_58 = arith.constant dense<0.000000e+00> : vector<256x64xf32>
      %58 = tpu.matmul %55, %57, %cst_58 {dimension_numbers = #tpu.dot_dimension_numbers<[1], [0], [0], [1], [0, 0, 1, 1], [], []>} : vector<256x64xf32>, vector<64x64xf32>, vector<256x64xf32> -> vector<256x64xf32>
      %59 = arith.addf %53, %58 : vector<256x64xf32>
      %c2_59 = arith.constant 2 : index
      %c2_60 = arith.constant 2 : index
      %c0_61 = arith.constant 0 : index
      %60 = vector.load %arg12[%c2_59, %c2_60, %c0_61] : memref<18x18x64xf32, #tpu.memory_space<vmem>>, vector<16x16x64xf32>
      %61 = vector.shape_cast %60 : vector<16x16x64xf32> to vector<256x64xf32>
      %c0_62 = arith.constant 0 : index
      %c8 = arith.constant 8 : index
      %c0_63 = arith.constant 0 : index
      %c0_64 = arith.constant 0 : index
      %62 = vector.load %arg5[%c0_62, %c8, %c0_63, %c0_64] : memref<1x9x64x64xf32, #tpu.memory_space<vmem>>, vector<1x1x64x64xf32>
      %63 = vector.shape_cast %62 : vector<1x1x64x64xf32> to vector<64x64xf32>
      %cst_65 = arith.constant dense<0.000000e+00> : vector<256x64xf32>
      %64 = tpu.matmul %61, %63, %cst_65 {dimension_numbers = #tpu.dot_dimension_numbers<[1], [0], [0], [1], [0, 0, 1, 1], [], []>} : vector<256x64xf32>, vector<64x64xf32>, vector<256x64xf32> -> vector<256x64xf32>
      %65 = arith.addf %59, %64 : vector<256x64xf32>
      %c0_66 = arith.constant 0 : index
      %c0_67 = arith.constant 0 : index
      %c0_68 = arith.constant 0 : index
      %66 = vector.load %arg6[%c0_66, %c0_67, %c0_68] : memref<1x1x64xf32, #tpu.memory_space<vmem>>, vector<1x1x64xf32>
      %67 = vector.shape_cast %66 : vector<1x1x64xf32> to vector<1x64xf32>
      %68 = vector.broadcast %67 : vector<1x64xf32> to vector<256x64xf32>
      %69 = arith.addf %65, %68 : vector<256x64xf32>
      %cst_69 = arith.constant 0.000000e+00 : f32
      %70 = vector.broadcast %cst_69 : f32 to vector<256x64xf32>
      %71 = arith.maximumf %69, %70 : vector<256x64xf32>
      %72 = vector.shape_cast %71 : vector<256x64xf32> to vector<16x16x64xf32>
      %c1_70 = arith.constant 1 : index
      %c1_71 = arith.constant 1 : index
      %c0_72 = arith.constant 0 : index
      %73 = vector.load %arg13[%c1_70, %c1_71, %c0_72] : memref<18x18x64xf32, #tpu.memory_space<vmem>>, vector<16x16x64xf32>
      tpu.vector_store %arg13[%c1_70, %c1_71, %c0_72], %72 {strides = array<i32>} : memref<18x18x64xf32, #tpu.memory_space<vmem>>, vector<16x16x64xf32>,
      %cst_73 = arith.constant 0.000000e+00 : f32
      %74 = vector.broadcast %cst_73 : f32 to vector<256x64xf32>
      %c0_74 = arith.constant 0 : index
      %c0_75 = arith.constant 0 : index
      %c0_76 = arith.constant 0 : index
      %75 = vector.load %arg13[%c0_74, %c0_75, %c0_76] : memref<18x18x64xf32, #tpu.memory_space<vmem>>, vector<16x16x64xf32>
      %76 = vector.shape_cast %75 : vector<16x16x64xf32> to vector<256x64xf32>
      %c0_77 = arith.constant 0 : index
      %c0_78 = arith.constant 0 : index
      %c0_79 = arith.constant 0 : index
      %c0_80 = arith.constant 0 : index
      %77 = vector.load %arg7[%c0_77, %c0_78, %c0_79, %c0_80] : memref<1x9x64x64xf32, #tpu.memory_space<vmem>>, vector<1x1x64x64xf32>
      %78 = vector.shape_cast %77 : vector<1x1x64x64xf32> to vector<64x64xf32>
      %cst_81 = arith.constant dense<0.000000e+00> : vector<256x64xf32>
      %79 = tpu.matmul %76, %78, %cst_81 {dimension_numbers = #tpu.dot_dimension_numbers<[1], [0], [0], [1], [0, 0, 1, 1], [], []>} : vector<256x64xf32>, vector<64x64xf32>, vector<256x64xf32> -> vector<256x64xf32>
      %80 = arith.addf %74, %79 : vector<256x64xf32>
      %c0_82 = arith.constant 0 : index
      %c1_83 = arith.constant 1 : index
      %c0_84 = arith.constant 0 : index
      %81 = vector.load %arg13[%c0_82, %c1_83, %c0_84] : memref<18x18x64xf32, #tpu.memory_space<vmem>>, vector<16x16x64xf32>
      %82 = vector.shape_cast %81 : vector<16x16x64xf32> to vector<256x64xf32>
      %c0_85 = arith.constant 0 : index
      %c1_86 = arith.constant 1 : index
      %c0_87 = arith.constant 0 : index
      %c0_88 = arith.constant 0 : index
      %83 = vector.load %arg7[%c0_85, %c1_86, %c0_87, %c0_88] : memref<1x9x64x64xf32, #tpu.memory_space<vmem>>, vector<1x1x64x64xf32>
      %84 = vector.shape_cast %83 : vector<1x1x64x64xf32> to vector<64x64xf32>
      %cst_89 = arith.constant dense<0.000000e+00> : vector<256x64xf32>
      %85 = tpu.matmul %82, %84, %cst_89 {dimension_numbers = #tpu.dot_dimension_numbers<[1], [0], [0], [1], [0, 0, 1, 1], [], []>} : vector<256x64xf32>, vector<64x64xf32>, vector<256x64xf32> -> vector<256x64xf32>
      %86 = arith.addf %80, %85 : vector<256x64xf32>
      %c0_90 = arith.constant 0 : index
      %c2_91 = arith.constant 2 : index
      %c0_92 = arith.constant 0 : index
      %87 = vector.load %arg13[%c0_90, %c2_91, %c0_92] : memref<18x18x64xf32, #tpu.memory_space<vmem>>, vector<16x16x64xf32>
      %88 = vector.shape_cast %87 : vector<16x16x64xf32> to vector<256x64xf32>
      %c0_93 = arith.constant 0 : index
      %c2_94 = arith.constant 2 : index
      %c0_95 = arith.constant 0 : index
      %c0_96 = arith.constant 0 : index
      %89 = vector.load %arg7[%c0_93, %c2_94, %c0_95, %c0_96] : memref<1x9x64x64xf32, #tpu.memory_space<vmem>>, vector<1x1x64x64xf32>
      %90 = vector.shape_cast %89 : vector<1x1x64x64xf32> to vector<64x64xf32>
      %cst_97 = arith.constant dense<0.000000e+00> : vector<256x64xf32>
      %91 = tpu.matmul %88, %90, %cst_97 {dimension_numbers = #tpu.dot_dimension_numbers<[1], [0], [0], [1], [0, 0, 1, 1], [], []>} : vector<256x64xf32>, vector<64x64xf32>, vector<256x64xf32> -> vector<256x64xf32>
      %92 = arith.addf %86, %91 : vector<256x64xf32>
      %c1_98 = arith.constant 1 : index
      %c0_99 = arith.constant 0 : index
      %c0_100 = arith.constant 0 : index
      %93 = vector.load %arg13[%c1_98, %c0_99, %c0_100] : memref<18x18x64xf32, #tpu.memory_space<vmem>>, vector<16x16x64xf32>
      %94 = vector.shape_cast %93 : vector<16x16x64xf32> to vector<256x64xf32>
      %c0_101 = arith.constant 0 : index
      %c3_102 = arith.constant 3 : index
      %c0_103 = arith.constant 0 : index
      %c0_104 = arith.constant 0 : index
      %95 = vector.load %arg7[%c0_101, %c3_102, %c0_103, %c0_104] : memref<1x9x64x64xf32, #tpu.memory_space<vmem>>, vector<1x1x64x64xf32>
      %96 = vector.shape_cast %95 : vector<1x1x64x64xf32> to vector<64x64xf32>
      %cst_105 = arith.constant dense<0.000000e+00> : vector<256x64xf32>
      %97 = tpu.matmul %94, %96, %cst_105 {dimension_numbers = #tpu.dot_dimension_numbers<[1], [0], [0], [1], [0, 0, 1, 1], [], []>} : vector<256x64xf32>, vector<64x64xf32>, vector<256x64xf32> -> vector<256x64xf32>
      %98 = arith.addf %92, %97 : vector<256x64xf32>
      %c1_106 = arith.constant 1 : index
      %c1_107 = arith.constant 1 : index
      %c0_108 = arith.constant 0 : index
      %99 = vector.load %arg13[%c1_106, %c1_107, %c0_108] : memref<18x18x64xf32, #tpu.memory_space<vmem>>, vector<16x16x64xf32>
      %100 = vector.shape_cast %99 : vector<16x16x64xf32> to vector<256x64xf32>
      %c0_109 = arith.constant 0 : index
      %c4_110 = arith.constant 4 : index
      %c0_111 = arith.constant 0 : index
      %c0_112 = arith.constant 0 : index
      %101 = vector.load %arg7[%c0_109, %c4_110, %c0_111, %c0_112] : memref<1x9x64x64xf32, #tpu.memory_space<vmem>>, vector<1x1x64x64xf32>
      %102 = vector.shape_cast %101 : vector<1x1x64x64xf32> to vector<64x64xf32>
      %cst_113 = arith.constant dense<0.000000e+00> : vector<256x64xf32>
      %103 = tpu.matmul %100, %102, %cst_113 {dimension_numbers = #tpu.dot_dimension_numbers<[1], [0], [0], [1], [0, 0, 1, 1], [], []>} : vector<256x64xf32>, vector<64x64xf32>, vector<256x64xf32> -> vector<256x64xf32>
      %104 = arith.addf %98, %103 : vector<256x64xf32>
      %c1_114 = arith.constant 1 : index
      %c2_115 = arith.constant 2 : index
      %c0_116 = arith.constant 0 : index
      %105 = vector.load %arg13[%c1_114, %c2_115, %c0_116] : memref<18x18x64xf32, #tpu.memory_space<vmem>>, vector<16x16x64xf32>
      %106 = vector.shape_cast %105 : vector<16x16x64xf32> to vector<256x64xf32>
      %c0_117 = arith.constant 0 : index
      %c5_118 = arith.constant 5 : index
      %c0_119 = arith.constant 0 : index
      %c0_120 = arith.constant 0 : index
      %107 = vector.load %arg7[%c0_117, %c5_118, %c0_119, %c0_120] : memref<1x9x64x64xf32, #tpu.memory_space<vmem>>, vector<1x1x64x64xf32>
      %108 = vector.shape_cast %107 : vector<1x1x64x64xf32> to vector<64x64xf32>
      %cst_121 = arith.constant dense<0.000000e+00> : vector<256x64xf32>
      %109 = tpu.matmul %106, %108, %cst_121 {dimension_numbers = #tpu.dot_dimension_numbers<[1], [0], [0], [1], [0, 0, 1, 1], [], []>} : vector<256x64xf32>, vector<64x64xf32>, vector<256x64xf32> -> vector<256x64xf32>
      %110 = arith.addf %104, %109 : vector<256x64xf32>
      %c2_122 = arith.constant 2 : index
      %c0_123 = arith.constant 0 : index
      %c0_124 = arith.constant 0 : index
      %111 = vector.load %arg13[%c2_122, %c0_123, %c0_124] : memref<18x18x64xf32, #tpu.memory_space<vmem>>, vector<16x16x64xf32>
      %112 = vector.shape_cast %111 : vector<16x16x64xf32> to vector<256x64xf32>
      %c0_125 = arith.constant 0 : index
      %c6_126 = arith.constant 6 : index
      %c0_127 = arith.constant 0 : index
      %c0_128 = arith.constant 0 : index
      %113 = vector.load %arg7[%c0_125, %c6_126, %c0_127, %c0_128] : memref<1x9x64x64xf32, #tpu.memory_space<vmem>>, vector<1x1x64x64xf32>
      %114 = vector.shape_cast %113 : vector<1x1x64x64xf32> to vector<64x64xf32>
      %cst_129 = arith.constant dense<0.000000e+00> : vector<256x64xf32>
      %115 = tpu.matmul %112, %114, %cst_129 {dimension_numbers = #tpu.dot_dimension_numbers<[1], [0], [0], [1], [0, 0, 1, 1], [], []>} : vector<256x64xf32>, vector<64x64xf32>, vector<256x64xf32> -> vector<256x64xf32>
      %116 = arith.addf %110, %115 : vector<256x64xf32>
      %c2_130 = arith.constant 2 : index
      %c1_131 = arith.constant 1 : index
      %c0_132 = arith.constant 0 : index
      %117 = vector.load %arg13[%c2_130, %c1_131, %c0_132] : memref<18x18x64xf32, #tpu.memory_space<vmem>>, vector<16x16x64xf32>
      %118 = vector.shape_cast %117 : vector<16x16x64xf32> to vector<256x64xf32>
      %c0_133 = arith.constant 0 : index
      %c7_134 = arith.constant 7 : index
      %c0_135 = arith.constant 0 : index
      %c0_136 = arith.constant 0 : index
      %119 = vector.load %arg7[%c0_133, %c7_134, %c0_135, %c0_136] : memref<1x9x64x64xf32, #tpu.memory_space<vmem>>, vector<1x1x64x64xf32>
      %120 = vector.shape_cast %119 : vector<1x1x64x64xf32> to vector<64x64xf32>
      %cst_137 = arith.constant dense<0.000000e+00> : vector<256x64xf32>
      %121 = tpu.matmul %118, %120, %cst_137 {dimension_numbers = #tpu.dot_dimension_numbers<[1], [0], [0], [1], [0, 0, 1, 1], [], []>} : vector<256x64xf32>, vector<64x64xf32>, vector<256x64xf32> -> vector<256x64xf32>
      %122 = arith.addf %116, %121 : vector<256x64xf32>
      %c2_138 = arith.constant 2 : index
      %c2_139 = arith.constant 2 : index
      %c0_140 = arith.constant 0 : index
      %123 = vector.load %arg13[%c2_138, %c2_139, %c0_140] : memref<18x18x64xf32, #tpu.memory_space<vmem>>, vector<16x16x64xf32>
      %124 = vector.shape_cast %123 : vector<16x16x64xf32> to vector<256x64xf32>
      %c0_141 = arith.constant 0 : index
      %c8_142 = arith.constant 8 : index
      %c0_143 = arith.constant 0 : index
      %c0_144 = arith.constant 0 : index
      %125 = vector.load %arg7[%c0_141, %c8_142, %c0_143, %c0_144] : memref<1x9x64x64xf32, #tpu.memory_space<vmem>>, vector<1x1x64x64xf32>
      %126 = vector.shape_cast %125 : vector<1x1x64x64xf32> to vector<64x64xf32>
      %cst_145 = arith.constant dense<0.000000e+00> : vector<256x64xf32>
      %127 = tpu.matmul %124, %126, %cst_145 {dimension_numbers = #tpu.dot_dimension_numbers<[1], [0], [0], [1], [0, 0, 1, 1], [], []>} : vector<256x64xf32>, vector<64x64xf32>, vector<256x64xf32> -> vector<256x64xf32>
      %128 = arith.addf %122, %127 : vector<256x64xf32>
      %c0_146 = arith.constant 0 : index
      %c0_147 = arith.constant 0 : index
      %c0_148 = arith.constant 0 : index
      %129 = vector.load %arg8[%c0_146, %c0_147, %c0_148] : memref<1x1x64xf32, #tpu.memory_space<vmem>>, vector<1x1x64xf32>
      %130 = vector.shape_cast %129 : vector<1x1x64xf32> to vector<1x64xf32>
      %131 = vector.broadcast %130 : vector<1x64xf32> to vector<256x64xf32>
      %132 = arith.addf %128, %131 : vector<256x64xf32>
      %c1_149 = arith.constant 1 : index
      %c1_150 = arith.constant 1 : index
      %c0_151 = arith.constant 0 : index
      %133 = vector.load %arg12[%c1_149, %c1_150, %c0_151] : memref<18x18x64xf32, #tpu.memory_space<vmem>>, vector<16x16x64xf32>
      %134 = vector.shape_cast %133 : vector<16x16x64xf32> to vector<256x64xf32>
      %135 = arith.addf %134, %132 : vector<256x64xf32>
      %136 = vector.shape_cast %135 : vector<256x64xf32> to vector<16x16x64xf32>
      %c1_152 = arith.constant 1 : index
      %c1_153 = arith.constant 1 : index
      %c0_154 = arith.constant 0 : index
      %137 = vector.load %arg12[%c1_152, %c1_153, %c0_154] : memref<18x18x64xf32, #tpu.memory_space<vmem>>, vector<16x16x64xf32>
      tpu.vector_store %arg12[%c1_152, %c1_153, %c0_154], %136 {strides = array<i32>} : memref<18x18x64xf32, #tpu.memory_space<vmem>>, vector<16x16x64xf32>,
    } else {
    }
    %c15_i32 = arith.constant 15 : i32
    %8 = arith.cmpi eq, %arg1, %c15_i32 : i32
    %9 = arith.extui %8 : i1 to i32
    %c0_i32_2 = arith.constant 0 : i32
    %10 = arith.cmpi ne, %9, %c0_i32_2 : i32
    scf.if %10 {
      %cst = arith.constant 0.000000e+00 : f32
      %11 = vector.broadcast %cst : f32 to vector<1x512xf32>
      %c0 = arith.constant 0 : index
      %c0_3 = arith.constant 0 : index
      %c0_4 = arith.constant 0 : index
      %12 = vector.load %arg12[%c0, %c0_3, %c0_4] : memref<18x18x64xf32, #tpu.memory_space<vmem>>, vector<16x16x64xf32>
      %13 = vector.shape_cast %12 : vector<16x16x64xf32> to vector<256x64xf32>
      %cst_5 = arith.constant dense<0.000000e+00> : vector<64xf32>
      %14 = vector.multi_reduction <add>, %13, %cst_5 [0] : vector<256x64xf32> to vector<64xf32>
      %15 = vector.shape_cast %14 : vector<64xf32> to vector<1x64xf32>
      %c0_6 = arith.constant 0 : index
      %c0_7 = arith.constant 0 : index
      %c0_8 = arith.constant 0 : index
      %16 = vector.load %arg9[%c0_6, %c0_7, %c0_8] : memref<9x64x512xf32, #tpu.memory_space<vmem>>, vector<1x64x512xf32>
      %17 = vector.shape_cast %16 : vector<1x64x512xf32> to vector<64x512xf32>
      %cst_9 = arith.constant dense<0.000000e+00> : vector<1x512xf32>
      %18 = tpu.matmul %15, %17, %cst_9 {dimension_numbers = #tpu.dot_dimension_numbers<[1], [0], [0], [1], [0, 0, 1, 1], [], []>} : vector<1x64xf32>, vector<64x512xf32>, vector<1x512xf32> -> vector<1x512xf32>
      %19 = arith.addf %11, %18 : vector<1x512xf32>
      %c0_10 = arith.constant 0 : index
      %c1 = arith.constant 1 : index
      %c0_11 = arith.constant 0 : index
      %20 = vector.load %arg12[%c0_10, %c1, %c0_11] : memref<18x18x64xf32, #tpu.memory_space<vmem>>, vector<16x16x64xf32>
      %21 = vector.shape_cast %20 : vector<16x16x64xf32> to vector<256x64xf32>
      %cst_12 = arith.constant dense<0.000000e+00> : vector<64xf32>
      %22 = vector.multi_reduction <add>, %21, %cst_12 [0] : vector<256x64xf32> to vector<64xf32>
      %23 = vector.shape_cast %22 : vector<64xf32> to vector<1x64xf32>
      %c1_13 = arith.constant 1 : index
      %c0_14 = arith.constant 0 : index
      %c0_15 = arith.constant 0 : index
      %24 = vector.load %arg9[%c1_13, %c0_14, %c0_15] : memref<9x64x512xf32, #tpu.memory_space<vmem>>, vector<1x64x512xf32>
      %25 = vector.shape_cast %24 : vector<1x64x512xf32> to vector<64x512xf32>
      %cst_16 = arith.constant dense<0.000000e+00> : vector<1x512xf32>
      %26 = tpu.matmul %23, %25, %cst_16 {dimension_numbers = #tpu.dot_dimension_numbers<[1], [0], [0], [1], [0, 0, 1, 1], [], []>} : vector<1x64xf32>, vector<64x512xf32>, vector<1x512xf32> -> vector<1x512xf32>
      %27 = arith.addf %19, %26 : vector<1x512xf32>
      %c0_17 = arith.constant 0 : index
      %c2 = arith.constant 2 : index
      %c0_18 = arith.constant 0 : index
      %28 = vector.load %arg12[%c0_17, %c2, %c0_18] : memref<18x18x64xf32, #tpu.memory_space<vmem>>, vector<16x16x64xf32>
      %29 = vector.shape_cast %28 : vector<16x16x64xf32> to vector<256x64xf32>
      %cst_19 = arith.constant dense<0.000000e+00> : vector<64xf32>
      %30 = vector.multi_reduction <add>, %29, %cst_19 [0] : vector<256x64xf32> to vector<64xf32>
      %31 = vector.shape_cast %30 : vector<64xf32> to vector<1x64xf32>
      %c2_20 = arith.constant 2 : index
      %c0_21 = arith.constant 0 : index
      %c0_22 = arith.constant 0 : index
      %32 = vector.load %arg9[%c2_20, %c0_21, %c0_22] : memref<9x64x512xf32, #tpu.memory_space<vmem>>, vector<1x64x512xf32>
      %33 = vector.shape_cast %32 : vector<1x64x512xf32> to vector<64x512xf32>
      %cst_23 = arith.constant dense<0.000000e+00> : vector<1x512xf32>
      %34 = tpu.matmul %31, %33, %cst_23 {dimension_numbers = #tpu.dot_dimension_numbers<[1], [0], [0], [1], [0, 0, 1, 1], [], []>} : vector<1x64xf32>, vector<64x512xf32>, vector<1x512xf32> -> vector<1x512xf32>
      %35 = arith.addf %27, %34 : vector<1x512xf32>
      %c1_24 = arith.constant 1 : index
      %c0_25 = arith.constant 0 : index
      %c0_26 = arith.constant 0 : index
      %36 = vector.load %arg12[%c1_24, %c0_25, %c0_26] : memref<18x18x64xf32, #tpu.memory_space<vmem>>, vector<16x16x64xf32>
      %37 = vector.shape_cast %36 : vector<16x16x64xf32> to vector<256x64xf32>
      %cst_27 = arith.constant dense<0.000000e+00> : vector<64xf32>
      %38 = vector.multi_reduction <add>, %37, %cst_27 [0] : vector<256x64xf32> to vector<64xf32>
      %39 = vector.shape_cast %38 : vector<64xf32> to vector<1x64xf32>
      %c3 = arith.constant 3 : index
      %c0_28 = arith.constant 0 : index
      %c0_29 = arith.constant 0 : index
      %40 = vector.load %arg9[%c3, %c0_28, %c0_29] : memref<9x64x512xf32, #tpu.memory_space<vmem>>, vector<1x64x512xf32>
      %41 = vector.shape_cast %40 : vector<1x64x512xf32> to vector<64x512xf32>
      %cst_30 = arith.constant dense<0.000000e+00> : vector<1x512xf32>
      %42 = tpu.matmul %39, %41, %cst_30 {dimension_numbers = #tpu.dot_dimension_numbers<[1], [0], [0], [1], [0, 0, 1, 1], [], []>} : vector<1x64xf32>, vector<64x512xf32>, vector<1x512xf32> -> vector<1x512xf32>
      %43 = arith.addf %35, %42 : vector<1x512xf32>
      %c1_31 = arith.constant 1 : index
      %c1_32 = arith.constant 1 : index
      %c0_33 = arith.constant 0 : index
      %44 = vector.load %arg12[%c1_31, %c1_32, %c0_33] : memref<18x18x64xf32, #tpu.memory_space<vmem>>, vector<16x16x64xf32>
      %45 = vector.shape_cast %44 : vector<16x16x64xf32> to vector<256x64xf32>
      %cst_34 = arith.constant dense<0.000000e+00> : vector<64xf32>
      %46 = vector.multi_reduction <add>, %45, %cst_34 [0] : vector<256x64xf32> to vector<64xf32>
      %47 = vector.shape_cast %46 : vector<64xf32> to vector<1x64xf32>
      %c4 = arith.constant 4 : index
      %c0_35 = arith.constant 0 : index
      %c0_36 = arith.constant 0 : index
      %48 = vector.load %arg9[%c4, %c0_35, %c0_36] : memref<9x64x512xf32, #tpu.memory_space<vmem>>, vector<1x64x512xf32>
      %49 = vector.shape_cast %48 : vector<1x64x512xf32> to vector<64x512xf32>
      %cst_37 = arith.constant dense<0.000000e+00> : vector<1x512xf32>
      %50 = tpu.matmul %47, %49, %cst_37 {dimension_numbers = #tpu.dot_dimension_numbers<[1], [0], [0], [1], [0, 0, 1, 1], [], []>} : vector<1x64xf32>, vector<64x512xf32>, vector<1x512xf32> -> vector<1x512xf32>
      %51 = arith.addf %43, %50 : vector<1x512xf32>
      %c1_38 = arith.constant 1 : index
      %c2_39 = arith.constant 2 : index
      %c0_40 = arith.constant 0 : index
      %52 = vector.load %arg12[%c1_38, %c2_39, %c0_40] : memref<18x18x64xf32, #tpu.memory_space<vmem>>, vector<16x16x64xf32>
      %53 = vector.shape_cast %52 : vector<16x16x64xf32> to vector<256x64xf32>
      %cst_41 = arith.constant dense<0.000000e+00> : vector<64xf32>
      %54 = vector.multi_reduction <add>, %53, %cst_41 [0] : vector<256x64xf32> to vector<64xf32>
      %55 = vector.shape_cast %54 : vector<64xf32> to vector<1x64xf32>
      %c5 = arith.constant 5 : index
      %c0_42 = arith.constant 0 : index
      %c0_43 = arith.constant 0 : index
      %56 = vector.load %arg9[%c5, %c0_42, %c0_43] : memref<9x64x512xf32, #tpu.memory_space<vmem>>, vector<1x64x512xf32>
      %57 = vector.shape_cast %56 : vector<1x64x512xf32> to vector<64x512xf32>
      %cst_44 = arith.constant dense<0.000000e+00> : vector<1x512xf32>
      %58 = tpu.matmul %55, %57, %cst_44 {dimension_numbers = #tpu.dot_dimension_numbers<[1], [0], [0], [1], [0, 0, 1, 1], [], []>} : vector<1x64xf32>, vector<64x512xf32>, vector<1x512xf32> -> vector<1x512xf32>
      %59 = arith.addf %51, %58 : vector<1x512xf32>
      %c2_45 = arith.constant 2 : index
      %c0_46 = arith.constant 0 : index
      %c0_47 = arith.constant 0 : index
      %60 = vector.load %arg12[%c2_45, %c0_46, %c0_47] : memref<18x18x64xf32, #tpu.memory_space<vmem>>, vector<16x16x64xf32>
      %61 = vector.shape_cast %60 : vector<16x16x64xf32> to vector<256x64xf32>
      %cst_48 = arith.constant dense<0.000000e+00> : vector<64xf32>
      %62 = vector.multi_reduction <add>, %61, %cst_48 [0] : vector<256x64xf32> to vector<64xf32>
      %63 = vector.shape_cast %62 : vector<64xf32> to vector<1x64xf32>
      %c6 = arith.constant 6 : index
      %c0_49 = arith.constant 0 : index
      %c0_50 = arith.constant 0 : index
      %64 = vector.load %arg9[%c6, %c0_49, %c0_50] : memref<9x64x512xf32, #tpu.memory_space<vmem>>, vector<1x64x512xf32>
      %65 = vector.shape_cast %64 : vector<1x64x512xf32> to vector<64x512xf32>
      %cst_51 = arith.constant dense<0.000000e+00> : vector<1x512xf32>
      %66 = tpu.matmul %63, %65, %cst_51 {dimension_numbers = #tpu.dot_dimension_numbers<[1], [0], [0], [1], [0, 0, 1, 1], [], []>} : vector<1x64xf32>, vector<64x512xf32>, vector<1x512xf32> -> vector<1x512xf32>
      %67 = arith.addf %59, %66 : vector<1x512xf32>
      %c2_52 = arith.constant 2 : index
      %c1_53 = arith.constant 1 : index
      %c0_54 = arith.constant 0 : index
      %68 = vector.load %arg12[%c2_52, %c1_53, %c0_54] : memref<18x18x64xf32, #tpu.memory_space<vmem>>, vector<16x16x64xf32>
      %69 = vector.shape_cast %68 : vector<16x16x64xf32> to vector<256x64xf32>
      %cst_55 = arith.constant dense<0.000000e+00> : vector<64xf32>
      %70 = vector.multi_reduction <add>, %69, %cst_55 [0] : vector<256x64xf32> to vector<64xf32>
      %71 = vector.shape_cast %70 : vector<64xf32> to vector<1x64xf32>
      %c7 = arith.constant 7 : index
      %c0_56 = arith.constant 0 : index
      %c0_57 = arith.constant 0 : index
      %72 = vector.load %arg9[%c7, %c0_56, %c0_57] : memref<9x64x512xf32, #tpu.memory_space<vmem>>, vector<1x64x512xf32>
      %73 = vector.shape_cast %72 : vector<1x64x512xf32> to vector<64x512xf32>
      %cst_58 = arith.constant dense<0.000000e+00> : vector<1x512xf32>
      %74 = tpu.matmul %71, %73, %cst_58 {dimension_numbers = #tpu.dot_dimension_numbers<[1], [0], [0], [1], [0, 0, 1, 1], [], []>} : vector<1x64xf32>, vector<64x512xf32>, vector<1x512xf32> -> vector<1x512xf32>
      %75 = arith.addf %67, %74 : vector<1x512xf32>
      %c2_59 = arith.constant 2 : index
      %c2_60 = arith.constant 2 : index
      %c0_61 = arith.constant 0 : index
      %76 = vector.load %arg12[%c2_59, %c2_60, %c0_61] : memref<18x18x64xf32, #tpu.memory_space<vmem>>, vector<16x16x64xf32>
      %77 = vector.shape_cast %76 : vector<16x16x64xf32> to vector<256x64xf32>
      %cst_62 = arith.constant dense<0.000000e+00> : vector<64xf32>
      %78 = vector.multi_reduction <add>, %77, %cst_62 [0] : vector<256x64xf32> to vector<64xf32>
      %79 = vector.shape_cast %78 : vector<64xf32> to vector<1x64xf32>
      %c8 = arith.constant 8 : index
      %c0_63 = arith.constant 0 : index
      %c0_64 = arith.constant 0 : index
      %80 = vector.load %arg9[%c8, %c0_63, %c0_64] : memref<9x64x512xf32, #tpu.memory_space<vmem>>, vector<1x64x512xf32>
      %81 = vector.shape_cast %80 : vector<1x64x512xf32> to vector<64x512xf32>
      %cst_65 = arith.constant dense<0.000000e+00> : vector<1x512xf32>
      %82 = tpu.matmul %79, %81, %cst_65 {dimension_numbers = #tpu.dot_dimension_numbers<[1], [0], [0], [1], [0, 0, 1, 1], [], []>} : vector<1x64xf32>, vector<64x512xf32>, vector<1x512xf32> -> vector<1x512xf32>
      %83 = arith.addf %75, %82 : vector<1x512xf32>
      %cst_66 = arith.constant 3.906250e-03 : f32
      %84 = vector.broadcast %cst_66 : f32 to vector<1x512xf32>
      %85 = arith.mulf %83, %84 : vector<1x512xf32>
      %c0_67 = arith.constant 0 : index
      %c0_68 = arith.constant 0 : index
      %86 = vector.load %arg10[%c0_67, %c0_68] : memref<1x512xf32, #tpu.memory_space<vmem>>, vector<1x512xf32>
      %87 = arith.addf %85, %86 : vector<1x512xf32>
      %cst_69 = arith.constant dense<0xFF800000> : vector<1xf32>
      %88 = vector.multi_reduction <maximumf>, %87, %cst_69 [1] : vector<1x512xf32> to vector<1xf32>
      %89 = vector.shape_cast %88 : vector<1xf32> to vector<1x1xf32>
      %90 = vector.broadcast %89 : vector<1x1xf32> to vector<1x512xf32>
      %91 = arith.subf %87, %90 : vector<1x512xf32>
      %92 = math.exp %91 : vector<1x512xf32>
      %cst_70 = arith.constant dense<0.000000e+00> : vector<1xf32>
      %93 = vector.multi_reduction <add>, %92, %cst_70 [1] : vector<1x512xf32> to vector<1xf32>
      %94 = vector.shape_cast %93 : vector<1xf32> to vector<1x1xf32>
      %95 = vector.broadcast %94 : vector<1x1xf32> to vector<1x512xf32>
      %96 = arith.divf %92, %95 : vector<1x512xf32>
      %c0_71 = arith.constant 0 : index
      %c0_72 = arith.constant 0 : index
      %c0_73 = arith.constant 0 : index
      %97 = vector.load %arg11[%c0_71, %c0_72, %c0_73] : memref<1x1x512xf32, #tpu.memory_space<vmem>>, vector<1x1x512xf32>
      %98 = vector.shape_cast %97 : vector<1x1x512xf32> to vector<1x512xf32>
      %99 = vector.shape_cast %96 : vector<1x512xf32> to vector<1x1x512xf32>
      tpu.vector_store %arg11[%c0_71, %c0_72, %c0_73], %99 {strides = array<i32>} : memref<1x1x512xf32, #tpu.memory_space<vmem>>, vector<1x1x512xf32>,
    } else {
    }
    return
  }
  func.func @transform_0(%arg0: i32, %arg1: i32) -> (i32, i32, i32, i32) {
    %c0_i32 = arith.constant 0 : i32
    %c0_i32_0 = arith.constant 0 : i32
    %c0_i32_1 = arith.constant 0 : i32
    %c0_i32_2 = arith.constant 0 : i32
    return %arg0, %c0_i32, %c0_i32_0, %c0_i32_1 : i32, i32, i32, i32
  }
  func.func @transform_1(%arg0: i32, %arg1: i32) -> (i32, i32, i32) {
    %c0_i32 = arith.constant 0 : i32
    %c0_i32_0 = arith.constant 0 : i32
    %c0_i32_1 = arith.constant 0 : i32
    %c0_i32_2 = arith.constant 0 : i32
    return %c0_i32, %c0_i32_0, %c0_i32_1 : i32, i32, i32
  }
  func.func @transform_2(%arg0: i32, %arg1: i32) -> (i32, i32) {
    %c0_i32 = arith.constant 0 : i32
    %c0_i32_0 = arith.constant 0 : i32
    %c0_i32_1 = arith.constant 0 : i32
    return %c0_i32, %c0_i32_0 : i32, i32
  }
  func.func @transform_3(%arg0: i32, %arg1: i32) -> (i32, i32, i32, i32) {
    %c1_i32 = arith.constant 1 : i32
    %0 = arith.subi %arg1, %c1_i32 : i32
    %c0_i32 = arith.constant 0 : i32
    %c13_i32 = arith.constant 13 : i32
    %1 = arith.maxsi %c0_i32, %0 : i32
    %2 = arith.minsi %c13_i32, %1 : i32
    %c0_i32_0 = arith.constant 0 : i32
    %c0_i32_1 = arith.constant 0 : i32
    %c0_i32_2 = arith.constant 0 : i32
    %c0_i32_3 = arith.constant 0 : i32
    return %2, %c0_i32_0, %c0_i32_1, %c0_i32_2 : i32, i32, i32, i32
  }
  func.func @transform_4(%arg0: i32, %arg1: i32) -> (i32, i32, i32) {
    %c1_i32 = arith.constant 1 : i32
    %0 = arith.subi %arg1, %c1_i32 : i32
    %c0_i32 = arith.constant 0 : i32
    %c13_i32 = arith.constant 13 : i32
    %1 = arith.maxsi %c0_i32, %0 : i32
    %2 = arith.minsi %c13_i32, %1 : i32
    %c0_i32_0 = arith.constant 0 : i32
    %c0_i32_1 = arith.constant 0 : i32
    %c0_i32_2 = arith.constant 0 : i32
    return %2, %c0_i32_0, %c0_i32_1 : i32, i32, i32
  }
  func.func @transform_5(%arg0: i32, %arg1: i32) -> (i32, i32, i32, i32) {
    %c1_i32 = arith.constant 1 : i32
    %0 = arith.subi %arg1, %c1_i32 : i32
    %c0_i32 = arith.constant 0 : i32
    %c13_i32 = arith.constant 13 : i32
    %1 = arith.maxsi %c0_i32, %0 : i32
    %2 = arith.minsi %c13_i32, %1 : i32
    %c0_i32_0 = arith.constant 0 : i32
    %c0_i32_1 = arith.constant 0 : i32
    %c0_i32_2 = arith.constant 0 : i32
    %c0_i32_3 = arith.constant 0 : i32
    return %2, %c0_i32_0, %c0_i32_1, %c0_i32_2 : i32, i32, i32, i32
  }
  func.func @transform_6(%arg0: i32, %arg1: i32) -> (i32, i32, i32) {
    %c1_i32 = arith.constant 1 : i32
    %0 = arith.subi %arg1, %c1_i32 : i32
    %c0_i32 = arith.constant 0 : i32
    %c13_i32 = arith.constant 13 : i32
    %1 = arith.maxsi %c0_i32, %0 : i32
    %2 = arith.minsi %c13_i32, %1 : i32
    %c0_i32_0 = arith.constant 0 : i32
    %c0_i32_1 = arith.constant 0 : i32
    %c0_i32_2 = arith.constant 0 : i32
    return %2, %c0_i32_0, %c0_i32_1 : i32, i32, i32
  }
  func.func @transform_7(%arg0: i32, %arg1: i32) -> (i32, i32, i32) {
    %c0_i32 = arith.constant 0 : i32
    %c0_i32_0 = arith.constant 0 : i32
    %c0_i32_1 = arith.constant 0 : i32
    %c0_i32_2 = arith.constant 0 : i32
    return %c0_i32, %c0_i32_0, %c0_i32_1 : i32, i32, i32
  }
  func.func @transform_8(%arg0: i32, %arg1: i32) -> (i32, i32) {
    %c0_i32 = arith.constant 0 : i32
    %c0_i32_0 = arith.constant 0 : i32
    %c0_i32_1 = arith.constant 0 : i32
    return %c0_i32, %c0_i32_0 : i32, i32
  }
  func.func @transform_9(%arg0: i32, %arg1: i32) -> (i32, i32, i32) {
    %c0_i32 = arith.constant 0 : i32
    %c0_i32_0 = arith.constant 0 : i32
    %c0_i32_1 = arith.constant 0 : i32
    return %arg0, %c0_i32, %c0_i32_0 : i32, i32, i32
  }
}

</mosaic_0001>

<bundles_post_ra>
// kernel: kernel_estimate_forward.1
= control target key start
LH: loop header
LB: loop body
LE: loop exit
PB: predicated region body
PF: predicated region fallthrough
CT: control target
= control target key end

     0   :  { %s25404_s0 = inlined_call_operand.vmem [shape: f32[2,18,18,8], index: 0, kind: input, shape index: {}]   ;;  %s25405_s1 = inlined_call_operand.vmem [shape: f32[9,8,64], index: 1, kind: input, shape index: {}]   ;;  %s25406_s2 = inlined_call_operand.hbm [shape: f32[1,64], index: 2, kind: input, shape index: {}]   ;;  %s25407_s3 = inlined_call_operand.hbm [shape: f32[14,9,64,64], index: 3, kind: input, shape index: {}]   ;;  %s25408_s4 = inlined_call_operand.vmem [shape: f32[14,1,64], index: 4, kind: input, shape index: {}]   ;;  %s25409_s5 = inlined_call_operand.hbm [shape: f32[14,9,64,64], index: 5, kind: input, shape index: {}]   ;;  %s25410_s6 = inlined_call_operand.vmem [shape: f32[14,1,64], index: 6, kind: input, shape index: {}]   ;;  %s25411_s7 = inlined_call_operand.vmem [shape: f32[9,64,512], index: 7, kind: input, shape index: {}]   ;;  %s25412_s8 = inlined_call_operand.vmem [shape: f32[1,512], index: 8, kind: input, shape index: {}]   ;;  %s25413_s9 = inlined_call_operand.vmem [shape: f32[2,1,512], index: 9, kind: output, shape index: {}]  }
   0x1   :  { %25622 = sst [smem:[#allocation106_spill]] %s25407_s3 }
   0x2   :  { %25623 = sst [smem:[#allocation107_spill]] %s25409_s5 }
   0x3   :  { %14 = vsyncpa [#allocation5], 0 }
   0x4   :  { %15 = vsyncpa [#allocation7], 0 }
   0x5   :  { %17 = vsyncpa [#allocation7 + $0x1], 0  ;;  %s20107_s30 = smov 0   ;;  %s20109_s10 = smov 0  }
   0x6   :  { %s20111_s11 = smov 0   ;;  %s20113_s12 = smov 0  }
   0x7   :  { %s20115_s13 = smov 0   ;;  %s20117_s14 = smov 0  }
   0x8   :  { %s20119_s15 = smov 0   ;;  %s20121_s16 = smov 0  }
   0x9 LB: > { %25624 = sst [smem:[#allocation11_spill]] %s20039_s14  ;;  %s32_s17 = sadd.s32 1, %s20039_s14  ;;  %s20047_s16 = sphi %s20121_s16, %s23_s16   ;;  %s20043_s15 = sphi %s20119_s15, %s25961_s15   ;;  %s20039_s14 = sphi %s20117_s14, %s25960_s14   ;;  %s20035_s13 = sphi %s20115_s13, %s25959_s13   ;;  %s20031_s12 = sphi %s20113_s12, %s25958_s12   ;;  %s20027_s11 = sphi %s20111_s11, %s25964_s11   ;;  %s20023_s10 = sphi %s20109_s10, %s25963_s10   ;;  %s20019_s30 = sphi %s20107_s30, %s25962_s30  }
   0xa   : > { %25625 = sst [smem:[#allocation12_spill]] %s20043_s15  ;;  %s35_s18 = sadd.s32 1, %s20043_s15 }
   0xb   : > { %p33_p0 = scmp.ge.s32.totalorder %s32_s17, 16  ;;  %s14206_s19 = sadd.s32 4294967295, %s20039_s14 }
   0xc   : > { %p108_p1 = scmp.gt.s32.totalorder %s14206_s19, 0  ;;  %p14207_p2 = scmp.lt.s32.totalorder %s14206_s19, 13 }
   0xd   : > { %s25966_s17 = smov (%p33_p0, %s32_s17), 0  ;;  %s25968_s18 = smov (!%p33_p0, %s35_s18), %s20043_s15 }
   0xe   : > { %25626 = sst [smem:[#allocation13_spill]] %s25966_s17  ;;  %s25970_s19 = smov (!%p108_p1, %s14206_s19), 0 }
   0xf   : > { %p37_p3 = scmp.ge.s32.totalorder %s25968_s18, 2  ;;  %s14212_s20 = sadd.s32 4294967295, %s25966_s17 }
  0x10   : > { %s25972_s19 = smov (!%p14207_p2, %s25970_s19), 13  ;;  %p113_p4 = scmp.gt.s32.totalorder %s14212_s20, 0 }
  0x11   : > { %s25974_s18 = smov (%p37_p3, %s25968_s18), 0  ;;  %p14213_p5 = scmp.lt.s32.totalorder %s14212_s20, 13 }
  0x12   : > { %25627 = sst [smem:[#allocation14_spill]] %s25974_s18  ;;  %s120_s21 = sadd.s32 1, %s20027_s11 }
  0x13   : > { %p127_p6 = scmp.ne.s32.totalorder %s20027_s11, %s20023_s10  ;;  %s25976_s20 = smov (!%p113_p4, %s14212_s20), 0 }
  0x14   : > { %p128_p7 = scmp.eq.s32.totalorder %s20047_s16, 0  ;;  %s25978_s20 = smov (!%p14213_p5, %s25976_s20), 13 }
  0x15   : > { %p19807_p9 = scmp.lt.s32.totalorder %s20047_s16, 32  ;;  %s117_s22 = ssub.s32 %s25972_s19, %s25978_s20 }
  0x16   : > { %p129_p8 = por %p128_p7, %p127_p6  ;;  %s361_s23 = sand.u32 1, %s20047_s16  }
  0x17   : > { %p118_p10 = scmp.eq.s32.totalorder %s117_s22, 0  ;;  %s363_s24 = sand.u32 1, %s20027_s11  }
  0x18   : > { %s25414_s25 = smul.u32 9216, %s25972_s19  ;;  %s25629_s3 = sld [smem:[#allocation106_spill]] }
  0x19   : > { %s20168_s26 = scalar_select %p118_p10, %s20027_s11, %s120_s21  }
  0x1a   : > { %s20170_s27 = smul.u32 576, %s363_s24  ;;  %p20179_p11 = pnand %p19807_p9, %p129_p8 }
  0x1b   : > { %25628 = sst [smem:[#allocation15_spill]] %s20168_s26  ;;  %s20186_s24 = scalar_lea.sflag [#allocation7], %s361_s23 }
  0x1c   : > { %s365_s21 = scalar_lea.vmem [#allocation6], %s20170_s27  ;;  %p19891_p13 = pneg %p20179_p11 }
  0x1d   : > { %s377_s22 = sshll.u32 %s365_s21, 4  ;;  %s20184_s22 = int_to_ptr.vmem [resolvable:$true] %s377_s22 }
  0x1e   : > { %s20177_s18 = scalar_lea.hbm %s25629_s3, %s25414_s25  ;;  %s19894_s17 = scalar_lea.hbm %s25629_s3, 129024 }
  0x1f   : > { %s19889_s28 = scalar_lea.hbm %s20177_s18, 9216  ;;  %p19895_p2 = scmp.lt.u32.totalorder %s20177_s18, %s25629_s3 }
  0x20   : > { %p19890_p12 = scmp.ne.s32.totalorder %s20177_s18, %s19889_s28  ;;  %p19896_p3 = scmp.lt.u32.totalorder %s19894_s17, %s19889_s28 }
  0x21   : > { %p19898_p5 = scmp.lt.u32.totalorder %s19889_s28, %s20177_s18 }
  0x22   : > { %p19892_p0 = pnand %p19891_p13, %p19890_p12  ;;  %p19897_p4 = por %p19896_p3, %p19895_p2 }
  0x24   : > { %p19893_p1 = pneg %p19892_p0  ;;  %p19899_p6 = por %p19898_p5, %p19897_p4 }
  0x26   : > { %p19900_p7 = pnand %p19899_p6, %p19893_p1 }
  0x28   : > { %19903 = shalt.err (!%p19900_p7)
}
  0x29   : > { %s19904_s23 = scalar_lea.vmem %s20184_s22, 9216  ;;  %s20049_s25 = smov [#allocation6]  }
  0x2a   : > { %p19905_p8 = scmp.ne.s32.totalorder %s20184_s22, %s19904_s23  ;;  %s19909_s21 = sshll.u32 %s20049_s25, 4  ;;  %s19910_s21 = int_to_ptr.vmem [resolvable:$false] %s19909_s21 }
  0x2b   : > { %s19911_s14 = scalar_lea.vmem %s19910_s21, 18432  ;;  %p19912_p12 = scmp.lt.s32.totalorder %s20184_s22, %s19910_s21 }
  0x2c   : > { %p19907_p9 = pnand %p19905_p8, %p19891_p13  ;;  %p19913_p0 = scmp.lt.s32.totalorder %s19911_s14, %s19904_s23 }
  0x2e   : > { %p19908_p10 = pneg %p19907_p9  ;;  %p19914_p2 = por %p19913_p0, %p19912_p12 }
  0x30   : > { %p19915_p3 = pnand %p19914_p2, %p19908_p10 }
  0x32   : > { %19918 = shalt.err (!%p19915_p3)
}
  0x33   : > { %s25419_s15 = smov 128   ;;  %s25420_s17 = smov 8  }
  0x34   : > { %19802 = dma.hbm_to_vmem [thread:$0]  (!%p20179_p11), %s20177_s18, 9216, %s20184_s22, %s20186_s24, %s25419_s15, %s25419_s15, %s25420_s17  }
  0x35   : > { %s25418_s28 = sadd.s32 4294967295, %s20047_s16   ;;  %p133_p1 = scmp.ne.s32.totalorder %s20023_s10, %s20019_s30 }
  0x36   : > { %p20222_p4 = scmp.eq.s32.totalorder %s25418_s28, 0  ;;  %p14254_p5 = scmp.ge.s32.totalorder %s20047_s16, 1 }
  0x37   : > { %p320_p6 = scmp.lt.s32.totalorder %s20047_s16, 33  ;;  %s20052_s30 = smov [#allocation4]  }
  0x38   : > { %s25631_s29 = scalar_select %p20222_p4, 1, 0 }
  0x39   : > { %p20230_p7 = por %p20222_p4, %p133_p1  ;;  %p20234_p8 = pnand %p14254_p5, %p320_p6 }
  0x3a   : > { %s336_s18 = sshll.u32 %s20052_s30, 4  ;;  %s25634_s22 = smul.u32 9216, %s25972_s19  ;;  %s20240_s18 = int_to_ptr.vmem [resolvable:$true] %s336_s18 }
  0x3b   : > { %s25632_s23 = scalar_select %p20230_p7, 1, 0 }
  0x3c   : > { %s25633_s25 = scalar_select %p20234_p8, 1, 0 }
  0x3d   : > { %p19795_p9 = pneg %p20234_p8  ;;  %s25635_s5 = sld [smem:[#allocation107_spill]] }
  0x3e   : > { %s407_s15 = scalar_lea.vmem [#allocation8], %s20170_s27 }
  0x3f   : > { %s419_s17 = sshll.u32 %s407_s15, 4  ;;  %p20252_p10 = pnand %p19795_p9, %p20222_p4  ;;  %s20256_s17 = int_to_ptr.vmem [resolvable:$true] %s419_s17 }
  0x43   : > { %s20247_s28 = scalar_lea.hbm %s25635_s5, %s25634_s22  ;;  %s19924_s21 = scalar_lea.hbm %s25635_s5, 129024 }
  0x44   : > { %s19919_s30 = scalar_lea.hbm %s20247_s28, 9216  ;;  %p19925_p3 = scmp.lt.u32.totalorder %s20247_s28, %s25635_s5 }
  0x45   : > { %p19920_p12 = scmp.ne.s32.totalorder %s20247_s28, %s19919_s30  ;;  %p19926_p1 = scmp.lt.u32.totalorder %s19924_s21, %s19919_s30 }
  0x46   : > { %p19928_p6 = scmp.lt.u32.totalorder %s19919_s30, %s20247_s28 }
  0x47   : > { %p19922_p0 = pnand %p19920_p12, %p19891_p13  ;;  %p19927_p5 = por %p19926_p1, %p19925_p3 }
  0x49   : > { %p19923_p2 = pneg %p19922_p0  ;;  %p19929_p9 = por %p19928_p6, %p19927_p5 }
  0x4b   : > { %p19930_p7 = pnand %p19929_p9, %p19923_p2 }
  0x4d   : > { %19933 = shalt.err (!%p19930_p7)
}
  0x4e   : > { %s19934_s15 = scalar_lea.vmem %s20256_s17, 9216  ;;  %s20053_s19 = smov [#allocation8]  }
  0x4f   : > { %p19935_p12 = scmp.ne.s32.totalorder %s20256_s17, %s19934_s15  ;;  %s19939_s22 = sshll.u32 %s20053_s19, 4  ;;  %s19940_s22 = int_to_ptr.vmem [resolvable:$false] %s19939_s22 }
  0x50   : > { %s19941_s14 = scalar_lea.vmem %s19940_s22, 18432  ;;  %p19942_p8 = scmp.lt.s32.totalorder %s20256_s17, %s19940_s22 }
  0x51   : > { %p19937_p0 = pnand %p19935_p12, %p19891_p13  ;;  %p19943_p3 = scmp.lt.s32.totalorder %s19941_s14, %s19934_s15 }
  0x53   : > { %p19938_p4 = pneg %p19937_p0  ;;  %p19944_p1 = por %p19943_p3, %p19942_p8 }
  0x55   : > { %p19945_p5 = pnand %p19944_p1, %p19938_p4 }
  0x57   : > { %19948 = shalt.err (!%p19945_p5)
}
  0x58   : > { %s25637_s30 = smov 8   ;;  %s25638_s21 = smov 128  }
  0x59   : > { %19805 = dma.hbm_to_vmem [thread:$0]  (!%p20179_p11), %s20247_s28, 9216, %s20256_s17, %s20186_s24, %s25638_s21, %s25638_s21, %s25637_s30  }
  0x5a   : > { %s19949_s19 = scalar_lea.hbm %s25406_s2, 16  ;;  %p19951_p4 = pneg %p20252_p10 }
  0x5b   : > { %p19950_p13 = scmp.ne.s32.totalorder %s25406_s2, %s19949_s19  ;;  %p19956_p2 = scmp.lt.u32.totalorder %s19949_s19, %s25406_s2 }
  0x5d   : > { %p19952_p7 = pnand %p19951_p4, %p19950_p13 }
  0x5f   : > { %p19953_p8 = pneg %p19952_p7 }
  0x61   : > { %p19958_p6 = pnand %p19956_p2, %p19953_p8 }
  0x63   : > { %19961 = shalt.err (!%p19958_p6)
}
  0x64   : > { %s19962_s5 = scalar_lea.vmem %s20240_s18, 16  ;;  %s19969_s26 = scalar_lea.vmem %s20240_s18, 32 }
  0x65   : > { %p19963_p11 = scmp.ne.s32.totalorder %s20240_s18, %s19962_s5  ;;  %p19970_p0 = scmp.lt.s32.totalorder %s20240_s18, %s20240_s18 }
  0x66   : > { %p19971_p3 = scmp.lt.s32.totalorder %s19969_s26, %s19962_s5 }
  0x67   : > { %p19965_p9 = pnand %p19963_p11, %p19951_p4 }
  0x68   : > { %p19972_p1 = por %p19971_p3, %p19970_p0 }
  0x69   : > { %p19966_p12 = pneg %p19965_p9 }
  0x6b   : > { %p19973_p5 = pnand %p19972_p1, %p19966_p12 }
  0x6d   : > { %19976 = shalt.err (!%p19973_p5)
}
  0x6e   : > { %19798 = dma.hbm_to_vmem [thread:$0]  (!%p20252_p10), %s25406_s2, 16, %s20240_s18, [#allocation5]  }
  0x6f   : > { %p25639_p13 = scmp.ne.s32.totalorder %s25633_s25, 0 }
  0x70   : > { %p25640_p4 = scmp.ne.s32.totalorder (!%p25639_p13), %s25631_s29, 0 }
  0x71   : > { %447 = sbr.rel (%p25639_p13) target bundleno = 3005 (0xbbd), region = 56 }
  0x78   : > { %20010 = dma.done.wait (%p25640_p4), [#allocation5], 16  }
  0x79   : > { %20012 = vsyncadd (%p25640_p4), [#allocation5], 4294967280  ;;  %s25641_s28 = sadd.s32 4294967295, %s20047_s16   ;;  %s455_s3 = sand.u32 1, %s20023_s10  }
  0x7a   : > { %s453_s14 = sand.u32 1, %s25641_s28   ;;  %s19785_s30 = smul.u32 576, %s455_s3 }
  0x7b   : > { %s454_s21 = scalar_lea.sflag [#allocation7], %s453_s14  ;;  %p25642_p10 = scmp.ne.s32.totalorder %s25632_s23, 0 }
  0x7c   : > { %s20316_s27 = scalar_lea.vmem [#allocation6], %s19785_s30 }
  0x7d   : > { %20014 = dma.done.wait (%p25642_p10), %s454_s21, 18432  }
  0x7e   : > { %20016 = vsyncadd (%p25642_p10), %s454_s21, 4294948864  ;;  %p526_p7 = scmp.lt.s32.totalorder %s20035_s13, 1  ;;  %s14274_s29 = sadd.s32 4294967295, %s20031_s12 }
  0x7f   : > { %p537_p8 = scmp.gt.s32.totalorder %s14274_s29, 0  ;;  %p14275_p2 = scmp.lt.s32.totalorder %s14274_s29, 13 }
  0x80   : > { %s25980_s13 = smov (!%p526_p7, %s20035_s13), 1  ;;  %s20345_s3 = scalar_lea.vmem [#allocation8], %s19785_s30 }
  0x81   : > { %s19786_s25 = smul.u32 432, %s25980_s13  ;;  %s14286_s18 = sshll.u32 %s25980_s13, 2 }
  0x82   : > { %s25982_s29 = smov (!%p537_p8, %s14274_s29), 0  ;;  %s20333_s23 = scalar_lea.vmem %s25413_s9, %s14286_s18 }
  0x83   : > { %s20328_s20 = scalar_lea.vmem %s25404_s0, %s19786_s25  ;;  %s25984_s29 = smov (!%p14275_p2, %s25982_s29), 13 }
  0x84   : > { %p541_p6 = scmp.lt.s32.totalorder %s25984_s29, 13  ;;  %p14287_p11 = scmp.ne.s32.totalorder %s20031_s12, 0 }
  0x86   : > { %s25986_s29 = smov (!%p541_p6, %s25984_s29), 13  ;;  %574 = sbr.rel (%p14287_p11) target bundleno = 650 (0x28a), region = 72 }
  0x87   : > { %s543_s13 = scalar_lea.vmem %s25408_s4, %s25986_s29  ;;  %s561_s14 = scalar_lea.vmem %s25410_s6, %s25986_s29 }
  0x8d   : > { %v14288_v0 = vld [vmem:[%s25405_s1 + $0x8] sm:$0xff]  ;;  %v20354_v1 = vld [vmem:[%s25405_s1 + $0x20] sm:$0xff]  ;;  %vm752_vm0 = vcmask 64512   ;;  %v20372_v8 = vld [vmem:[%s20328_s20 + $0x31] sm:$0xff]  ;;  %vm575_vm1 = vcmask 523264   ;;  %vm578_vm2 = vcmask 517120  }
  0x8e   : > { %v718_v2 = vld [vmem:[%s20328_s20 + $0x1] sm:$0xff]  ;;  %16801 = vmatprep.subr.mxu1 %v14288_v0  ;;  %17001 = vmatprep.subr.mxu0 %v20354_v1  ;;  %v14451_v3 = vld [vmem:[%s20328_s20 + $0x19] sm:$0xff]  ;;  %v719_v4 = vld [vmem:[%s20328_s20 + $0x9] sm:$0xff] }
  0x8f   : > { %v717_v5 = vld [vmem:[%s25405_s1] sm:$0xff]  ;;  %16802 = vmatpush3.msra.mxu1 %v14288_v0  ;;  %16803 = vmatprep.mubr.msk.f32.mxu1 %vm752_vm0, %v718_v2  ;;  %v14548_v7 = vld [vmem:[%s25405_s1 + $0x28] sm:$0xff]  ;;  %v14613_v11 = vld [vmem:[%s25405_s1 + $0x30] sm:$0xff] }
  0x90   : > { %v14452_v6 = vld [vmem:[%s20328_s20 + $0x21] sm:$0xff]  ;;  %17002 = vmatpush3.msra.mxu0 %v20354_v1  ;;  %17003 = vmatprep.mubr.msk.f32.mxu0 %vm752_vm0, %v14451_v3  ;;  %v20376_v9 = vld [vmem:[%s20328_s20 + $0x39] sm:$0xff]  ;;  %v20382_v10 = vld [vmem:[%s20328_s20 + $0x49] sm:$0xff] }
  0x91   : > { %16804 = vmatmul.mubr.msk.f32.vlgmr.msra.gmra.mrb[0].mxu1 %vm752_vm0, %v719_v4  ;;  %16851 = vmatprep.subr.mxu1 %v717_v5  ;;  %v20395_v12 = vld [vmem:[%s20328_s20 + $0x51] sm:$0xff]  ;;  %v20398_v13 = vld [vmem:[%s20328_s20 + $0x61] sm:$0xff]  ;;  %v20409_v14 = vld [vmem:[%s20328_s20 + $0x69] sm:$0xff] }
  0x92   : > { %17004 = vmatmul.mubr.msk.f32.vlgmr.msra.gmra.mrb[0].mxu0 %vm752_vm0, %v14452_v6  ;;  %17051 = vmatprep.subr.mxu0 %v14548_v7  ;;  %v20412_v15 = vld [vmem:[%s20328_s20 + $0x79] sm:$0xff]  ;;  %v20423_v16 = vld [vmem:[%s20328_s20 + $0x81] sm:$0xff]  ;;  %v20428_v17 = vld [vmem:[%s25405_s1 + $0x10] sm:$0xff] }
  0x93   : > { %16852 = vmatpush3.msra.mxu1 %v717_v5  ;;  %17052 = vmatpush3.msra.mxu0 %v14548_v7  ;;  %v20431_v18 = vld [vmem:[%s20328_s20 + $0x91] sm:$0xff]  ;;  %v20443_v19 = vld [vmem:[%s20328_s20 + $0x99] sm:$0xff]  ;;  %v20446_v20 = vld [vmem:[%s20328_s20 + $0xa9] sm:$0xff] }
  0x94   : > { %16806 = vmatprep.mubr.msk.f32.mxu1 %vm752_vm0, %v14451_v3  ;;  %17006 = vmatprep.mubr.msk.f32.mxu0 %vm752_vm0, %v20372_v8  ;;  %v20457_v21 = vld [vmem:[%s20328_s20 + $0xb1] sm:$0xff]  ;;  %v20460_v22 = vld [vmem:[%s20328_s20 + $0xc1] sm:$0xff]  ;;  %v20471_v23 = vld [vmem:[%s20328_s20 + $0xc9] sm:$0xff] }
  0x95   : > { %16807 = vmatmul.mubr.msk.f32.gmra.mrb[2].mxu1 %vm752_vm0, %v14452_v6  ;;  %17101 = vmatprep.subr.mxu0 %v14613_v11  ;;  %v20474_v24 = vld [vmem:[%s20328_s20 + $0x1a] sm:$0xff]  ;;  %v20485_v25 = vld [vmem:[%s20328_s20 + $0x22] sm:$0xff]  ;;  %v20491_v27 = vld [vmem:[%s20328_s20 + $0x32] sm:$0xff] }
  0x96   : > { %17007 = vmatmul.mubr.msk.f32.gmra.mrb[2].mxu0 %vm752_vm0, %v20376_v9  ;;  %16809 = vmatprep.mubr.msk.f32.mxu1 %vm752_vm0, %v20372_v8  ;;  %v20488_v26 = vld [vmem:[%s20328_s20 + $0xd9] sm:$0xff]  ;;  %v20505_v29 = vld [vmem:[%s20328_s20 + $0xe1] sm:$0xff]  ;;  %v20513_v31 = vld [vmem:[%s20328_s20 + $0xf1] sm:$0xff] }
  0x97   : > { %17009 = vmatprep.mubr.msk.f32.mxu0 %vm752_vm0, %v20382_v10  ;;  %16901 = vmatprep.subr.mxu1 %v20428_v17  ;;  %v20498_v28 = vld [vmem:[%s25405_s1 + $0x38] sm:$0xff]  ;;  %25643 = vst [vmem:[#allocation16_spill] sm:$0xff] %v20505_v29  ;;  %25644 = vst [vmem:[#allocation17_spill] sm:$0xff] %v20513_v31  ;;  %v20516_v32 = vld [vmem:[%s20328_s20 + $0x4a] sm:$0xff] }
  0x98   : > { %v20510_v30 = vld [vmem:[%s20328_s20 + $0x3a] sm:$0xff]  ;;  %v20531_v34 = vld [vmem:[%s20328_s20 + $0x52] sm:$0xff]  ;;  %v20534_v35 = vld [vmem:[%s20328_s20 + $0x109] sm:$0xff] }
  0x99   : > { %16810 = vmatmul.mubr.msk.f32.gmra.mrb[4].mxu1 %vm752_vm0, %v20376_v9  ;;  %v20526_v33 = vld [vmem:[%s20328_s20 + $0xf9] sm:$0xff]  ;;  %25646 = vst [vmem:[#allocation19_spill] sm:$0xff] %v20534_v35  ;;  %v20537_v36 = vld [vmem:[%s20328_s20 + $0x62] sm:$0xff]  ;;  %v20546_v37 = vld [vmem:[%s20328_s20 + $0x111] sm:$0xff] }
  0x9a   : > { %17010 = vmatmul.mubr.msk.f32.gmra.mrb[4].mxu0 %vm752_vm0, %v20395_v12  ;;  %16812 = vmatprep.mubr.msk.f32.mxu1 %vm752_vm0, %v20382_v10  ;;  %25645 = vst [vmem:[#allocation18_spill] sm:$0xff] %v20526_v33  ;;  %25647 = vst [vmem:[#allocation20_spill] sm:$0xff] %v20546_v37  ;;  %v20551_v38 = vld [vmem:[%s20328_s20 + $0x6a] sm:$0xff]  ;;  %v20554_v39 = vld [vmem:[%s20328_s20 + $0x121] sm:$0xff] }
  0x9b   : > { %17012 = vmatprep.mubr.msk.f32.mxu0 %vm752_vm0, %v20398_v13  ;;  %25648 = vst [vmem:[#allocation21_spill] sm:$0xff] %v20554_v39  ;;  %v20557_v40 = vld [vmem:[%s20328_s20 + $0x7a] sm:$0xff]  ;;  %v20566_v41 = vld [vmem:[%s20328_s20 + $0x129] sm:$0xff]  ;;  %v20577_v44 = vld [vmem:[%s20328_s20 + $0x92] sm:$0xff] }
  0x9c   : > { %25649 = vst [vmem:[#allocation22_spill] sm:$0xff] %v20566_v41  ;;  %v20571_v42 = vld [vmem:[%s20328_s20 + $0x82] sm:$0xff]  ;;  %v20574_v43 = vld [vmem:[%s20328_s20 + $0x139] sm:$0xff]  ;;  %v20594_v47 = vld [vmem:[%s20328_s20 + $0x151] sm:$0xff] }
  0x9d   : > { %16813 = vmatmul.mubr.msk.f32.gmra.mrb[6].mxu1 %vm752_vm0, %v20395_v12  ;;  %25650 = vst [vmem:[#allocation23_spill] sm:$0xff] %v20574_v43  ;;  %v20586_v45 = vld [vmem:[%s20328_s20 + $0x141] sm:$0xff]  ;;  %25652 = vst [vmem:[#allocation25_spill] sm:$0xff] %v20594_v47  ;;  %v20597_v48 = vld [vmem:[%s20328_s20 + $0xaa] sm:$0xff] }
  0x9e   : > { %17013 = vmatmul.mubr.msk.f32.gmra.mrb[6].mxu0 %vm752_vm0, %v20409_v14  ;;  %16815 = vmatprep.mubr.msk.f32.mxu1 %vm752_vm0, %v20398_v13  ;;  %25651 = vst [vmem:[#allocation24_spill] sm:$0xff] %v20586_v45  ;;  %v20591_v46 = vld [vmem:[%s20328_s20 + $0x9a] sm:$0xff]  ;;  %v20611_v50 = vld [vmem:[%s20328_s20 + $0xb2] sm:$0xff]  ;;  %v20614_v51 = vld [vmem:[%s20328_s20 + $0x169] sm:$0xff] }
  0x9f   : > { %17015 = vmatprep.mubr.msk.f32.mxu0 %vm752_vm0, %v20412_v15  ;;  %v20606_v49 = vld [vmem:[%s20328_s20 + $0x159] sm:$0xff]  ;;  %25654 = vst [vmem:[#allocation27_spill] sm:$0xff] %v20614_v51  ;;  %v20617_v52 = vld [vmem:[%s20328_s20 + $0xc2] sm:$0xff]  ;;  %v20626_v53 = vld [vmem:[%s20328_s20 + $0x171] sm:$0xff] }
  0xa0   : > { %25653 = vst [vmem:[#allocation26_spill] sm:$0xff] %v20606_v49  ;;  %25655 = vst [vmem:[#allocation28_spill] sm:$0xff] %v20626_v53  ;;  %v20631_v54 = vld [vmem:[%s20328_s20 + $0xca] sm:$0xff]  ;;  %v685_v55 = vld [vmem:[%s20328_s20] sm:$0xff] }
  0xa1   : > { %16816 = vmatmul.mubr.msk.f32.gmra.mrb[8].mxu1 %vm752_vm0, %v20409_v14  ;;  %v20635_v56 = vld [vmem:[%s20328_s20 + $0xda] sm:$0xff]  ;;  %v686_v57 = vld [vmem:[%s20328_s20 + $0x8] sm:$0xff]  ;;  %v20652_v60 = vld [vmem:[%s20328_s20 + $0xf2] sm:$0xff] }
  0xa2   : > { %17016 = vmatmul.mubr.msk.f32.gmra.mrb[8].mxu0 %vm752_vm0, %v20423_v16  ;;  %16818 = vmatprep.mubr.msk.f32.mxu1 %vm752_vm0, %v20412_v15  ;;  %v20646_v58 = vld [vmem:[%s20328_s20 + $0xe2] sm:$0xff]  ;;  %v20649_v59 = vld [vmem:[%s20328_s20 + $0x18] sm:$0xff]  ;;  %v20674_v0 = vld [vmem:[%s20328_s20 + $0x30] sm:$0xff] }
  0xa3   : > { %17018 = vmatprep.mubr.msk.f32.mxu0 %vm752_vm0, %v20431_v18  ;;  %25656 = vst [vmem:[#allocation29_spill] sm:$0xff] %v20649_v59  ;;  %v20658_v61 = vld [vmem:[%s25405_s1 + $0x18] sm:$0xff]  ;;  %v20664_v62 = vld [vmem:[%s20328_s20 + $0x20] sm:$0xff]  ;;  %25658 = vst [vmem:[#allocation31_spill] sm:$0xff] %v20674_v0 }
  0xa4   : > { %25657 = vst [vmem:[#allocation30_spill] sm:$0xff] %v20664_v62  ;;  %v20671_v63 = vld [vmem:[%s20328_s20 + $0xfa] sm:$0xff]  ;;  %v20677_v2 = vld [vmem:[%s20328_s20 + $0x10a] sm:$0xff]  ;;  %v20692_v4 = vld [vmem:[%s20328_s20 + $0x112] sm:$0xff] }
  0xa5   : > { %16819 = vmatmul.mubr.msk.f32.gmra.mrb[10].mxu1 %vm752_vm0, %v20423_v16  ;;  %v20687_v3 = vld [vmem:[%s20328_s20 + $0x38] sm:$0xff]  ;;  %v20695_v5 = vld [vmem:[%s20328_s20 + $0x48] sm:$0xff]  ;;  %v20707_v7 = vld [vmem:[%s20328_s20 + $0x50] sm:$0xff] }
  0xa6   : > { %17019 = vmatmul.mubr.msk.f32.gmra.mrb[10].mxu0 %vm752_vm0, %v20443_v19  ;;  %16821 = vmatprep.mubr.msk.f32.mxu1 %vm752_vm0, %v20431_v18  ;;  %25659 = vst [vmem:[#allocation32_spill] sm:$0xff] %v20687_v3  ;;  %25660 = vst [vmem:[#allocation33_spill] sm:$0xff] %v20695_v5  ;;  %v20698_v6 = vld [vmem:[%s20328_s20 + $0x122] sm:$0xff] }
  0xa7   : > { %17021 = vmatprep.mubr.msk.f32.mxu0 %vm752_vm0, %v20446_v20  ;;  %25661 = vst [vmem:[#allocation34_spill] sm:$0xff] %v20707_v7 }
  0xa9   : > { %16822 = vmatmul.mubr.msk.f32.gmra.mrb[12].mxu1 %vm752_vm0, %v20443_v19 }
  0xaa   : > { %17022 = vmatmul.mubr.msk.f32.gmra.mrb[12].mxu0 %vm752_vm0, %v20457_v21  ;;  %16824 = vmatprep.mubr.msk.f32.mxu1 %vm752_vm0, %v20446_v20 }
  0xab   : > { %17024 = vmatprep.mubr.msk.f32.mxu0 %vm752_vm0, %v20460_v22 }
  0xad   : > { %16825 = vmatmul.mubr.msk.f32.gmra.mrb[14].mxu1 %vm752_vm0, %v20457_v21 }
  0xae   : > { %17025 = vmatmul.mubr.msk.f32.gmra.mrb[14].mxu0 %vm752_vm0, %v20471_v23  ;;  %16827 = vmatprep.mubr.msk.f32.mxu1 %vm752_vm0, %v20460_v22 }
  0xaf   : > { %17053 = vmatprep.mubr.msk.f32.mxu0 %vm752_vm0, %v20474_v24 }
  0xb1   : > { %16828 = vmatmul.mubr.msk.f32.gmra.mrb[16].mxu1 %vm752_vm0, %v20471_v23 }
  0xb2   : > { %17054 = vmatmul.mubr.msk.f32.vlgmr.msra.gmra.mrb[0].mxu0 %vm752_vm0, %v20485_v25  ;;  %16830 = vmatprep.mubr.msk.f32.mxu1 %vm752_vm0, %v20488_v26 }
  0xb3   : > { %17102 = vmatpush3.msra.mxu0 %v14613_v11  ;;  %17056 = vmatprep.mubr.msk.f32.mxu0 %vm752_vm0, %v20491_v27  ;;  %v20712_v11 = vld [vmem:[%s20328_s20 + $0x12a] sm:$0xff] }
  0xb4   : > { %17151 = vmatprep.subr.mxu0 %v20498_v28 }
  0xb5   : > { %16831 = vmatmul.mubr.msk.f32.gmra.mrb[18].mxu1 %vm752_vm0, %v20505_v29  ;;  %v20804_v29 = vld [vmem:[%s20328_s20 + $0xc8] sm:$0xff] }
  0xb6   : > { %17057 = vmatmul.mubr.msk.f32.gmra.mrb[2].mxu0 %vm752_vm0, %v20510_v30  ;;  %16833 = vmatprep.mubr.msk.f32.mxu1 %vm752_vm0, %v20513_v31  ;;  %v20792_v31 = vld [vmem:[%s20328_s20 + $0x18a] sm:$0xff] }
  0xb7   : > { %17059 = vmatprep.mubr.msk.f32.mxu0 %vm752_vm0, %v20516_v32  ;;  %25672 = vst [vmem:[#allocation45_spill] sm:$0xff] %v20792_v31 }
  0xb9   : > { %16834 = vmatmul.mubr.msk.f32.gmra.mrb[20].mxu1 %vm752_vm0, %v20526_v33  ;;  %v20778_v33 = vld [vmem:[%s20328_s20 + $0x182] sm:$0xff] }
  0xba   : > { %17060 = vmatmul.mubr.msk.f32.gmra.mrb[4].mxu0 %vm752_vm0, %v20531_v34  ;;  %16836 = vmatprep.mubr.msk.f32.mxu1 %vm752_vm0, %v20534_v35  ;;  %v20775_v35 = vld [vmem:[%s20328_s20 + $0xa8] sm:$0xff]  ;;  %25670 = vst [vmem:[#allocation43_spill] sm:$0xff] %v20778_v33 }
  0xbb   : > { %17062 = vmatprep.mubr.msk.f32.mxu0 %vm752_vm0, %v20537_v36  ;;  %25669 = vst [vmem:[#allocation42_spill] sm:$0xff] %v20775_v35 }
  0xbd   : > { %16837 = vmatmul.mubr.msk.f32.gmra.mrb[22].mxu1 %vm752_vm0, %v20546_v37  ;;  %v20772_v37 = vld [vmem:[%s20328_s20 + $0x172] sm:$0xff] }
  0xbe   : > { %17063 = vmatmul.mubr.msk.f32.gmra.mrb[6].mxu0 %vm752_vm0, %v20551_v38  ;;  %16839 = vmatprep.mubr.msk.f32.mxu1 %vm752_vm0, %v20554_v39  ;;  %v20767_v39 = vld [vmem:[%s20328_s20 + $0x98] sm:$0xff]  ;;  %25668 = vst [vmem:[#allocation41_spill] sm:$0xff] %v20772_v37 }
  0xbf   : > { %17065 = vmatprep.mubr.msk.f32.mxu0 %vm752_vm0, %v20557_v40  ;;  %25667 = vst [vmem:[#allocation40_spill] sm:$0xff] %v20767_v39 }
  0xc1   : > { %16840 = vmatmul.mubr.msk.f32.gmra.mrb[24].mxu1 %vm752_vm0, %v20566_v41  ;;  %v20758_v41 = vld [vmem:[%s20328_s20 + $0x16a] sm:$0xff] }
  0xc2   : > { %17066 = vmatmul.mubr.msk.f32.gmra.mrb[8].mxu0 %vm752_vm0, %v20571_v42  ;;  %16842 = vmatprep.mubr.msk.f32.mxu1 %vm752_vm0, %v20574_v43  ;;  %v20755_v43 = vld [vmem:[%s20328_s20 + $0x90] sm:$0xff] }
  0xc3   : > { %17068 = vmatprep.mubr.msk.f32.mxu0 %vm752_vm0, %v20577_v44  ;;  %25666 = vst [vmem:[#allocation39_spill] sm:$0xff] %v20755_v43 }
  0xc5   : > { %16843 = vmatmul.mubr.msk.f32.gmra.mrb[26].mxu1 %vm752_vm0, %v20586_v45  ;;  %v20752_v45 = vld [vmem:[%s20328_s20 + $0x15a] sm:$0xff] }
  0xc6   : > { %17069 = vmatmul.mubr.msk.f32.gmra.mrb[10].mxu0 %vm752_vm0, %v20591_v46  ;;  %16845 = vmatprep.mubr.msk.f32.mxu1 %vm752_vm0, %v20594_v47  ;;  %v20747_v47 = vld [vmem:[%s20328_s20 + $0x80] sm:$0xff] }
  0xc7   : > { %17071 = vmatprep.mubr.msk.f32.mxu0 %vm752_vm0, %v20597_v48  ;;  %25665 = vst [vmem:[#allocation38_spill] sm:$0xff] %v20747_v47 }
  0xc9   : > { %16846 = vmatmul.mubr.msk.f32.gmra.mrb[28].mxu1 %vm752_vm0, %v20606_v49  ;;  %v20738_v49 = vld [vmem:[%s20328_s20 + $0x152] sm:$0xff] }
  0xca   : > { %17072 = vmatmul.mubr.msk.f32.gmra.mrb[12].mxu0 %vm752_vm0, %v20611_v50  ;;  %16848 = vmatprep.mubr.msk.f32.mxu1 %vm752_vm0, %v20614_v51  ;;  %v20735_v51 = vld [vmem:[%s20328_s20 + $0x78] sm:$0xff] }
  0xcb   : > { %17074 = vmatprep.mubr.msk.f32.mxu0 %vm752_vm0, %v20617_v52  ;;  %25664 = vst [vmem:[#allocation37_spill] sm:$0xff] %v20735_v51 }
  0xcd   : > { %16849 = vmatmul.mubr.msk.f32.gmra.mrb[30].mxu1 %vm752_vm0, %v20626_v53  ;;  %v20732_v53 = vld [vmem:[%s20328_s20 + $0x142] sm:$0xff] }
  0xce   : > { %17075 = vmatmul.mubr.msk.f32.gmra.mrb[14].mxu0 %vm752_vm0, %v20631_v54  ;;  %16853 = vmatprep.mubr.msk.f32.mxu1 %vm752_vm0, %v685_v55  ;;  %v20718_v55 = vld [vmem:[%s20328_s20 + $0x13a] sm:$0xff] }
  0xcf   : > { %17077 = vmatprep.mubr.msk.f32.mxu0 %vm752_vm0, %v20635_v56 }
  0xd1   : > { %16854 = vmatmul.mubr.msk.f32.vlgmr.msra.gmra.mrb[0].mxu1 %vm752_vm0, %v686_v57  ;;  %v20727_v57 = vld [vmem:[%s20328_s20 + $0x68] sm:$0xff] }
  0xd2   : > { %17078 = vmatmul.mubr.msk.f32.gmra.mrb[16].mxu0 %vm752_vm0, %v20646_v58  ;;  %16902 = vmatpush3.msra.mxu1 %v20428_v17  ;;  %v20715_v17 = vld [vmem:[%s20328_s20 + $0x60] sm:$0xff]  ;;  %25663 = vst [vmem:[#allocation36_spill] sm:$0xff] %v20727_v57 }
  0xd3   : > { %16856 = vmatprep.mubr.msk.f32.mxu1 %vm752_vm0, %v20649_v59  ;;  %17080 = vmatprep.mubr.msk.f32.mxu0 %vm752_vm0, %v20652_v60  ;;  %25662 = vst [vmem:[#allocation35_spill] sm:$0xff] %v20715_v17  ;;  %v20795_v59 = vld [vmem:[%s20328_s20 + $0xc0] sm:$0xff] }
  0xd4   : > { %16951 = vmatprep.subr.mxu1 %v20658_v61  ;;  %25673 = vst [vmem:[#allocation46_spill] sm:$0xff] %v20795_v59 }
  0xd5   : > { %16857 = vmatmul.mubr.msk.f32.gmra.mrb[2].mxu1 %vm752_vm0, %v20664_v62  ;;  %v20787_v62 = vld [vmem:[%s20328_s20 + $0xb0] sm:$0xff] }
  0xd6   : > { %17081 = vmatmul.mubr.msk.f32.gmra.mrb[18].mxu0 %vm752_vm0, %v20671_v63  ;;  %16859 = vmatprep.mubr.msk.f32.mxu1 %vm752_vm0, %v20674_v0  ;;  %25671 = vst [vmem:[#allocation44_spill] sm:$0xff] %v20787_v62 }
  0xd7   : > { %17083 = vmatprep.mubr.msk.f32.mxu0 %vm752_vm0, %v20677_v2 }
  0xd9   : > { %16860 = vmatmul.mubr.msk.f32.gmra.mrb[4].mxu1 %vm752_vm0, %v20687_v3 }
  0xda   : > { %17084 = vmatmul.mubr.msk.f32.gmra.mrb[20].mxu0 %vm752_vm0, %v20692_v4  ;;  %16862 = vmatprep.mubr.msk.f32.mxu1 %vm752_vm0, %v20695_v5 }
  0xdb   : > { %17086 = vmatprep.mubr.msk.f32.mxu0 %vm752_vm0, %v20698_v6 }
  0xdd   : > { %16863 = vmatmul.mubr.msk.f32.gmra.mrb[6].mxu1 %vm752_vm0, %v20707_v7 }
  0xde   : > { %17087 = vmatmul.mubr.msk.f32.gmra.mrb[22].mxu0 %vm752_vm0, %v20712_v11  ;;  %16865 = vmatprep.mubr.msk.f32.mxu1 %vm752_vm0, %v20715_v17 }
  0xdf   : > { %17089 = vmatprep.mubr.msk.f32.mxu0 %vm752_vm0, %v20718_v55 }
  0xe1   : > { %16866 = vmatmul.mubr.msk.f32.gmra.mrb[8].mxu1 %vm752_vm0, %v20727_v57 }
  0xe2   : > { %17090 = vmatmul.mubr.msk.f32.gmra.mrb[24].mxu0 %vm752_vm0, %v20732_v53  ;;  %16868 = vmatprep.mubr.msk.f32.mxu1 %vm752_vm0, %v20735_v51 }
  0xe3   : > { %17092 = vmatprep.mubr.msk.f32.mxu0 %vm752_vm0, %v20738_v49 }
  0xe5   : > { %16869 = vmatmul.mubr.msk.f32.gmra.mrb[10].mxu1 %vm752_vm0, %v20747_v47 }
  0xe6   : > { %17093 = vmatmul.mubr.msk.f32.gmra.mrb[26].mxu0 %vm752_vm0, %v20752_v45  ;;  %16871 = vmatprep.mubr.msk.f32.mxu1 %vm752_vm0, %v20755_v43 }
  0xe7   : > { %17095 = vmatprep.mubr.msk.f32.mxu0 %vm752_vm0, %v20758_v41 }
  0xe9   : > { %16872 = vmatmul.mubr.msk.f32.gmra.mrb[12].mxu1 %vm752_vm0, %v20767_v39 }
  0xea   : > { %17096 = vmatmul.mubr.msk.f32.gmra.mrb[28].mxu0 %vm752_vm0, %v20772_v37  ;;  %16874 = vmatprep.mubr.msk.f32.mxu1 %vm752_vm0, %v20775_v35  ;;  %v20816_v37 = vld [vmem:[%s25405_s1 + $0x40] sm:$0xff] }
  0xeb   : > { %17098 = vmatprep.mubr.msk.f32.mxu0 %vm752_vm0, %v20778_v33  ;;  %v20809_v33 = vld [vmem:[%s20328_s20 + $0xd8] sm:$0xff] }
  0xed   : > { %16875 = vmatmul.mubr.msk.f32.gmra.mrb[14].mxu1 %vm752_vm0, %v20787_v62 }
  0xee   : > { %17099 = vmatmul.mubr.msk.f32.gmra.mrb[30].mxu0 %vm752_vm0, %v20792_v31  ;;  %16877 = vmatprep.mubr.msk.f32.mxu1 %vm752_vm0, %v20795_v59  ;;  %v20823_v31 = vld [vmem:[%s20328_s20 + $0xe0] sm:$0xff] }
  0xef   : > { %17103 = vmatprep.mubr.msk.f32.mxu0 %vm752_vm0, %v20674_v0  ;;  %v20829_v0 = vld [vmem:[%s20328_s20 + $0xf0] sm:$0xff] }
  0xf1   : > { %16878 = vmatmul.mubr.msk.f32.gmra.mrb[16].mxu1 %vm752_vm0, %v20804_v29 }
  0xf2   : > { %17104 = vmatmul.mubr.msk.f32.vlgmr.msra.gmra.mrb[0].mxu0 %vm752_vm0, %v20687_v3  ;;  %16880 = vmatprep.mubr.msk.f32.mxu1 %vm752_vm0, %v20809_v33  ;;  %v20839_v3 = vld [vmem:[%s20328_s20 + $0xf8] sm:$0xff] }
  0xf3   : > { %17152 = vmatpush3.msra.mxu0 %v20498_v28  ;;  %17106 = vmatprep.mubr.msk.f32.mxu0 %vm752_vm0, %v20695_v5  ;;  %v20844_v28 = vld [vmem:[%s20328_s20 + $0x108] sm:$0xff]  ;;  %v20858_v5 = vld [vmem:[%s20328_s20 + $0x120] sm:$0xff] }
  0xf4   : > { %17201 = vmatprep.subr.mxu0 %v20816_v37 }
  0xf5   : > { %16881 = vmatmul.mubr.msk.f32.gmra.mrb[18].mxu1 %vm752_vm0, %v20823_v31 }
  0xf6   : > { %17107 = vmatmul.mubr.msk.f32.gmra.mrb[2].mxu0 %vm752_vm0, %v20707_v7  ;;  %16883 = vmatprep.mubr.msk.f32.mxu1 %vm752_vm0, %v20829_v0  ;;  %v20853_v7 = vld [vmem:[%s20328_s20 + $0x110] sm:$0xff] }
  0xf7   : > { %17109 = vmatprep.mubr.msk.f32.mxu0 %vm752_vm0, %v20715_v17  ;;  %v20872_v17 = vld [vmem:[%s20328_s20 + $0x138] sm:$0xff] }
  0xf9   : > { %16884 = vmatmul.mubr.msk.f32.gmra.mrb[20].mxu1 %vm752_vm0, %v20839_v3 }
  0xfa   : > { %17110 = vmatmul.mubr.msk.f32.gmra.mrb[4].mxu0 %vm752_vm0, %v20727_v57  ;;  %16886 = vmatprep.mubr.msk.f32.mxu1 %vm752_vm0, %v20844_v28  ;;  %v20867_v57 = vld [vmem:[%s20328_s20 + $0x128] sm:$0xff] }
  0xfb   : > { %17112 = vmatprep.mubr.msk.f32.mxu0 %vm752_vm0, %v20735_v51  ;;  %v20886_v51 = vld [vmem:[%s20328_s20 + $0x150] sm:$0xff] }
  0xfd   : > { %16887 = vmatmul.mubr.msk.f32.gmra.mrb[22].mxu1 %vm752_vm0, %v20853_v7 }
  0xfe   : > { %17113 = vmatmul.mubr.msk.f32.gmra.mrb[6].mxu0 %vm752_vm0, %v20747_v47  ;;  %16889 = vmatprep.mubr.msk.f32.mxu1 %vm752_vm0, %v20858_v5  ;;  %v20881_v47 = vld [vmem:[%s20328_s20 + $0x140] sm:$0xff] }
  0xff   : > { %17115 = vmatprep.mubr.msk.f32.mxu0 %vm752_vm0, %v20755_v43  ;;  %v20900_v43 = vld [vmem:[%s20328_s20 + $0x168] sm:$0xff] }
 0x101   : > { %16890 = vmatmul.mubr.msk.f32.gmra.mrb[24].mxu1 %vm752_vm0, %v20867_v57 }
 0x102   : > { %17116 = vmatmul.mubr.msk.f32.gmra.mrb[8].mxu0 %vm752_vm0, %v20767_v39  ;;  %16892 = vmatprep.mubr.msk.f32.mxu1 %vm752_vm0, %v20872_v17  ;;  %v20895_v39 = vld [vmem:[%s20328_s20 + $0x158] sm:$0xff] }
 0x103   : > { %17118 = vmatprep.mubr.msk.f32.mxu0 %vm752_vm0, %v20775_v35  ;;  %v1395_v35 = vld [vmem:[%s20328_s20 + $0x2] sm:$0xff] }
 0x105   : > { %16893 = vmatmul.mubr.msk.f32.gmra.mrb[26].mxu1 %vm752_vm0, %v20881_v47 }
 0x106   : > { %17119 = vmatmul.mubr.msk.f32.gmra.mrb[10].mxu0 %vm752_vm0, %v20787_v62  ;;  %16895 = vmatprep.mubr.msk.f32.mxu1 %vm752_vm0, %v20886_v51  ;;  %v20909_v62 = vld [vmem:[%s20328_s20 + $0x170] sm:$0xff] }
 0x107   : > { %17121 = vmatprep.mubr.msk.f32.mxu0 %vm752_vm0, %v20795_v59  ;;  %v1396_v59 = vld [vmem:[%s20328_s20 + $0xa] sm:$0xff] }
 0x109   : > { %16896 = vmatmul.mubr.msk.f32.gmra.mrb[28].mxu1 %vm752_vm0, %v20895_v39 }
 0x10a   : > { %17122 = vmatmul.mubr.msk.f32.gmra.mrb[12].mxu0 %vm752_vm0, %v20804_v29  ;;  %16898 = vmatprep.mubr.msk.f32.mxu1 %vm752_vm0, %v20900_v43 }
 0x10b   : > { %17124 = vmatprep.mubr.msk.f32.mxu0 %vm752_vm0, %v20809_v33 }
 0x10d   : > { %16899 = vmatmul.mubr.msk.f32.gmra.mrb[30].mxu1 %vm752_vm0, %v20909_v62 }
 0x10e   : > { %17125 = vmatmul.mubr.msk.f32.gmra.mrb[14].mxu0 %vm752_vm0, %v20823_v31  ;;  %16903 = vmatprep.mubr.msk.f32.mxu1 %vm752_vm0, %v1395_v35  ;;  %v14611_v35 = vld [vmem:[%s20328_s20 + $0x198] sm:$0xff] }
 0x10f   : > { %17127 = vmatprep.mubr.msk.f32.mxu0 %vm752_vm0, %v20829_v0 }
 0x111   : > { %16904 = vmatmul.mubr.msk.f32.vlgmr.msra.gmra.mrb[0].mxu1 %vm752_vm0, %v1396_v59  ;;  %v14612_v59 = vld [vmem:[%s20328_s20 + $0x1a0] sm:$0xff] }
 0x112   : > { %17128 = vmatmul.mubr.msk.f32.gmra.mrb[16].mxu0 %vm752_vm0, %v20839_v3  ;;  %16952 = vmatpush3.msra.mxu1 %v20658_v61  ;;  %v25690_v61 = vld [vmem:[#allocation36_spill] sm:$0xff] }
 0x113   : > { %16906 = vmatprep.mubr.msk.f32.mxu1 %vm752_vm0, %v20474_v24  ;;  %17130 = vmatprep.mubr.msk.f32.mxu0 %vm752_vm0, %v20844_v28  ;;  %v20964_v24 = vld [vmem:[%s20328_s20 + $0x180] sm:$0xff] }
 0x114   : > { %18979 = vmatprep.subr.mxu1 %v20354_v1 }
 0x115   : > { %16907 = vmatmul.mubr.msk.f32.gmra.mrb[2].mxu1 %vm752_vm0, %v20485_v25  ;;  %v20975_v25 = vld [vmem:[%s20328_s20 + $0x188] sm:$0xff] }
 0x116   : > { %17131 = vmatmul.mubr.msk.f32.gmra.mrb[18].mxu0 %vm752_vm0, %v20853_v7  ;;  %16909 = vmatprep.mubr.msk.f32.mxu1 %vm752_vm0, %v20491_v27 }
 0x117   : > { %17133 = vmatprep.mubr.msk.f32.mxu0 %vm752_vm0, %v20858_v5 }
 0x119   : > { %16910 = vmatmul.mubr.msk.f32.gmra.mrb[4].mxu1 %vm752_vm0, %v20510_v30 }
 0x11a   : > { %17134 = vmatmul.mubr.msk.f32.gmra.mrb[20].mxu0 %vm752_vm0, %v20867_v57  ;;  %16912 = vmatprep.mubr.msk.f32.mxu1 %vm752_vm0, %v20516_v32 }
 0x11b   : > { %17136 = vmatprep.mubr.msk.f32.mxu0 %vm752_vm0, %v20872_v17 }
 0x11d   : > { %16913 = vmatmul.mubr.msk.f32.gmra.mrb[6].mxu1 %vm752_vm0, %v20531_v34 }
 0x11e   : > { %17137 = vmatmul.mubr.msk.f32.gmra.mrb[22].mxu0 %vm752_vm0, %v20881_v47  ;;  %16915 = vmatprep.mubr.msk.f32.mxu1 %vm752_vm0, %v20537_v36 }
 0x11f   : > { %17139 = vmatprep.mubr.msk.f32.mxu0 %vm752_vm0, %v20886_v51 }
 0x121   : > { %16916 = vmatmul.mubr.msk.f32.gmra.mrb[8].mxu1 %vm752_vm0, %v20551_v38 }
 0x122   : > { %17140 = vmatmul.mubr.msk.f32.gmra.mrb[24].mxu0 %vm752_vm0, %v20895_v39  ;;  %16918 = vmatprep.mubr.msk.f32.mxu1 %vm752_vm0, %v20557_v40 }
 0x123   : > { %17142 = vmatprep.mubr.msk.f32.mxu0 %vm752_vm0, %v20900_v43 }
 0x125   : > { %16919 = vmatmul.mubr.msk.f32.gmra.mrb[10].mxu1 %vm752_vm0, %v20571_v42 }
 0x126   : > { %17143 = vmatmul.mubr.msk.f32.gmra.mrb[26].mxu0 %vm752_vm0, %v20909_v62  ;;  %16921 = vmatprep.mubr.msk.f32.mxu1 %vm752_vm0, %v20577_v44 }
 0x127   : > { %17145 = vmatprep.mubr.msk.f32.mxu0 %vm752_vm0, %v20964_v24 }
 0x129   : > { %16922 = vmatmul.mubr.msk.f32.gmra.mrb[12].mxu1 %vm752_vm0, %v20591_v46 }
 0x12a   : > { %17146 = vmatmul.mubr.msk.f32.gmra.mrb[28].mxu0 %vm752_vm0, %v20975_v25  ;;  %16924 = vmatprep.mubr.msk.f32.mxu1 %vm752_vm0, %v20597_v48 }
 0x12b   : > { %17148 = vmatprep.mubr.msk.f32.mxu0 %vm752_vm0, %v14611_v35  ;;  %v25691_v35 = vld [vmem:[#allocation24_spill] sm:$0xff] }
 0x12d   : > { %16925 = vmatmul.mubr.msk.f32.gmra.mrb[14].mxu1 %vm752_vm0, %v20611_v50 }
 0x12e   : > { %17149 = vmatmul.mubr.msk.f32.gmra.mrb[30].mxu0 %vm752_vm0, %v14612_v59  ;;  %16927 = vmatprep.mubr.msk.f32.mxu1 %vm752_vm0, %v20617_v52  ;;  %v25692_v59 = vld [vmem:[#allocation37_spill] sm:$0xff] }
 0x12f   : > { %17153 = vmatprep.mubr.msk.f32.mxu0 %vm752_vm0, %v20372_v8  ;;  %v25674_v8 = vld [vmem:[#allocation41_spill] sm:$0xff] }
 0x131   : > { %16928 = vmatmul.mubr.msk.f32.gmra.mrb[16].mxu1 %vm752_vm0, %v20631_v54 }
 0x132   : > { %17154 = vmatmul.mubr.msk.f32.vlgmr.msra.gmra.mrb[0].mxu0 %vm752_vm0, %v20376_v9  ;;  %16930 = vmatprep.mubr.msk.f32.mxu1 %vm752_vm0, %v20635_v56  ;;  %v25675_v9 = vld [vmem:[#allocation16_spill] sm:$0xff] }
 0x133   : > { %17202 = vmatpush3.msra.mxu0 %v20816_v37  ;;  %17156 = vmatprep.mubr.msk.f32.mxu0 %vm752_vm0, %v20382_v10  ;;  %v25676_v10 = vld [vmem:[#allocation29_spill] sm:$0xff]  ;;  %v25689_v37 = vld [vmem:[#allocation23_spill] sm:$0xff] }
 0x135   : > { %16931 = vmatmul.mubr.msk.f32.gmra.mrb[18].mxu1 %vm752_vm0, %v20646_v58 }
 0x136   : > { %17157 = vmatmul.mubr.msk.f32.gmra.mrb[2].mxu0 %vm752_vm0, %v20395_v12  ;;  %16933 = vmatprep.mubr.msk.f32.mxu1 %vm752_vm0, %v20652_v60  ;;  %v25677_v12 = vld [vmem:[#allocation17_spill] sm:$0xff] }
 0x137   : > { %17159 = vmatprep.mubr.msk.f32.mxu0 %vm752_vm0, %v20398_v13  ;;  %v25678_v13 = vld [vmem:[#allocation30_spill] sm:$0xff] }
 0x139   : > { %16934 = vmatmul.mubr.msk.f32.gmra.mrb[20].mxu1 %vm752_vm0, %v20671_v63 }
 0x13a   : > { %17160 = vmatmul.mubr.msk.f32.gmra.mrb[4].mxu0 %vm752_vm0, %v20409_v14  ;;  %16936 = vmatprep.mubr.msk.f32.mxu1 %vm752_vm0, %v20677_v2  ;;  %v25679_v14 = vld [vmem:[#allocation18_spill] sm:$0xff] }
 0x13b   : > { %17162 = vmatprep.mubr.msk.f32.mxu0 %vm752_vm0, %v20412_v15  ;;  %v25680_v15 = vld [vmem:[#allocation31_spill] sm:$0xff] }
 0x13d   : > { %16937 = vmatmul.mubr.msk.f32.gmra.mrb[22].mxu1 %vm752_vm0, %v20692_v4 }
 0x13e   : > { %17163 = vmatmul.mubr.msk.f32.gmra.mrb[6].mxu0 %vm752_vm0, %v20423_v16  ;;  %16939 = vmatprep.mubr.msk.f32.mxu1 %vm752_vm0, %v20698_v6  ;;  %v25681_v16 = vld [vmem:[#allocation19_spill] sm:$0xff] }
 0x13f   : > { %17165 = vmatprep.mubr.msk.f32.mxu0 %vm752_vm0, %v20431_v18  ;;  %v25682_v18 = vld [vmem:[#allocation32_spill] sm:$0xff] }
 0x141   : > { %16940 = vmatmul.mubr.msk.f32.gmra.mrb[24].mxu1 %vm752_vm0, %v20712_v11 }
 0x142   : > { %17166 = vmatmul.mubr.msk.f32.gmra.mrb[8].mxu0 %vm752_vm0, %v20443_v19  ;;  %16942 = vmatprep.mubr.msk.f32.mxu1 %vm752_vm0, %v20718_v55  ;;  %v25683_v19 = vld [vmem:[#allocation20_spill] sm:$0xff] }
 0x143   : > { %17168 = vmatprep.mubr.msk.f32.mxu0 %vm752_vm0, %v20446_v20  ;;  %v25684_v20 = vld [vmem:[#allocation33_spill] sm:$0xff] }
 0x145   : > { %16943 = vmatmul.mubr.msk.f32.gmra.mrb[26].mxu1 %vm752_vm0, %v20732_v53 }
 0x146   : > { %17169 = vmatmul.mubr.msk.f32.gmra.mrb[10].mxu0 %vm752_vm0, %v20457_v21  ;;  %16945 = vmatprep.mubr.msk.f32.mxu1 %vm752_vm0, %v20738_v49  ;;  %v25685_v21 = vld [vmem:[#allocation21_spill] sm:$0xff] }
 0x147   : > { %17171 = vmatprep.mubr.msk.f32.mxu0 %vm752_vm0, %v20460_v22  ;;  %v25687_v22 = vld [vmem:[#allocation22_spill] sm:$0xff] }
 0x149   : > { %16946 = vmatmul.mubr.msk.f32.gmra.mrb[28].mxu1 %vm752_vm0, %v20752_v45 }
 0x14a   : > { %17172 = vmatmul.mubr.msk.f32.gmra.mrb[12].mxu0 %vm752_vm0, %v20471_v23  ;;  %16948 = vmatprep.mubr.msk.f32.mxu1 %vm752_vm0, %v20758_v41  ;;  %v25688_v23 = vld [vmem:[#allocation35_spill] sm:$0xff] }
 0x14b   : > { %17174 = vmatprep.mubr.msk.f32.mxu0 %vm752_vm0, %v20488_v26 }
 0x14d   : > { %16949 = vmatmul.mubr.msk.f32.gmra.mrb[30].mxu1 %vm752_vm0, %v25674_v8  ;;  %v25701_v8 = vld [vmem:[#allocation44_spill] sm:$0xff] }
 0x14e   : > { %17175 = vmatmul.mubr.msk.f32.gmra.mrb[14].mxu0 %vm752_vm0, %v25675_v9  ;;  %16953 = vmatprep.mubr.msk.f32.mxu1 %vm752_vm0, %v25676_v10  ;;  %v25693_v10 = vld [vmem:[#allocation25_spill] sm:$0xff] }
 0x14f   : > { %17177 = vmatprep.mubr.msk.f32.mxu0 %vm752_vm0, %v25677_v12 }
 0x151   : > { %16954 = vmatmul.mubr.msk.f32.vlgmr.msra.gmra.mrb[0].mxu1 %vm752_vm0, %v25678_v13  ;;  %v25694_v13 = vld [vmem:[#allocation38_spill] sm:$0xff] }
 0x152   : > { %17178 = vmatmul.mubr.msk.f32.gmra.mrb[16].mxu0 %vm752_vm0, %v25679_v14  ;;  %18980 = vmatpush3.msra.mxu1 %v20354_v1  ;;  %v25686_v1 = vld [vmem:[#allocation34_spill] sm:$0xff] }
 0x153   : > { %16956 = vmatprep.mubr.msk.f32.mxu1 %vm752_vm0, %v25680_v15  ;;  %17180 = vmatprep.mubr.msk.f32.mxu0 %vm752_vm0, %v25681_v16  ;;  %v25695_v15 = vld [vmem:[#allocation26_spill] sm:$0xff] }
 0x155   : > { %16957 = vmatmul.mubr.msk.f32.gmra.mrb[2].mxu1 %vm752_vm0, %v25682_v18  ;;  %v25696_v18 = vld [vmem:[#allocation39_spill] sm:$0xff] }
 0x156   : > { %17181 = vmatmul.mubr.msk.f32.gmra.mrb[18].mxu0 %vm752_vm0, %v25683_v19  ;;  %16959 = vmatprep.mubr.msk.f32.mxu1 %vm752_vm0, %v25684_v20  ;;  %v25697_v20 = vld [vmem:[#allocation27_spill] sm:$0xff] }
 0x157   : > { %17183 = vmatprep.mubr.msk.f32.mxu0 %vm752_vm0, %v25685_v21 }
 0x159   : > { %16960 = vmatmul.mubr.msk.f32.gmra.mrb[4].mxu1 %vm752_vm0, %v25686_v1  ;;  %v21100_v1 = vld [vmem:[%s20328_s20 + $0x181] sm:$0xff] }
 0x15a   : > { %17184 = vmatmul.mubr.msk.f32.gmra.mrb[20].mxu0 %vm752_vm0, %v25687_v22  ;;  %16962 = vmatprep.mubr.msk.f32.mxu1 %vm752_vm0, %v25688_v23  ;;  %v25698_v23 = vld [vmem:[#allocation40_spill] sm:$0xff] }
 0x15b   : > { %17186 = vmatprep.mubr.msk.f32.mxu0 %vm752_vm0, %v25689_v37 }
 0x15d   : > { %16963 = vmatmul.mubr.msk.f32.gmra.mrb[6].mxu1 %vm752_vm0, %v25690_v61  ;;  %v25699_v61 = vld [vmem:[#allocation28_spill] sm:$0xff] }
 0x15e   : > { %17187 = vmatmul.mubr.msk.f32.gmra.mrb[22].mxu0 %vm752_vm0, %v25691_v35  ;;  %16965 = vmatprep.mubr.msk.f32.mxu1 %vm752_vm0, %v25692_v59  ;;  %v25700_v59 = vld [vmem:[#allocation42_spill] sm:$0xff] }
 0x15f   : > { %17189 = vmatprep.mubr.msk.f32.mxu0 %vm752_vm0, %v25693_v10 }
 0x161   : > { %16966 = vmatmul.mubr.msk.f32.gmra.mrb[8].mxu1 %vm752_vm0, %v25694_v13  ;;  %v21111_v13 = vld [vmem:[%s20328_s20 + $0x189] sm:$0xff] }
 0x162   : > { %17190 = vmatmul.mubr.msk.f32.gmra.mrb[24].mxu0 %vm752_vm0, %v25695_v15  ;;  %16968 = vmatprep.mubr.msk.f32.mxu1 %vm752_vm0, %v25696_v18  ;;  %v14676_v18 = vld [vmem:[%s20328_s20 + $0x199] sm:$0xff] }
 0x163   : > { %17192 = vmatprep.mubr.msk.f32.mxu0 %vm752_vm0, %v25697_v20  ;;  %v25702_v20 = vld [vmem:[#allocation46_spill] sm:$0xff] }
 0x165   : > { %16969 = vmatmul.mubr.msk.f32.gmra.mrb[10].mxu1 %vm752_vm0, %v25698_v23  ;;  %v14677_v23 = vld [vmem:[%s20328_s20 + $0x1a1] sm:$0xff] }
 0x166   : > { %17193 = vmatmul.mubr.msk.f32.gmra.mrb[26].mxu0 %vm752_vm0, %v25699_v61  ;;  %16971 = vmatprep.mubr.msk.f32.mxu1 %vm752_vm0, %v25700_v59 }
 0x167   : > { %17195 = vmatprep.mubr.msk.f32.mxu0 %vm752_vm0, %v21100_v1 }
 0x169   : > { %16972 = vmatmul.mubr.msk.f32.gmra.mrb[12].mxu1 %vm752_vm0, %v25701_v8 }
 0x16a   : > { %17196 = vmatmul.mubr.msk.f32.gmra.mrb[28].mxu0 %vm752_vm0, %v21111_v13  ;;  %16974 = vmatprep.mubr.msk.f32.mxu1 %vm752_vm0, %v25702_v20 }
 0x16b   : > { %17198 = vmatprep.mubr.msk.f32.mxu0 %vm752_vm0, %v14676_v18 }
 0x16d   : > { %16975 = vmatmul.mubr.msk.f32.gmra.mrb[14].mxu1 %vm752_vm0, %v20804_v29  ;;  %v25705_v29 = vld [vmem:[#allocation43_spill] sm:$0xff] }
 0x16e   : > { %17199 = vmatmul.mubr.msk.f32.gmra.mrb[30].mxu0 %vm752_vm0, %v14677_v23  ;;  %16977 = vmatprep.mubr.msk.f32.mxu1 %vm752_vm0, %v20809_v33  ;;  %v20054_v33 = vmov 0.0  }
 0x16f   : > { %17203 = vmatprep.mubr.msk.f32.mxu0 %vm752_vm0, %v20491_v27  ;;  %v25704_v27 = vld [vmem:[#allocation27_spill] sm:$0xff]  ;;  %579 = vst.msk [vmem:[#allocation2 + $0x10] sm:$0x3] %vm578_vm2, %v20054_v33  ;;  %582 = vst.msk [vmem:[#allocation2 + $0x28] sm:$0x3] %vm578_vm2, %v20054_v33 }
 0x170   : > { %581 = vst.msk [vmem:[#allocation2 + $0x20] sm:$0xff] %vm575_vm1, %v20054_v33  ;;  %576 = vst.msk [vmem:[#allocation2] sm:$0xff] %vm575_vm1, %v20054_v33 }
 0x171   : > { %16978 = vmatmul.mubr.msk.f32.gmra.mrb[16].mxu1 %vm752_vm0, %v20823_v31  ;;  %v25706_v31 = vld [vmem:[#allocation45_spill] sm:$0xff]  ;;  %630 = vst.msk [vmem:[#allocation2 + $0x1a8] sm:$0x3] %vm578_vm2, %v20054_v33  ;;  %633 = vst.msk [vmem:[#allocation3 + $0x10] sm:$0x3] %vm578_vm2, %v20054_v33 }
 0x172   : > { %17204 = vmatmul.mubr.msk.f32.vlgmr.msra.gmra.mrb[0].mxu0 %vm752_vm0, %v20510_v30  ;;  %16980 = vmatprep.mubr.msk.f32.mxu1 %vm752_vm0, %v20829_v0  ;;  %v14741_v30 = vld [vmem:[%s20328_s20 + $0x19a] sm:$0xff]  ;;  %636 = vst.msk [vmem:[#allocation3 + $0x28] sm:$0x3] %vm578_vm2, %v20054_v33  ;;  %639 = vst.msk [vmem:[#allocation3 + $0x40] sm:$0x3] %vm578_vm2, %v20054_v33 }
 0x173   : > { %17206 = vmatprep.mubr.msk.f32.mxu0 %vm752_vm0, %v20516_v32  ;;  %v14742_v32 = vld [vmem:[%s20328_s20 + $0x1a2] sm:$0xff]  ;;  %642 = vst.msk [vmem:[#allocation3 + $0x58] sm:$0x3] %vm578_vm2, %v20054_v33  ;;  %645 = vst.msk [vmem:[#allocation3 + $0x70] sm:$0x3] %vm578_vm2, %v20054_v33 }
 0x174   : > { %648 = vst.msk [vmem:[#allocation3 + $0x88] sm:$0x3] %vm578_vm2, %v20054_v33  ;;  %651 = vst.msk [vmem:[#allocation3 + $0xa0] sm:$0x3] %vm578_vm2, %v20054_v33 }
 0x175   : > { %16981 = vmatmul.mubr.msk.f32.gmra.mrb[18].mxu1 %vm752_vm0, %v20839_v3  ;;  %654 = vst.msk [vmem:[#allocation3 + $0xb8] sm:$0x3] %vm578_vm2, %v20054_v33  ;;  %657 = vst.msk [vmem:[#allocation3 + $0xd0] sm:$0x3] %vm578_vm2, %v20054_v33 }
 0x176   : > { %17207 = vmatmul.mubr.msk.f32.gmra.mrb[2].mxu0 %vm752_vm0, %v20531_v34  ;;  %16983 = vmatprep.mubr.msk.f32.mxu1 %vm752_vm0, %v20844_v28  ;;  %660 = vst.msk [vmem:[#allocation3 + $0xe8] sm:$0x3] %vm578_vm2, %v20054_v33  ;;  %663 = vst.msk [vmem:[#allocation3 + $0x100] sm:$0x3] %vm578_vm2, %v20054_v33 }
 0x177   : > { %17209 = vmatprep.mubr.msk.f32.mxu0 %vm752_vm0, %v20537_v36  ;;  %666 = vst.msk [vmem:[#allocation3 + $0x118] sm:$0x3] %vm578_vm2, %v20054_v33  ;;  %669 = vst.msk [vmem:[#allocation3 + $0x130] sm:$0x3] %vm578_vm2, %v20054_v33 }
 0x178   : > { %672 = vst.msk [vmem:[#allocation3 + $0x148] sm:$0x3] %vm578_vm2, %v20054_v33  ;;  %675 = vst.msk [vmem:[#allocation3 + $0x160] sm:$0x3] %vm578_vm2, %v20054_v33 }
 0x179   : > { %16984 = vmatmul.mubr.msk.f32.gmra.mrb[20].mxu1 %vm752_vm0, %v20853_v7  ;;  %678 = vst.msk [vmem:[#allocation3 + $0x178] sm:$0x3] %vm578_vm2, %v20054_v33  ;;  %681 = vst.msk [vmem:[#allocation3 + $0x190] sm:$0x3] %vm578_vm2, %v20054_v33 }
 0x17a   : > { %17210 = vmatmul.mubr.msk.f32.gmra.mrb[4].mxu0 %vm752_vm0, %v20551_v38  ;;  %16986 = vmatprep.mubr.msk.f32.mxu1 %vm752_vm0, %v20858_v5  ;;  %684 = vst.msk [vmem:[#allocation3 + $0x1a8] sm:$0x3] %vm578_vm2, %v20054_v33  ;;  %585 = vst.msk [vmem:[#allocation2 + $0x40] sm:$0x3] %vm578_vm2, %v20054_v33 }
 0x17b   : > { %17212 = vmatprep.mubr.msk.f32.mxu0 %vm752_vm0, %v20557_v40  ;;  %577 = vst.msk [vmem:[#allocation2 + $0x8] sm:$0xff] %vm575_vm1, %v20054_v33  ;;  %580 = vst.msk [vmem:[#allocation2 + $0x18] sm:$0xff] %vm575_vm1, %v20054_v33 }
 0x17c   : > { %583 = vst.msk [vmem:[#allocation2 + $0x30] sm:$0xff] %vm575_vm1, %v20054_v33  ;;  %584 = vst.msk [vmem:[#allocation2 + $0x38] sm:$0xff] %vm575_vm1, %v20054_v33 }
 0x17d   : > { %16987 = vmatmul.mubr.msk.f32.gmra.mrb[22].mxu1 %vm752_vm0, %v20867_v57  ;;  %586 = vst.msk [vmem:[#allocation2 + $0x48] sm:$0xff] %vm575_vm1, %v20054_v33  ;;  %587 = vst.msk [vmem:[#allocation2 + $0x50] sm:$0xff] %vm575_vm1, %v20054_v33 }
 0x17e   : > { %17213 = vmatmul.mubr.msk.f32.gmra.mrb[6].mxu0 %vm752_vm0, %v20571_v42  ;;  %16989 = vmatprep.mubr.msk.f32.mxu1 %vm752_vm0, %v20872_v17  ;;  %588 = vst.msk [vmem:[#allocation2 + $0x58] sm:$0x3] %vm578_vm2, %v20054_v33  ;;  %591 = vst.msk [vmem:[#allocation2 + $0x70] sm:$0x3] %vm578_vm2, %v20054_v33 }
 0x17f   : > { %17215 = vmatprep.mubr.msk.f32.mxu0 %vm752_vm0, %v20577_v44  ;;  %589 = vst.msk [vmem:[#allocation2 + $0x60] sm:$0xff] %vm575_vm1, %v20054_v33  ;;  %590 = vst.msk [vmem:[#allocation2 + $0x68] sm:$0xff] %vm575_vm1, %v20054_v33 }
 0x180   : > { %592 = vst.msk [vmem:[#allocation2 + $0x78] sm:$0xff] %vm575_vm1, %v20054_v33  ;;  %593 = vst.msk [vmem:[#allocation2 + $0x80] sm:$0xff] %vm575_vm1, %v20054_v33 }
 0x181   : > { %16990 = vmatmul.mubr.msk.f32.gmra.mrb[24].mxu1 %vm752_vm0, %v20881_v47  ;;  %594 = vst.msk [vmem:[#allocation2 + $0x88] sm:$0x3] %vm578_vm2, %v20054_v33  ;;  %597 = vst.msk [vmem:[#allocation2 + $0xa0] sm:$0x3] %vm578_vm2, %v20054_v33 }
 0x182   : > { %17216 = vmatmul.mubr.msk.f32.gmra.mrb[8].mxu0 %vm752_vm0, %v20591_v46  ;;  %16992 = vmatprep.mubr.msk.f32.mxu1 %vm752_vm0, %v20886_v51  ;;  %595 = vst.msk [vmem:[#allocation2 + $0x90] sm:$0xff] %vm575_vm1, %v20054_v33  ;;  %596 = vst.msk [vmem:[#allocation2 + $0x98] sm:$0xff] %vm575_vm1, %v20054_v33 }
 0x183   : > { %17218 = vmatprep.mubr.msk.f32.mxu0 %vm752_vm0, %v20597_v48  ;;  %598 = vst.msk [vmem:[#allocation2 + $0xa8] sm:$0xff] %vm575_vm1, %v20054_v33  ;;  %599 = vst.msk [vmem:[#allocation2 + $0xb0] sm:$0xff] %vm575_vm1, %v20054_v33 }
 0x184   : > { %600 = vst.msk [vmem:[#allocation2 + $0xb8] sm:$0x3] %vm578_vm2, %v20054_v33  ;;  %603 = vst.msk [vmem:[#allocation2 + $0xd0] sm:$0x3] %vm578_vm2, %v20054_v33 }
 0x185   : > { %16993 = vmatmul.mubr.msk.f32.gmra.mrb[26].mxu1 %vm752_vm0, %v20895_v39  ;;  %601 = vst.msk [vmem:[#allocation2 + $0xc0] sm:$0xff] %vm575_vm1, %v20054_v33  ;;  %602 = vst.msk [vmem:[#allocation2 + $0xc8] sm:$0xff] %vm575_vm1, %v20054_v33 }
 0x186   : > { %17219 = vmatmul.mubr.msk.f32.gmra.mrb[10].mxu0 %vm752_vm0, %v20611_v50  ;;  %16995 = vmatprep.mubr.msk.f32.mxu1 %vm752_vm0, %v20900_v43  ;;  %604 = vst.msk [vmem:[#allocation2 + $0xd8] sm:$0xff] %vm575_vm1, %v20054_v33  ;;  %605 = vst.msk [vmem:[#allocation2 + $0xe0] sm:$0xff] %vm575_vm1, %v20054_v33 }
 0x187   : > { %17221 = vmatprep.mubr.msk.f32.mxu0 %vm752_vm0, %v20617_v52  ;;  %606 = vst.msk [vmem:[#allocation2 + $0xe8] sm:$0x3] %vm578_vm2, %v20054_v33  ;;  %609 = vst.msk [vmem:[#allocation2 + $0x100] sm:$0x3] %vm578_vm2, %v20054_v33 }
 0x188   : > { %607 = vst.msk [vmem:[#allocation2 + $0xf0] sm:$0xff] %vm575_vm1, %v20054_v33  ;;  %608 = vst.msk [vmem:[#allocation2 + $0xf8] sm:$0xff] %vm575_vm1, %v20054_v33 }
 0x189   : > { %16996 = vmatmul.mubr.msk.f32.gmra.mrb[28].mxu1 %vm752_vm0, %v20909_v62  ;;  %610 = vst.msk [vmem:[#allocation2 + $0x108] sm:$0xff] %vm575_vm1, %v20054_v33  ;;  %611 = vst.msk [vmem:[#allocation2 + $0x110] sm:$0xff] %vm575_vm1, %v20054_v33 }
 0x18a   : > { %17222 = vmatmul.mubr.msk.f32.gmra.mrb[12].mxu0 %vm752_vm0, %v20631_v54  ;;  %16998 = vmatprep.mubr.msk.f32.mxu1 %vm752_vm0, %v20964_v24  ;;  %612 = vst.msk [vmem:[#allocation2 + $0x118] sm:$0x3] %vm578_vm2, %v20054_v33  ;;  %615 = vst.msk [vmem:[#allocation2 + $0x130] sm:$0x3] %vm578_vm2, %v20054_v33 }
 0x18b   : > { %17224 = vmatprep.mubr.msk.f32.mxu0 %vm752_vm0, %v20635_v56  ;;  %613 = vst.msk [vmem:[#allocation2 + $0x120] sm:$0xff] %vm575_vm1, %v20054_v33  ;;  %614 = vst.msk [vmem:[#allocation2 + $0x128] sm:$0xff] %vm575_vm1, %v20054_v33 }
 0x18c   : > { %616 = vst.msk [vmem:[#allocation2 + $0x138] sm:$0xff] %vm575_vm1, %v20054_v33  ;;  %617 = vst.msk [vmem:[#allocation2 + $0x140] sm:$0xff] %vm575_vm1, %v20054_v33 }
 0x18d   : > { %16999 = vmatmul.mubr.msk.f32.gmra.mrb[30].mxu1 %vm752_vm0, %v20975_v25  ;;  %618 = vst.msk [vmem:[#allocation2 + $0x148] sm:$0x3] %vm578_vm2, %v20054_v33  ;;  %621 = vst.msk [vmem:[#allocation2 + $0x160] sm:$0x3] %vm578_vm2, %v20054_v33 }
 0x18e   : > { %17225 = vmatmul.mubr.msk.f32.gmra.mrb[14].mxu0 %vm752_vm0, %v20646_v58  ;;  %17027 = vmatprep.mubr.msk.f32.mxu1 %vm752_vm0, %v20488_v26  ;;  %v25703_v26 = vld [vmem:[#allocation41_spill] sm:$0xff]  ;;  %619 = vst.msk [vmem:[#allocation2 + $0x150] sm:$0xff] %vm575_vm1, %v20054_v33  ;;  %620 = vst.msk [vmem:[#allocation2 + $0x158] sm:$0xff] %vm575_vm1, %v20054_v33 }
 0x18f   : > { %17227 = vmatprep.mubr.msk.f32.mxu0 %vm752_vm0, %v20652_v60  ;;  %622 = vst.msk [vmem:[#allocation2 + $0x168] sm:$0xff] %vm575_vm1, %v20054_v33  ;;  %623 = vst.msk [vmem:[#allocation2 + $0x170] sm:$0xff] %vm575_vm1, %v20054_v33 }
 0x190   : > { %624 = vst.msk [vmem:[#allocation2 + $0x178] sm:$0x3] %vm578_vm2, %v20054_v33  ;;  %627 = vst.msk [vmem:[#allocation2 + $0x190] sm:$0x3] %vm578_vm2, %v20054_v33 }
 0x191   : > { %17028 = vmatmul.mubr.msk.f32.vlgmr.msra.gmra.mrb[16].mxu1 %vm752_vm0, %v25675_v9  ;;  %625 = vst.msk [vmem:[#allocation2 + $0x180] sm:$0xff] %vm575_vm1, %v20054_v33  ;;  %626 = vst.msk [vmem:[#allocation2 + $0x188] sm:$0xff] %vm575_vm1, %v20054_v33 }
 0x192   : > { %17228 = vmatmul.mubr.msk.f32.gmra.mrb[16].mxu0 %vm752_vm0, %v20671_v63  ;;  %17030 = vmatprep.mubr.msk.f32.mxu1 %vm752_vm0, %v25677_v12  ;;  %628 = vst.msk [vmem:[#allocation2 + $0x198] sm:$0xff] %vm575_vm1, %v20054_v33  ;;  %629 = vst.msk [vmem:[#allocation2 + $0x1a0] sm:$0xff] %vm575_vm1, %v20054_v33 }
 0x193   : > { %17230 = vmatprep.mubr.msk.f32.mxu0 %vm752_vm0, %v20677_v2  ;;  %631 = vst.msk [vmem:[#allocation3] sm:$0xff] %vm575_vm1, %v20054_v33  ;;  %632 = vst.msk [vmem:[#allocation3 + $0x8] sm:$0xff] %vm575_vm1, %v20054_v33 }
 0x194   : > { %634 = vst.msk [vmem:[#allocation3 + $0x18] sm:$0xff] %vm575_vm1, %v20054_v33  ;;  %635 = vst.msk [vmem:[#allocation3 + $0x20] sm:$0xff] %vm575_vm1, %v20054_v33 }
 0x195   : > { %17031 = vmatmul.mubr.msk.f32.gmra.mrb[18].mxu1 %vm752_vm0, %v25679_v14  ;;  %637 = vst.msk [vmem:[#allocation3 + $0x30] sm:$0xff] %vm575_vm1, %v20054_v33  ;;  %638 = vst.msk [vmem:[#allocation3 + $0x38] sm:$0xff] %vm575_vm1, %v20054_v33 }
 0x196   : > { %17231 = vmatmul.mubr.msk.f32.gmra.mrb[18].mxu0 %vm752_vm0, %v20692_v4  ;;  %17033 = vmatprep.mubr.msk.f32.mxu1 %vm752_vm0, %v25681_v16  ;;  %640 = vst.msk [vmem:[#allocation3 + $0x48] sm:$0xff] %vm575_vm1, %v20054_v33  ;;  %641 = vst.msk [vmem:[#allocation3 + $0x50] sm:$0xff] %vm575_vm1, %v20054_v33 }
 0x197   : > { %17233 = vmatprep.mubr.msk.f32.mxu0 %vm752_vm0, %v20698_v6  ;;  %643 = vst.msk [vmem:[#allocation3 + $0x60] sm:$0xff] %vm575_vm1, %v20054_v33  ;;  %644 = vst.msk [vmem:[#allocation3 + $0x68] sm:$0xff] %vm575_vm1, %v20054_v33 }
 0x198   : > { %646 = vst.msk [vmem:[#allocation3 + $0x78] sm:$0xff] %vm575_vm1, %v20054_v33  ;;  %647 = vst.msk [vmem:[#allocation3 + $0x80] sm:$0xff] %vm575_vm1, %v20054_v33 }
 0x199   : > { %17034 = vmatmul.mubr.msk.f32.gmra.mrb[20].mxu1 %vm752_vm0, %v25683_v19  ;;  %649 = vst.msk [vmem:[#allocation3 + $0x90] sm:$0xff] %vm575_vm1, %v20054_v33  ;;  %650 = vst.msk [vmem:[#allocation3 + $0x98] sm:$0xff] %vm575_vm1, %v20054_v33 }
 0x19a   : > { %17234 = vmatmul.mubr.msk.f32.gmra.mrb[20].mxu0 %vm752_vm0, %v20712_v11  ;;  %17036 = vmatprep.mubr.msk.f32.mxu1 %vm752_vm0, %v25685_v21  ;;  %652 = vst.msk [vmem:[#allocation3 + $0xa8] sm:$0xff] %vm575_vm1, %v20054_v33  ;;  %653 = vst.msk [vmem:[#allocation3 + $0xb0] sm:$0xff] %vm575_vm1, %v20054_v33 }
 0x19b   : > { %17236 = vmatprep.mubr.msk.f32.mxu0 %vm752_vm0, %v20718_v55  ;;  %655 = vst.msk [vmem:[#allocation3 + $0xc0] sm:$0xff] %vm575_vm1, %v20054_v33  ;;  %656 = vst.msk [vmem:[#allocation3 + $0xc8] sm:$0xff] %vm575_vm1, %v20054_v33 }
 0x19c   : > { %658 = vst.msk [vmem:[#allocation3 + $0xd8] sm:$0xff] %vm575_vm1, %v20054_v33  ;;  %659 = vst.msk [vmem:[#allocation3 + $0xe0] sm:$0xff] %vm575_vm1, %v20054_v33 }
 0x19d   : > { %17037 = vmatmul.mubr.msk.f32.gmra.mrb[22].mxu1 %vm752_vm0, %v25687_v22  ;;  %661 = vst.msk [vmem:[#allocation3 + $0xf0] sm:$0xff] %vm575_vm1, %v20054_v33  ;;  %662 = vst.msk [vmem:[#allocation3 + $0xf8] sm:$0xff] %vm575_vm1, %v20054_v33 }
 0x19e   : > { %17237 = vmatmul.mubr.msk.f32.gmra.mrb[22].mxu0 %vm752_vm0, %v20732_v53  ;;  %17039 = vmatprep.mubr.msk.f32.mxu1 %vm752_vm0, %v25689_v37  ;;  %664 = vst.msk [vmem:[#allocation3 + $0x108] sm:$0xff] %vm575_vm1, %v20054_v33  ;;  %665 = vst.msk [vmem:[#allocation3 + $0x110] sm:$0xff] %vm575_vm1, %v20054_v33  ;;  %v21477_v53 = vld [vmem:[#allocation4] ss:$0 sm:$0xff] }
 0x19f   : > { %17239 = vmatprep.mubr.msk.f32.mxu0 %vm752_vm0, %v20738_v49  ;;  %667 = vst.msk [vmem:[#allocation3 + $0x120] sm:$0xff] %vm575_vm1, %v20054_v33  ;;  %668 = vst.msk [vmem:[#allocation3 + $0x128] sm:$0xff] %vm575_vm1, %v20054_v33 }
 0x1a0   : > { %670 = vst.msk [vmem:[#allocation3 + $0x138] sm:$0xff] %vm575_vm1, %v20054_v33  ;;  %671 = vst.msk [vmem:[#allocation3 + $0x140] sm:$0xff] %vm575_vm1, %v20054_v33 }
 0x1a1   : > { %17040 = vmatmul.mubr.msk.f32.gmra.mrb[24].mxu1 %vm752_vm0, %v25691_v35  ;;  %673 = vst.msk [vmem:[#allocation3 + $0x150] sm:$0xff] %vm575_vm1, %v20054_v33  ;;  %674 = vst.msk [vmem:[#allocation3 + $0x158] sm:$0xff] %vm575_vm1, %v20054_v33 }
 0x1a2   : > { %17240 = vmatmul.mubr.msk.f32.gmra.mrb[24].mxu0 %vm752_vm0, %v20752_v45  ;;  %17042 = vmatprep.mubr.msk.f32.mxu1 %vm752_vm0, %v25693_v10  ;;  %676 = vst.msk [vmem:[#allocation3 + $0x168] sm:$0xff] %vm575_vm1, %v20054_v33  ;;  %677 = vst.msk [vmem:[#allocation3 + $0x170] sm:$0xff] %vm575_vm1, %v20054_v33 }
 0x1a3   : > { %17242 = vmatprep.mubr.msk.f32.mxu0 %vm752_vm0, %v20758_v41  ;;  %679 = vst.msk [vmem:[#allocation3 + $0x180] sm:$0xff] %vm575_vm1, %v20054_v33  ;;  %680 = vst.msk [vmem:[#allocation3 + $0x188] sm:$0xff] %vm575_vm1, %v20054_v33 }
 0x1a4   : > { %682 = vst.msk [vmem:[#allocation3 + $0x198] sm:$0xff] %vm575_vm1, %v20054_v33  ;;  %683 = vst.msk [vmem:[#allocation3 + $0x1a0] sm:$0xff] %vm575_vm1, %v20054_v33 }
 0x1a5   : > { %17043 = vmatmul.mubr.msk.f32.gmra.mrb[26].mxu1 %vm752_vm0, %v25695_v15 }
 0x1a6   : > { %17243 = vmatmul.mubr.msk.f32.gmra.mrb[26].mxu0 %vm752_vm0, %v25703_v26  ;;  %17045 = vmatprep.mubr.msk.f32.mxu1 %vm752_vm0, %v25704_v27 }
 0x1a7   : > { %17245 = vmatprep.mubr.msk.f32.mxu0 %vm752_vm0, %v25705_v29 }
 0x1a9   : > { %17046 = vmatmul.mubr.msk.f32.gmra.mrb[28].mxu1 %vm752_vm0, %v25699_v61 }
 0x1aa   : > { %17246 = vmatmul.mubr.msk.f32.gmra.mrb[28].mxu0 %vm752_vm0, %v25706_v31  ;;  %17048 = vmatprep.mubr.msk.f32.mxu1 %vm752_vm0, %v21100_v1 }
 0x1ab   : > { %17248 = vmatprep.mubr.msk.f32.mxu0 %vm752_vm0, %v14741_v30 }
 0x1ad   : > { %17049 = vmatmul.mubr.msk.f32.gmra.mrb[30].mxu1 %vm752_vm0, %v21111_v13 }
 0x1ae   : > { %17249 = vmatmul.mubr.msk.f32.gmra.mrb[30].mxu0 %vm752_vm0, %v14742_v32 }
 0x224   : > { %v16955_v34 = vpop.f32.mrb[0].mxu1 }
 0x225   : > { %v1979_v36 = vpop.f32.mrb[1].mxu1 }
 0x228   : > { %v16958_v38 = vpop.f32.mrb[2].mxu1 }
 0x229   : > { %v1989_v39 = vpop.f32.mrb[3].mxu1 }
 0x22c   : > { %v16961_v40 = vpop.f32.mrb[4].mxu1 }
 0x22d   : > { %v1999_v41 = vpop.f32.mrb[5].mxu1 }
 0x230   : > { %v16964_v42 = vpop.f32.mrb[6].mxu1 }
 0x231   : > { %v2009_v43 = vpop.f32.mrb[7].mxu1 }
 0x234   : > { %v16967_v44 = vpop.f32.mrb[8].mxu1 }
 0x235   : > { %v2019_v45 = vpop.f32.mrb[9].mxu1 }
 0x238   : > { %v16970_v46 = vpop.f32.mrb[10].mxu1 }
 0x239   : > { %v2029_v47 = vpop.f32.mrb[11].mxu1 }
 0x23c   : > { %v21469_v48 = vpop.f32.mrb[12].mxu1 }
 0x23d   : > { %v21471_v49 = vpop.f32.mrb[13].mxu1 }
 0x240   : > { %v21473_v50 = vpop.f32.mrb[14].mxu1 }
 0x241   : > { %v21475_v51 = vpop.f32.mrb[15].mxu1 }
 0x245   : > { %v17205_v52 = vpop.f32.mrb[0].mxu0 }
 0x246   : > { %v18981_v54 = vadd.f32 %v17205_v52, %v16955_v34  ;;  %v3915_v56 = vpop.f32.mrb[1].mxu0 }
 0x247   : > { %v18982_v58 = vadd.f32 %v3915_v56, %v1979_v36 }
 0x248   : > { %v4114_v60 = vadd.f32 %v18981_v54, %v21477_v53 }
 0x249   : > { %v4113_v62 = vadd.f32 %v18982_v58, %v21477_v53  ;;  %v17208_v63 = vpop.f32.mrb[2].mxu0 }
 0x24a   : > { %v4146_v0 = vmax.f32 %v4114_v60, 0.0  ;;  %v18983_v2 = vadd.f32 %v17208_v63, %v16958_v38  ;;  %v3925_v3 = vpop.f32.mrb[3].mxu0 }
 0x24b   : > { %v4145_v4 = vmax.f32 %v4113_v62, 0.0  ;;  %v18984_v5 = vadd.f32 %v3925_v3, %v1989_v39 }
 0x24c   : > { %4179 = vst.msk [vmem:[#allocation2 + $0x21] sm:$0xff] %vm575_vm1, %v4146_v0  ;;  %v4116_v6 = vadd.f32 %v18983_v2, %v21477_v53 }
 0x24d   : > { %4178 = vst.msk [vmem:[#allocation2 + $0x19] sm:$0xff] %vm575_vm1, %v4145_v4  ;;  %v4115_v7 = vadd.f32 %v18984_v5, %v21477_v53  ;;  %v17211_v11 = vpop.f32.mrb[4].mxu0 }
 0x24e   : > { %v4148_v17 = vmax.f32 %v4116_v6, 0.0  ;;  %v18985_v55 = vadd.f32 %v17211_v11, %v16961_v40  ;;  %v3935_v57 = vpop.f32.mrb[5].mxu0 }
 0x24f   : > { %v4147_v28 = vmax.f32 %v4115_v7, 0.0  ;;  %v18986_v24 = vadd.f32 %v3935_v57, %v1999_v41 }
 0x250   : > { %4181 = vst.msk [vmem:[#allocation2 + $0x39] sm:$0xff] %vm575_vm1, %v4148_v17  ;;  %v4118_v25 = vadd.f32 %v18985_v55, %v21477_v53 }
 0x251   : > { %4180 = vst.msk [vmem:[#allocation2 + $0x31] sm:$0xff] %vm575_vm1, %v4147_v28  ;;  %v4117_v8 = vadd.f32 %v18986_v24, %v21477_v53  ;;  %v17214_v9 = vpop.f32.mrb[6].mxu0 }
 0x252   : > { %v4150_v12 = vmax.f32 %v4118_v25, 0.0  ;;  %v18987_v14 = vadd.f32 %v17214_v9, %v16964_v42  ;;  %v3945_v16 = vpop.f32.mrb[7].mxu0 }
 0x253   : > { %v4149_v19 = vmax.f32 %v4117_v8, 0.0  ;;  %v18988_v21 = vadd.f32 %v3945_v16, %v2009_v43 }
 0x254   : > { %4183 = vst.msk [vmem:[#allocation2 + $0x51] sm:$0xff] %vm575_vm1, %v4150_v12  ;;  %v4120_v22 = vadd.f32 %v18987_v14, %v21477_v53 }
 0x255   : > { %4182 = vst.msk [vmem:[#allocation2 + $0x49] sm:$0xff] %vm575_vm1, %v4149_v19  ;;  %v4119_v37 = vadd.f32 %v18988_v21, %v21477_v53  ;;  %v17217_v35 = vpop.f32.mrb[8].mxu0 }
 0x256   : > { %v4152_v10 = vmax.f32 %v4120_v22, 0.0  ;;  %v18989_v15 = vadd.f32 %v17217_v35, %v16967_v44  ;;  %v3955_v20 = vpop.f32.mrb[9].mxu0 }
 0x257   : > { %v4151_v1 = vmax.f32 %v4119_v37, 0.0  ;;  %v18990_v61 = vadd.f32 %v3955_v20, %v2019_v45 }
 0x258   : > { %4185 = vst.msk [vmem:[#allocation2 + $0x69] sm:$0xff] %vm575_vm1, %v4152_v10  ;;  %v4122_v59 = vadd.f32 %v18989_v15, %v21477_v53 }
 0x259   : > { %4184 = vst.msk [vmem:[#allocation2 + $0x61] sm:$0xff] %vm575_vm1, %v4151_v1  ;;  %v4121_v13 = vadd.f32 %v18990_v61, %v21477_v53  ;;  %v17220_v18 = vpop.f32.mrb[10].mxu0 }
 0x25a   : > { %v4154_v23 = vmax.f32 %v4122_v59, 0.0  ;;  %v18991_v26 = vadd.f32 %v17220_v18, %v16970_v46  ;;  %v3965_v27 = vpop.f32.mrb[11].mxu0 }
 0x25b   : > { %v4153_v29 = vmax.f32 %v4121_v13, 0.0  ;;  %v18992_v30 = vadd.f32 %v3965_v27, %v2029_v47 }
 0x25c   : > { %4187 = vst.msk [vmem:[#allocation2 + $0x81] sm:$0xff] %vm575_vm1, %v4154_v23  ;;  %v4124_v31 = vadd.f32 %v18991_v26, %v21477_v53 }
 0x25d   : > { %4186 = vst.msk [vmem:[#allocation2 + $0x79] sm:$0xff] %vm575_vm1, %v4153_v29  ;;  %v4123_v32 = vadd.f32 %v18992_v30, %v21477_v53  ;;  %v17223_v33 = vpop.f32.mrb[12].mxu0 }
 0x25e   : > { %v4156_v34 = vmax.f32 %v4124_v31, 0.0  ;;  %v18993_v36 = vadd.f32 %v17223_v33, %v21469_v48  ;;  %v3975_v38 = vpop.f32.mrb[13].mxu0 }
 0x25f   : > { %v4155_v39 = vmax.f32 %v4123_v32, 0.0  ;;  %v18994_v40 = vadd.f32 %v3975_v38, %v21471_v49 }
 0x260   : > { %4189 = vst.msk [vmem:[#allocation2 + $0x99] sm:$0xff] %vm575_vm1, %v4156_v34  ;;  %v4126_v41 = vadd.f32 %v18993_v36, %v21477_v53 }
 0x261   : > { %4188 = vst.msk [vmem:[#allocation2 + $0x91] sm:$0xff] %vm575_vm1, %v4155_v39  ;;  %v4125_v42 = vadd.f32 %v18994_v40, %v21477_v53  ;;  %v17226_v43 = vpop.f32.mrb[14].mxu0 }
 0x262   : > { %v4158_v44 = vmax.f32 %v4126_v41, 0.0  ;;  %v18995_v45 = vadd.f32 %v17226_v43, %v21473_v50  ;;  %v3985_v46 = vpop.f32.mrb[15].mxu0 }
 0x263   : > { %v4157_v47 = vmax.f32 %v4125_v42, 0.0  ;;  %v18996_v48 = vadd.f32 %v3985_v46, %v21475_v51 }
 0x264   : > { %4191 = vst.msk [vmem:[#allocation2 + $0xb1] sm:$0xff] %vm575_vm1, %v4158_v44  ;;  %v4128_v49 = vadd.f32 %v18995_v45, %v21477_v53  ;;  %v17029_v52 = vpop.f32.mrb[16].mxu1 }
 0x265   : > { %4190 = vst.msk [vmem:[#allocation2 + $0xa9] sm:$0xff] %vm575_vm1, %v4157_v47  ;;  %v4127_v54 = vadd.f32 %v18996_v48, %v21477_v53  ;;  %v17229_v56 = vpop.f32.mrb[16].mxu0  ;;  %v2446_v58 = vpop.f32.mrb[17].mxu1 }
 0x266   : > { %v4160_v60 = vmax.f32 %v4128_v49, 0.0  ;;  %v18997_v62 = vadd.f32 %v17229_v56, %v17029_v52  ;;  %v3995_v63 = vpop.f32.mrb[17].mxu0 }
 0x267   : > { %v4159_v0 = vmax.f32 %v4127_v54, 0.0  ;;  %v18998_v50 = vadd.f32 %v3995_v63, %v2446_v58 }
 0x268   : > { %4193 = vst.msk [vmem:[#allocation2 + $0xc9] sm:$0xff] %vm575_vm1, %v4160_v60  ;;  %v4130_v51 = vadd.f32 %v18997_v62, %v21477_v53  ;;  %v17032_v2 = vpop.f32.mrb[18].mxu1 }
 0x269   : > { %4192 = vst.msk [vmem:[#allocation2 + $0xc1] sm:$0xff] %vm575_vm1, %v4159_v0  ;;  %v4129_v3 = vadd.f32 %v18998_v50, %v21477_v53  ;;  %v17232_v4 = vpop.f32.mrb[18].mxu0  ;;  %v2456_v5 = vpop.f32.mrb[19].mxu1 }
 0x26a   : > { %v4162_v6 = vmax.f32 %v4130_v51, 0.0  ;;  %v18999_v7 = vadd.f32 %v17232_v4, %v17032_v2  ;;  %v4005_v11 = vpop.f32.mrb[19].mxu0 }
 0x26b   : > { %v4161_v17 = vmax.f32 %v4129_v3, 0.0  ;;  %v19000_v55 = vadd.f32 %v4005_v11, %v2456_v5 }
 0x26c   : > { %4195 = vst.msk [vmem:[#allocation2 + $0xe1] sm:$0xff] %vm575_vm1, %v4162_v6  ;;  %v4132_v57 = vadd.f32 %v18999_v7, %v21477_v53  ;;  %v17035_v28 = vpop.f32.mrb[20].mxu1 }
 0x26d   : > { %4194 = vst.msk [vmem:[#allocation2 + $0xd9] sm:$0xff] %vm575_vm1, %v4161_v17  ;;  %v4131_v24 = vadd.f32 %v19000_v55, %v21477_v53  ;;  %v17235_v25 = vpop.f32.mrb[20].mxu0  ;;  %v2466_v8 = vpop.f32.mrb[21].mxu1 }
 0x26e   : > { %v4164_v9 = vmax.f32 %v4132_v57, 0.0  ;;  %v19001_v12 = vadd.f32 %v17235_v25, %v17035_v28  ;;  %v4015_v14 = vpop.f32.mrb[21].mxu0 }
 0x26f   : > { %v4163_v16 = vmax.f32 %v4131_v24, 0.0  ;;  %v19002_v19 = vadd.f32 %v4015_v14, %v2466_v8 }
 0x270   : > { %4197 = vst.msk [vmem:[#allocation2 + $0xf9] sm:$0xff] %vm575_vm1, %v4164_v9  ;;  %v4134_v21 = vadd.f32 %v19001_v12, %v21477_v53  ;;  %v17038_v22 = vpop.f32.mrb[22].mxu1 }
 0x271   : > { %4196 = vst.msk [vmem:[#allocation2 + $0xf1] sm:$0xff] %vm575_vm1, %v4163_v16  ;;  %v4133_v37 = vadd.f32 %v19002_v19, %v21477_v53  ;;  %v17238_v35 = vpop.f32.mrb[22].mxu0  ;;  %v2476_v10 = vpop.f32.mrb[23].mxu1 }
 0x272   : > { %v4166_v15 = vmax.f32 %v4134_v21, 0.0  ;;  %v19003_v20 = vadd.f32 %v17238_v35, %v17038_v22  ;;  %v4025_v1 = vpop.f32.mrb[23].mxu0 }
 0x273   : > { %v4165_v61 = vmax.f32 %v4133_v37, 0.0  ;;  %v19004_v59 = vadd.f32 %v4025_v1, %v2476_v10 }
 0x274   : > { %4199 = vst.msk [vmem:[#allocation2 + $0x111] sm:$0xff] %vm575_vm1, %v4166_v15  ;;  %v4136_v13 = vadd.f32 %v19003_v20, %v21477_v53  ;;  %v17041_v18 = vpop.f32.mrb[24].mxu1 }
 0x275   : > { %4198 = vst.msk [vmem:[#allocation2 + $0x109] sm:$0xff] %vm575_vm1, %v4165_v61  ;;  %v4135_v23 = vadd.f32 %v19004_v59, %v21477_v53  ;;  %v17241_v26 = vpop.f32.mrb[24].mxu0  ;;  %v2486_v27 = vpop.f32.mrb[25].mxu1 }
 0x276   : > { %v4168_v29 = vmax.f32 %v4136_v13, 0.0  ;;  %v19005_v30 = vadd.f32 %v17241_v26, %v17041_v18  ;;  %v4035_v31 = vpop.f32.mrb[25].mxu0 }
 0x277   : > { %v4167_v32 = vmax.f32 %v4135_v23, 0.0  ;;  %v19006_v33 = vadd.f32 %v4035_v31, %v2486_v27 }
 0x278   : > { %4201 = vst.msk [vmem:[#allocation2 + $0x129] sm:$0xff] %vm575_vm1, %v4168_v29  ;;  %v4138_v34 = vadd.f32 %v19005_v30, %v21477_v53  ;;  %v17044_v36 = vpop.f32.mrb[26].mxu1 }
 0x279   : > { %4200 = vst.msk [vmem:[#allocation2 + $0x121] sm:$0xff] %vm575_vm1, %v4167_v32  ;;  %v4137_v38 = vadd.f32 %v19006_v33, %v21477_v53  ;;  %v17244_v39 = vpop.f32.mrb[26].mxu0  ;;  %v2496_v40 = vpop.f32.mrb[27].mxu1 }
 0x27a   : > { %v4170_v41 = vmax.f32 %v4138_v34, 0.0  ;;  %v19007_v42 = vadd.f32 %v17244_v39, %v17044_v36  ;;  %v4045_v43 = vpop.f32.mrb[27].mxu0 }
 0x27b   : > { %v4169_v44 = vmax.f32 %v4137_v38, 0.0  ;;  %v19008_v45 = vadd.f32 %v4045_v43, %v2496_v40 }
 0x27c   : > { %4203 = vst.msk [vmem:[#allocation2 + $0x141] sm:$0xff] %vm575_vm1, %v4170_v41  ;;  %v4140_v46 = vadd.f32 %v19007_v42, %v21477_v53  ;;  %v17047_v47 = vpop.f32.mrb[28].mxu1 }
 0x27d   : > { %4202 = vst.msk [vmem:[#allocation2 + $0x139] sm:$0xff] %vm575_vm1, %v4169_v44  ;;  %v4139_v48 = vadd.f32 %v19008_v45, %v21477_v53  ;;  %v17247_v49 = vpop.f32.mrb[28].mxu0  ;;  %v2506_v52 = vpop.f32.mrb[29].mxu1 }
 0x27e   : > { %v4172_v54 = vmax.f32 %v4140_v46, 0.0  ;;  %v19009_v56 = vadd.f32 %v17247_v49, %v17047_v47  ;;  %v4055_v58 = vpop.f32.mrb[29].mxu0 }
 0x27f   : > { %v4171_v60 = vmax.f32 %v4139_v48, 0.0  ;;  %v19010_v62 = vadd.f32 %v4055_v58, %v2506_v52 }
 0x280   : > { %4205 = vst.msk [vmem:[#allocation2 + $0x159] sm:$0xff] %vm575_vm1, %v4172_v54  ;;  %v4142_v63 = vadd.f32 %v19009_v56, %v21477_v53  ;;  %v17050_v0 = vpop.f32.mrb[30].mxu1 }
 0x281   : > { %4204 = vst.msk [vmem:[#allocation2 + $0x151] sm:$0xff] %vm575_vm1, %v4171_v60  ;;  %v4141_v50 = vadd.f32 %v19010_v62, %v21477_v53  ;;  %v17250_v51 = vpop.f32.mrb[30].mxu0  ;;  %v2516_v2 = vpop.f32.mrb[31].mxu1 }
 0x282   : > { %v4174_v3 = vmax.f32 %v4142_v63, 0.0  ;;  %v19011_v4 = vadd.f32 %v17250_v51, %v17050_v0  ;;  %v4065_v5 = vpop.f32.mrb[31].mxu0 }
 0x283   : > { %v4173_v6 = vmax.f32 %v4141_v50, 0.0  ;;  %v19012_v7 = vadd.f32 %v4065_v5, %v2516_v2 }
 0x284   : > { %4207 = vst.msk [vmem:[#allocation2 + $0x171] sm:$0xff] %vm575_vm1, %v4174_v3  ;;  %v4144_v11 = vadd.f32 %v19011_v4, %v21477_v53 }
 0x285   : > { %4206 = vst.msk [vmem:[#allocation2 + $0x169] sm:$0xff] %vm575_vm1, %v4173_v6  ;;  %v4143_v17 = vadd.f32 %v19012_v7, %v21477_v53 }
 0x286   : > { %v4176_v55 = vmax.f32 %v4144_v11, 0.0 }
 0x287   : > { %v4175_v57 = vmax.f32 %v4143_v17, 0.0 }
 0x288   : > { %4209 = vst.msk [vmem:[#allocation2 + $0x189] sm:$0xff] %vm575_vm1, %v4176_v55 }
 0x289   : > { %4208 = vst.msk [vmem:[#allocation2 + $0x181] sm:$0xff] %vm575_vm1, %v4175_v57 }
 0x28a PF: > { %p4210_p9 = scmp.ge.s32.totalorder %s20031_s12, 1  ;;  %p4211_p12 = scmp.le.s32.totalorder %s20031_s12, 14 }
 0x28c   : > { %p4212_p0 = pnand %p4211_p12, %p4210_p9 }
 0x28e   : > { %4215 = sbr.rel (%p4212_p0) target bundleno = 2204 (0x89c), region = 76 }
 0x295   : > { %v14777_v53 = vld [vmem:[%s20316_s27 + $0x40] sm:$0xff]  ;;  %v14778_v28 = vld [vmem:[%s20316_s27 + $0x48] sm:$0xff]  ;;  %v14779_v24 = vld [vmem:[%s20316_s27 + $0x50] sm:$0xff]  ;;  %vm4297_vm3 = vcmask 523264  }
 0x296   : > { %v18403_v25 = vpack.c.bf16 %v14778_v28, %v14777_v53  ;;  %v14780_v8 = vld [vmem:[%s20316_s27 + $0x58] sm:$0xff]  ;;  %v14781_v12 = vld [vmem:[%s20316_s27 + $0x60] sm:$0xff]  ;;  %v14782_v14 = vld [vmem:[%s20316_s27 + $0x68] sm:$0xff] }
 0x297   : > { %v18407_v9 = vpack.c.bf16 %v14780_v8, %v14779_v24  ;;  %v4256_v16 = vld [vmem:[#allocation2 + $0x1] sm:$0xff]  ;;  %v18411_v19 = vpack.c.bf16 %v14782_v14, %v14781_v12  ;;  %v14783_v21 = vld [vmem:[%s20316_s27 + $0x70] sm:$0xff]  ;;  %v4249_v10 = vld [vmem:[%s20316_s27 + $0x8] sm:$0xff] }
 0x298   : > { %18404 = vmatprep.subr.bf16.mxu0 %v18403_v25  ;;  %17267 = vmatprep.mubr.msk.f32.mxu0 %vm4297_vm3, %v4256_v16  ;;  %v14784_v22 = vld [vmem:[%s20316_s27 + $0x78] sm:$0xff]  ;;  %v4248_v35 = vld [vmem:[%s20316_s27] sm:$0xff]  ;;  %v4250_v20 = vld [vmem:[%s20316_s27 + $0x10] sm:$0xff] }
 0x299   : > { %18406 = vmatpush3.bf16.msra.mxu0 %v18403_v25  ;;  %v18415_v37 = vpack.c.bf16 %v14784_v22, %v14783_v21  ;;  %v18419_v15 = vpack.c.bf16 %v4249_v10, %v4248_v35  ;;  %v4251_v1 = vld [vmem:[%s20316_s27 + $0x18] sm:$0xff]  ;;  %v4257_v61 = vld [vmem:[#allocation2 + $0x9] sm:$0xff]  ;;  %v21571_v27 = vld [vmem:[#allocation2 + $0x31] sm:$0xff] }
 0x29a   : > { %18408 = vmatprep.subr.bf16.mxu0 %v18407_v9  ;;  %v21562_v59 = vld [vmem:[#allocation2 + $0x19] sm:$0xff]  ;;  %v18423_v13 = vpack.c.bf16 %v4251_v1, %v4250_v20  ;;  %v4252_v18 = vld [vmem:[%s20316_s27 + $0x20] sm:$0xff]  ;;  %v4253_v23 = vld [vmem:[%s20316_s27 + $0x28] sm:$0xff] }
 0x29b   : > { %v21569_v26 = vld [vmem:[#allocation2 + $0x21] sm:$0xff]  ;;  %v18427_v29 = vpack.c.bf16 %v4253_v23, %v4252_v18  ;;  %v4254_v30 = vld [vmem:[%s20316_s27 + $0x30] sm:$0xff]  ;;  %v21581_v33 = vld [vmem:[#allocation2 + $0x49] sm:$0xff] }
 0x29c   : > { %v4255_v31 = vld [vmem:[%s20316_s27 + $0x38] sm:$0xff]  ;;  %v14849_v36 = vld [vmem:[%s20316_s27 + $0x80] sm:$0xff]  ;;  %v14850_v38 = vld [vmem:[%s20316_s27 + $0x88] sm:$0xff] }
 0x29d   : > { %18410 = vmatpush3.bf16.msra.mxu0 %v18407_v9  ;;  %v21579_v32 = vld [vmem:[#allocation2 + $0x39] sm:$0xff]  ;;  %v18431_v34 = vpack.c.bf16 %v4255_v31, %v4254_v30  ;;  %v21589_v39 = vld [vmem:[#allocation2 + $0x51] sm:$0xff]  ;;  %v21591_v40 = vld [vmem:[#allocation2 + $0x61] sm:$0xff]  ;;  %v18435_v41 = vpack.c.bf16 %v14850_v38, %v14849_v36 }
 0x29e   : > { %18412 = vmatprep.subr.bf16.mxu0 %v18411_v19  ;;  %v21597_v42 = vld [vmem:[#allocation2 + $0x69] sm:$0xff]  ;;  %v21599_v43 = vld [vmem:[#allocation2 + $0x79] sm:$0xff]  ;;  %v21605_v44 = vld [vmem:[#allocation2 + $0x81] sm:$0xff] }
 0x29f   : > { %v21607_v45 = vld [vmem:[#allocation2 + $0x91] sm:$0xff]  ;;  %v21613_v46 = vld [vmem:[#allocation2 + $0x99] sm:$0xff]  ;;  %v21615_v47 = vld [vmem:[#allocation2 + $0xa9] sm:$0xff] }
 0x2a0   : > { %v21621_v48 = vld [vmem:[#allocation2 + $0xb1] sm:$0xff]  ;;  %v21623_v49 = vld [vmem:[#allocation2 + $0xc1] sm:$0xff]  ;;  %v21629_v52 = vld [vmem:[#allocation2 + $0xc9] sm:$0xff] }
 0x2a1   : > { %18414 = vmatpush3.bf16.msra.mxu0 %v18411_v19  ;;  %v21631_v54 = vld [vmem:[#allocation2 + $0xd9] sm:$0xff]  ;;  %v21637_v56 = vld [vmem:[#allocation2 + $0xe1] sm:$0xff]  ;;  %v21639_v58 = vld [vmem:[#allocation2 + $0xf1] sm:$0xff] }
 0x2a2   : > { %18416 = vmatprep.subr.bf16.mxu0 %v18415_v37  ;;  %v21645_v60 = vld [vmem:[#allocation2 + $0xf9] sm:$0xff]  ;;  %v21647_v62 = vld [vmem:[#allocation2 + $0x109] sm:$0xff]  ;;  %v21653_v63 = vld [vmem:[#allocation2 + $0x111] sm:$0xff] }
 0x2a3   : > { %25707 = vst [vmem:[#allocation47_spill] sm:$0xff] %v21653_v63  ;;  %v21655_v0 = vld [vmem:[#allocation2 + $0x121] sm:$0xff]  ;;  %v21661_v50 = vld [vmem:[#allocation2 + $0x129] sm:$0xff]  ;;  %v21663_v51 = vld [vmem:[#allocation2 + $0x139] sm:$0xff] }
 0x2a4   : > { %25708 = vst [vmem:[#allocation48_spill] sm:$0xff] %v21655_v0  ;;  %25709 = vst [vmem:[#allocation49_spill] sm:$0xff] %v21661_v50  ;;  %v21669_v2 = vld [vmem:[#allocation2 + $0x141] sm:$0xff]  ;;  %v21671_v3 = vld [vmem:[#allocation2 + $0x151] sm:$0xff] }
 0x2a5   : > { %18418 = vmatpush3.bf16.msra.mxu0 %v18415_v37  ;;  %25710 = vst [vmem:[#allocation50_spill] sm:$0xff] %v21663_v51  ;;  %25711 = vst [vmem:[#allocation51_spill] sm:$0xff] %v21669_v2  ;;  %v21677_v4 = vld [vmem:[#allocation2 + $0x159] sm:$0xff]  ;;  %v21679_v5 = vld [vmem:[#allocation2 + $0x169] sm:$0xff] }
 0x2a6   : > { %18420 = vmatprep.subr.bf16.mxu0 %v18419_v15  ;;  %25712 = vst [vmem:[#allocation52_spill] sm:$0xff] %v21671_v3  ;;  %25713 = vst [vmem:[#allocation53_spill] sm:$0xff] %v21677_v4  ;;  %v21685_v6 = vld [vmem:[#allocation2 + $0x171] sm:$0xff]  ;;  %v4216_v7 = vld [vmem:[#allocation2] sm:$0xff] }
 0x2a7   : > { %25714 = vst [vmem:[#allocation54_spill] sm:$0xff] %v21679_v5  ;;  %25715 = vst [vmem:[#allocation55_spill] sm:$0xff] %v21685_v6  ;;  %v14851_v11 = vld [vmem:[%s20316_s27 + $0x90] sm:$0xff]  ;;  %v14852_v17 = vld [vmem:[%s20316_s27 + $0x98] sm:$0xff] }
 0x2a8   : > { %17268 = vmatmul.mubr.msk.f32.vlgmr.msra.gmra.mrb[0].mxu0 %vm4297_vm3, %v4257_v61  ;;  %v4217_v55 = vld [vmem:[#allocation2 + $0x8] sm:$0xff]  ;;  %v21692_v57 = vld [vmem:[#allocation2 + $0x18] sm:$0xff]  ;;  %v18439_v53 = vpack.c.bf16 %v14852_v17, %v14851_v11  ;;  %v21699_v25 = vld [vmem:[#allocation2 + $0x20] sm:$0xff] }
 0x2a9   : > { %18422 = vmatpush3.bf16.msra.mxu0 %v18419_v15  ;;  %17270 = vmatprep.mubr.msk.f32.mxu0 %vm4297_vm3, %v21562_v59  ;;  %v14853_v28 = vld [vmem:[%s20316_s27 + $0xa0] sm:$0xff]  ;;  %v14854_v24 = vld [vmem:[%s20316_s27 + $0xa8] sm:$0xff]  ;;  %v14855_v12 = vld [vmem:[%s20316_s27 + $0xb0] sm:$0xff] }
 0x2aa   : > { %18424 = vmatprep.subr.bf16.mxu0 %v18423_v13  ;;  %v21701_v8 = vld [vmem:[#allocation2 + $0x30] sm:$0xff]  ;;  %v18443_v9 = vpack.c.bf16 %v14854_v24, %v14853_v28  ;;  %v14856_v14 = vld [vmem:[%s20316_s27 + $0xb8] sm:$0xff]  ;;  %v21711_v19 = vld [vmem:[#allocation2 + $0x48] sm:$0xff] }
 0x2ab   : > { %v21709_v16 = vld [vmem:[#allocation2 + $0x38] sm:$0xff]  ;;  %v18447_v21 = vpack.c.bf16 %v14856_v14, %v14855_v12  ;;  %v14889_v22 = vld [vmem:[%s20316_s27 + $0xc0] sm:$0xff]  ;;  %v14890_v37 = vld [vmem:[%s20316_s27 + $0xc8] sm:$0xff] }
 0x2ac   : > { %17271 = vmatmul.mubr.msk.f32.gmra.mrb[2].mxu0 %vm4297_vm3, %v21569_v26  ;;  %v21719_v35 = vld [vmem:[#allocation2 + $0x50] sm:$0xff]  ;;  %v21721_v10 = vld [vmem:[#allocation2 + $0x60] sm:$0xff]  ;;  %v18451_v15 = vpack.c.bf16 %v14890_v37, %v14889_v22  ;;  %v21727_v20 = vld [vmem:[#allocation2 + $0x68] sm:$0xff] }
 0x2ad   : > { %17273 = vmatprep.mubr.msk.f32.mxu0 %vm4297_vm3, %v21571_v27  ;;  %18426 = vmatpush3.bf16.msra.mxu0 %v18423_v13  ;;  %v21729_v1 = vld [vmem:[#allocation2 + $0x78] sm:$0xff]  ;;  %v21735_v61 = vld [vmem:[#allocation2 + $0x80] sm:$0xff]  ;;  %v21737_v13 = vld [vmem:[#allocation2 + $0x90] sm:$0xff] }
 0x2ae   : > { %18428 = vmatprep.subr.bf16.mxu0 %v18427_v29  ;;  %v21743_v18 = vld [vmem:[#allocation2 + $0x98] sm:$0xff]  ;;  %v21745_v23 = vld [vmem:[#allocation2 + $0xa8] sm:$0xff]  ;;  %v21753_v30 = vld [vmem:[#allocation2 + $0xc0] sm:$0xff] }
 0x2af   : > { %v21759_v31 = vld [vmem:[#allocation2 + $0xc8] sm:$0xff]  ;;  %v21767_v36 = vld [vmem:[#allocation2 + $0xe0] sm:$0xff]  ;;  %v21769_v38 = vld [vmem:[#allocation2 + $0xf0] sm:$0xff] }
 0x2b0   : > { %17274 = vmatmul.mubr.msk.f32.gmra.mrb[4].mxu0 %vm4297_vm3, %v21579_v32  ;;  %v21783_v11 = vld [vmem:[#allocation2 + $0x110] sm:$0xff]  ;;  %v21785_v17 = vld [vmem:[#allocation2 + $0x120] sm:$0xff]  ;;  %v21809_v12 = vld [vmem:[#allocation2 + $0x168] sm:$0xff] }
 0x2b1   : > { %17276 = vmatprep.mubr.msk.f32.mxu0 %vm4297_vm3, %v21581_v33  ;;  %18430 = vmatpush3.bf16.msra.mxu0 %v18427_v29  ;;  %v21751_v29 = vld [vmem:[#allocation2 + $0xb0] sm:$0xff]  ;;  %v21799_v28 = vld [vmem:[#allocation2 + $0x140] sm:$0xff] }
 0x2b2   : > { %18432 = vmatprep.subr.bf16.mxu0 %v18431_v34  ;;  %v21801_v24 = vld [vmem:[#allocation2 + $0x150] sm:$0xff]  ;;  %v14892_v37 = vld [vmem:[%s20316_s27 + $0xd8] sm:$0xff] }
 0x2b3   : > { %v21815_v14 = vld [vmem:[#allocation2 + $0x170] sm:$0xff] }
 0x2b4   : > { %17277 = vmatmul.mubr.msk.f32.gmra.mrb[6].mxu0 %vm4297_vm3, %v21589_v39  ;;  %v14891_v22 = vld [vmem:[%s20316_s27 + $0xd0] sm:$0xff] }
 0x2b5   : > { %17279 = vmatprep.mubr.msk.f32.mxu0 %vm4297_vm3, %v21591_v40  ;;  %18434 = vmatpush3.bf16.msra.mxu0 %v18431_v34  ;;  %v21761_v34 = vld [vmem:[#allocation2 + $0xd8] sm:$0xff] }
 0x2b6   : > { %18436 = vmatprep.subr.bf16.mxu0 %v18435_v41 }
 0x2b8   : > { %17280 = vmatmul.mubr.msk.f32.gmra.mrb[8].mxu0 %vm4297_vm3, %v21597_v42 }
 0x2b9   : > { %17282 = vmatprep.mubr.msk.f32.mxu0 %vm4297_vm3, %v21599_v43 }
 0x2bc   : > { %17283 = vmatmul.mubr.msk.f32.gmra.mrb[10].mxu0 %vm4297_vm3, %v21605_v44 }
 0x2bd   : > { %17285 = vmatprep.mubr.msk.f32.mxu0 %vm4297_vm3, %v21607_v45 }
 0x2c0   : > { %17286 = vmatmul.mubr.msk.f32.gmra.mrb[12].mxu0 %vm4297_vm3, %v21613_v46 }
 0x2c1   : > { %17288 = vmatprep.mubr.msk.f32.mxu0 %vm4297_vm3, %v21615_v47 }
 0x2c4   : > { %17289 = vmatmul.mubr.msk.f32.gmra.mrb[14].mxu0 %vm4297_vm3, %v21621_v48 }
 0x2c5   : > { %17291 = vmatprep.mubr.msk.f32.mxu0 %vm4297_vm3, %v21623_v49 }
 0x2c8   : > { %17292 = vmatmul.mubr.msk.f32.gmra.mrb[16].mxu0 %vm4297_vm3, %v21629_v52 }
 0x2c9   : > { %17294 = vmatprep.mubr.msk.f32.mxu0 %vm4297_vm3, %v21631_v54 }
 0x2cc   : > { %17295 = vmatmul.mubr.msk.f32.gmra.mrb[18].mxu0 %vm4297_vm3, %v21637_v56 }
 0x2cd   : > { %17297 = vmatprep.mubr.msk.f32.mxu0 %vm4297_vm3, %v21639_v58 }
 0x2d0   : > { %17298 = vmatmul.mubr.msk.f32.gmra.mrb[20].mxu0 %vm4297_vm3, %v21645_v60 }
 0x2d1   : > { %17300 = vmatprep.mubr.msk.f32.mxu0 %vm4297_vm3, %v21647_v62 }
 0x2d4   : > { %17301 = vmatmul.mubr.msk.f32.gmra.mrb[22].mxu0 %vm4297_vm3, %v21653_v63  ;;  %v14896_v63 = vld [vmem:[%s20316_s27 + $0xf8] sm:$0xff] }
 0x2d5   : > { %17303 = vmatprep.mubr.msk.f32.mxu0 %vm4297_vm3, %v21655_v0  ;;  %v14895_v0 = vld [vmem:[%s20316_s27 + $0xf0] sm:$0xff] }
 0x2d8   : > { %17304 = vmatmul.mubr.msk.f32.gmra.mrb[24].mxu0 %vm4297_vm3, %v21661_v50  ;;  %v21831_v50 = vld [vmem:[#allocation2 + $0x32] sm:$0xff] }
 0x2d9   : > { %17306 = vmatprep.mubr.msk.f32.mxu0 %vm4297_vm3, %v21663_v51  ;;  %v21829_v51 = vld [vmem:[#allocation2 + $0x22] sm:$0xff]  ;;  %25717 = vst [vmem:[#allocation57_spill] sm:$0xff] %v21831_v50 }
 0x2dc   : > { %17307 = vmatmul.mubr.msk.f32.gmra.mrb[26].mxu0 %vm4297_vm3, %v21669_v2  ;;  %v14894_v2 = vld [vmem:[%s20316_s27 + $0xe8] sm:$0xff] }
 0x2dd   : > { %17309 = vmatprep.mubr.msk.f32.mxu0 %vm4297_vm3, %v21671_v3  ;;  %v14893_v3 = vld [vmem:[%s20316_s27 + $0xe0] sm:$0xff] }
 0x2e0   : > { %17310 = vmatmul.mubr.msk.f32.gmra.mrb[28].mxu0 %vm4297_vm3, %v21677_v4  ;;  %v18455_v4 = vpack.c.bf16 %v14892_v37, %v14891_v22  ;;  %v18463_v22 = vpack.c.bf16 %v14896_v63, %v14895_v0  ;;  %v14929_v37 = vld [vmem:[%s20316_s27 + $0x100] sm:$0xff]  ;;  %v21857_v63 = vld [vmem:[#allocation2 + $0x6a] sm:$0xff]  ;;  %v21859_v0 = vld [vmem:[#allocation2 + $0x7a] sm:$0xff] }
 0x2e1   : > { %17312 = vmatprep.mubr.msk.f32.mxu0 %vm4297_vm3, %v21679_v5  ;;  %v21822_v5 = vld [vmem:[#allocation2 + $0x1a] sm:$0xff]  ;;  %25720 = vst [vmem:[#allocation60_spill] sm:$0xff] %v21857_v63  ;;  %25721 = vst [vmem:[#allocation61_spill] sm:$0xff] %v21859_v0 }
 0x2e2   : > { %25716 = vst [vmem:[#allocation56_spill] sm:$0xff] %v21822_v5 }
 0x2e4   : > { %17313 = vmatmul.mubr.msk.f32.gmra.mrb[30].mxu0 %vm4297_vm3, %v21685_v6  ;;  %v4941_v6 = vld [vmem:[#allocation2 + $0xa] sm:$0xff] }
 0x2e5   : > { %17331 = vmatprep.mubr.msk.f32.mxu0 %vm4297_vm3, %v4216_v7  ;;  %v21777_v7 = vld [vmem:[#allocation2 + $0x108] sm:$0xff] }
 0x2e8   : > { %17332 = vmatmul.mubr.msk.f32.vlgmr.msra.gmra.mrb[0].mxu0 %vm4297_vm3, %v4217_v55  ;;  %v21791_v55 = vld [vmem:[#allocation2 + $0x128] sm:$0xff] }
 0x2e9   : > { %18438 = vmatpush3.bf16.msra.mxu0 %v18435_v41  ;;  %17334 = vmatprep.mubr.msk.f32.mxu0 %vm4297_vm3, %v21692_v57  ;;  %v21775_v41 = vld [vmem:[#allocation2 + $0xf8] sm:$0xff] }
 0x2ea   : > { %18440 = vmatprep.subr.bf16.mxu0 %v18439_v53 }
 0x2ec   : > { %17335 = vmatmul.mubr.msk.f32.gmra.mrb[2].mxu0 %vm4297_vm3, %v21699_v25 }
 0x2ed   : > { %17337 = vmatprep.mubr.msk.f32.mxu0 %vm4297_vm3, %v21701_v8  ;;  %18442 = vmatpush3.bf16.msra.mxu0 %v18439_v53  ;;  %v21793_v53 = vld [vmem:[#allocation2 + $0x138] sm:$0xff] }
 0x2ee   : > { %18444 = vmatprep.subr.bf16.mxu0 %v18443_v9 }
 0x2f0   : > { %17338 = vmatmul.mubr.msk.f32.gmra.mrb[4].mxu0 %vm4297_vm3, %v21709_v16 }
 0x2f1   : > { %17340 = vmatprep.mubr.msk.f32.mxu0 %vm4297_vm3, %v21711_v19  ;;  %18446 = vmatpush3.bf16.msra.mxu0 %v18443_v9  ;;  %v21807_v9 = vld [vmem:[#allocation2 + $0x158] sm:$0xff] }
 0x2f2   : > { %18448 = vmatprep.subr.bf16.mxu0 %v18447_v21 }
 0x2f4   : > { %17341 = vmatmul.mubr.msk.f32.gmra.mrb[6].mxu0 %vm4297_vm3, %v21719_v35 }
 0x2f5   : > { %17343 = vmatprep.mubr.msk.f32.mxu0 %vm4297_vm3, %v21721_v10  ;;  %18450 = vmatpush3.bf16.msra.mxu0 %v18447_v21  ;;  %v4940_v21 = vld [vmem:[#allocation2 + $0x2] sm:$0xff] }
 0x2f6   : > { %18452 = vmatprep.subr.bf16.mxu0 %v18451_v15 }
 0x2f8   : > { %17344 = vmatmul.mubr.msk.f32.gmra.mrb[8].mxu0 %vm4297_vm3, %v21727_v20 }
 0x2f9   : > { %17346 = vmatprep.mubr.msk.f32.mxu0 %vm4297_vm3, %v21729_v1 }
 0x2fc   : > { %17347 = vmatmul.mubr.msk.f32.gmra.mrb[10].mxu0 %vm4297_vm3, %v21735_v61 }
 0x2fd   : > { %17349 = vmatprep.mubr.msk.f32.mxu0 %vm4297_vm3, %v21737_v13 }
 0x300   : > { %17350 = vmatmul.mubr.msk.f32.gmra.mrb[12].mxu0 %vm4297_vm3, %v21743_v18 }
 0x301   : > { %17352 = vmatprep.mubr.msk.f32.mxu0 %vm4297_vm3, %v21745_v23 }
 0x304   : > { %17353 = vmatmul.mubr.msk.f32.gmra.mrb[14].mxu0 %vm4297_vm3, %v21751_v29 }
 0x305   : > { %17355 = vmatprep.mubr.msk.f32.mxu0 %vm4297_vm3, %v21753_v30 }
 0x308   : > { %17356 = vmatmul.mubr.msk.f32.gmra.mrb[16].mxu0 %vm4297_vm3, %v21759_v31 }
 0x309   : > { %17358 = vmatprep.mubr.msk.f32.mxu0 %vm4297_vm3, %v21761_v34 }
 0x30c   : > { %17359 = vmatmul.mubr.msk.f32.gmra.mrb[18].mxu0 %vm4297_vm3, %v21767_v36 }
 0x30d   : > { %17361 = vmatprep.mubr.msk.f32.mxu0 %vm4297_vm3, %v21769_v38 }
 0x310   : > { %17362 = vmatmul.mubr.msk.f32.gmra.mrb[20].mxu0 %vm4297_vm3, %v21775_v41 }
 0x311   : > { %17364 = vmatprep.mubr.msk.f32.mxu0 %vm4297_vm3, %v21777_v7 }
 0x314   : > { %17365 = vmatmul.mubr.msk.f32.gmra.mrb[22].mxu0 %vm4297_vm3, %v21783_v11 }
 0x315   : > { %17367 = vmatprep.mubr.msk.f32.mxu0 %vm4297_vm3, %v21785_v17 }
 0x318   : > { %17368 = vmatmul.mubr.msk.f32.gmra.mrb[24].mxu0 %vm4297_vm3, %v21791_v55 }
 0x319   : > { %17370 = vmatprep.mubr.msk.f32.mxu0 %vm4297_vm3, %v21793_v53 }
 0x31c   : > { %17371 = vmatmul.mubr.msk.f32.gmra.mrb[26].mxu0 %vm4297_vm3, %v21799_v28 }
 0x31d   : > { %17373 = vmatprep.mubr.msk.f32.mxu0 %vm4297_vm3, %v21801_v24 }
 0x320   : > { %17374 = vmatmul.mubr.msk.f32.gmra.mrb[28].mxu0 %vm4297_vm3, %v21807_v9 }
 0x321   : > { %17376 = vmatprep.mubr.msk.f32.mxu0 %vm4297_vm3, %v21809_v12 }
 0x324   : > { %17377 = vmatmul.mubr.msk.f32.gmra.mrb[30].mxu0 %vm4297_vm3, %v21815_v14 }
 0x325   : > { %17395 = vmatprep.mubr.msk.f32.mxu0 %vm4297_vm3, %v4940_v21  ;;  %v18459_v21 = vpack.c.bf16 %v14894_v2, %v14893_v3  ;;  %v21849_v2 = vld [vmem:[#allocation2 + $0x52] sm:$0xff]  ;;  %v21851_v3 = vld [vmem:[#allocation2 + $0x62] sm:$0xff] }
 0x326   : > { %25718 = vst [vmem:[#allocation58_spill] sm:$0xff] %v21849_v2  ;;  %25719 = vst [vmem:[#allocation59_spill] sm:$0xff] %v21851_v3 }
 0x328   : > { %17396 = vmatmul.mubr.msk.f32.vlgmr.msra.gmra.mrb[0].mxu0 %vm4297_vm3, %v4941_v6  ;;  %v21839_v6 = vld [vmem:[#allocation2 + $0x3a] sm:$0xff] }
 0x329   : > { %18454 = vmatpush3.bf16.msra.mxu0 %v18451_v15  ;;  %17398 = vmatprep.mubr.msk.f32.mxu0 %vm4297_vm3, %v21822_v5  ;;  %v21841_v15 = vld [vmem:[#allocation2 + $0x4a] sm:$0xff] }
 0x32a   : > { %18456 = vmatprep.subr.bf16.mxu0 %v18455_v4  ;;  %v14930_v5 = vld [vmem:[%s20316_s27 + $0x108] sm:$0xff] }
 0x32c   : > { %17399 = vmatmul.mubr.msk.f32.gmra.mrb[2].mxu0 %vm4297_vm3, %v21829_v51 }
 0x32d   : > { %17401 = vmatprep.mubr.msk.f32.mxu0 %vm4297_vm3, %v21831_v50  ;;  %18458 = vmatpush3.bf16.msra.mxu0 %v18455_v4  ;;  %v18467_v50 = vpack.c.bf16 %v14930_v5, %v14929_v37  ;;  %v21865_v4 = vld [vmem:[#allocation2 + $0x82] sm:$0xff]  ;;  %v21867_v5 = vld [vmem:[#allocation2 + $0x92] sm:$0xff] }
 0x32e   : > { %18460 = vmatprep.subr.bf16.mxu0 %v18459_v21  ;;  %25722 = vst [vmem:[#allocation62_spill] sm:$0xff] %v21865_v4  ;;  %25723 = vst [vmem:[#allocation63_spill] sm:$0xff] %v21867_v5  ;;  %v21881_v37 = vld [vmem:[#allocation2 + $0xb2] sm:$0xff] }
 0x32f   : > { %25726 = vst [vmem:[#allocation66_spill] sm:$0xff] %v21881_v37 }
 0x330   : > { %17402 = vmatmul.mubr.msk.f32.gmra.mrb[4].mxu0 %vm4297_vm3, %v21839_v6 }
 0x331   : > { %17404 = vmatprep.mubr.msk.f32.mxu0 %vm4297_vm3, %v21841_v15  ;;  %18462 = vmatpush3.bf16.msra.mxu0 %v18459_v21  ;;  %v21873_v21 = vld [vmem:[#allocation2 + $0x9a] sm:$0xff] }
 0x332   : > { %18464 = vmatprep.subr.bf16.mxu0 %v18463_v22  ;;  %25724 = vst [vmem:[#allocation64_spill] sm:$0xff] %v21873_v21 }
 0x334   : > { %17405 = vmatmul.mubr.msk.f32.gmra.mrb[6].mxu0 %vm4297_vm3, %v21849_v2  ;;  %v14936_v2 = vld [vmem:[%s20316_s27 + $0x138] sm:$0xff] }
 0x335   : > { %17407 = vmatprep.mubr.msk.f32.mxu0 %vm4297_vm3, %v21851_v3  ;;  %18466 = vmatpush3.bf16.msra.mxu0 %v18463_v22  ;;  %v21875_v22 = vld [vmem:[#allocation2 + $0xaa] sm:$0xff] }
 0x336   : > { %18468 = vmatprep.subr.bf16.mxu0 %v18467_v50  ;;  %25725 = vst [vmem:[#allocation65_spill] sm:$0xff] %v21875_v22  ;;  %v14934_v3 = vld [vmem:[%s20316_s27 + $0x128] sm:$0xff] }
 0x338   : > { %17408 = vmatmul.mubr.msk.f32.gmra.mrb[8].mxu0 %vm4297_vm3, %v21857_v63  ;;  %v14932_v63 = vld [vmem:[%s20316_s27 + $0x118] sm:$0xff] }
 0x339   : > { %17410 = vmatprep.mubr.msk.f32.mxu0 %vm4297_vm3, %v21859_v0  ;;  %v21883_v0 = vld [vmem:[#allocation2 + $0xc2] sm:$0xff] }
 0x33a   : > { %25727 = vst [vmem:[#allocation67_spill] sm:$0xff] %v21883_v0 }
 0x33c   : > { %17411 = vmatmul.mubr.msk.f32.gmra.mrb[10].mxu0 %vm4297_vm3, %v21865_v4  ;;  %v21891_v4 = vld [vmem:[#allocation2 + $0xda] sm:$0xff] }
 0x33d   : > { %17413 = vmatprep.mubr.msk.f32.mxu0 %vm4297_vm3, %v21867_v5  ;;  %v21889_v5 = vld [vmem:[#allocation2 + $0xca] sm:$0xff]  ;;  %25729 = vst [vmem:[#allocation69_spill] sm:$0xff] %v21891_v4 }
 0x33e   : > { %25728 = vst [vmem:[#allocation68_spill] sm:$0xff] %v21889_v5 }
 0x340   : > { %17414 = vmatmul.mubr.msk.f32.gmra.mrb[12].mxu0 %vm4297_vm3, %v21873_v21  ;;  %v21899_v21 = vld [vmem:[#allocation2 + $0xf2] sm:$0xff] }
 0x341   : > { %17416 = vmatprep.mubr.msk.f32.mxu0 %vm4297_vm3, %v21875_v22  ;;  %v21897_v22 = vld [vmem:[#allocation2 + $0xe2] sm:$0xff]  ;;  %25731 = vst [vmem:[#allocation71_spill] sm:$0xff] %v21899_v21 }
 0x342   : > { %25730 = vst [vmem:[#allocation70_spill] sm:$0xff] %v21897_v22 }
 0x344   : > { %17417 = vmatmul.mubr.msk.f32.gmra.mrb[14].mxu0 %vm4297_vm3, %v21881_v37  ;;  %v21907_v37 = vld [vmem:[#allocation2 + $0x10a] sm:$0xff] }
 0x345   : > { %17419 = vmatprep.mubr.msk.f32.mxu0 %vm4297_vm3, %v21883_v0  ;;  %v21905_v0 = vld [vmem:[#allocation2 + $0xfa] sm:$0xff]  ;;  %25733 = vst [vmem:[#allocation73_spill] sm:$0xff] %v21907_v37 }
 0x346   : > { %25732 = vst [vmem:[#allocation72_spill] sm:$0xff] %v21905_v0 }
 0x348   : > { %17420 = vmatmul.mubr.msk.f32.gmra.mrb[16].mxu0 %vm4297_vm3, %v21889_v5  ;;  %v21915_v5 = vld [vmem:[#allocation2 + $0x122] sm:$0xff] }
 0x349   : > { %17422 = vmatprep.mubr.msk.f32.mxu0 %vm4297_vm3, %v21891_v4  ;;  %v21913_v4 = vld [vmem:[#allocation2 + $0x112] sm:$0xff]  ;;  %25735 = vst [vmem:[#allocation75_spill] sm:$0xff] %v21915_v5 }
 0x34a   : > { %25734 = vst [vmem:[#allocation74_spill] sm:$0xff] %v21913_v4 }
 0x34c   : > { %17423 = vmatmul.mubr.msk.f32.gmra.mrb[18].mxu0 %vm4297_vm3, %v21897_v22  ;;  %v21923_v22 = vld [vmem:[#allocation2 + $0x13a] sm:$0xff] }
 0x34d   : > { %17425 = vmatprep.mubr.msk.f32.mxu0 %vm4297_vm3, %v21899_v21  ;;  %v21921_v21 = vld [vmem:[#allocation2 + $0x12a] sm:$0xff]  ;;  %25737 = vst [vmem:[#allocation77_spill] sm:$0xff] %v21923_v22 }
 0x34e   : > { %25736 = vst [vmem:[#allocation76_spill] sm:$0xff] %v21921_v21 }
 0x350   : > { %17426 = vmatmul.mubr.msk.f32.gmra.mrb[20].mxu0 %vm4297_vm3, %v21905_v0  ;;  %v21931_v0 = vld [vmem:[#allocation2 + $0x152] sm:$0xff] }
 0x351   : > { %17428 = vmatprep.mubr.msk.f32.mxu0 %vm4297_vm3, %v21907_v37  ;;  %v21929_v37 = vld [vmem:[#allocation2 + $0x142] sm:$0xff]  ;;  %25739 = vst [vmem:[#allocation79_spill] sm:$0xff] %v21931_v0 }
 0x352   : > { %25738 = vst [vmem:[#allocation78_spill] sm:$0xff] %v21929_v37 }
 0x354   : > { %17429 = vmatmul.mubr.msk.f32.gmra.mrb[22].mxu0 %vm4297_vm3, %v21913_v4  ;;  %v21939_v4 = vld [vmem:[#allocation2 + $0x16a] sm:$0xff] }
 0x355   : > { %17431 = vmatprep.mubr.msk.f32.mxu0 %vm4297_vm3, %v21915_v5  ;;  %v21937_v5 = vld [vmem:[#allocation2 + $0x15a] sm:$0xff]  ;;  %25741 = vst [vmem:[#allocation81_spill] sm:$0xff] %v21939_v4 }
 0x356   : > { %25740 = vst [vmem:[#allocation80_spill] sm:$0xff] %v21937_v5 }
 0x358   : > { %17432 = vmatmul.mubr.msk.f32.gmra.mrb[24].mxu0 %vm4297_vm3, %v21921_v21  ;;  %v14931_v21 = vld [vmem:[%s20316_s27 + $0x110] sm:$0xff] }
 0x359   : > { %17434 = vmatprep.mubr.msk.f32.mxu0 %vm4297_vm3, %v21923_v22  ;;  %v21945_v22 = vld [vmem:[#allocation2 + $0x172] sm:$0xff] }
 0x35a   : > { %25742 = vst [vmem:[#allocation82_spill] sm:$0xff] %v21945_v22 }
 0x35c   : > { %17435 = vmatmul.mubr.msk.f32.gmra.mrb[26].mxu0 %vm4297_vm3, %v21929_v37  ;;  %v14933_v37 = vld [vmem:[%s20316_s27 + $0x120] sm:$0xff] }
 0x35d   : > { %17437 = vmatprep.mubr.msk.f32.mxu0 %vm4297_vm3, %v21931_v0  ;;  %v18471_v0 = vpack.c.bf16 %v14932_v63, %v14931_v21  ;;  %v14969_v63 = vld [vmem:[%s20316_s27 + $0x140] sm:$0xff]  ;;  %v14970_v21 = vld [vmem:[%s20316_s27 + $0x148] sm:$0xff] }
 0x360   : > { %17438 = vmatmul.mubr.msk.f32.gmra.mrb[28].mxu0 %vm4297_vm3, %v21937_v5  ;;  %v14935_v5 = vld [vmem:[%s20316_s27 + $0x130] sm:$0xff] }
 0x361   : > { %17440 = vmatprep.mubr.msk.f32.mxu0 %vm4297_vm3, %v21939_v4  ;;  %v18475_v4 = vpack.c.bf16 %v14934_v3, %v14933_v37  ;;  %v14971_v3 = vld [vmem:[%s20316_s27 + $0x150] sm:$0xff]  ;;  %v14974_v37 = vld [vmem:[%s20316_s27 + $0x168] sm:$0xff] }
 0x364   : > { %17441 = vmatmul.mubr.msk.f32.gmra.mrb[30].mxu0 %vm4297_vm3, %v21945_v22 }
 0x365   : > { %17459 = vmatprep.mubr.msk.f32.mxu0 %vm4297_vm3, %v21692_v57  ;;  %v18479_v57 = vpack.c.bf16 %v14936_v2, %v14935_v5  ;;  %v22021_v2 = vld [vmem:[#allocation2 + $0x188] sm:$0xff] }
 0x366   : > { %v14973_v5 = vld [vmem:[%s20316_s27 + $0x160] sm:$0xff] }
 0x368   : > { %17460 = vmatmul.mubr.msk.f32.vlgmr.msra.gmra.mrb[0].mxu0 %vm4297_vm3, %v21699_v25  ;;  %v22015_v25 = vld [vmem:[#allocation2 + $0x180] sm:$0xff] }
 0x369   : > { %18470 = vmatpush3.bf16.msra.mxu0 %v18467_v50  ;;  %17462 = vmatprep.mubr.msk.f32.mxu0 %vm4297_vm3, %v21701_v8  ;;  %v18483_v50 = vpack.c.bf16 %v14970_v21, %v14969_v63  ;;  %v14975_v63 = vld [vmem:[%s20316_s27 + $0x170] sm:$0xff]  ;;  %v14976_v21 = vld [vmem:[%s20316_s27 + $0x178] sm:$0xff] }
 0x36a   : > { %18472 = vmatprep.subr.bf16.mxu0 %v18471_v0 }
 0x36c   : > { %17463 = vmatmul.mubr.msk.f32.gmra.mrb[2].mxu0 %vm4297_vm3, %v21709_v16 }
 0x36d   : > { %17465 = vmatprep.mubr.msk.f32.mxu0 %vm4297_vm3, %v21711_v19  ;;  %18474 = vmatpush3.bf16.msra.mxu0 %v18471_v0  ;;  %v14972_v0 = vld [vmem:[%s20316_s27 + $0x158] sm:$0xff] }
 0x36e   : > { %18476 = vmatprep.subr.bf16.mxu0 %v18475_v4 }
 0x370   : > { %17466 = vmatmul.mubr.msk.f32.gmra.mrb[4].mxu0 %vm4297_vm3, %v21719_v35 }
 0x371   : > { %17468 = vmatprep.mubr.msk.f32.mxu0 %vm4297_vm3, %v21721_v10  ;;  %18478 = vmatpush3.bf16.msra.mxu0 %v18475_v4  ;;  %v18487_v4 = vpack.c.bf16 %v14972_v0, %v14971_v3  ;;  %v15009_v3 = vld [vmem:[%s20316_s27 + $0x180] sm:$0xff]  ;;  %v15010_v0 = vld [vmem:[%s20316_s27 + $0x188] sm:$0xff] }
 0x372   : > { %18480 = vmatprep.subr.bf16.mxu0 %v18479_v57 }
 0x374   : > { %17469 = vmatmul.mubr.msk.f32.gmra.mrb[6].mxu0 %vm4297_vm3, %v21727_v20 }
 0x375   : > { %17471 = vmatprep.mubr.msk.f32.mxu0 %vm4297_vm3, %v21729_v1  ;;  %18482 = vmatpush3.bf16.msra.mxu0 %v18479_v57  ;;  %v18491_v57 = vpack.c.bf16 %v14974_v37, %v14973_v5  ;;  %v15049_v37 = vld [vmem:[%s20316_s27 + $0x1c0] sm:$0xff] }
 0x376   : > { %18484 = vmatprep.subr.bf16.mxu0 %v18483_v50 }
 0x378   : > { %17472 = vmatmul.mubr.msk.f32.gmra.mrb[8].mxu0 %vm4297_vm3, %v21735_v61 }
 0x379   : > { %17474 = vmatprep.mubr.msk.f32.mxu0 %vm4297_vm3, %v21737_v13 }
 0x37c   : > { %17475 = vmatmul.mubr.msk.f32.gmra.mrb[10].mxu0 %vm4297_vm3, %v21743_v18 }
 0x37d   : > { %17477 = vmatprep.mubr.msk.f32.mxu0 %vm4297_vm3, %v21745_v23 }
 0x380   : > { %17478 = vmatmul.mubr.msk.f32.gmra.mrb[12].mxu0 %vm4297_vm3, %v21751_v29 }
 0x381   : > { %17480 = vmatprep.mubr.msk.f32.mxu0 %vm4297_vm3, %v21753_v30 }
 0x384   : > { %17481 = vmatmul.mubr.msk.f32.gmra.mrb[14].mxu0 %vm4297_vm3, %v21759_v31 }
 0x385   : > { %17483 = vmatprep.mubr.msk.f32.mxu0 %vm4297_vm3, %v21761_v34 }
 0x388   : > { %17484 = vmatmul.mubr.msk.f32.gmra.mrb[16].mxu0 %vm4297_vm3, %v21767_v36 }
 0x389   : > { %17486 = vmatprep.mubr.msk.f32.mxu0 %vm4297_vm3, %v21769_v38 }
 0x38c   : > { %17487 = vmatmul.mubr.msk.f32.gmra.mrb[18].mxu0 %vm4297_vm3, %v21775_v41 }
 0x38d   : > { %17489 = vmatprep.mubr.msk.f32.mxu0 %vm4297_vm3, %v21777_v7 }
 0x390   : > { %17490 = vmatmul.mubr.msk.f32.gmra.mrb[20].mxu0 %vm4297_vm3, %v21783_v11 }
 0x391   : > { %17492 = vmatprep.mubr.msk.f32.mxu0 %vm4297_vm3, %v21785_v17 }
 0x394   : > { %17493 = vmatmul.mubr.msk.f32.gmra.mrb[22].mxu0 %vm4297_vm3, %v21791_v55 }
 0x395   : > { %17495 = vmatprep.mubr.msk.f32.mxu0 %vm4297_vm3, %v21793_v53 }
 0x398   : > { %17496 = vmatmul.mubr.msk.f32.gmra.mrb[24].mxu0 %vm4297_vm3, %v21799_v28 }
 0x399   : > { %17498 = vmatprep.mubr.msk.f32.mxu0 %vm4297_vm3, %v21801_v24 }
 0x39c   : > { %17499 = vmatmul.mubr.msk.f32.gmra.mrb[26].mxu0 %vm4297_vm3, %v21807_v9 }
 0x39d   : > { %17501 = vmatprep.mubr.msk.f32.mxu0 %vm4297_vm3, %v21809_v12 }
 0x3a0   : > { %17502 = vmatmul.mubr.msk.f32.gmra.mrb[28].mxu0 %vm4297_vm3, %v21815_v14 }
 0x3a1   : > { %17504 = vmatprep.mubr.msk.f32.mxu0 %vm4297_vm3, %v22015_v25 }
 0x3a4   : > { %17505 = vmatmul.mubr.msk.f32.gmra.mrb[30].mxu0 %vm4297_vm3, %v22021_v2 }
 0x3a5   : > { %17523 = vmatprep.mubr.msk.f32.mxu0 %vm4297_vm3, %v21562_v59  ;;  %v18495_v59 = vpack.c.bf16 %v14976_v21, %v14975_v63  ;;  %v25755_v63 = vld [vmem:[#allocation59_spill] sm:$0xff] }
 0x3a8   : > { %17524 = vmatmul.mubr.msk.f32.vlgmr.msra.gmra.mrb[0].mxu0 %vm4297_vm3, %v21569_v26  ;;  %v18499_v26 = vpack.c.bf16 %v15010_v0, %v15009_v3  ;;  %v25757_v3 = vld [vmem:[#allocation61_spill] sm:$0xff]  ;;  %v25758_v0 = vld [vmem:[#allocation62_spill] sm:$0xff] }
 0x3a9   : > { %18486 = vmatpush3.bf16.msra.mxu0 %v18483_v50  ;;  %17526 = vmatprep.mubr.msk.f32.mxu0 %vm4297_vm3, %v21571_v27  ;;  %v25743_v27 = vld [vmem:[#allocation47_spill] sm:$0xff]  ;;  %v15015_v50 = vld [vmem:[%s20316_s27 + $0x1b0] sm:$0xff] }
 0x3aa   : > { %18488 = vmatprep.subr.bf16.mxu0 %v18487_v4 }
 0x3ac   : > { %17527 = vmatmul.mubr.msk.f32.gmra.mrb[2].mxu0 %vm4297_vm3, %v21579_v32  ;;  %v25744_v32 = vld [vmem:[#allocation48_spill] sm:$0xff] }
 0x3ad   : > { %17529 = vmatprep.mubr.msk.f32.mxu0 %vm4297_vm3, %v21581_v33  ;;  %18490 = vmatpush3.bf16.msra.mxu0 %v18487_v4  ;;  %v25745_v33 = vld [vmem:[#allocation49_spill] sm:$0xff]  ;;  %v15016_v4 = vld [vmem:[%s20316_s27 + $0x1b8] sm:$0xff] }
 0x3ae   : > { %18492 = vmatprep.subr.bf16.mxu0 %v18491_v57  ;;  %v18511_v5 = vpack.c.bf16 %v15016_v4, %v15015_v50  ;;  %v25776_v50 = vld [vmem:[#allocation80_spill] sm:$0xff]  ;;  %v25777_v4 = vld [vmem:[#allocation81_spill] sm:$0xff] }
 0x3b0   : > { %17530 = vmatmul.mubr.msk.f32.gmra.mrb[4].mxu0 %vm4297_vm3, %v21589_v39  ;;  %v25746_v39 = vld [vmem:[#allocation50_spill] sm:$0xff] }
 0x3b1   : > { %17532 = vmatprep.mubr.msk.f32.mxu0 %vm4297_vm3, %v21591_v40  ;;  %18494 = vmatpush3.bf16.msra.mxu0 %v18491_v57  ;;  %v25747_v40 = vld [vmem:[#allocation51_spill] sm:$0xff]  ;;  %v15050_v57 = vld [vmem:[%s20316_s27 + $0x1c8] sm:$0xff] }
 0x3b2   : > { %18496 = vmatprep.subr.bf16.mxu0 %v18495_v59  ;;  %v18515_v21 = vpack.c.bf16 %v15050_v57, %v15049_v37  ;;  %v22173_v37 = vld [vmem:[#allocation2 + $0x18a] sm:$0xff]  ;;  %v15051_v57 = vld [vmem:[%s20316_s27 + $0x1d0] sm:$0xff] }
 0x3b4   : > { %17533 = vmatmul.mubr.msk.f32.gmra.mrb[6].mxu0 %vm4297_vm3, %v21597_v42  ;;  %v25748_v42 = vld [vmem:[#allocation52_spill] sm:$0xff] }
 0x3b5   : > { %17535 = vmatprep.mubr.msk.f32.mxu0 %vm4297_vm3, %v21599_v43  ;;  %18498 = vmatpush3.bf16.msra.mxu0 %v18495_v59  ;;  %v25749_v43 = vld [vmem:[#allocation53_spill] sm:$0xff]  ;;  %v25756_v59 = vld [vmem:[#allocation60_spill] sm:$0xff] }
 0x3b6   : > { %18500 = vmatprep.subr.bf16.mxu0 %v18499_v26 }
 0x3b8   : > { %17536 = vmatmul.mubr.msk.f32.gmra.mrb[8].mxu0 %vm4297_vm3, %v21605_v44  ;;  %v25750_v44 = vld [vmem:[#allocation54_spill] sm:$0xff] }
 0x3b9   : > { %17538 = vmatprep.mubr.msk.f32.mxu0 %vm4297_vm3, %v21607_v45  ;;  %v22091_v45 = vld [vmem:[#allocation2 + $0x181] sm:$0xff] }
 0x3bc   : > { %17539 = vmatmul.mubr.msk.f32.gmra.mrb[10].mxu0 %vm4297_vm3, %v21613_v46  ;;  %v25751_v46 = vld [vmem:[#allocation55_spill] sm:$0xff] }
 0x3bd   : > { %17541 = vmatprep.mubr.msk.f32.mxu0 %vm4297_vm3, %v21615_v47  ;;  %v22097_v47 = vld [vmem:[#allocation2 + $0x189] sm:$0xff] }
 0x3c0   : > { %17542 = vmatmul.mubr.msk.f32.gmra.mrb[12].mxu0 %vm4297_vm3, %v21621_v48  ;;  %v15011_v48 = vld [vmem:[%s20316_s27 + $0x190] sm:$0xff] }
 0x3c1   : > { %17544 = vmatprep.mubr.msk.f32.mxu0 %vm4297_vm3, %v21623_v49  ;;  %v15012_v49 = vld [vmem:[%s20316_s27 + $0x198] sm:$0xff] }
 0x3c4   : > { %17545 = vmatmul.mubr.msk.f32.gmra.mrb[14].mxu0 %vm4297_vm3, %v21629_v52  ;;  %v25752_v52 = vld [vmem:[#allocation56_spill] sm:$0xff] }
 0x3c5   : > { %17547 = vmatprep.mubr.msk.f32.mxu0 %vm4297_vm3, %v21631_v54  ;;  %v18503_v54 = vpack.c.bf16 %v15012_v49, %v15011_v48  ;;  %v25769_v48 = vld [vmem:[#allocation73_spill] sm:$0xff]  ;;  %v25770_v49 = vld [vmem:[#allocation74_spill] sm:$0xff] }
 0x3c8   : > { %17548 = vmatmul.mubr.msk.f32.gmra.mrb[16].mxu0 %vm4297_vm3, %v21637_v56  ;;  %v15013_v56 = vld [vmem:[%s20316_s27 + $0x1a0] sm:$0xff] }
 0x3c9   : > { %17550 = vmatprep.mubr.msk.f32.mxu0 %vm4297_vm3, %v21639_v58  ;;  %v15014_v58 = vld [vmem:[%s20316_s27 + $0x1a8] sm:$0xff] }
 0x3cc   : > { %17551 = vmatmul.mubr.msk.f32.gmra.mrb[18].mxu0 %vm4297_vm3, %v21645_v60  ;;  %v25753_v60 = vld [vmem:[#allocation57_spill] sm:$0xff] }
 0x3cd   : > { %17553 = vmatprep.mubr.msk.f32.mxu0 %vm4297_vm3, %v21647_v62  ;;  %v18507_v62 = vpack.c.bf16 %v15014_v58, %v15013_v56  ;;  %v25773_v56 = vld [vmem:[#allocation77_spill] sm:$0xff]  ;;  %v25774_v58 = vld [vmem:[#allocation78_spill] sm:$0xff] }
 0x3d0   : > { %17554 = vmatmul.mubr.msk.f32.gmra.mrb[20].mxu0 %vm4297_vm3, %v25743_v27  ;;  %v25760_v27 = vld [vmem:[#allocation64_spill] sm:$0xff] }
 0x3d1   : > { %17556 = vmatprep.mubr.msk.f32.mxu0 %vm4297_vm3, %v25744_v32  ;;  %v25761_v32 = vld [vmem:[#allocation65_spill] sm:$0xff] }
 0x3d4   : > { %17557 = vmatmul.mubr.msk.f32.gmra.mrb[22].mxu0 %vm4297_vm3, %v25745_v33  ;;  %v25762_v33 = vld [vmem:[#allocation66_spill] sm:$0xff] }
 0x3d5   : > { %17559 = vmatprep.mubr.msk.f32.mxu0 %vm4297_vm3, %v25746_v39  ;;  %v25763_v39 = vld [vmem:[#allocation67_spill] sm:$0xff] }
 0x3d8   : > { %17560 = vmatmul.mubr.msk.f32.gmra.mrb[24].mxu0 %vm4297_vm3, %v25747_v40  ;;  %v25764_v40 = vld [vmem:[#allocation68_spill] sm:$0xff] }
 0x3d9   : > { %17562 = vmatprep.mubr.msk.f32.mxu0 %vm4297_vm3, %v25748_v42  ;;  %v25765_v42 = vld [vmem:[#allocation69_spill] sm:$0xff] }
 0x3dc   : > { %17563 = vmatmul.mubr.msk.f32.gmra.mrb[26].mxu0 %vm4297_vm3, %v25749_v43  ;;  %v25766_v43 = vld [vmem:[#allocation70_spill] sm:$0xff] }
 0x3dd   : > { %17565 = vmatprep.mubr.msk.f32.mxu0 %vm4297_vm3, %v25750_v44  ;;  %v25767_v44 = vld [vmem:[#allocation71_spill] sm:$0xff] }
 0x3e0   : > { %17566 = vmatmul.mubr.msk.f32.gmra.mrb[28].mxu0 %vm4297_vm3, %v25751_v46  ;;  %v25768_v46 = vld [vmem:[#allocation72_spill] sm:$0xff] }
 0x3e1   : > { %17568 = vmatprep.mubr.msk.f32.mxu0 %vm4297_vm3, %v22091_v45 }
 0x3e4   : > { %17569 = vmatmul.mubr.msk.f32.gmra.mrb[30].mxu0 %vm4297_vm3, %v22097_v47 }
 0x3e5   : > { %17587 = vmatprep.mubr.msk.f32.mxu0 %vm4297_vm3, %v25752_v52  ;;  %v25771_v52 = vld [vmem:[#allocation75_spill] sm:$0xff] }
 0x3e8   : > { %17588 = vmatmul.mubr.msk.f32.vlgmr.msra.gmra.mrb[0].mxu0 %vm4297_vm3, %v21829_v51  ;;  %v25754_v51 = vld [vmem:[#allocation58_spill] sm:$0xff] }
 0x3e9   : > { %18502 = vmatpush3.bf16.msra.mxu0 %v18499_v26  ;;  %17590 = vmatprep.mubr.msk.f32.mxu0 %vm4297_vm3, %v25753_v60  ;;  %v25759_v26 = vld [vmem:[#allocation63_spill] sm:$0xff] }
 0x3ea   : > { %18504 = vmatprep.subr.bf16.mxu0 %v18503_v54 }
 0x3ec   : > { %17591 = vmatmul.mubr.msk.f32.gmra.mrb[2].mxu0 %vm4297_vm3, %v21839_v6 }
 0x3ed   : > { %17593 = vmatprep.mubr.msk.f32.mxu0 %vm4297_vm3, %v21841_v15  ;;  %18506 = vmatpush3.bf16.msra.mxu0 %v18503_v54  ;;  %v25772_v54 = vld [vmem:[#allocation76_spill] sm:$0xff] }
 0x3ee   : > { %18508 = vmatprep.subr.bf16.mxu0 %v18507_v62 }
 0x3f0   : > { %17594 = vmatmul.mubr.msk.f32.gmra.mrb[4].mxu0 %vm4297_vm3, %v25754_v51 }
 0x3f1   : > { %17596 = vmatprep.mubr.msk.f32.mxu0 %vm4297_vm3, %v25755_v63  ;;  %18510 = vmatpush3.bf16.msra.mxu0 %v18507_v62  ;;  %v25775_v62 = vld [vmem:[#allocation79_spill] sm:$0xff] }
 0x3f2   : > { %18512 = vmatprep.subr.bf16.mxu0 %v18511_v5 }
 0x3f4   : > { %17597 = vmatmul.mubr.msk.f32.gmra.mrb[6].mxu0 %vm4297_vm3, %v25756_v59 }
 0x3f5   : > { %17599 = vmatprep.mubr.msk.f32.mxu0 %vm4297_vm3, %v25757_v3  ;;  %18514 = vmatpush3.bf16.msra.mxu0 %v18511_v5  ;;  %v22167_v5 = vld [vmem:[#allocation2 + $0x182] sm:$0xff] }
 0x3f6   : > { %18516 = vmatprep.subr.bf16.mxu0 %v18515_v21  ;;  %25778 = vst [vmem:[#allocation47_spill] sm:$0xff] %v22167_v5 }
 0x3f8   : > { %17600 = vmatmul.mubr.msk.f32.gmra.mrb[8].mxu0 %vm4297_vm3, %v25758_v0 }
 0x3f9   : > { %17602 = vmatprep.mubr.msk.f32.mxu0 %vm4297_vm3, %v25759_v26 }
 0x3fc   : > { %17603 = vmatmul.mubr.msk.f32.gmra.mrb[10].mxu0 %vm4297_vm3, %v25760_v27 }
 0x3fd   : > { %17605 = vmatprep.mubr.msk.f32.mxu0 %vm4297_vm3, %v25761_v32 }
 0x400   : > { %17606 = vmatmul.mubr.msk.f32.gmra.mrb[12].mxu0 %vm4297_vm3, %v25762_v33 }
 0x401   : > { %17608 = vmatprep.mubr.msk.f32.mxu0 %vm4297_vm3, %v25763_v39 }
 0x404   : > { %17609 = vmatmul.mubr.msk.f32.gmra.mrb[14].mxu0 %vm4297_vm3, %v25764_v40 }
 0x405   : > { %17611 = vmatprep.mubr.msk.f32.mxu0 %vm4297_vm3, %v25765_v42 }
 0x408   : > { %17612 = vmatmul.mubr.msk.f32.gmra.mrb[16].mxu0 %vm4297_vm3, %v25766_v43 }
 0x409   : > { %17614 = vmatprep.mubr.msk.f32.mxu0 %vm4297_vm3, %v25767_v44 }
 0x40c   : > { %17615 = vmatmul.mubr.msk.f32.gmra.mrb[18].mxu0 %vm4297_vm3, %v25768_v46 }
 0x40d   : > { %17617 = vmatprep.mubr.msk.f32.mxu0 %vm4297_vm3, %v25769_v48 }
 0x410   : > { %17618 = vmatmul.mubr.msk.f32.gmra.mrb[20].mxu0 %vm4297_vm3, %v25770_v49 }
 0x411   : > { %17620 = vmatprep.mubr.msk.f32.mxu0 %vm4297_vm3, %v25771_v52 }
 0x414   : > { %17621 = vmatmul.mubr.msk.f32.gmra.mrb[22].mxu0 %vm4297_vm3, %v25772_v54 }
 0x415   : > { %17623 = vmatprep.mubr.msk.f32.mxu0 %vm4297_vm3, %v25773_v56  ;;  %v15056_v56 = vld [vmem:[%s20316_s27 + $0x1f8] sm:$0xff] }
 0x418   : > { %17624 = vmatmul.mubr.msk.f32.gmra.mrb[24].mxu0 %vm4297_vm3, %v25774_v58  ;;  %v15054_v58 = vld [vmem:[%s20316_s27 + $0x1e8] sm:$0xff] }
 0x419   : > { %17626 = vmatprep.mubr.msk.f32.mxu0 %vm4297_vm3, %v25775_v62  ;;  %v15052_v62 = vld [vmem:[%s20316_s27 + $0x1d8] sm:$0xff] }
 0x41c   : > { %17627 = vmatmul.mubr.msk.f32.gmra.mrb[26].mxu0 %vm4297_vm3, %v25776_v50  ;;  %v15053_v50 = vld [vmem:[%s20316_s27 + $0x1e0] sm:$0xff] }
 0x41d   : > { %17629 = vmatprep.mubr.msk.f32.mxu0 %vm4297_vm3, %v25777_v4  ;;  %v18519_v4 = vpack.c.bf16 %v15052_v62, %v15051_v57  ;;  %v15089_v62 = vld [vmem:[%s20316_s27 + $0x200] sm:$0xff]  ;;  %v15090_v57 = vld [vmem:[%s20316_s27 + $0x208] sm:$0xff] }
 0x420   : > { %17630 = vmatmul.mubr.msk.f32.gmra.mrb[28].mxu0 %vm4297_vm3, %v21945_v22  ;;  %v15055_v22 = vld [vmem:[%s20316_s27 + $0x1f0] sm:$0xff] }
 0x421   : > { %17632 = vmatprep.mubr.msk.f32.mxu0 %vm4297_vm3, %v22167_v5  ;;  %v18523_v5 = vpack.c.bf16 %v15054_v58, %v15053_v50  ;;  %v6926_v58 = vld [vmem:[#allocation2 + $0xd9] sm:$0xff]  ;;  %v6927_v50 = vld [vmem:[#allocation2 + $0xe1] sm:$0xff] }
 0x424   : > { %17633 = vmatmul.mubr.msk.f32.gmra.mrb[30].mxu0 %vm4297_vm3, %v22173_v37 }
 0x425   : > { %17651 = vmatprep.mubr.msk.f32.mxu0 %vm4297_vm3, %v21701_v8  ;;  %v18527_v8 = vpack.c.bf16 %v15056_v56, %v15055_v22  ;;  %v6921_v22 = vld [vmem:[#allocation2 + $0x99] sm:$0xff]  ;;  %v6925_v56 = vld [vmem:[#allocation2 + $0xc9] sm:$0xff] }
 0x428   : > { %17652 = vmatmul.mubr.msk.f32.vlgmr.msra.gmra.mrb[0].mxu0 %vm4297_vm3, %v21709_v16  ;;  %v18531_v16 = vpack.c.bf16 %v15090_v57, %v15089_v62  ;;  %v6931_v62 = vld [vmem:[#allocation2 + $0x111] sm:$0xff]  ;;  %v6932_v57 = vld [vmem:[#allocation2 + $0x121] sm:$0xff] }
 0x429   : > { %18518 = vmatpush3.bf16.msra.mxu0 %v18515_v21  ;;  %17654 = vmatprep.mubr.msk.f32.mxu0 %vm4297_vm3, %v21711_v19  ;;  %v6548_v19 = vld [vmem:[#allocation2 + $0x198] sm:$0xff]  ;;  %v6924_v21 = vld [vmem:[#allocation2 + $0xc1] sm:$0xff] }
 0x42a   : > { %18520 = vmatprep.subr.bf16.mxu0 %v18519_v4 }
 0x42c   : > { %17655 = vmatmul.mubr.msk.f32.gmra.mrb[2].mxu0 %vm4297_vm3, %v21719_v35  ;;  %v6549_v35 = vld [vmem:[#allocation2 + $0x1a0] sm:$0xff] }
 0x42d   : > { %17657 = vmatprep.mubr.msk.f32.mxu0 %vm4297_vm3, %v21721_v10  ;;  %18522 = vmatpush3.bf16.msra.mxu0 %v18519_v4  ;;  %v6912_v10 = vld [vmem:[#allocation2 + $0x31] sm:$0xff] }
 0x42e   : > { %18524 = vmatprep.subr.bf16.mxu0 %v18523_v5  ;;  %v6928_v4 = vld [vmem:[#allocation2 + $0xf1] sm:$0xff] }
 0x430   : > { %17658 = vmatmul.mubr.msk.f32.gmra.mrb[4].mxu0 %vm4297_vm3, %v21727_v20  ;;  %v15091_v20 = vld [vmem:[%s20316_s27 + $0x210] sm:$0xff] }
 0x431   : > { %17660 = vmatprep.mubr.msk.f32.mxu0 %vm4297_vm3, %v21729_v1  ;;  %18526 = vmatpush3.bf16.msra.mxu0 %v18523_v5  ;;  %v15092_v1 = vld [vmem:[%s20316_s27 + $0x218] sm:$0xff] }
 0x432   : > { %18528 = vmatprep.subr.bf16.mxu0 %v18527_v8  ;;  %v6929_v5 = vld [vmem:[#allocation2 + $0xf9] sm:$0xff] }
 0x434   : > { %17661 = vmatmul.mubr.msk.f32.gmra.mrb[6].mxu0 %vm4297_vm3, %v21735_v61  ;;  %v15130_v61 = vld [vmem:[%s20345_s3 + $0x40] sm:$0xff] }
 0x435   : > { %17663 = vmatprep.mubr.msk.f32.mxu0 %vm4297_vm3, %v21737_v13  ;;  %18530 = vmatpush3.bf16.msra.mxu0 %v18527_v8  ;;  %v15131_v13 = vld [vmem:[%s20345_s3 + $0x48] sm:$0xff] }
 0x436   : > { %18532 = vmatprep.subr.bf16.mxu0 %v18531_v16  ;;  %v6930_v8 = vld [vmem:[#allocation2 + $0x109] sm:$0xff] }
 0x438   : > { %17664 = vmatmul.mubr.msk.f32.gmra.mrb[8].mxu0 %vm4297_vm3, %v21743_v18  ;;  %v15132_v18 = vld [vmem:[%s20345_s3 + $0x50] sm:$0xff] }
 0x439   : > { %17666 = vmatprep.mubr.msk.f32.mxu0 %vm4297_vm3, %v21745_v23  ;;  %v6913_v23 = vld [vmem:[#allocation2 + $0x39] sm:$0xff] }
 0x43c   : > { %17667 = vmatmul.mubr.msk.f32.gmra.mrb[10].mxu0 %vm4297_vm3, %v21751_v29  ;;  %v18547_v29 = vpack.c.bf16 %v15131_v13, %v15130_v61  ;;  %v6939_v61 = vld [vmem:[#allocation2 + $0x171] sm:$0xff]  ;;  %v6942_v13 = vld [vmem:[#allocation2 + $0x199] sm:$0xff] }
 0x43d   : > { %17669 = vmatprep.mubr.msk.f32.mxu0 %vm4297_vm3, %v21753_v30  ;;  %v15133_v30 = vld [vmem:[%s20345_s3 + $0x58] sm:$0xff] }
 0x43e   : > { %18548 = vmatprep.subr.bf16.mxu1 %v18547_v29 }
 0x43f   : > { %18550 = vmatpush3.bf16.msra.mxu1 %v18547_v29  ;;  %v7842_v29 = vld [vmem:[%s20345_s3 + $0x30] sm:$0xff] }
 0x440   : > { %17670 = vmatmul.mubr.msk.f32.gmra.mrb[12].mxu0 %vm4297_vm3, %v21759_v31  ;;  %v6914_v31 = vld [vmem:[#allocation2 + $0x49] sm:$0xff] }
 0x441   : > { %17672 = vmatprep.mubr.msk.f32.mxu0 %vm4297_vm3, %v21761_v34  ;;  %v18535_v34 = vpack.c.bf16 %v15092_v1, %v15091_v20  ;;  %v6937_v20 = vld [vmem:[#allocation2 + $0x159] sm:$0xff]  ;;  %v6938_v1 = vld [vmem:[#allocation2 + $0x169] sm:$0xff] }
 0x444   : > { %17673 = vmatmul.mubr.msk.f32.gmra.mrb[14].mxu0 %vm4297_vm3, %v21767_v36  ;;  %v18551_v36 = vpack.c.bf16 %v15133_v30, %v15132_v18  ;;  %v6943_v18 = vld [vmem:[#allocation2 + $0x1a1] sm:$0xff] }
 0x445   : > { %17675 = vmatprep.mubr.msk.f32.mxu0 %vm4297_vm3, %v21769_v38  ;;  %v15093_v38 = vld [vmem:[%s20316_s27 + $0x220] sm:$0xff]  ;;  %v7843_v30 = vld [vmem:[%s20345_s3 + $0x38] sm:$0xff] }
 0x446   : > { %18552 = vmatprep.subr.bf16.mxu1 %v18551_v36 }
 0x447   : > { %18554 = vmatpush3.bf16.msra.mxu1 %v18551_v36  ;;  %v15203_v36 = vld [vmem:[%s20345_s3 + $0x88] sm:$0xff] }
 0x448   : > { %17676 = vmatmul.mubr.msk.f32.gmra.mrb[16].mxu0 %vm4297_vm3, %v21775_v41  ;;  %v15094_v41 = vld [vmem:[%s20316_s27 + $0x228] sm:$0xff] }
 0x449   : > { %17678 = vmatprep.mubr.msk.f32.mxu0 %vm4297_vm3, %v21777_v7  ;;  %v6915_v7 = vld [vmem:[#allocation2 + $0x51] sm:$0xff] }
 0x44c   : > { %17679 = vmatmul.mubr.msk.f32.gmra.mrb[18].mxu0 %vm4297_vm3, %v21783_v11  ;;  %v6916_v11 = vld [vmem:[#allocation2 + $0x61] sm:$0xff] }
 0x44d   : > { %17681 = vmatprep.mubr.msk.f32.mxu0 %vm4297_vm3, %v21785_v17  ;;  %v18539_v17 = vpack.c.bf16 %v15094_v41, %v15093_v38  ;;  %v22377_v41 = vld [vmem:[%s543_s13] ss:$0 sm:$0xff] }
 0x450   : > { %17682 = vmatmul.mubr.msk.f32.gmra.mrb[20].mxu0 %vm4297_vm3, %v21791_v55  ;;  %v15095_v55 = vld [vmem:[%s20316_s27 + $0x230] sm:$0xff] }
 0x451   : > { %17684 = vmatprep.mubr.msk.f32.mxu0 %vm4297_vm3, %v21793_v53  ;;  %v15096_v53 = vld [vmem:[%s20316_s27 + $0x238] sm:$0xff] }
 0x454   : > { %17685 = vmatmul.mubr.msk.f32.gmra.mrb[22].mxu0 %vm4297_vm3, %v21799_v28  ;;  %v6917_v28 = vld [vmem:[#allocation2 + $0x69] sm:$0xff] }
 0x455   : > { %17687 = vmatprep.mubr.msk.f32.mxu0 %vm4297_vm3, %v21801_v24  ;;  %v6918_v24 = vld [vmem:[#allocation2 + $0x79] sm:$0xff] }
 0x458   : > { %17688 = vmatmul.mubr.msk.f32.gmra.mrb[24].mxu0 %vm4297_vm3, %v21807_v9  ;;  %v18543_v9 = vpack.c.bf16 %v15096_v53, %v15095_v55 }
 0x459   : > { %17690 = vmatprep.mubr.msk.f32.mxu0 %vm4297_vm3, %v21809_v12  ;;  %v6919_v12 = vld [vmem:[#allocation2 + $0x81] sm:$0xff] }
 0x45c   : > { %17691 = vmatmul.mubr.msk.f32.gmra.mrb[26].mxu0 %vm4297_vm3, %v21815_v14  ;;  %v6920_v14 = vld [vmem:[#allocation2 + $0x91] sm:$0xff] }
 0x45d   : > { %17693 = vmatprep.mubr.msk.f32.mxu0 %vm4297_vm3, %v22015_v25  ;;  %v6922_v25 = vld [vmem:[#allocation2 + $0xa9] sm:$0xff] }
 0x460   : > { %17694 = vmatmul.mubr.msk.f32.gmra.mrb[28].mxu0 %vm4297_vm3, %v22021_v2  ;;  %v6923_v2 = vld [vmem:[#allocation2 + $0xb1] sm:$0xff] }
 0x461   : > { %17696 = vmatprep.mubr.msk.f32.mxu0 %vm4297_vm3, %v6548_v19  ;;  %v6934_v19 = vld [vmem:[#allocation2 + $0x139] sm:$0xff] }
 0x464   : > { %17697 = vmatmul.mubr.msk.f32.gmra.mrb[30].mxu0 %vm4297_vm3, %v6549_v35  ;;  %v6935_v35 = vld [vmem:[#allocation2 + $0x141] sm:$0xff] }
 0x465   : > { %17715 = vmatprep.mubr.msk.f32.mxu0 %vm4297_vm3, %v6912_v10  ;;  %v6936_v10 = vld [vmem:[#allocation2 + $0x151] sm:$0xff] }
 0x468   : > { %17716 = vmatmul.mubr.msk.f32.vlgmr.msra.gmra.mrb[0].mxu0 %vm4297_vm3, %v6913_v23 }
 0x469   : > { %18534 = vmatpush3.bf16.msra.mxu0 %v18531_v16  ;;  %17718 = vmatprep.mubr.msk.f32.mxu0 %vm4297_vm3, %v6914_v31  ;;  %v6933_v16 = vld [vmem:[#allocation2 + $0x129] sm:$0xff]  ;;  %v18575_v31 = vpack.c.bf16 %v7843_v30, %v7842_v29 }
 0x46a   : > { %18536 = vmatprep.subr.bf16.mxu0 %v18535_v34 }
 0x46c   : > { %17719 = vmatmul.mubr.msk.f32.gmra.mrb[2].mxu0 %vm4297_vm3, %v6915_v7 }
 0x46d   : > { %17721 = vmatprep.mubr.msk.f32.mxu0 %vm4297_vm3, %v6916_v11  ;;  %18538 = vmatpush3.bf16.msra.mxu0 %v18535_v34  ;;  %v15202_v34 = vld [vmem:[%s20345_s3 + $0x80] sm:$0xff] }
 0x46e   : > { %18540 = vmatprep.subr.bf16.mxu0 %v18539_v17  ;;  %v22369_v38 = vpack.c.bf16 %v15203_v36, %v15202_v34 }
 0x470   : > { %17722 = vmatmul.mubr.msk.f32.gmra.mrb[4].mxu0 %vm4297_vm3, %v6917_v28 }
 0x471   : > { %17724 = vmatprep.mubr.msk.f32.mxu0 %vm4297_vm3, %v6918_v24  ;;  %18542 = vmatpush3.bf16.msra.mxu0 %v18539_v17 }
 0x472   : > { %18544 = vmatprep.subr.bf16.mxu0 %v18543_v9 }
 0x474   : > { %17725 = vmatmul.mubr.msk.f32.gmra.mrb[6].mxu0 %vm4297_vm3, %v6919_v12 }
 0x475   : > { %17727 = vmatprep.mubr.msk.f32.mxu0 %vm4297_vm3, %v6920_v14  ;;  %18546 = vmatpush3.bf16.msra.mxu0 %v18543_v9 }
 0x478   : > { %17728 = vmatmul.mubr.msk.f32.gmra.mrb[8].mxu0 %vm4297_vm3, %v6921_v22 }
 0x479   : > { %17730 = vmatprep.mubr.msk.f32.mxu0 %vm4297_vm3, %v6922_v25 }
 0x47c   : > { %17731 = vmatmul.mubr.msk.f32.gmra.mrb[10].mxu0 %vm4297_vm3, %v6923_v2 }
 0x47d   : > { %17733 = vmatprep.mubr.msk.f32.mxu0 %vm4297_vm3, %v6924_v21 }
 0x480   : > { %17734 = vmatmul.mubr.msk.f32.gmra.mrb[12].mxu0 %vm4297_vm3, %v6925_v56 }
 0x481   : > { %17736 = vmatprep.mubr.msk.f32.mxu0 %vm4297_vm3, %v6926_v58 }
 0x484   : > { %17737 = vmatmul.mubr.msk.f32.gmra.mrb[14].mxu0 %vm4297_vm3, %v6927_v50 }
 0x485   : > { %17739 = vmatprep.mubr.msk.f32.mxu0 %vm4297_vm3, %v6928_v4 }
 0x488   : > { %17740 = vmatmul.mubr.msk.f32.gmra.mrb[16].mxu0 %vm4297_vm3, %v6929_v5 }
 0x489   : > { %17742 = vmatprep.mubr.msk.f32.mxu0 %vm4297_vm3, %v6930_v8 }
 0x48c   : > { %17743 = vmatmul.mubr.msk.f32.gmra.mrb[18].mxu0 %vm4297_vm3, %v6931_v62 }
 0x48d   : > { %17745 = vmatprep.mubr.msk.f32.mxu0 %vm4297_vm3, %v6932_v57 }
 0x490   : > { %17746 = vmatmul.mubr.msk.f32.gmra.mrb[20].mxu0 %vm4297_vm3, %v6933_v16 }
 0x491   : > { %17748 = vmatprep.mubr.msk.f32.mxu0 %vm4297_vm3, %v6934_v19 }
 0x494   : > { %17749 = vmatmul.mubr.msk.f32.gmra.mrb[22].mxu0 %vm4297_vm3, %v6935_v35 }
 0x495   : > { %17751 = vmatprep.mubr.msk.f32.mxu0 %vm4297_vm3, %v6936_v10 }
 0x498   : > { %17752 = vmatmul.mubr.msk.f32.gmra.mrb[24].mxu0 %vm4297_vm3, %v6937_v20 }
 0x499   : > { %17754 = vmatprep.mubr.msk.f32.mxu0 %vm4297_vm3, %v6938_v1 }
 0x49c   : > { %17755 = vmatmul.mubr.msk.f32.gmra.mrb[26].mxu0 %vm4297_vm3, %v6939_v61 }
 0x49d   : > { %17757 = vmatprep.mubr.msk.f32.mxu0 %vm4297_vm3, %v22091_v45  ;;  %v25781_v45 = vld [vmem:[#allocation79_spill] sm:$0xff] }
 0x4a0   : > { %17758 = vmatmul.mubr.msk.f32.gmra.mrb[28].mxu0 %vm4297_vm3, %v22097_v47  ;;  %v25782_v47 = vld [vmem:[#allocation80_spill] sm:$0xff] }
 0x4a1   : > { %17760 = vmatprep.mubr.msk.f32.mxu0 %vm4297_vm3, %v6942_v13 }
 0x4a4   : > { %17761 = vmatmul.mubr.msk.f32.gmra.mrb[30].mxu0 %vm4297_vm3, %v6943_v18 }
 0x4a5   : > { %17779 = vmatprep.mubr.msk.f32.mxu0 %vm4297_vm3, %v25753_v60  ;;  %v25783_v60 = vld [vmem:[#allocation81_spill] sm:$0xff] }
 0x4a8   : > { %17780 = vmatmul.mubr.msk.f32.vlgmr.msra.gmra.mrb[0].mxu0 %vm4297_vm3, %v21839_v6  ;;  %v25779_v6 = vld [vmem:[#allocation77_spill] sm:$0xff] }
 0x4a9   : > { %17782 = vmatprep.mubr.msk.f32.mxu0 %vm4297_vm3, %v21841_v15  ;;  %v25780_v15 = vld [vmem:[#allocation78_spill] sm:$0xff] }
 0x4ac   : > { %17783 = vmatmul.mubr.msk.f32.gmra.mrb[2].mxu0 %vm4297_vm3, %v25754_v51  ;;  %v25784_v51 = vld [vmem:[#allocation82_spill] sm:$0xff] }
 0x4ad   : > { %17785 = vmatprep.mubr.msk.f32.mxu0 %vm4297_vm3, %v25755_v63  ;;  %v25785_v63 = vld [vmem:[#allocation47_spill] sm:$0xff] }
 0x4b0   : > { %17786 = vmatmul.mubr.msk.f32.gmra.mrb[4].mxu0 %vm4297_vm3, %v25756_v59  ;;  %v7336_v59 = vld [vmem:[#allocation2 + $0x19a] sm:$0xff] }
 0x4b1   : > { %17788 = vmatprep.mubr.msk.f32.mxu0 %vm4297_vm3, %v25757_v3  ;;  %v7337_v3 = vld [vmem:[#allocation2 + $0x1a2] sm:$0xff] }
 0x4b4   : > { %17789 = vmatmul.mubr.msk.f32.gmra.mrb[6].mxu0 %vm4297_vm3, %v25758_v0  ;;  %v15134_v0 = vld [vmem:[%s20345_s3 + $0x60] sm:$0xff] }
 0x4b5   : > { %17791 = vmatprep.mubr.msk.f32.mxu0 %vm4297_vm3, %v25759_v26  ;;  %v15135_v26 = vld [vmem:[%s20345_s3 + $0x68] sm:$0xff] }
 0x4b8   : > { %17792 = vmatmul.mubr.msk.f32.gmra.mrb[8].mxu0 %vm4297_vm3, %v25760_v27  ;;  %v18555_v27 = vpack.c.bf16 %v15135_v26, %v15134_v0 }
 0x4b9   : > { %17794 = vmatprep.mubr.msk.f32.mxu0 %vm4297_vm3, %v25761_v32  ;;  %v15136_v32 = vld [vmem:[%s20345_s3 + $0x70] sm:$0xff] }
 0x4ba   : > { %18556 = vmatprep.subr.bf16.mxu1 %v18555_v27 }
 0x4bb   : > { %18558 = vmatpush3.bf16.msra.mxu1 %v18555_v27 }
 0x4bc   : > { %17795 = vmatmul.mubr.msk.f32.gmra.mrb[10].mxu0 %vm4297_vm3, %v25762_v33  ;;  %v15137_v33 = vld [vmem:[%s20345_s3 + $0x78] sm:$0xff] }
 0x4bd   : > { %17797 = vmatprep.mubr.msk.f32.mxu0 %vm4297_vm3, %v25763_v39  ;;  %v18559_v39 = vpack.c.bf16 %v15137_v33, %v15136_v32 }
 0x4bf   : > { %18560 = vmatprep.subr.bf16.mxu1 %v18559_v39 }
 0x4c0   : > { %17798 = vmatmul.mubr.msk.f32.gmra.mrb[12].mxu0 %vm4297_vm3, %v25764_v40  ;;  %18562 = vmatpush3.bf16.msra.mxu1 %v18559_v39  ;;  %v7844_v40 = vld [vmem:[#allocation3 + $0x1] sm:$0xff] }
 0x4c1   : > { %17800 = vmatprep.mubr.msk.f32.mxu0 %vm4297_vm3, %v25765_v42  ;;  %17843 = vmatprep.mubr.msk.f32.mxu1 %vm4297_vm3, %v7844_v40  ;;  %v7845_v42 = vld [vmem:[#allocation3 + $0x9] sm:$0xff] }
 0x4c3   : > { %17844 = vmatmul.mubr.msk.f32.vlgmr.msra.gmra.mrb[0].mxu1 %vm4297_vm3, %v7845_v42 }
 0x4c4   : > { %17801 = vmatmul.mubr.msk.f32.gmra.mrb[14].mxu0 %vm4297_vm3, %v25766_v43  ;;  %v7836_v43 = vld [vmem:[%s20345_s3] sm:$0xff] }
 0x4c5   : > { %17803 = vmatprep.mubr.msk.f32.mxu0 %vm4297_vm3, %v25767_v44  ;;  %v7837_v44 = vld [vmem:[%s20345_s3 + $0x8] sm:$0xff] }
 0x4c8   : > { %17804 = vmatmul.mubr.msk.f32.gmra.mrb[16].mxu0 %vm4297_vm3, %v25768_v46  ;;  %v18563_v46 = vpack.c.bf16 %v7837_v44, %v7836_v43 }
 0x4c9   : > { %17806 = vmatprep.mubr.msk.f32.mxu0 %vm4297_vm3, %v25769_v48  ;;  %v7838_v48 = vld [vmem:[%s20345_s3 + $0x10] sm:$0xff] }
 0x4ca   : > { %18564 = vmatprep.subr.bf16.mxu1 %v18563_v46 }
 0x4cb   : > { %18566 = vmatpush3.bf16.msra.mxu1 %v18563_v46 }
 0x4cc   : > { %17807 = vmatmul.mubr.msk.f32.gmra.mrb[18].mxu0 %vm4297_vm3, %v25770_v49  ;;  %v7839_v49 = vld [vmem:[%s20345_s3 + $0x18] sm:$0xff] }
 0x4cd   : > { %17809 = vmatprep.mubr.msk.f32.mxu0 %vm4297_vm3, %v25771_v52  ;;  %v18567_v52 = vpack.c.bf16 %v7839_v49, %v7838_v48 }
 0x4cf   : > { %18568 = vmatprep.subr.bf16.mxu1 %v18567_v52 }
 0x4d0   : > { %17810 = vmatmul.mubr.msk.f32.gmra.mrb[20].mxu0 %vm4297_vm3, %v25772_v54  ;;  %18570 = vmatpush3.bf16.msra.mxu1 %v18567_v52  ;;  %v7840_v54 = vld [vmem:[%s20345_s3 + $0x20] sm:$0xff] }
 0x4d1   : > { %17812 = vmatprep.mubr.msk.f32.mxu0 %vm4297_vm3, %v25779_v6 }
 0x4d4   : > { %17813 = vmatmul.mubr.msk.f32.gmra.mrb[22].mxu0 %vm4297_vm3, %v25780_v15 }
 0x4d5   : > { %17815 = vmatprep.mubr.msk.f32.mxu0 %vm4297_vm3, %v25781_v45 }
 0x4d8   : > { %17816 = vmatmul.mubr.msk.f32.gmra.mrb[24].mxu0 %vm4297_vm3, %v25782_v47 }
 0x4d9   : > { %17818 = vmatprep.mubr.msk.f32.mxu0 %vm4297_vm3, %v25783_v60 }
 0x4dc   : > { %17819 = vmatmul.mubr.msk.f32.gmra.mrb[26].mxu0 %vm4297_vm3, %v25784_v51 }
 0x4dd   : > { %17821 = vmatprep.mubr.msk.f32.mxu0 %vm4297_vm3, %v25785_v63 }
 0x4e0   : > { %17822 = vmatmul.mubr.msk.f32.gmra.mrb[28].mxu0 %vm4297_vm3, %v22173_v37  ;;  %v7841_v37 = vld [vmem:[%s20345_s3 + $0x28] sm:$0xff] }
 0x4e1   : > { %17824 = vmatprep.mubr.msk.f32.mxu0 %vm4297_vm3, %v7336_v59  ;;  %v18571_v23 = vpack.c.bf16 %v7841_v37, %v7840_v54 }
 0x4e3   : > { %18572 = vmatprep.subr.bf16.mxu1 %v18571_v23 }
 0x4e4   : > { %17825 = vmatmul.mubr.msk.f32.gmra.mrb[30].mxu0 %vm4297_vm3, %v7337_v3  ;;  %18574 = vmatpush3.bf16.msra.mxu1 %v18571_v23 }
 0x4e5   : > { %18576 = vmatprep.subr.bf16.mxu1 %v18575_v31 }
 0x4e8   : > { %18578 = vmatpush3.bf16.msra.mxu1 %v18575_v31 }
 0x4e9   : > { %18580 = vmatprep.subr.bf16.mxu1 %v22369_v38 }
 0x57b   : > { %v17781_v7 = vpop.f32.mrb[0].mxu0 }
 0x57c   : > { %v7708_v11 = vadd.f32 %v17781_v7, %v22377_v41  ;;  %v7509_v17 = vpop.f32.mrb[1].mxu0 }
 0x57d   : > { %v7707_v55 = vadd.f32 %v22377_v41, %v7509_v17 }
 0x57e   : > { %v7740_v53 = vmax.f32 %v7708_v11, 0.0 }
 0x57f   : > { %v7739_v28 = vmax.f32 %v7707_v55, 0.0  ;;  %v17784_v24 = vpop.f32.mrb[2].mxu0 }
 0x580   : > { %7773 = vst.msk [vmem:[#allocation3 + $0x21] sm:$0xff] %vm4297_vm3, %v7740_v53  ;;  %v7710_v9 = vadd.f32 %v17784_v24, %v22377_v41  ;;  %v7519_v12 = vpop.f32.mrb[3].mxu0 }
 0x581   : > { %7772 = vst.msk [vmem:[#allocation3 + $0x19] sm:$0xff] %vm4297_vm3, %v7739_v28  ;;  %v7709_v14 = vadd.f32 %v22377_v41, %v7519_v12 }
 0x582   : > { %v7742_v22 = vmax.f32 %v7710_v9, 0.0 }
 0x583   : > { %v7741_v25 = vmax.f32 %v7709_v14, 0.0  ;;  %v17787_v2 = vpop.f32.mrb[4].mxu0 }
 0x584   : > { %7775 = vst.msk [vmem:[#allocation3 + $0x39] sm:$0xff] %vm4297_vm3, %v7742_v22  ;;  %v7712_v21 = vadd.f32 %v17787_v2, %v22377_v41  ;;  %v7529_v56 = vpop.f32.mrb[5].mxu0 }
 0x585   : > { %7774 = vst.msk [vmem:[#allocation3 + $0x31] sm:$0xff] %vm4297_vm3, %v7741_v25  ;;  %v7711_v58 = vadd.f32 %v22377_v41, %v7529_v56 }
 0x586   : > { %v7744_v50 = vmax.f32 %v7712_v21, 0.0 }
 0x587   : > { %v7743_v4 = vmax.f32 %v7711_v58, 0.0  ;;  %v17790_v5 = vpop.f32.mrb[6].mxu0  ;;  %v22397_v19 = vld [vmem:[#allocation3 + $0x21] sm:$0xff] }
 0x588   : > { %7777 = vst.msk [vmem:[#allocation3 + $0x51] sm:$0xff] %vm4297_vm3, %v7744_v50  ;;  %v7714_v8 = vadd.f32 %v17790_v5, %v22377_v41  ;;  %v7539_v62 = vpop.f32.mrb[7].mxu0  ;;  %v22391_v57 = vld [vmem:[#allocation3 + $0x19] sm:$0xff] }
 0x589   : > { %7776 = vst.msk [vmem:[#allocation3 + $0x49] sm:$0xff] %vm4297_vm3, %v7743_v4  ;;  %v7713_v16 = vadd.f32 %v22377_v41, %v7539_v62  ;;  %17846 = vmatprep.mubr.msk.f32.mxu1 %vm4297_vm3, %v22391_v57 }
 0x58a   : > { %v7746_v35 = vmax.f32 %v7714_v8, 0.0  ;;  %17847 = vmatmul.mubr.msk.f32.gmra.mrb[2].mxu1 %vm4297_vm3, %v22397_v19 }
 0x58b   : > { %v7745_v10 = vmax.f32 %v7713_v16, 0.0  ;;  %v17793_v20 = vpop.f32.mrb[8].mxu0  ;;  %v22409_v6 = vld [vmem:[#allocation3 + $0x39] sm:$0xff] }
 0x58c   : > { %7779 = vst.msk [vmem:[#allocation3 + $0x69] sm:$0xff] %vm4297_vm3, %v7746_v35  ;;  %v7716_v1 = vadd.f32 %v17793_v20, %v22377_v41  ;;  %v7549_v61 = vpop.f32.mrb[9].mxu0  ;;  %v22403_v13 = vld [vmem:[#allocation3 + $0x31] sm:$0xff] }
 0x58d   : > { %7778 = vst.msk [vmem:[#allocation3 + $0x61] sm:$0xff] %vm4297_vm3, %v7745_v10  ;;  %v7715_v18 = vadd.f32 %v22377_v41, %v7549_v61  ;;  %17849 = vmatprep.mubr.msk.f32.mxu1 %vm4297_vm3, %v22403_v13 }
 0x58e   : > { %v7748_v15 = vmax.f32 %v7716_v1, 0.0  ;;  %17850 = vmatmul.mubr.msk.f32.gmra.mrb[4].mxu1 %vm4297_vm3, %v22409_v6 }
 0x58f   : > { %v7747_v45 = vmax.f32 %v7715_v18, 0.0  ;;  %v17796_v47 = vpop.f32.mrb[10].mxu0  ;;  %v22421_v3 = vld [vmem:[#allocation3 + $0x51] sm:$0xff] }
 0x590   : > { %7781 = vst.msk [vmem:[#allocation3 + $0x81] sm:$0xff] %vm4297_vm3, %v7748_v15  ;;  %v7718_v60 = vadd.f32 %v17796_v47, %v22377_v41  ;;  %v7559_v51 = vpop.f32.mrb[11].mxu0  ;;  %v22415_v63 = vld [vmem:[#allocation3 + $0x49] sm:$0xff] }
 0x591   : > { %7780 = vst.msk [vmem:[#allocation3 + $0x79] sm:$0xff] %vm4297_vm3, %v7747_v45  ;;  %v7717_v59 = vadd.f32 %v22377_v41, %v7559_v51  ;;  %17852 = vmatprep.mubr.msk.f32.mxu1 %vm4297_vm3, %v22415_v63 }
 0x592   : > { %v7750_v0 = vmax.f32 %v7718_v60, 0.0  ;;  %17853 = vmatmul.mubr.msk.f32.gmra.mrb[6].mxu1 %vm4297_vm3, %v22421_v3 }
 0x593   : > { %v7749_v26 = vmax.f32 %v7717_v59, 0.0  ;;  %v17799_v27 = vpop.f32.mrb[12].mxu0  ;;  %v22433_v42 = vld [vmem:[#allocation3 + $0x69] sm:$0xff] }
 0x594   : > { %7783 = vst.msk [vmem:[#allocation3 + $0x99] sm:$0xff] %vm4297_vm3, %v7750_v0  ;;  %v7720_v32 = vadd.f32 %v17799_v27, %v22377_v41  ;;  %v7569_v33 = vpop.f32.mrb[13].mxu0  ;;  %v22427_v39 = vld [vmem:[#allocation3 + $0x61] sm:$0xff] }
 0x595   : > { %7782 = vst.msk [vmem:[#allocation3 + $0x91] sm:$0xff] %vm4297_vm3, %v7749_v26  ;;  %v7719_v40 = vadd.f32 %v22377_v41, %v7569_v33  ;;  %17855 = vmatprep.mubr.msk.f32.mxu1 %vm4297_vm3, %v22427_v39 }
 0x596   : > { %v7752_v43 = vmax.f32 %v7720_v32, 0.0  ;;  %17856 = vmatmul.mubr.msk.f32.gmra.mrb[8].mxu1 %vm4297_vm3, %v22433_v42 }
 0x597   : > { %v7751_v44 = vmax.f32 %v7719_v40, 0.0  ;;  %v17802_v46 = vpop.f32.mrb[14].mxu0  ;;  %v22445_v37 = vld [vmem:[#allocation3 + $0x81] sm:$0xff] }
 0x598   : > { %7785 = vst.msk [vmem:[#allocation3 + $0xb1] sm:$0xff] %vm4297_vm3, %v7752_v43  ;;  %v7722_v48 = vadd.f32 %v17802_v46, %v22377_v41  ;;  %v7579_v49 = vpop.f32.mrb[15].mxu0  ;;  %v22439_v52 = vld [vmem:[#allocation3 + $0x79] sm:$0xff] }
 0x599   : > { %7784 = vst.msk [vmem:[#allocation3 + $0xa9] sm:$0xff] %vm4297_vm3, %v7751_v44  ;;  %v7721_v54 = vadd.f32 %v22377_v41, %v7579_v49  ;;  %17858 = vmatprep.mubr.msk.f32.mxu1 %vm4297_vm3, %v22439_v52 }
 0x59a   : > { %v7754_v23 = vmax.f32 %v7722_v48, 0.0  ;;  %17859 = vmatmul.mubr.msk.f32.gmra.mrb[10].mxu1 %vm4297_vm3, %v22445_v37 }
 0x59b   : > { %v7753_v29 = vmax.f32 %v7721_v54, 0.0  ;;  %v17805_v30 = vpop.f32.mrb[16].mxu0  ;;  %v22457_v11 = vld [vmem:[#allocation3 + $0x99] sm:$0xff] }
 0x59c   : > { %7787 = vst.msk [vmem:[#allocation3 + $0xc9] sm:$0xff] %vm4297_vm3, %v7754_v23  ;;  %v7724_v31 = vadd.f32 %v17805_v30, %v22377_v41  ;;  %v7589_v34 = vpop.f32.mrb[17].mxu0  ;;  %v22451_v36 = vld [vmem:[#allocation3 + $0x91] sm:$0xff] }
 0x59d   : > { %7786 = vst.msk [vmem:[#allocation3 + $0xc1] sm:$0xff] %vm4297_vm3, %v7753_v29  ;;  %v7723_v7 = vadd.f32 %v22377_v41, %v7589_v34  ;;  %17861 = vmatprep.mubr.msk.f32.mxu1 %vm4297_vm3, %v22451_v36 }
 0x59e   : > { %v7756_v17 = vmax.f32 %v7724_v31, 0.0  ;;  %17862 = vmatmul.mubr.msk.f32.gmra.mrb[12].mxu1 %vm4297_vm3, %v22457_v11 }
 0x59f   : > { %v7755_v55 = vmax.f32 %v7723_v7, 0.0  ;;  %v17808_v53 = vpop.f32.mrb[18].mxu0  ;;  %v22469_v14 = vld [vmem:[#allocation3 + $0xb1] sm:$0xff] }
 0x5a0   : > { %7789 = vst.msk [vmem:[#allocation3 + $0xe1] sm:$0xff] %vm4297_vm3, %v7756_v17  ;;  %v7726_v28 = vadd.f32 %v17808_v53, %v22377_v41  ;;  %v7599_v24 = vpop.f32.mrb[19].mxu0  ;;  %v22463_v9 = vld [vmem:[#allocation3 + $0xa9] sm:$0xff] }
 0x5a1   : > { %7788 = vst.msk [vmem:[#allocation3 + $0xd9] sm:$0xff] %vm4297_vm3, %v7755_v55  ;;  %v7725_v12 = vadd.f32 %v22377_v41, %v7599_v24  ;;  %17864 = vmatprep.mubr.msk.f32.mxu1 %vm4297_vm3, %v22463_v9 }
 0x5a2   : > { %v7758_v22 = vmax.f32 %v7726_v28, 0.0  ;;  %17865 = vmatmul.mubr.msk.f32.gmra.mrb[14].mxu1 %vm4297_vm3, %v22469_v14 }
 0x5a3   : > { %v7757_v25 = vmax.f32 %v7725_v12, 0.0  ;;  %v17811_v2 = vpop.f32.mrb[20].mxu0  ;;  %v22481_v4 = vld [vmem:[#allocation3 + $0xc9] sm:$0xff] }
 0x5a4   : > { %7791 = vst.msk [vmem:[#allocation3 + $0xf9] sm:$0xff] %vm4297_vm3, %v7758_v22  ;;  %v7728_v21 = vadd.f32 %v17811_v2, %v22377_v41  ;;  %v7609_v56 = vpop.f32.mrb[21].mxu0  ;;  %v22475_v58 = vld [vmem:[#allocation3 + $0xc1] sm:$0xff] }
 0x5a5   : > { %7790 = vst.msk [vmem:[#allocation3 + $0xf1] sm:$0xff] %vm4297_vm3, %v7757_v25  ;;  %v7727_v50 = vadd.f32 %v22377_v41, %v7609_v56  ;;  %17867 = vmatprep.mubr.msk.f32.mxu1 %vm4297_vm3, %v22475_v58  ;;  %v7804_v56 = vld [vmem:[#allocation3] sm:$0xff] }
 0x5a6   : > { %v7760_v5 = vmax.f32 %v7728_v21, 0.0  ;;  %17868 = vmatmul.mubr.msk.f32.gmra.mrb[16].mxu1 %vm4297_vm3, %v22481_v4 }
 0x5a7   : > { %v7759_v8 = vmax.f32 %v7727_v50, 0.0  ;;  %v17814_v62 = vpop.f32.mrb[22].mxu0  ;;  %v22493_v1 = vld [vmem:[#allocation3 + $0xe1] sm:$0xff] }
 0x5a8   : > { %7793 = vst.msk [vmem:[#allocation3 + $0x111] sm:$0xff] %vm4297_vm3, %v7760_v5  ;;  %v7730_v16 = vadd.f32 %v17814_v62, %v22377_v41  ;;  %v7619_v35 = vpop.f32.mrb[23].mxu0  ;;  %v22487_v10 = vld [vmem:[#allocation3 + $0xd9] sm:$0xff]  ;;  %v15204_v5 = vld [vmem:[%s20345_s3 + $0x90] sm:$0xff] }
 0x5a9   : > { %7792 = vst.msk [vmem:[#allocation3 + $0x109] sm:$0xff] %vm4297_vm3, %v7759_v8  ;;  %v7729_v20 = vadd.f32 %v22377_v41, %v7619_v35  ;;  %17870 = vmatprep.mubr.msk.f32.mxu1 %vm4297_vm3, %v22487_v10  ;;  %v15205_v8 = vld [vmem:[%s20345_s3 + $0x98] sm:$0xff]  ;;  %v15206_v35 = vld [vmem:[%s20345_s3 + $0xa0] sm:$0xff] }
 0x5aa   : > { %v7762_v61 = vmax.f32 %v7730_v16, 0.0  ;;  %17871 = vmatmul.mubr.msk.f32.gmra.mrb[18].mxu1 %vm4297_vm3, %v22493_v1  ;;  %v7805_v62 = vld [vmem:[#allocation3 + $0x8] sm:$0xff]  ;;  %v18583_v16 = vpack.c.bf16 %v15205_v8, %v15204_v5 }
 0x5ab   : > { %v7761_v18 = vmax.f32 %v7729_v20, 0.0  ;;  %v17817_v15 = vpop.f32.mrb[24].mxu0  ;;  %v22505_v59 = vld [vmem:[#allocation3 + $0xf9] sm:$0xff] }
 0x5ac   : > { %7795 = vst.msk [vmem:[#allocation3 + $0x129] sm:$0xff] %vm4297_vm3, %v7762_v61  ;;  %v7732_v45 = vadd.f32 %v17817_v15, %v22377_v41  ;;  %v7629_v47 = vpop.f32.mrb[25].mxu0  ;;  %v22499_v60 = vld [vmem:[#allocation3 + $0xf1] sm:$0xff]  ;;  %v15207_v20 = vld [vmem:[%s20345_s3 + $0xa8] sm:$0xff] }
 0x5ad   : > { %7794 = vst.msk [vmem:[#allocation3 + $0x121] sm:$0xff] %vm4297_vm3, %v7761_v18  ;;  %v7731_v51 = vadd.f32 %v22377_v41, %v7629_v47  ;;  %17873 = vmatprep.mubr.msk.f32.mxu1 %vm4297_vm3, %v22499_v60  ;;  %v22569_v61 = vld [vmem:[#allocation3 + $0x18] sm:$0xff]  ;;  %v18587_v18 = vpack.c.bf16 %v15207_v20, %v15206_v35  ;;  %v22574_v15 = vld [vmem:[#allocation3 + $0x20] sm:$0xff]  ;;  %v15209_v47 = vld [vmem:[%s20345_s3 + $0xb8] sm:$0xff] }
 0x5ae   : > { %v7764_v0 = vmax.f32 %v7732_v45, 0.0  ;;  %17874 = vmatmul.mubr.msk.f32.gmra.mrb[20].mxu1 %vm4297_vm3, %v22505_v59  ;;  %v15208_v45 = vld [vmem:[%s20345_s3 + $0xb0] sm:$0xff] }
 0x5af   : > { %v7763_v26 = vmax.f32 %v7731_v51, 0.0  ;;  %v17820_v27 = vpop.f32.mrb[26].mxu0  ;;  %v22517_v44 = vld [vmem:[#allocation3 + $0x111] sm:$0xff] }
 0x5b0   : > { %7797 = vst.msk [vmem:[#allocation3 + $0x141] sm:$0xff] %vm4297_vm3, %v7764_v0  ;;  %v7734_v32 = vadd.f32 %v17820_v27, %v22377_v41  ;;  %v7639_v33 = vpop.f32.mrb[27].mxu0  ;;  %v22511_v40 = vld [vmem:[#allocation3 + $0x109] sm:$0xff]  ;;  %v18591_v0 = vpack.c.bf16 %v15209_v47, %v15208_v45  ;;  %v15243_v27 = vld [vmem:[%s20345_s3 + $0xc8] sm:$0xff] }
 0x5b1   : > { %7796 = vst.msk [vmem:[#allocation3 + $0x139] sm:$0xff] %vm4297_vm3, %v7763_v26  ;;  %v7733_v43 = vadd.f32 %v22377_v41, %v7639_v33  ;;  %17876 = vmatprep.mubr.msk.f32.mxu1 %vm4297_vm3, %v22511_v40  ;;  %v22580_v51 = vld [vmem:[#allocation3 + $0x30] sm:$0xff]  ;;  %v22584_v26 = vld [vmem:[#allocation3 + $0x38] sm:$0xff]  ;;  %v8527_v47 = vld [vmem:[#allocation3 + $0x2] sm:$0xff] }
 0x5b2   : > { %v7766_v46 = vmax.f32 %v7734_v32, 0.0  ;;  %17877 = vmatmul.mubr.msk.f32.gmra.mrb[22].mxu1 %vm4297_vm3, %v22517_v44  ;;  %v22590_v32 = vld [vmem:[#allocation3 + $0x48] sm:$0xff]  ;;  %v22661_v5 = vld [vmem:[#allocation3 + $0x110] sm:$0xff] }
 0x5b3   : > { %v7765_v48 = vmax.f32 %v7733_v43, 0.0  ;;  %v17823_v49 = vpop.f32.mrb[28].mxu0  ;;  %v22529_v31 = vld [vmem:[#allocation3 + $0x129] sm:$0xff] }
 0x5b4   : > { %7799 = vst.msk [vmem:[#allocation3 + $0x159] sm:$0xff] %vm4297_vm3, %v7766_v46  ;;  %v7736_v54 = vadd.f32 %v17823_v49, %v22377_v41  ;;  %v7649_v23 = vpop.f32.mrb[29].mxu0  ;;  %v22523_v29 = vld [vmem:[#allocation3 + $0x121] sm:$0xff]  ;;  %25787 = vst [vmem:[#allocation49_spill] sm:$0xff] %v22529_v31  ;;  %v22596_v43 = vld [vmem:[#allocation3 + $0x50] sm:$0xff] }
 0x5b5   : > { %25786 = vst [vmem:[#allocation48_spill] sm:$0xff] %v22523_v29  ;;  %7798 = vst.msk [vmem:[#allocation3 + $0x151] sm:$0xff] %vm4297_vm3, %v7765_v48  ;;  %v7735_v30 = vadd.f32 %v22377_v41, %v7649_v23  ;;  %17879 = vmatprep.mubr.msk.f32.mxu1 %vm4297_vm3, %v22523_v29  ;;  %v22600_v46 = vld [vmem:[#allocation3 + $0x60] sm:$0xff]  ;;  %v22605_v48 = vld [vmem:[#allocation3 + $0x68] sm:$0xff] }
 0x5b6   : > { %v7768_v34 = vmax.f32 %v7736_v54, 0.0  ;;  %17880 = vmatmul.mubr.msk.f32.gmra.mrb[24].mxu1 %vm4297_vm3, %v22529_v31  ;;  %v22609_v49 = vld [vmem:[#allocation3 + $0x78] sm:$0xff]  ;;  %v22613_v54 = vld [vmem:[#allocation3 + $0x80] sm:$0xff]  ;;  %v22617_v23 = vld [vmem:[#allocation3 + $0x90] sm:$0xff] }
 0x5b7   : > { %v7767_v7 = vmax.f32 %v7735_v30, 0.0  ;;  %v17826_v17 = vpop.f32.mrb[30].mxu0  ;;  %v22541_v12 = vld [vmem:[#allocation3 + $0x141] sm:$0xff]  ;;  %v22621_v30 = vld [vmem:[#allocation3 + $0x98] sm:$0xff]  ;;  %v15249_v29 = vld [vmem:[%s20345_s3 + $0xf8] sm:$0xff] }
 0x5b8   : > { %7801 = vst.msk [vmem:[#allocation3 + $0x171] sm:$0xff] %vm4297_vm3, %v7768_v34  ;;  %v7738_v55 = vadd.f32 %v17826_v17, %v22377_v41  ;;  %v7659_v53 = vpop.f32.mrb[31].mxu0  ;;  %v22535_v28 = vld [vmem:[#allocation3 + $0x139] sm:$0xff]  ;;  %25789 = vst [vmem:[#allocation51_spill] sm:$0xff] %v22541_v12  ;;  %v22625_v34 = vld [vmem:[#allocation3 + $0xa8] sm:$0xff] }
 0x5b9   : > { %25788 = vst [vmem:[#allocation50_spill] sm:$0xff] %v22535_v28  ;;  %7800 = vst.msk [vmem:[#allocation3 + $0x169] sm:$0xff] %vm4297_vm3, %v7767_v7  ;;  %v7737_v24 = vadd.f32 %v22377_v41, %v7659_v53  ;;  %17882 = vmatprep.mubr.msk.f32.mxu1 %vm4297_vm3, %v22535_v28  ;;  %v22629_v7 = vld [vmem:[#allocation3 + $0xb0] sm:$0xff]  ;;  %v22633_v17 = vld [vmem:[#allocation3 + $0xc0] sm:$0xff] }
 0x5ba   : > { %v7770_v22 = vmax.f32 %v7738_v55, 0.0  ;;  %17883 = vmatmul.mubr.msk.f32.gmra.mrb[26].mxu1 %vm4297_vm3, %v22541_v12  ;;  %v22637_v55 = vld [vmem:[#allocation3 + $0xc8] sm:$0xff]  ;;  %v22641_v53 = vld [vmem:[#allocation3 + $0xd8] sm:$0xff]  ;;  %v22665_v8 = vld [vmem:[#allocation3 + $0x120] sm:$0xff] }
 0x5bb   : > { %v7769_v25 = vmax.f32 %v7737_v24, 0.0  ;;  %v22551_v41 = vld [vmem:[#allocation3 + $0x159] sm:$0xff]  ;;  %v22708_v31 = vld [vmem:[#allocation3 + $0x22] sm:$0xff] }
 0x5bc   : > { %7803 = vst.msk [vmem:[#allocation3 + $0x189] sm:$0xff] %vm4297_vm3, %v7770_v22  ;;  %v22546_v2 = vld [vmem:[#allocation3 + $0x151] sm:$0xff]  ;;  %25791 = vst [vmem:[#allocation53_spill] sm:$0xff] %v22551_v41  ;;  %v22645_v24 = vld [vmem:[#allocation3 + $0xe0] sm:$0xff] }
 0x5bd   : > { %25790 = vst [vmem:[#allocation52_spill] sm:$0xff] %v22546_v2  ;;  %7802 = vst.msk [vmem:[#allocation3 + $0x181] sm:$0xff] %vm4297_vm3, %v7769_v25  ;;  %17885 = vmatprep.mubr.msk.f32.mxu1 %vm4297_vm3, %v22546_v2  ;;  %v22649_v22 = vld [vmem:[#allocation3 + $0xf0] sm:$0xff]  ;;  %v22653_v25 = vld [vmem:[#allocation3 + $0xf8] sm:$0xff] }
 0x5be   : > { %17886 = vmatmul.mubr.msk.f32.gmra.mrb[28].mxu1 %vm4297_vm3, %v22551_v41  ;;  %v22677_v35 = vld [vmem:[#allocation3 + $0x140] sm:$0xff]  ;;  %v22681_v20 = vld [vmem:[#allocation3 + $0x150] sm:$0xff]  ;;  %25795 = vst [vmem:[#allocation57_spill] sm:$0xff] %v22708_v31 }
 0x5bf   : > { %v22559_v50 = vld [vmem:[#allocation3 + $0x171] sm:$0xff]  ;;  %v15247_v2 = vld [vmem:[%s20345_s3 + $0xe8] sm:$0xff] }
 0x5c0   : > { %v22555_v21 = vld [vmem:[#allocation3 + $0x169] sm:$0xff]  ;;  %25793 = vst [vmem:[#allocation55_spill] sm:$0xff] %v22559_v50  ;;  %v15246_v41 = vld [vmem:[%s20345_s3 + $0xe0] sm:$0xff]  ;;  %v22703_v12 = vld [vmem:[#allocation3 + $0x1a] sm:$0xff] }
 0x5c1   : > { %25792 = vst [vmem:[#allocation54_spill] sm:$0xff] %v22555_v21  ;;  %17888 = vmatprep.mubr.msk.f32.mxu1 %vm4297_vm3, %v22555_v21  ;;  %v22689_v45 = vld [vmem:[#allocation3 + $0x168] sm:$0xff]  ;;  %25794 = vst [vmem:[#allocation56_spill] sm:$0xff] %v22703_v12  ;;  %v18603_v28 = vpack.c.bf16 %v15247_v2, %v15246_v41 }
 0x5c2   : > { %17889 = vmatmul.mubr.msk.f32.gmra.mrb[30].mxu1 %vm4297_vm3, %v22559_v50  ;;  %v8528_v50 = vld [vmem:[#allocation3 + $0xa] sm:$0xff] }
 0x5c3   : > { %17907 = vmatprep.mubr.msk.f32.mxu1 %vm4297_vm3, %v7804_v56  ;;  %v22657_v56 = vld [vmem:[#allocation3 + $0x108] sm:$0xff] }
 0x5c4   : > { %v22724_v2 = vld [vmem:[#allocation3 + $0x4a] sm:$0xff] }
 0x5c5   : > { %25796 = vst [vmem:[#allocation58_spill] sm:$0xff] %v22724_v2 }
 0x5c6   : > { %17908 = vmatmul.mubr.msk.f32.vlgmr.msra.gmra.mrb[0].mxu1 %vm4297_vm3, %v7805_v62  ;;  %v22669_v62 = vld [vmem:[#allocation3 + $0x128] sm:$0xff] }
 0x5c7   : > { %17910 = vmatprep.mubr.msk.f32.mxu1 %vm4297_vm3, %v22569_v61  ;;  %18582 = vmatpush3.bf16.msra.mxu1 %v22369_v38  ;;  %v15242_v38 = vld [vmem:[%s20345_s3 + $0xc0] sm:$0xff] }
 0x5c8   : > { %18584 = vmatprep.subr.bf16.mxu1 %v18583_v16  ;;  %v22594_v33 = vpack.c.bf16 %v15243_v27, %v15242_v38  ;;  %v15244_v38 = vld [vmem:[%s20345_s3 + $0xd0] sm:$0xff]  ;;  %v15245_v27 = vld [vmem:[%s20345_s3 + $0xd8] sm:$0xff] }
 0x5c9   : > { %v18599_v21 = vpack.c.bf16 %v15245_v27, %v15244_v38  ;;  %v22714_v38 = vld [vmem:[#allocation3 + $0x32] sm:$0xff]  ;;  %v22718_v27 = vld [vmem:[#allocation3 + $0x3a] sm:$0xff] }
 0x5ca   : > { %17911 = vmatmul.mubr.msk.f32.gmra.mrb[2].mxu1 %vm4297_vm3, %v22574_v15 }
 0x5cb   : > { %17913 = vmatprep.mubr.msk.f32.mxu1 %vm4297_vm3, %v22580_v51  ;;  %18586 = vmatpush3.bf16.msra.mxu1 %v18583_v16  ;;  %v22673_v16 = vld [vmem:[#allocation3 + $0x138] sm:$0xff] }
 0x5cc   : > { %18588 = vmatprep.subr.bf16.mxu1 %v18587_v18 }
 0x5ce   : > { %17914 = vmatmul.mubr.msk.f32.gmra.mrb[4].mxu1 %vm4297_vm3, %v22584_v26 }
 0x5cf   : > { %17916 = vmatprep.mubr.msk.f32.mxu1 %vm4297_vm3, %v22590_v32  ;;  %18590 = vmatpush3.bf16.msra.mxu1 %v18587_v18  ;;  %v22685_v18 = vld [vmem:[#allocation3 + $0x158] sm:$0xff] }
 0x5d0   : > { %18592 = vmatprep.subr.bf16.mxu1 %v18591_v0 }
 0x5d2   : > { %17917 = vmatmul.mubr.msk.f32.gmra.mrb[6].mxu1 %vm4297_vm3, %v22596_v43 }
 0x5d3   : > { %17919 = vmatprep.mubr.msk.f32.mxu1 %vm4297_vm3, %v22600_v46  ;;  %18594 = vmatpush3.bf16.msra.mxu1 %v18591_v0  ;;  %v22693_v0 = vld [vmem:[#allocation3 + $0x170] sm:$0xff] }
 0x5d4   : > { %18596 = vmatprep.subr.bf16.mxu1 %v22594_v33 }
 0x5d6   : > { %17920 = vmatmul.mubr.msk.f32.gmra.mrb[8].mxu1 %vm4297_vm3, %v22605_v48 }
 0x5d7   : > { %17922 = vmatprep.mubr.msk.f32.mxu1 %vm4297_vm3, %v22609_v49 }
 0x5da   : > { %17923 = vmatmul.mubr.msk.f32.gmra.mrb[10].mxu1 %vm4297_vm3, %v22613_v54 }
 0x5db   : > { %17925 = vmatprep.mubr.msk.f32.mxu1 %vm4297_vm3, %v22617_v23 }
 0x5de   : > { %17926 = vmatmul.mubr.msk.f32.gmra.mrb[12].mxu1 %vm4297_vm3, %v22621_v30 }
 0x5df   : > { %17928 = vmatprep.mubr.msk.f32.mxu1 %vm4297_vm3, %v22625_v34 }
 0x5e2   : > { %17929 = vmatmul.mubr.msk.f32.gmra.mrb[14].mxu1 %vm4297_vm3, %v22629_v7 }
 0x5e3   : > { %17931 = vmatprep.mubr.msk.f32.mxu1 %vm4297_vm3, %v22633_v17 }
 0x5e6   : > { %17932 = vmatmul.mubr.msk.f32.gmra.mrb[16].mxu1 %vm4297_vm3, %v22637_v55 }
 0x5e7   : > { %17934 = vmatprep.mubr.msk.f32.mxu1 %vm4297_vm3, %v22641_v53 }
 0x5ea   : > { %17935 = vmatmul.mubr.msk.f32.gmra.mrb[18].mxu1 %vm4297_vm3, %v22645_v24 }
 0x5eb   : > { %17937 = vmatprep.mubr.msk.f32.mxu1 %vm4297_vm3, %v22649_v22 }
 0x5ee   : > { %17938 = vmatmul.mubr.msk.f32.gmra.mrb[20].mxu1 %vm4297_vm3, %v22653_v25 }
 0x5ef   : > { %17940 = vmatprep.mubr.msk.f32.mxu1 %vm4297_vm3, %v22657_v56 }
 0x5f2   : > { %17941 = vmatmul.mubr.msk.f32.gmra.mrb[22].mxu1 %vm4297_vm3, %v22661_v5 }
 0x5f3   : > { %17943 = vmatprep.mubr.msk.f32.mxu1 %vm4297_vm3, %v22665_v8 }
 0x5f6   : > { %17944 = vmatmul.mubr.msk.f32.gmra.mrb[24].mxu1 %vm4297_vm3, %v22669_v62 }
 0x5f7   : > { %17946 = vmatprep.mubr.msk.f32.mxu1 %vm4297_vm3, %v22673_v16 }
 0x5fa   : > { %17947 = vmatmul.mubr.msk.f32.gmra.mrb[26].mxu1 %vm4297_vm3, %v22677_v35 }
 0x5fb   : > { %17949 = vmatprep.mubr.msk.f32.mxu1 %vm4297_vm3, %v22681_v20 }
 0x5fe   : > { %17950 = vmatmul.mubr.msk.f32.gmra.mrb[28].mxu1 %vm4297_vm3, %v22685_v18 }
 0x5ff   : > { %17952 = vmatprep.mubr.msk.f32.mxu1 %vm4297_vm3, %v22689_v45 }
 0x602   : > { %17953 = vmatmul.mubr.msk.f32.gmra.mrb[30].mxu1 %vm4297_vm3, %v22693_v0 }
 0x603   : > { %17971 = vmatprep.mubr.msk.f32.mxu1 %vm4297_vm3, %v8527_v47  ;;  %v15248_v47 = vld [vmem:[%s20345_s3 + $0xf0] sm:$0xff] }
 0x606   : > { %17972 = vmatmul.mubr.msk.f32.vlgmr.msra.gmra.mrb[0].mxu1 %vm4297_vm3, %v8528_v50  ;;  %v18607_v50 = vpack.c.bf16 %v15249_v29, %v15248_v47  ;;  %v22732_v29 = vld [vmem:[#allocation3 + $0x62] sm:$0xff]  ;;  %v22748_v47 = vld [vmem:[#allocation3 + $0x92] sm:$0xff] }
 0x607   : > { %17974 = vmatprep.mubr.msk.f32.mxu1 %vm4297_vm3, %v22703_v12  ;;  %18598 = vmatpush3.bf16.msra.mxu1 %v22594_v33  ;;  %v15282_v33 = vld [vmem:[%s20345_s3 + $0x100] sm:$0xff]  ;;  %v15283_v12 = vld [vmem:[%s20345_s3 + $0x108] sm:$0xff]  ;;  %25798 = vst [vmem:[#allocation60_spill] sm:$0xff] %v22732_v29  ;;  %25802 = vst [vmem:[#allocation64_spill] sm:$0xff] %v22748_v47 }
 0x608   : > { %18600 = vmatprep.subr.bf16.mxu1 %v18599_v21  ;;  %v18611_v41 = vpack.c.bf16 %v15283_v12, %v15282_v33  ;;  %v22744_v12 = vld [vmem:[#allocation3 + $0x82] sm:$0xff]  ;;  %v22756_v33 = vld [vmem:[#allocation3 + $0xaa] sm:$0xff] }
 0x609   : > { %25801 = vst [vmem:[#allocation63_spill] sm:$0xff] %v22744_v12  ;;  %25804 = vst [vmem:[#allocation66_spill] sm:$0xff] %v22756_v33 }
 0x60a   : > { %17975 = vmatmul.mubr.msk.f32.gmra.mrb[2].mxu1 %vm4297_vm3, %v22708_v31  ;;  %v22728_v31 = vld [vmem:[#allocation3 + $0x52] sm:$0xff] }
 0x60b   : > { %17977 = vmatprep.mubr.msk.f32.mxu1 %vm4297_vm3, %v22714_v38  ;;  %18602 = vmatpush3.bf16.msra.mxu1 %v18599_v21  ;;  %25797 = vst [vmem:[#allocation59_spill] sm:$0xff] %v22728_v31  ;;  %v22736_v21 = vld [vmem:[#allocation3 + $0x6a] sm:$0xff] }
 0x60c   : > { %18604 = vmatprep.subr.bf16.mxu1 %v18603_v28  ;;  %25799 = vst [vmem:[#allocation61_spill] sm:$0xff] %v22736_v21 }
 0x60e   : > { %17978 = vmatmul.mubr.msk.f32.gmra.mrb[4].mxu1 %vm4297_vm3, %v22718_v27 }
 0x60f   : > { %17980 = vmatprep.mubr.msk.f32.mxu1 %vm4297_vm3, %v22724_v2  ;;  %18606 = vmatpush3.bf16.msra.mxu1 %v18603_v28  ;;  %v22740_v28 = vld [vmem:[#allocation3 + $0x7a] sm:$0xff]  ;;  %v15289_v2 = vld [vmem:[%s20345_s3 + $0x138] sm:$0xff] }
 0x610   : > { %18608 = vmatprep.subr.bf16.mxu1 %v18607_v50  ;;  %25800 = vst [vmem:[#allocation62_spill] sm:$0xff] %v22740_v28 }
 0x612   : > { %17981 = vmatmul.mubr.msk.f32.gmra.mrb[6].mxu1 %vm4297_vm3, %v22728_v31  ;;  %v15288_v31 = vld [vmem:[%s20345_s3 + $0x130] sm:$0xff] }
 0x613   : > { %17983 = vmatprep.mubr.msk.f32.mxu1 %vm4297_vm3, %v22732_v29  ;;  %18610 = vmatpush3.bf16.msra.mxu1 %v18607_v50  ;;  %v22752_v50 = vld [vmem:[#allocation3 + $0x9a] sm:$0xff] }
 0x614   : > { %18612 = vmatprep.subr.bf16.mxu1 %v18611_v41  ;;  %25803 = vst [vmem:[#allocation65_spill] sm:$0xff] %v22752_v50  ;;  %v15287_v29 = vld [vmem:[%s20345_s3 + $0x128] sm:$0xff] }
 0x616   : > { %17984 = vmatmul.mubr.msk.f32.gmra.mrb[8].mxu1 %vm4297_vm3, %v22736_v21  ;;  %v15285_v21 = vld [vmem:[%s20345_s3 + $0x118] sm:$0xff] }
 0x617   : > { %17986 = vmatprep.mubr.msk.f32.mxu1 %vm4297_vm3, %v22740_v28  ;;  %v22760_v28 = vld [vmem:[#allocation3 + $0xb2] sm:$0xff] }
 0x618   : > { %25805 = vst [vmem:[#allocation67_spill] sm:$0xff] %v22760_v28 }
 0x61a   : > { %17987 = vmatmul.mubr.msk.f32.gmra.mrb[10].mxu1 %vm4297_vm3, %v22744_v12  ;;  %v22764_v12 = vld [vmem:[#allocation3 + $0xc2] sm:$0xff] }
 0x61b   : > { %17989 = vmatprep.mubr.msk.f32.mxu1 %vm4297_vm3, %v22748_v47  ;;  %25806 = vst [vmem:[#allocation68_spill] sm:$0xff] %v22764_v12  ;;  %v22768_v47 = vld [vmem:[#allocation3 + $0xca] sm:$0xff] }
 0x61c   : > { %25807 = vst [vmem:[#allocation69_spill] sm:$0xff] %v22768_v47 }
 0x61e   : > { %17990 = vmatmul.mubr.msk.f32.gmra.mrb[12].mxu1 %vm4297_vm3, %v22752_v50  ;;  %v22772_v50 = vld [vmem:[#allocation3 + $0xda] sm:$0xff] }
 0x61f   : > { %17992 = vmatprep.mubr.msk.f32.mxu1 %vm4297_vm3, %v22756_v33  ;;  %25808 = vst [vmem:[#allocation70_spill] sm:$0xff] %v22772_v50  ;;  %v22776_v33 = vld [vmem:[#allocation3 + $0xe2] sm:$0xff] }
 0x620   : > { %25809 = vst [vmem:[#allocation71_spill] sm:$0xff] %v22776_v33 }
 0x622   : > { %17993 = vmatmul.mubr.msk.f32.gmra.mrb[14].mxu1 %vm4297_vm3, %v22760_v28  ;;  %v22780_v28 = vld [vmem:[#allocation3 + $0xf2] sm:$0xff] }
 0x623   : > { %17995 = vmatprep.mubr.msk.f32.mxu1 %vm4297_vm3, %v22764_v12  ;;  %25810 = vst [vmem:[#allocation72_spill] sm:$0xff] %v22780_v28  ;;  %v22784_v12 = vld [vmem:[#allocation3 + $0xfa] sm:$0xff] }
 0x624   : > { %25811 = vst [vmem:[#allocation73_spill] sm:$0xff] %v22784_v12 }
 0x626   : > { %17996 = vmatmul.mubr.msk.f32.gmra.mrb[16].mxu1 %vm4297_vm3, %v22768_v47  ;;  %v22788_v47 = vld [vmem:[#allocation3 + $0x10a] sm:$0xff] }
 0x627   : > { %17998 = vmatprep.mubr.msk.f32.mxu1 %vm4297_vm3, %v22772_v50  ;;  %25812 = vst [vmem:[#allocation74_spill] sm:$0xff] %v22788_v47  ;;  %v22792_v50 = vld [vmem:[#allocation3 + $0x112] sm:$0xff] }
 0x628   : > { %25813 = vst [vmem:[#allocation75_spill] sm:$0xff] %v22792_v50 }
 0x62a   : > { %17999 = vmatmul.mubr.msk.f32.gmra.mrb[18].mxu1 %vm4297_vm3, %v22776_v33  ;;  %v22796_v33 = vld [vmem:[#allocation3 + $0x122] sm:$0xff] }
 0x62b   : > { %18001 = vmatprep.mubr.msk.f32.mxu1 %vm4297_vm3, %v22780_v28  ;;  %25814 = vst [vmem:[#allocation76_spill] sm:$0xff] %v22796_v33  ;;  %v22800_v28 = vld [vmem:[#allocation3 + $0x12a] sm:$0xff] }
 0x62c   : > { %25815 = vst [vmem:[#allocation77_spill] sm:$0xff] %v22800_v28 }
 0x62e   : > { %18002 = vmatmul.mubr.msk.f32.gmra.mrb[20].mxu1 %vm4297_vm3, %v22784_v12  ;;  %v22804_v12 = vld [vmem:[#allocation3 + $0x13a] sm:$0xff] }
 0x62f   : > { %18004 = vmatprep.mubr.msk.f32.mxu1 %vm4297_vm3, %v22788_v47  ;;  %25816 = vst [vmem:[#allocation78_spill] sm:$0xff] %v22804_v12  ;;  %v22812_v47 = vld [vmem:[#allocation3 + $0x152] sm:$0xff] }
 0x630   : > { %25818 = vst [vmem:[#allocation80_spill] sm:$0xff] %v22812_v47 }
 0x632   : > { %18005 = vmatmul.mubr.msk.f32.gmra.mrb[22].mxu1 %vm4297_vm3, %v22792_v50  ;;  %v22808_v50 = vld [vmem:[#allocation3 + $0x142] sm:$0xff] }
 0x633   : > { %18007 = vmatprep.mubr.msk.f32.mxu1 %vm4297_vm3, %v22796_v33  ;;  %25817 = vst [vmem:[#allocation79_spill] sm:$0xff] %v22808_v50  ;;  %v22816_v33 = vld [vmem:[#allocation3 + $0x15a] sm:$0xff] }
 0x634   : > { %25819 = vst [vmem:[#allocation81_spill] sm:$0xff] %v22816_v33 }
 0x636   : > { %18008 = vmatmul.mubr.msk.f32.gmra.mrb[24].mxu1 %vm4297_vm3, %v22800_v28  ;;  %v22820_v28 = vld [vmem:[#allocation3 + $0x16a] sm:$0xff] }
 0x637   : > { %18010 = vmatprep.mubr.msk.f32.mxu1 %vm4297_vm3, %v22804_v12  ;;  %25820 = vst [vmem:[#allocation82_spill] sm:$0xff] %v22820_v28  ;;  %v22824_v12 = vld [vmem:[#allocation3 + $0x172] sm:$0xff] }
 0x638   : > { %25821 = vst [vmem:[#allocation47_spill] sm:$0xff] %v22824_v12 }
 0x63a   : > { %18011 = vmatmul.mubr.msk.f32.gmra.mrb[26].mxu1 %vm4297_vm3, %v22808_v50  ;;  %v15284_v50 = vld [vmem:[%s20345_s3 + $0x110] sm:$0xff] }
 0x63b   : > { %18013 = vmatprep.mubr.msk.f32.mxu1 %vm4297_vm3, %v22812_v47  ;;  %v18615_v47 = vpack.c.bf16 %v15285_v21, %v15284_v50  ;;  %v15322_v21 = vld [vmem:[%s20345_s3 + $0x140] sm:$0xff]  ;;  %v15323_v50 = vld [vmem:[%s20345_s3 + $0x148] sm:$0xff] }
 0x63e   : > { %18014 = vmatmul.mubr.msk.f32.gmra.mrb[28].mxu1 %vm4297_vm3, %v22816_v33  ;;  %v15286_v33 = vld [vmem:[%s20345_s3 + $0x120] sm:$0xff] }
 0x63f   : > { %18016 = vmatprep.mubr.msk.f32.mxu1 %vm4297_vm3, %v22820_v28  ;;  %v18619_v28 = vpack.c.bf16 %v15287_v29, %v15286_v33  ;;  %v15325_v29 = vld [vmem:[%s20345_s3 + $0x158] sm:$0xff]  ;;  %v15327_v33 = vld [vmem:[%s20345_s3 + $0x168] sm:$0xff] }
 0x642   : > { %18017 = vmatmul.mubr.msk.f32.gmra.mrb[30].mxu1 %vm4297_vm3, %v22824_v12 }
 0x643   : > { %18035 = vmatprep.mubr.msk.f32.mxu1 %vm4297_vm3, %v22569_v61  ;;  %v18623_v61 = vpack.c.bf16 %v15289_v2, %v15288_v31  ;;  %v22896_v31 = vld [vmem:[#allocation3 + $0x180] sm:$0xff]  ;;  %v22900_v2 = vld [vmem:[#allocation3 + $0x188] sm:$0xff] }
 0x646   : > { %18036 = vmatmul.mubr.msk.f32.vlgmr.msra.gmra.mrb[0].mxu1 %vm4297_vm3, %v22574_v15  ;;  %v18627_v15 = vpack.c.bf16 %v15323_v50, %v15322_v21  ;;  %v15328_v21 = vld [vmem:[%s20345_s3 + $0x170] sm:$0xff]  ;;  %v15329_v50 = vld [vmem:[%s20345_s3 + $0x178] sm:$0xff] }
 0x647   : > { %18038 = vmatprep.mubr.msk.f32.mxu1 %vm4297_vm3, %v22580_v51  ;;  %18614 = vmatpush3.bf16.msra.mxu1 %v18611_v41  ;;  %v15324_v41 = vld [vmem:[%s20345_s3 + $0x150] sm:$0xff] }
 0x648   : > { %18616 = vmatprep.subr.bf16.mxu1 %v18615_v47 }
 0x64a   : > { %18039 = vmatmul.mubr.msk.f32.gmra.mrb[2].mxu1 %vm4297_vm3, %v22584_v26 }
 0x64b   : > { %18041 = vmatprep.mubr.msk.f32.mxu1 %vm4297_vm3, %v22590_v32  ;;  %18618 = vmatpush3.bf16.msra.mxu1 %v18615_v47  ;;  %v15326_v47 = vld [vmem:[%s20345_s3 + $0x160] sm:$0xff] }
 0x64c   : > { %18620 = vmatprep.subr.bf16.mxu1 %v18619_v28 }
 0x64e   : > { %18042 = vmatmul.mubr.msk.f32.gmra.mrb[4].mxu1 %vm4297_vm3, %v22596_v43 }
 0x64f   : > { %18044 = vmatprep.mubr.msk.f32.mxu1 %vm4297_vm3, %v22600_v46  ;;  %18622 = vmatpush3.bf16.msra.mxu1 %v18619_v28  ;;  %v18631_v28 = vpack.c.bf16 %v15325_v29, %v15324_v41  ;;  %v15362_v41 = vld [vmem:[%s20345_s3 + $0x180] sm:$0xff]  ;;  %v15363_v29 = vld [vmem:[%s20345_s3 + $0x188] sm:$0xff] }
 0x650   : > { %18624 = vmatprep.subr.bf16.mxu1 %v18623_v61 }
 0x652   : > { %18045 = vmatmul.mubr.msk.f32.gmra.mrb[6].mxu1 %vm4297_vm3, %v22605_v48 }
 0x653   : > { %18047 = vmatprep.mubr.msk.f32.mxu1 %vm4297_vm3, %v22609_v49  ;;  %18626 = vmatpush3.bf16.msra.mxu1 %v18623_v61  ;;  %v18635_v61 = vpack.c.bf16 %v15327_v33, %v15326_v47  ;;  %v15402_v47 = vld [vmem:[%s20345_s3 + $0x1c0] sm:$0xff]  ;;  %v15403_v33 = vld [vmem:[%s20345_s3 + $0x1c8] sm:$0xff] }
 0x654   : > { %18628 = vmatprep.subr.bf16.mxu1 %v18627_v15 }
 0x656   : > { %18048 = vmatmul.mubr.msk.f32.gmra.mrb[8].mxu1 %vm4297_vm3, %v22613_v54 }
 0x657   : > { %18050 = vmatprep.mubr.msk.f32.mxu1 %vm4297_vm3, %v22617_v23 }
 0x65a   : > { %18051 = vmatmul.mubr.msk.f32.gmra.mrb[10].mxu1 %vm4297_vm3, %v22621_v30 }
 0x65b   : > { %18053 = vmatprep.mubr.msk.f32.mxu1 %vm4297_vm3, %v22625_v34 }
 0x65e   : > { %18054 = vmatmul.mubr.msk.f32.gmra.mrb[12].mxu1 %vm4297_vm3, %v22629_v7 }
 0x65f   : > { %18056 = vmatprep.mubr.msk.f32.mxu1 %vm4297_vm3, %v22633_v17 }
 0x662   : > { %18057 = vmatmul.mubr.msk.f32.gmra.mrb[14].mxu1 %vm4297_vm3, %v22637_v55 }
 0x663   : > { %18059 = vmatprep.mubr.msk.f32.mxu1 %vm4297_vm3, %v22641_v53 }
 0x666   : > { %18060 = vmatmul.mubr.msk.f32.gmra.mrb[16].mxu1 %vm4297_vm3, %v22645_v24 }
 0x667   : > { %18062 = vmatprep.mubr.msk.f32.mxu1 %vm4297_vm3, %v22649_v22 }
 0x66a   : > { %18063 = vmatmul.mubr.msk.f32.gmra.mrb[18].mxu1 %vm4297_vm3, %v22653_v25 }
 0x66b   : > { %18065 = vmatprep.mubr.msk.f32.mxu1 %vm4297_vm3, %v22657_v56 }
 0x66e   : > { %18066 = vmatmul.mubr.msk.f32.gmra.mrb[20].mxu1 %vm4297_vm3, %v22661_v5 }
 0x66f   : > { %18068 = vmatprep.mubr.msk.f32.mxu1 %vm4297_vm3, %v22665_v8 }
 0x672   : > { %18069 = vmatmul.mubr.msk.f32.gmra.mrb[22].mxu1 %vm4297_vm3, %v22669_v62 }
 0x673   : > { %18071 = vmatprep.mubr.msk.f32.mxu1 %vm4297_vm3, %v22673_v16 }
 0x676   : > { %18072 = vmatmul.mubr.msk.f32.gmra.mrb[24].mxu1 %vm4297_vm3, %v22677_v35 }
 0x677   : > { %18074 = vmatprep.mubr.msk.f32.mxu1 %vm4297_vm3, %v22681_v20 }
 0x67a   : > { %18075 = vmatmul.mubr.msk.f32.gmra.mrb[26].mxu1 %vm4297_vm3, %v22685_v18 }
 0x67b   : > { %18077 = vmatprep.mubr.msk.f32.mxu1 %vm4297_vm3, %v22689_v45 }
 0x67e   : > { %18078 = vmatmul.mubr.msk.f32.gmra.mrb[28].mxu1 %vm4297_vm3, %v22693_v0 }
 0x67f   : > { %18080 = vmatprep.mubr.msk.f32.mxu1 %vm4297_vm3, %v22896_v31 }
 0x682   : > { %18081 = vmatmul.mubr.msk.f32.gmra.mrb[30].mxu1 %vm4297_vm3, %v22900_v2 }
 0x683   : > { %18099 = vmatprep.mubr.msk.f32.mxu1 %vm4297_vm3, %v22391_v57  ;;  %v18639_v57 = vpack.c.bf16 %v15329_v50, %v15328_v21  ;;  %v25834_v21 = vld [vmem:[#allocation60_spill] sm:$0xff]  ;;  %v18659_v50 = vpack.c.bf16 %v15403_v33, %v15402_v47  ;;  %v23052_v47 = vld [vmem:[#allocation3 + $0x18a] sm:$0xff]  ;;  %v15404_v33 = vld [vmem:[%s20345_s3 + $0x1d0] sm:$0xff] }
 0x686   : > { %18100 = vmatmul.mubr.msk.f32.vlgmr.msra.gmra.mrb[0].mxu1 %vm4297_vm3, %v22397_v19  ;;  %v18643_v19 = vpack.c.bf16 %v15363_v29, %v15362_v41  ;;  %v25836_v41 = vld [vmem:[#allocation62_spill] sm:$0xff]  ;;  %v25837_v29 = vld [vmem:[#allocation63_spill] sm:$0xff] }
 0x687   : > { %18102 = vmatprep.mubr.msk.f32.mxu1 %vm4297_vm3, %v22403_v13  ;;  %18630 = vmatpush3.bf16.msra.mxu1 %v18627_v15  ;;  %v25822_v13 = vld [vmem:[#allocation48_spill] sm:$0xff]  ;;  %v25832_v15 = vld [vmem:[#allocation58_spill] sm:$0xff] }
 0x688   : > { %18632 = vmatprep.subr.bf16.mxu1 %v18631_v28 }
 0x68a   : > { %18103 = vmatmul.mubr.msk.f32.gmra.mrb[2].mxu1 %vm4297_vm3, %v22409_v6  ;;  %v25823_v6 = vld [vmem:[#allocation49_spill] sm:$0xff] }
 0x68b   : > { %18105 = vmatprep.mubr.msk.f32.mxu1 %vm4297_vm3, %v22415_v63  ;;  %18634 = vmatpush3.bf16.msra.mxu1 %v18631_v28  ;;  %v25824_v63 = vld [vmem:[#allocation50_spill] sm:$0xff] }
 0x68c   : > { %18636 = vmatprep.subr.bf16.mxu1 %v18635_v61 }
 0x68e   : > { %18106 = vmatmul.mubr.msk.f32.gmra.mrb[4].mxu1 %vm4297_vm3, %v22421_v3  ;;  %v25825_v3 = vld [vmem:[#allocation51_spill] sm:$0xff] }
 0x68f   : > { %18108 = vmatprep.mubr.msk.f32.mxu1 %vm4297_vm3, %v22427_v39  ;;  %18638 = vmatpush3.bf16.msra.mxu1 %v18635_v61  ;;  %v25826_v39 = vld [vmem:[#allocation52_spill] sm:$0xff]  ;;  %v25833_v61 = vld [vmem:[#allocation59_spill] sm:$0xff] }
 0x690   : > { %18640 = vmatprep.subr.bf16.mxu1 %v18639_v57 }
 0x692   : > { %18109 = vmatmul.mubr.msk.f32.gmra.mrb[6].mxu1 %vm4297_vm3, %v22433_v42  ;;  %v25827_v42 = vld [vmem:[#allocation53_spill] sm:$0xff] }
 0x693   : > { %18111 = vmatprep.mubr.msk.f32.mxu1 %vm4297_vm3, %v22439_v52  ;;  %18642 = vmatpush3.bf16.msra.mxu1 %v18639_v57  ;;  %v25828_v52 = vld [vmem:[#allocation54_spill] sm:$0xff]  ;;  %v25835_v57 = vld [vmem:[#allocation61_spill] sm:$0xff] }
 0x694   : > { %18644 = vmatprep.subr.bf16.mxu1 %v18643_v19 }
 0x696   : > { %18112 = vmatmul.mubr.msk.f32.gmra.mrb[8].mxu1 %vm4297_vm3, %v22445_v37  ;;  %v25829_v37 = vld [vmem:[#allocation55_spill] sm:$0xff] }
 0x697   : > { %18114 = vmatprep.mubr.msk.f32.mxu1 %vm4297_vm3, %v22451_v36  ;;  %v22972_v36 = vld [vmem:[#allocation3 + $0x181] sm:$0xff] }
 0x69a   : > { %18115 = vmatmul.mubr.msk.f32.gmra.mrb[10].mxu1 %vm4297_vm3, %v22457_v11  ;;  %v22976_v11 = vld [vmem:[#allocation3 + $0x189] sm:$0xff] }
 0x69b   : > { %18117 = vmatprep.mubr.msk.f32.mxu1 %vm4297_vm3, %v22463_v9  ;;  %v15364_v9 = vld [vmem:[%s20345_s3 + $0x190] sm:$0xff] }
 0x69e   : > { %18118 = vmatmul.mubr.msk.f32.gmra.mrb[12].mxu1 %vm4297_vm3, %v22469_v14  ;;  %v15365_v14 = vld [vmem:[%s20345_s3 + $0x198] sm:$0xff] }
 0x69f   : > { %18120 = vmatprep.mubr.msk.f32.mxu1 %vm4297_vm3, %v22475_v58  ;;  %v25830_v58 = vld [vmem:[#allocation56_spill] sm:$0xff] }
 0x6a2   : > { %18121 = vmatmul.mubr.msk.f32.gmra.mrb[14].mxu1 %vm4297_vm3, %v22481_v4  ;;  %v18647_v4 = vpack.c.bf16 %v15365_v14, %v15364_v9  ;;  %v25847_v9 = vld [vmem:[#allocation73_spill] sm:$0xff]  ;;  %v25848_v14 = vld [vmem:[#allocation74_spill] sm:$0xff] }
 0x6a3   : > { %18123 = vmatprep.mubr.msk.f32.mxu1 %vm4297_vm3, %v22487_v10  ;;  %v15366_v10 = vld [vmem:[%s20345_s3 + $0x1a0] sm:$0xff] }
 0x6a6   : > { %18124 = vmatmul.mubr.msk.f32.gmra.mrb[16].mxu1 %vm4297_vm3, %v22493_v1  ;;  %v15367_v1 = vld [vmem:[%s20345_s3 + $0x1a8] sm:$0xff] }
 0x6a7   : > { %18126 = vmatprep.mubr.msk.f32.mxu1 %vm4297_vm3, %v22499_v60  ;;  %v25831_v60 = vld [vmem:[#allocation57_spill] sm:$0xff] }
 0x6aa   : > { %18127 = vmatmul.mubr.msk.f32.gmra.mrb[18].mxu1 %vm4297_vm3, %v22505_v59  ;;  %v18651_v59 = vpack.c.bf16 %v15367_v1, %v15366_v10  ;;  %v25851_v10 = vld [vmem:[#allocation77_spill] sm:$0xff]  ;;  %v25852_v1 = vld [vmem:[#allocation78_spill] sm:$0xff] }
 0x6ab   : > { %18129 = vmatprep.mubr.msk.f32.mxu1 %vm4297_vm3, %v22511_v40  ;;  %v15368_v40 = vld [vmem:[%s20345_s3 + $0x1b0] sm:$0xff] }
 0x6ae   : > { %18130 = vmatmul.mubr.msk.f32.gmra.mrb[20].mxu1 %vm4297_vm3, %v22517_v44  ;;  %v15369_v44 = vld [vmem:[%s20345_s3 + $0x1b8] sm:$0xff] }
 0x6af   : > { %18132 = vmatprep.mubr.msk.f32.mxu1 %vm4297_vm3, %v25822_v13  ;;  %v18655_v28 = vpack.c.bf16 %v15369_v44, %v15368_v40  ;;  %v25839_v13 = vld [vmem:[#allocation65_spill] sm:$0xff]  ;;  %v25856_v44 = vld [vmem:[#allocation82_spill] sm:$0xff] }
 0x6b0   : > { %v25855_v40 = vld [vmem:[#allocation81_spill] sm:$0xff] }
 0x6b2   : > { %18133 = vmatmul.mubr.msk.f32.gmra.mrb[22].mxu1 %vm4297_vm3, %v25823_v6  ;;  %v25840_v6 = vld [vmem:[#allocation66_spill] sm:$0xff] }
 0x6b3   : > { %18135 = vmatprep.mubr.msk.f32.mxu1 %vm4297_vm3, %v25824_v63  ;;  %v25841_v63 = vld [vmem:[#allocation67_spill] sm:$0xff] }
 0x6b6   : > { %18136 = vmatmul.mubr.msk.f32.gmra.mrb[24].mxu1 %vm4297_vm3, %v25825_v3  ;;  %v25842_v3 = vld [vmem:[#allocation68_spill] sm:$0xff] }
 0x6b7   : > { %18138 = vmatprep.mubr.msk.f32.mxu1 %vm4297_vm3, %v25826_v39  ;;  %v25843_v39 = vld [vmem:[#allocation69_spill] sm:$0xff] }
 0x6ba   : > { %18139 = vmatmul.mubr.msk.f32.gmra.mrb[26].mxu1 %vm4297_vm3, %v25827_v42  ;;  %v25844_v42 = vld [vmem:[#allocation70_spill] sm:$0xff] }
 0x6bb   : > { %18141 = vmatprep.mubr.msk.f32.mxu1 %vm4297_vm3, %v25828_v52  ;;  %v25845_v52 = vld [vmem:[#allocation71_spill] sm:$0xff] }
 0x6be   : > { %18142 = vmatmul.mubr.msk.f32.gmra.mrb[28].mxu1 %vm4297_vm3, %v25829_v37  ;;  %v25846_v37 = vld [vmem:[#allocation72_spill] sm:$0xff] }
 0x6bf   : > { %18144 = vmatprep.mubr.msk.f32.mxu1 %vm4297_vm3, %v22972_v36 }
 0x6c2   : > { %18145 = vmatmul.mubr.msk.f32.gmra.mrb[30].mxu1 %vm4297_vm3, %v22976_v11 }
 0x6c3   : > { %18163 = vmatprep.mubr.msk.f32.mxu1 %vm4297_vm3, %v25830_v58  ;;  %v25849_v58 = vld [vmem:[#allocation75_spill] sm:$0xff] }
 0x6c6   : > { %18164 = vmatmul.mubr.msk.f32.vlgmr.msra.gmra.mrb[0].mxu1 %vm4297_vm3, %v25831_v60  ;;  %v25853_v60 = vld [vmem:[#allocation79_spill] sm:$0xff] }
 0x6c7   : > { %18166 = vmatprep.mubr.msk.f32.mxu1 %vm4297_vm3, %v22714_v38  ;;  %18646 = vmatpush3.bf16.msra.mxu1 %v18643_v19  ;;  %v25838_v19 = vld [vmem:[#allocation64_spill] sm:$0xff] }
 0x6c8   : > { %18648 = vmatprep.subr.bf16.mxu1 %v18647_v4 }
 0x6ca   : > { %18167 = vmatmul.mubr.msk.f32.gmra.mrb[2].mxu1 %vm4297_vm3, %v22718_v27 }
 0x6cb   : > { %18169 = vmatprep.mubr.msk.f32.mxu1 %vm4297_vm3, %v25832_v15  ;;  %18650 = vmatpush3.bf16.msra.mxu1 %v18647_v4  ;;  %v25850_v4 = vld [vmem:[#allocation76_spill] sm:$0xff] }
 0x6cc   : > { %18652 = vmatprep.subr.bf16.mxu1 %v18651_v59 }
 0x6ce   : > { %18170 = vmatmul.mubr.msk.f32.gmra.mrb[4].mxu1 %vm4297_vm3, %v25833_v61 }
 0x6cf   : > { %18172 = vmatprep.mubr.msk.f32.mxu1 %vm4297_vm3, %v25834_v21  ;;  %18654 = vmatpush3.bf16.msra.mxu1 %v18651_v59  ;;  %v25854_v59 = vld [vmem:[#allocation80_spill] sm:$0xff] }
 0x6d0   : > { %18656 = vmatprep.subr.bf16.mxu1 %v18655_v28 }
 0x6d2   : > { %18173 = vmatmul.mubr.msk.f32.gmra.mrb[6].mxu1 %vm4297_vm3, %v25835_v57 }
 0x6d3   : > { %18175 = vmatprep.mubr.msk.f32.mxu1 %vm4297_vm3, %v25836_v41  ;;  %18658 = vmatpush3.bf16.msra.mxu1 %v18655_v28  ;;  %v23048_v28 = vld [vmem:[#allocation3 + $0x182] sm:$0xff] }
 0x6d4   : > { %18660 = vmatprep.subr.bf16.mxu1 %v18659_v50  ;;  %25857 = vst [vmem:[#allocation48_spill] sm:$0xff] %v23048_v28 }
 0x6d6   : > { %18176 = vmatmul.mubr.msk.f32.gmra.mrb[8].mxu1 %vm4297_vm3, %v25837_v29 }
 0x6d7   : > { %18178 = vmatprep.mubr.msk.f32.mxu1 %vm4297_vm3, %v25838_v19 }
 0x6da   : > { %18179 = vmatmul.mubr.msk.f32.gmra.mrb[10].mxu1 %vm4297_vm3, %v25839_v13 }
 0x6db   : > { %18181 = vmatprep.mubr.msk.f32.mxu1 %vm4297_vm3, %v25840_v6 }
 0x6de   : > { %18182 = vmatmul.mubr.msk.f32.gmra.mrb[12].mxu1 %vm4297_vm3, %v25841_v63 }
 0x6df   : > { %18184 = vmatprep.mubr.msk.f32.mxu1 %vm4297_vm3, %v25842_v3 }
 0x6e2   : > { %18185 = vmatmul.mubr.msk.f32.gmra.mrb[14].mxu1 %vm4297_vm3, %v25843_v39 }
 0x6e3   : > { %18187 = vmatprep.mubr.msk.f32.mxu1 %vm4297_vm3, %v25844_v42 }
 0x6e6   : > { %18188 = vmatmul.mubr.msk.f32.gmra.mrb[16].mxu1 %vm4297_vm3, %v25845_v52 }
 0x6e7   : > { %18190 = vmatprep.mubr.msk.f32.mxu1 %vm4297_vm3, %v25846_v37 }
 0x6ea   : > { %18191 = vmatmul.mubr.msk.f32.gmra.mrb[18].mxu1 %vm4297_vm3, %v25847_v9 }
 0x6eb   : > { %18193 = vmatprep.mubr.msk.f32.mxu1 %vm4297_vm3, %v25848_v14 }
 0x6ee   : > { %18194 = vmatmul.mubr.msk.f32.gmra.mrb[20].mxu1 %vm4297_vm3, %v25849_v58 }
 0x6ef   : > { %18196 = vmatprep.mubr.msk.f32.mxu1 %vm4297_vm3, %v25850_v4 }
 0x6f2   : > { %18197 = vmatmul.mubr.msk.f32.gmra.mrb[22].mxu1 %vm4297_vm3, %v25851_v10 }
 0x6f3   : > { %18199 = vmatprep.mubr.msk.f32.mxu1 %vm4297_vm3, %v25852_v1  ;;  %v15409_v1 = vld [vmem:[%s20345_s3 + $0x1f8] sm:$0xff] }
 0x6f6   : > { %18200 = vmatmul.mubr.msk.f32.gmra.mrb[24].mxu1 %vm4297_vm3, %v25853_v60  ;;  %v15408_v60 = vld [vmem:[%s20345_s3 + $0x1f0] sm:$0xff] }
 0x6f7   : > { %18202 = vmatprep.mubr.msk.f32.mxu1 %vm4297_vm3, %v25854_v59  ;;  %v15405_v59 = vld [vmem:[%s20345_s3 + $0x1d8] sm:$0xff] }
 0x6fa   : > { %18203 = vmatmul.mubr.msk.f32.gmra.mrb[26].mxu1 %vm4297_vm3, %v25855_v40  ;;  %v15407_v40 = vld [vmem:[%s20345_s3 + $0x1e8] sm:$0xff] }
 0x6fb   : > { %18205 = vmatprep.mubr.msk.f32.mxu1 %vm4297_vm3, %v25856_v44  ;;  %v18663_v44 = vpack.c.bf16 %v15405_v59, %v15404_v33  ;;  %v15442_v59 = vld [vmem:[%s20345_s3 + $0x200] sm:$0xff]  ;;  %v15443_v33 = vld [vmem:[%s20345_s3 + $0x208] sm:$0xff] }
 0x6fe   : > { %18206 = vmatmul.mubr.msk.f32.gmra.mrb[28].mxu1 %vm4297_vm3, %v22824_v12  ;;  %v15406_v12 = vld [vmem:[%s20345_s3 + $0x1e0] sm:$0xff] }
 0x6ff   : > { %18208 = vmatprep.mubr.msk.f32.mxu1 %vm4297_vm3, %v23048_v28  ;;  %v18667_v28 = vpack.c.bf16 %v15407_v40, %v15406_v12  ;;  %v10513_v12 = vld [vmem:[#allocation3 + $0xe1] sm:$0xff]  ;;  %v10519_v40 = vld [vmem:[#allocation3 + $0x129] sm:$0xff] }
 0x702   : > { %18209 = vmatmul.mubr.msk.f32.gmra.mrb[30].mxu1 %vm4297_vm3, %v23052_v47 }
 0x703   : > { %18227 = vmatprep.mubr.msk.f32.mxu1 %vm4297_vm3, %v22580_v51  ;;  %v18671_v51 = vpack.c.bf16 %v15409_v1, %v15408_v60  ;;  %v10517_v1 = vld [vmem:[#allocation3 + $0x111] sm:$0xff]  ;;  %v10518_v60 = vld [vmem:[#allocation3 + $0x121] sm:$0xff] }
 0x706   : > { %18228 = vmatmul.mubr.msk.f32.vlgmr.msra.gmra.mrb[0].mxu1 %vm4297_vm3, %v22584_v26  ;;  %v18675_v26 = vpack.c.bf16 %v15443_v33, %v15442_v59  ;;  %v10523_v59 = vld [vmem:[#allocation3 + $0x159] sm:$0xff]  ;;  %v10524_v33 = vld [vmem:[#allocation3 + $0x169] sm:$0xff] }
 0x707   : > { %18230 = vmatprep.mubr.msk.f32.mxu1 %vm4297_vm3, %v22590_v32  ;;  %18662 = vmatpush3.bf16.msra.mxu1 %v18659_v50  ;;  %v10134_v32 = vld [vmem:[#allocation3 + $0x198] sm:$0xff]  ;;  %v10516_v50 = vld [vmem:[#allocation3 + $0x109] sm:$0xff] }
 0x708   : > { %18664 = vmatprep.subr.bf16.mxu1 %v18663_v44 }
 0x70a   : > { %18231 = vmatmul.mubr.msk.f32.gmra.mrb[2].mxu1 %vm4297_vm3, %v22596_v43  ;;  %v10135_v43 = vld [vmem:[#allocation3 + $0x1a0] sm:$0xff] }
 0x70b   : > { %18233 = vmatprep.mubr.msk.f32.mxu1 %vm4297_vm3, %v22600_v46  ;;  %18666 = vmatpush3.bf16.msra.mxu1 %v18663_v44  ;;  %v15444_v46 = vld [vmem:[%s20345_s3 + $0x210] sm:$0xff]  ;;  %v10520_v44 = vld [vmem:[#allocation3 + $0x139] sm:$0xff] }
 0x70c   : > { %18668 = vmatprep.subr.bf16.mxu1 %v18667_v28 }
 0x70e   : > { %18234 = vmatmul.mubr.msk.f32.gmra.mrb[4].mxu1 %vm4297_vm3, %v22605_v48  ;;  %v15445_v48 = vld [vmem:[%s20345_s3 + $0x218] sm:$0xff] }
 0x70f   : > { %18236 = vmatprep.mubr.msk.f32.mxu1 %vm4297_vm3, %v22609_v49  ;;  %18670 = vmatpush3.bf16.msra.mxu1 %v18667_v28  ;;  %v10498_v49 = vld [vmem:[#allocation3 + $0x31] sm:$0xff]  ;;  %v10521_v28 = vld [vmem:[#allocation3 + $0x141] sm:$0xff] }
 0x710   : > { %18672 = vmatprep.subr.bf16.mxu1 %v18671_v51 }
 0x712   : > { %18237 = vmatmul.mubr.msk.f32.gmra.mrb[6].mxu1 %vm4297_vm3, %v22613_v54  ;;  %v18679_v54 = vpack.c.bf16 %v15445_v48, %v15444_v46 }
 0x713   : > { %18239 = vmatprep.mubr.msk.f32.mxu1 %vm4297_vm3, %v22617_v23  ;;  %18674 = vmatpush3.bf16.msra.mxu1 %v18671_v51  ;;  %v10499_v23 = vld [vmem:[#allocation3 + $0x39] sm:$0xff]  ;;  %v10522_v51 = vld [vmem:[#allocation3 + $0x151] sm:$0xff] }
 0x714   : > { %18676 = vmatprep.subr.bf16.mxu1 %v18675_v26 }
 0x716   : > { %18240 = vmatmul.mubr.msk.f32.gmra.mrb[8].mxu1 %vm4297_vm3, %v22621_v30  ;;  %v15446_v30 = vld [vmem:[%s20345_s3 + $0x220] sm:$0xff] }
 0x717   : > { %18242 = vmatprep.mubr.msk.f32.mxu1 %vm4297_vm3, %v22625_v34  ;;  %v15447_v34 = vld [vmem:[%s20345_s3 + $0x228] sm:$0xff] }
 0x71a   : > { %18243 = vmatmul.mubr.msk.f32.gmra.mrb[10].mxu1 %vm4297_vm3, %v22629_v7  ;;  %v10500_v7 = vld [vmem:[#allocation3 + $0x49] sm:$0xff] }
 0x71b   : > { %18245 = vmatprep.mubr.msk.f32.mxu1 %vm4297_vm3, %v22633_v17  ;;  %v18683_v17 = vpack.c.bf16 %v15447_v34, %v15446_v30  ;;  %v11329_v30 = vld [vmem:[#allocation2 + $0x49] sm:$0xff] }
 0x71e   : > { %18246 = vmatmul.mubr.msk.f32.gmra.mrb[12].mxu1 %vm4297_vm3, %v22637_v55  ;;  %v10501_v55 = vld [vmem:[#allocation3 + $0x51] sm:$0xff] }
 0x71f   : > { %18248 = vmatprep.mubr.msk.f32.mxu1 %vm4297_vm3, %v22641_v53  ;;  %v15448_v53 = vld [vmem:[%s20345_s3 + $0x230] sm:$0xff] }
 0x722   : > { %18249 = vmatmul.mubr.msk.f32.gmra.mrb[14].mxu1 %vm4297_vm3, %v22645_v24  ;;  %v15449_v24 = vld [vmem:[%s20345_s3 + $0x238] sm:$0xff] }
 0x723   : > { %18251 = vmatprep.mubr.msk.f32.mxu1 %vm4297_vm3, %v22649_v22  ;;  %v10502_v22 = vld [vmem:[#allocation3 + $0x61] sm:$0xff] }
 0x726   : > { %18252 = vmatmul.mubr.msk.f32.gmra.mrb[16].mxu1 %vm4297_vm3, %v22653_v25  ;;  %v18687_v25 = vpack.c.bf16 %v15449_v24, %v15448_v53  ;;  %v11332_v53 = vld [vmem:[#allocation2 + $0x69] sm:$0xff] }
 0x727   : > { %18254 = vmatprep.mubr.msk.f32.mxu1 %vm4297_vm3, %v22657_v56  ;;  %v10503_v56 = vld [vmem:[#allocation3 + $0x69] sm:$0xff] }
 0x72a   : > { %18255 = vmatmul.mubr.msk.f32.gmra.mrb[18].mxu1 %vm4297_vm3, %v22661_v5  ;;  %v10504_v5 = vld [vmem:[#allocation3 + $0x79] sm:$0xff] }
 0x72b   : > { %18257 = vmatprep.mubr.msk.f32.mxu1 %vm4297_vm3, %v22665_v8  ;;  %v10505_v8 = vld [vmem:[#allocation3 + $0x81] sm:$0xff] }
 0x72e   : > { %18258 = vmatmul.mubr.msk.f32.gmra.mrb[20].mxu1 %vm4297_vm3, %v22669_v62  ;;  %v10506_v62 = vld [vmem:[#allocation3 + $0x91] sm:$0xff] }
 0x72f   : > { %18260 = vmatprep.mubr.msk.f32.mxu1 %vm4297_vm3, %v22673_v16  ;;  %v10507_v16 = vld [vmem:[#allocation3 + $0x99] sm:$0xff] }
 0x732   : > { %18261 = vmatmul.mubr.msk.f32.gmra.mrb[22].mxu1 %vm4297_vm3, %v22677_v35  ;;  %v10508_v35 = vld [vmem:[#allocation3 + $0xa9] sm:$0xff] }
 0x733   : > { %18263 = vmatprep.mubr.msk.f32.mxu1 %vm4297_vm3, %v22681_v20  ;;  %v10509_v20 = vld [vmem:[#allocation3 + $0xb1] sm:$0xff] }
 0x736   : > { %18264 = vmatmul.mubr.msk.f32.gmra.mrb[24].mxu1 %vm4297_vm3, %v22685_v18  ;;  %v10510_v18 = vld [vmem:[#allocation3 + $0xc1] sm:$0xff] }
 0x737   : > { %18266 = vmatprep.mubr.msk.f32.mxu1 %vm4297_vm3, %v22689_v45  ;;  %v10511_v45 = vld [vmem:[#allocation3 + $0xc9] sm:$0xff] }
 0x73a   : > { %18267 = vmatmul.mubr.msk.f32.gmra.mrb[26].mxu1 %vm4297_vm3, %v22693_v0  ;;  %v10512_v0 = vld [vmem:[#allocation3 + $0xd9] sm:$0xff] }
 0x73b   : > { %18269 = vmatprep.mubr.msk.f32.mxu1 %vm4297_vm3, %v22896_v31  ;;  %v10514_v31 = vld [vmem:[#allocation3 + $0xf1] sm:$0xff] }
 0x73e   : > { %18270 = vmatmul.mubr.msk.f32.gmra.mrb[28].mxu1 %vm4297_vm3, %v22900_v2  ;;  %v10515_v2 = vld [vmem:[#allocation3 + $0xf9] sm:$0xff] }
 0x73f   : > { %18272 = vmatprep.mubr.msk.f32.mxu1 %vm4297_vm3, %v10134_v32  ;;  %v10528_v32 = vld [vmem:[#allocation3 + $0x199] sm:$0xff] }
 0x742   : > { %18273 = vmatmul.mubr.msk.f32.gmra.mrb[30].mxu1 %vm4297_vm3, %v10135_v43  ;;  %v10529_v43 = vld [vmem:[#allocation3 + $0x1a1] sm:$0xff] }
 0x743   : > { %18291 = vmatprep.mubr.msk.f32.mxu1 %vm4297_vm3, %v10498_v49  ;;  %v11330_v49 = vld [vmem:[#allocation2 + $0x51] sm:$0xff] }
 0x746   : > { %18292 = vmatmul.mubr.msk.f32.vlgmr.msra.gmra.mrb[0].mxu1 %vm4297_vm3, %v10499_v23 }
 0x747   : > { %18294 = vmatprep.mubr.msk.f32.mxu1 %vm4297_vm3, %v10500_v7  ;;  %18678 = vmatpush3.bf16.msra.mxu1 %v18675_v26  ;;  %v10525_v26 = vld [vmem:[#allocation3 + $0x171] sm:$0xff] }
 0x748   : > { %18680 = vmatprep.subr.bf16.mxu1 %v18679_v54 }
 0x74a   : > { %18295 = vmatmul.mubr.msk.f32.gmra.mrb[2].mxu1 %vm4297_vm3, %v10501_v55 }
 0x74b   : > { %18297 = vmatprep.mubr.msk.f32.mxu1 %vm4297_vm3, %v10502_v22  ;;  %18682 = vmatpush3.bf16.msra.mxu1 %v18679_v54 }
 0x74c   : > { %18684 = vmatprep.subr.bf16.mxu1 %v18683_v17 }
 0x74e   : > { %18298 = vmatmul.mubr.msk.f32.gmra.mrb[4].mxu1 %vm4297_vm3, %v10503_v56 }
 0x74f   : > { %18300 = vmatprep.mubr.msk.f32.mxu1 %vm4297_vm3, %v10504_v5  ;;  %18686 = vmatpush3.bf16.msra.mxu1 %v18683_v17 }
 0x750   : > { %18688 = vmatprep.subr.bf16.mxu1 %v18687_v25 }
 0x752   : > { %18301 = vmatmul.mubr.msk.f32.gmra.mrb[6].mxu1 %vm4297_vm3, %v10505_v8 }
 0x753   : > { %18303 = vmatprep.mubr.msk.f32.mxu1 %vm4297_vm3, %v10506_v62  ;;  %18690 = vmatpush3.bf16.msra.mxu1 %v18687_v25  ;;  %v11331_v25 = vld [vmem:[#allocation2 + $0x61] sm:$0xff] }
 0x756   : > { %18304 = vmatmul.mubr.msk.f32.gmra.mrb[8].mxu1 %vm4297_vm3, %v10507_v16  ;;  %v11334_v16 = vld [vmem:[#allocation2 + $0x81] sm:$0xff] }
 0x757   : > { %18306 = vmatprep.mubr.msk.f32.mxu1 %vm4297_vm3, %v10508_v35 }
 0x75a   : > { %18307 = vmatmul.mubr.msk.f32.gmra.mrb[10].mxu1 %vm4297_vm3, %v10509_v20 }
 0x75b   : > { %18309 = vmatprep.mubr.msk.f32.mxu1 %vm4297_vm3, %v10510_v18  ;;  %v11333_v18 = vld [vmem:[#allocation2 + $0x79] sm:$0xff] }
 0x75e   : > { %18310 = vmatmul.mubr.msk.f32.gmra.mrb[12].mxu1 %vm4297_vm3, %v10511_v45 }
 0x75f   : > { %18312 = vmatprep.mubr.msk.f32.mxu1 %vm4297_vm3, %v10512_v0 }
 0x762   : > { %18313 = vmatmul.mubr.msk.f32.gmra.mrb[14].mxu1 %vm4297_vm3, %v10513_v12 }
 0x763   : > { %18315 = vmatprep.mubr.msk.f32.mxu1 %vm4297_vm3, %v10514_v31 }
 0x766   : > { %18316 = vmatmul.mubr.msk.f32.gmra.mrb[16].mxu1 %vm4297_vm3, %v10515_v2  ;;  %v11336_v2 = vld [vmem:[#allocation2 + $0x99] sm:$0xff] }
 0x767   : > { %18318 = vmatprep.mubr.msk.f32.mxu1 %vm4297_vm3, %v10516_v50 }
 0x76a   : > { %18319 = vmatmul.mubr.msk.f32.gmra.mrb[18].mxu1 %vm4297_vm3, %v10517_v1 }
 0x76b   : > { %18321 = vmatprep.mubr.msk.f32.mxu1 %vm4297_vm3, %v10518_v60  ;;  %v11335_v60 = vld [vmem:[#allocation2 + $0x91] sm:$0xff] }
 0x76e   : > { %18322 = vmatmul.mubr.msk.f32.gmra.mrb[20].mxu1 %vm4297_vm3, %v10519_v40 }
 0x76f   : > { %18324 = vmatprep.mubr.msk.f32.mxu1 %vm4297_vm3, %v10520_v44 }
 0x772   : > { %18325 = vmatmul.mubr.msk.f32.gmra.mrb[22].mxu1 %vm4297_vm3, %v10521_v28 }
 0x773   : > { %18327 = vmatprep.mubr.msk.f32.mxu1 %vm4297_vm3, %v10522_v51 }
 0x776   : > { %18328 = vmatmul.mubr.msk.f32.gmra.mrb[24].mxu1 %vm4297_vm3, %v10523_v59  ;;  %v11338_v59 = vld [vmem:[#allocation2 + $0xb1] sm:$0xff] }
 0x777   : > { %18330 = vmatprep.mubr.msk.f32.mxu1 %vm4297_vm3, %v10524_v33 }
 0x77a   : > { %18331 = vmatmul.mubr.msk.f32.gmra.mrb[26].mxu1 %vm4297_vm3, %v10525_v26 }
 0x77b   : > { %18333 = vmatprep.mubr.msk.f32.mxu1 %vm4297_vm3, %v22972_v36  ;;  %v25860_v36 = vld [vmem:[#allocation80_spill] sm:$0xff] }
 0x77e   : > { %18334 = vmatmul.mubr.msk.f32.gmra.mrb[28].mxu1 %vm4297_vm3, %v22976_v11  ;;  %v25861_v11 = vld [vmem:[#allocation81_spill] sm:$0xff] }
 0x77f   : > { %18336 = vmatprep.mubr.msk.f32.mxu1 %vm4297_vm3, %v10528_v32  ;;  %v11337_v32 = vld [vmem:[#allocation2 + $0xa9] sm:$0xff] }
 0x782   : > { %18337 = vmatmul.mubr.msk.f32.gmra.mrb[30].mxu1 %vm4297_vm3, %v10529_v43 }
 0x783   : > { %18355 = vmatprep.mubr.msk.f32.mxu1 %vm4297_vm3, %v22714_v38  ;;  %v25858_v38 = vld [vmem:[#allocation78_spill] sm:$0xff] }
 0x786   : > { %18356 = vmatmul.mubr.msk.f32.vlgmr.msra.gmra.mrb[0].mxu1 %vm4297_vm3, %v22718_v27  ;;  %v25859_v27 = vld [vmem:[#allocation79_spill] sm:$0xff] }
 0x787   : > { %18358 = vmatprep.mubr.msk.f32.mxu1 %vm4297_vm3, %v25832_v15  ;;  %v25862_v15 = vld [vmem:[#allocation82_spill] sm:$0xff] }
 0x78a   : > { %18359 = vmatmul.mubr.msk.f32.gmra.mrb[2].mxu1 %vm4297_vm3, %v25833_v61  ;;  %v25863_v61 = vld [vmem:[#allocation47_spill] sm:$0xff] }
 0x78b   : > { %18361 = vmatprep.mubr.msk.f32.mxu1 %vm4297_vm3, %v25834_v21  ;;  %v25864_v21 = vld [vmem:[#allocation48_spill] sm:$0xff] }
 0x78e   : > { %18362 = vmatmul.mubr.msk.f32.gmra.mrb[4].mxu1 %vm4297_vm3, %v25835_v57  ;;  %v10922_v57 = vld [vmem:[#allocation3 + $0x19a] sm:$0xff] }
 0x78f   : > { %18364 = vmatprep.mubr.msk.f32.mxu1 %vm4297_vm3, %v25836_v41  ;;  %v10923_v41 = vld [vmem:[#allocation3 + $0x1a2] sm:$0xff] }
 0x792   : > { %18365 = vmatmul.mubr.msk.f32.gmra.mrb[6].mxu1 %vm4297_vm3, %v25837_v29  ;;  %v23233_v29 = vld [vmem:[%s561_s14] ss:$0 sm:$0xff] }
 0x793   : > { %18367 = vmatprep.mubr.msk.f32.mxu1 %vm4297_vm3, %v25838_v19 }
 0x796   : > { %18368 = vmatmul.mubr.msk.f32.gmra.mrb[8].mxu1 %vm4297_vm3, %v25839_v13  ;;  %v11326_v13 = vld [vmem:[#allocation2 + $0x21] sm:$0xff] }
 0x797   : > { %18370 = vmatprep.mubr.msk.f32.mxu1 %vm4297_vm3, %v25840_v6 }
 0x79a   : > { %18371 = vmatmul.mubr.msk.f32.gmra.mrb[10].mxu1 %vm4297_vm3, %v25841_v63 }
 0x79b   : > { %18373 = vmatprep.mubr.msk.f32.mxu1 %vm4297_vm3, %v25842_v3  ;;  %v11325_v3 = vld [vmem:[#allocation2 + $0x19] sm:$0xff] }
 0x79e   : > { %18374 = vmatmul.mubr.msk.f32.gmra.mrb[12].mxu1 %vm4297_vm3, %v25843_v39 }
 0x79f   : > { %18376 = vmatprep.mubr.msk.f32.mxu1 %vm4297_vm3, %v25844_v42 }
 0x7a2   : > { %18377 = vmatmul.mubr.msk.f32.gmra.mrb[14].mxu1 %vm4297_vm3, %v25845_v52 }
 0x7a3   : > { %18379 = vmatprep.mubr.msk.f32.mxu1 %vm4297_vm3, %v25846_v37 }
 0x7a6   : > { %18380 = vmatmul.mubr.msk.f32.gmra.mrb[16].mxu1 %vm4297_vm3, %v25847_v9  ;;  %v11328_v9 = vld [vmem:[#allocation2 + $0x39] sm:$0xff] }
 0x7a7   : > { %18382 = vmatprep.mubr.msk.f32.mxu1 %vm4297_vm3, %v25848_v14 }
 0x7aa   : > { %18383 = vmatmul.mubr.msk.f32.gmra.mrb[18].mxu1 %vm4297_vm3, %v25849_v58 }
 0x7ab   : > { %18385 = vmatprep.mubr.msk.f32.mxu1 %vm4297_vm3, %v25850_v4  ;;  %v11327_v4 = vld [vmem:[#allocation2 + $0x31] sm:$0xff] }
 0x7ae   : > { %18386 = vmatmul.mubr.msk.f32.gmra.mrb[20].mxu1 %vm4297_vm3, %v25851_v10 }
 0x7af   : > { %18388 = vmatprep.mubr.msk.f32.mxu1 %vm4297_vm3, %v25858_v38 }
 0x7b2   : > { %18389 = vmatmul.mubr.msk.f32.gmra.mrb[22].mxu1 %vm4297_vm3, %v25859_v27 }
 0x7b3   : > { %18391 = vmatprep.mubr.msk.f32.mxu1 %vm4297_vm3, %v25860_v36 }
 0x7b6   : > { %18392 = vmatmul.mubr.msk.f32.gmra.mrb[24].mxu1 %vm4297_vm3, %v25861_v11  ;;  %v11340_v11 = vld [vmem:[#allocation2 + $0xc9] sm:$0xff] }
 0x7b7   : > { %18394 = vmatprep.mubr.msk.f32.mxu1 %vm4297_vm3, %v25862_v15 }
 0x7ba   : > { %18395 = vmatmul.mubr.msk.f32.gmra.mrb[26].mxu1 %vm4297_vm3, %v25863_v61 }
 0x7bb   : > { %18397 = vmatprep.mubr.msk.f32.mxu1 %vm4297_vm3, %v25864_v21  ;;  %v11339_v21 = vld [vmem:[#allocation2 + $0xc1] sm:$0xff] }
 0x7be   : > { %18398 = vmatmul.mubr.msk.f32.gmra.mrb[28].mxu1 %vm4297_vm3, %v23052_v47 }
 0x7bf   : > { %18400 = vmatprep.mubr.msk.f32.mxu1 %vm4297_vm3, %v10922_v57 }
 0x7c2   : > { %18401 = vmatmul.mubr.msk.f32.gmra.mrb[30].mxu1 %vm4297_vm3, %v10923_v41 }
 0x859   : > { %v18357_v19 = vpop.f32.mrb[0].mxu1 }
 0x85a   : > { %v11294_v6 = vadd.f32 %v18357_v19, %v23233_v29  ;;  %v11095_v63 = vpop.f32.mrb[1].mxu1 }
 0x85b   : > { %v11293_v39 = vadd.f32 %v23233_v29, %v11095_v63 }
 0x85c   : > { %v11358_v42 = vadd.f32 %v11326_v13, %v11294_v6  ;;  %v11342_v6 = vld [vmem:[#allocation2 + $0xe1] sm:$0xff] }
 0x85d   : > { %v11357_v52 = vadd.f32 %v11325_v3, %v11293_v39  ;;  %v18360_v37 = vpop.f32.mrb[2].mxu1  ;;  %v11341_v39 = vld [vmem:[#allocation2 + $0xd9] sm:$0xff] }
 0x85e   : > { %11390 = vst.msk [vmem:[#allocation2 + $0x21] sm:$0xff] %vm4297_vm3, %v11358_v42  ;;  %v11296_v14 = vadd.f32 %v18360_v37, %v23233_v29  ;;  %v11105_v58 = vpop.f32.mrb[3].mxu1 }
 0x85f   : > { %11389 = vst.msk [vmem:[#allocation2 + $0x19] sm:$0xff] %vm4297_vm3, %v11357_v52  ;;  %v11295_v10 = vadd.f32 %v23233_v29, %v11105_v58 }
 0x860   : > { %v11360_v47 = vadd.f32 %v11328_v9, %v11296_v14  ;;  %v11344_v14 = vld [vmem:[#allocation2 + $0xf9] sm:$0xff] }
 0x861   : > { %v11359_v46 = vadd.f32 %v11327_v4, %v11295_v10  ;;  %v18363_v48 = vpop.f32.mrb[4].mxu1  ;;  %v11343_v10 = vld [vmem:[#allocation2 + $0xf1] sm:$0xff] }
 0x862   : > { %11392 = vst.msk [vmem:[#allocation2 + $0x39] sm:$0xff] %vm4297_vm3, %v11360_v47  ;;  %v11298_v54 = vadd.f32 %v18363_v48, %v23233_v29  ;;  %v11115_v23 = vpop.f32.mrb[5].mxu1 }
 0x863   : > { %11391 = vst.msk [vmem:[#allocation2 + $0x31] sm:$0xff] %vm4297_vm3, %v11359_v46  ;;  %v11297_v34 = vadd.f32 %v23233_v29, %v11115_v23 }
 0x864   : > { %v11362_v7 = vadd.f32 %v11330_v49, %v11298_v54  ;;  %v11346_v54 = vld [vmem:[#allocation2 + $0x111] sm:$0xff] }
 0x865   : > { %v11361_v17 = vadd.f32 %v11329_v30, %v11297_v34  ;;  %v18366_v55 = vpop.f32.mrb[6].mxu1  ;;  %v11345_v34 = vld [vmem:[#allocation2 + $0x109] sm:$0xff] }
 0x866   : > { %11394 = vst.msk [vmem:[#allocation2 + $0x51] sm:$0xff] %vm4297_vm3, %v11362_v7  ;;  %v11300_v24 = vadd.f32 %v18366_v55, %v23233_v29  ;;  %v11125_v22 = vpop.f32.mrb[7].mxu1 }
 0x867   : > { %11393 = vst.msk [vmem:[#allocation2 + $0x49] sm:$0xff] %vm4297_vm3, %v11361_v17  ;;  %v11299_v56 = vadd.f32 %v23233_v29, %v11125_v22 }
 0x868   : > { %v11364_v5 = vadd.f32 %v11332_v53, %v11300_v24  ;;  %v11348_v24 = vld [vmem:[#allocation2 + $0x129] sm:$0xff] }
 0x869   : > { %v11363_v8 = vadd.f32 %v11331_v25, %v11299_v56  ;;  %v18369_v62 = vpop.f32.mrb[8].mxu1  ;;  %v11347_v56 = vld [vmem:[#allocation2 + $0x121] sm:$0xff] }
 0x86a   : > { %11396 = vst.msk [vmem:[#allocation2 + $0x69] sm:$0xff] %vm4297_vm3, %v11364_v5  ;;  %v11302_v35 = vadd.f32 %v18369_v62, %v23233_v29  ;;  %v11135_v20 = vpop.f32.mrb[9].mxu1 }
 0x86b   : > { %11395 = vst.msk [vmem:[#allocation2 + $0x61] sm:$0xff] %vm4297_vm3, %v11363_v8  ;;  %v11301_v45 = vadd.f32 %v23233_v29, %v11135_v20 }
 0x86c   : > { %v11366_v0 = vadd.f32 %v11334_v16, %v11302_v35  ;;  %v11350_v35 = vld [vmem:[#allocation2 + $0x141] sm:$0xff] }
 0x86d   : > { %v11365_v12 = vadd.f32 %v11333_v18, %v11301_v45  ;;  %v18372_v31 = vpop.f32.mrb[10].mxu1  ;;  %v11349_v45 = vld [vmem:[#allocation2 + $0x139] sm:$0xff] }
 0x86e   : > { %11398 = vst.msk [vmem:[#allocation2 + $0x81] sm:$0xff] %vm4297_vm3, %v11366_v0  ;;  %v11304_v50 = vadd.f32 %v18372_v31, %v23233_v29  ;;  %v11145_v1 = vpop.f32.mrb[11].mxu1 }
 0x86f   : > { %11397 = vst.msk [vmem:[#allocation2 + $0x79] sm:$0xff] %vm4297_vm3, %v11365_v12  ;;  %v11303_v40 = vadd.f32 %v23233_v29, %v11145_v1 }
 0x870   : > { %v11368_v44 = vadd.f32 %v11336_v2, %v11304_v50  ;;  %v11352_v50 = vld [vmem:[#allocation2 + $0x159] sm:$0xff] }
 0x871   : > { %v11367_v28 = vadd.f32 %v11335_v60, %v11303_v40  ;;  %v18375_v51 = vpop.f32.mrb[12].mxu1  ;;  %v11351_v40 = vld [vmem:[#allocation2 + $0x151] sm:$0xff] }
 0x872   : > { %11400 = vst.msk [vmem:[#allocation2 + $0x99] sm:$0xff] %vm4297_vm3, %v11368_v44  ;;  %v11306_v33 = vadd.f32 %v18375_v51, %v23233_v29  ;;  %v11155_v26 = vpop.f32.mrb[13].mxu1 }
 0x873   : > { %11399 = vst.msk [vmem:[#allocation2 + $0x91] sm:$0xff] %vm4297_vm3, %v11367_v28  ;;  %v11305_v43 = vadd.f32 %v23233_v29, %v11155_v26 }
 0x874   : > { %v11370_v38 = vadd.f32 %v11338_v59, %v11306_v33  ;;  %v11354_v33 = vld [vmem:[#allocation2 + $0x171] sm:$0xff] }
 0x875   : > { %v11369_v27 = vadd.f32 %v11337_v32, %v11305_v43  ;;  %v18378_v36 = vpop.f32.mrb[14].mxu1  ;;  %v11353_v43 = vld [vmem:[#allocation2 + $0x169] sm:$0xff] }
 0x876   : > { %11402 = vst.msk [vmem:[#allocation2 + $0xb1] sm:$0xff] %vm4297_vm3, %v11370_v38  ;;  %v11308_v15 = vadd.f32 %v18378_v36, %v23233_v29  ;;  %v11165_v61 = vpop.f32.mrb[15].mxu1 }
 0x877   : > { %11401 = vst.msk [vmem:[#allocation2 + $0xa9] sm:$0xff] %vm4297_vm3, %v11369_v27  ;;  %v11307_v57 = vadd.f32 %v23233_v29, %v11165_v61 }
 0x878   : > { %v11372_v41 = vadd.f32 %v11340_v11, %v11308_v15  ;;  %v11356_v15 = vld [vmem:[#allocation2 + $0x189] sm:$0xff] }
 0x879   : > { %v11371_v19 = vadd.f32 %v11339_v21, %v11307_v57  ;;  %v18381_v13 = vpop.f32.mrb[16].mxu1  ;;  %v11355_v57 = vld [vmem:[#allocation2 + $0x181] sm:$0xff] }
 0x87a   : > { %11404 = vst.msk [vmem:[#allocation2 + $0xc9] sm:$0xff] %vm4297_vm3, %v11372_v41  ;;  %v11310_v63 = vadd.f32 %v18381_v13, %v23233_v29  ;;  %v11175_v3 = vpop.f32.mrb[17].mxu1 }
 0x87b   : > { %11403 = vst.msk [vmem:[#allocation2 + $0xc1] sm:$0xff] %vm4297_vm3, %v11371_v19  ;;  %v11309_v42 = vadd.f32 %v23233_v29, %v11175_v3 }
 0x87c   : > { %v11374_v52 = vadd.f32 %v11342_v6, %v11310_v63 }
 0x87d   : > { %v11373_v37 = vadd.f32 %v11341_v39, %v11309_v42  ;;  %v18384_v9 = vpop.f32.mrb[18].mxu1 }
 0x87e   : > { %11406 = vst.msk [vmem:[#allocation2 + $0xe1] sm:$0xff] %vm4297_vm3, %v11374_v52  ;;  %v11312_v58 = vadd.f32 %v18384_v9, %v23233_v29  ;;  %v11185_v4 = vpop.f32.mrb[19].mxu1 }
 0x87f   : > { %11405 = vst.msk [vmem:[#allocation2 + $0xd9] sm:$0xff] %vm4297_vm3, %v11373_v37  ;;  %v11311_v47 = vadd.f32 %v23233_v29, %v11185_v4 }
 0x880   : > { %v11376_v46 = vadd.f32 %v11344_v14, %v11312_v58 }
 0x881   : > { %v11375_v48 = vadd.f32 %v11343_v10, %v11311_v47  ;;  %v18387_v49 = vpop.f32.mrb[20].mxu1 }
 0x882   : > { %11408 = vst.msk [vmem:[#allocation2 + $0xf9] sm:$0xff] %vm4297_vm3, %v11376_v46  ;;  %v11314_v23 = vadd.f32 %v18387_v49, %v23233_v29  ;;  %v11195_v30 = vpop.f32.mrb[21].mxu1 }
 0x883   : > { %11407 = vst.msk [vmem:[#allocation2 + $0xf1] sm:$0xff] %vm4297_vm3, %v11375_v48  ;;  %v11313_v7 = vadd.f32 %v23233_v29, %v11195_v30 }
 0x884   : > { %v11378_v17 = vadd.f32 %v11346_v54, %v11314_v23 }
 0x885   : > { %v11377_v55 = vadd.f32 %v11345_v34, %v11313_v7  ;;  %v18390_v53 = vpop.f32.mrb[22].mxu1 }
 0x886   : > { %11410 = vst.msk [vmem:[#allocation2 + $0x111] sm:$0xff] %vm4297_vm3, %v11378_v17  ;;  %v11316_v22 = vadd.f32 %v18390_v53, %v23233_v29  ;;  %v11205_v25 = vpop.f32.mrb[23].mxu1 }
 0x887   : > { %11409 = vst.msk [vmem:[#allocation2 + $0x109] sm:$0xff] %vm4297_vm3, %v11377_v55  ;;  %v11315_v5 = vadd.f32 %v23233_v29, %v11205_v25 }
 0x888   : > { %v11380_v8 = vadd.f32 %v11348_v24, %v11316_v22 }
 0x889   : > { %v11379_v62 = vadd.f32 %v11347_v56, %v11315_v5  ;;  %v18393_v16 = vpop.f32.mrb[24].mxu1 }
 0x88a   : > { %11412 = vst.msk [vmem:[#allocation2 + $0x129] sm:$0xff] %vm4297_vm3, %v11380_v8  ;;  %v11318_v20 = vadd.f32 %v18393_v16, %v23233_v29  ;;  %v11215_v18 = vpop.f32.mrb[25].mxu1 }
 0x88b   : > { %11411 = vst.msk [vmem:[#allocation2 + $0x121] sm:$0xff] %vm4297_vm3, %v11379_v62  ;;  %v11317_v0 = vadd.f32 %v23233_v29, %v11215_v18 }
 0x88c   : > { %v11382_v12 = vadd.f32 %v11350_v35, %v11318_v20 }
 0x88d   : > { %v11381_v31 = vadd.f32 %v11349_v45, %v11317_v0  ;;  %v18396_v2 = vpop.f32.mrb[26].mxu1 }
 0x88e   : > { %11414 = vst.msk [vmem:[#allocation2 + $0x141] sm:$0xff] %vm4297_vm3, %v11382_v12  ;;  %v11320_v1 = vadd.f32 %v18396_v2, %v23233_v29  ;;  %v11225_v60 = vpop.f32.mrb[27].mxu1 }
 0x88f   : > { %11413 = vst.msk [vmem:[#allocation2 + $0x139] sm:$0xff] %vm4297_vm3, %v11381_v31  ;;  %v11319_v44 = vadd.f32 %v23233_v29, %v11225_v60 }
 0x890   : > { %v11384_v28 = vadd.f32 %v11352_v50, %v11320_v1 }
 0x891   : > { %v11383_v51 = vadd.f32 %v11351_v40, %v11319_v44  ;;  %v18399_v59 = vpop.f32.mrb[28].mxu1 }
 0x892   : > { %11416 = vst.msk [vmem:[#allocation2 + $0x159] sm:$0xff] %vm4297_vm3, %v11384_v28  ;;  %v11322_v26 = vadd.f32 %v18399_v59, %v23233_v29  ;;  %v11235_v32 = vpop.f32.mrb[29].mxu1 }
 0x893   : > { %11415 = vst.msk [vmem:[#allocation2 + $0x151] sm:$0xff] %vm4297_vm3, %v11383_v51  ;;  %v11321_v38 = vadd.f32 %v23233_v29, %v11235_v32 }
 0x894   : > { %v11386_v27 = vadd.f32 %v11354_v33, %v11322_v26 }
 0x895   : > { %v11385_v36 = vadd.f32 %v11353_v43, %v11321_v38  ;;  %v18402_v11 = vpop.f32.mrb[30].mxu1 }
 0x896   : > { %11418 = vst.msk [vmem:[#allocation2 + $0x171] sm:$0xff] %vm4297_vm3, %v11386_v27  ;;  %v11324_v61 = vadd.f32 %v18402_v11, %v23233_v29  ;;  %v11245_v21 = vpop.f32.mrb[31].mxu1 }
 0x897   : > { %11417 = vst.msk [vmem:[#allocation2 + $0x169] sm:$0xff] %vm4297_vm3, %v11385_v36  ;;  %v11323_v41 = vadd.f32 %v23233_v29, %v11245_v21 }
 0x898   : > { %v11388_v19 = vadd.f32 %v11356_v15, %v11324_v61 }
 0x899   : > { %v11387_v13 = vadd.f32 %v11355_v57, %v11323_v41 }
 0x89a   : > { %11420 = vst.msk [vmem:[#allocation2 + $0x189] sm:$0xff] %vm4297_vm3, %v11388_v19 }
 0x89b   : > { %11419 = vst.msk [vmem:[#allocation2 + $0x181] sm:$0xff] %vm4297_vm3, %v11387_v13 }
 0x89c PF: > { %p15483_p3 = scmp.ne.s32.totalorder %s20031_s12, 15 }
 0x89e   : > { %11424 = sbr.rel (%p15483_p3) target bundleno = 3005 (0xbbd), region = 80 }
 0x8a5   : > { %v15485_v6 = vld [vmem:[%s25411_s7 + $0x108] sm:$0xff]  ;;  %v15487_v29 = vld [vmem:[%s25411_s7 + $0x118] sm:$0xff]  ;;  %v15484_v42 = vld [vmem:[%s25411_s7 + $0x100] sm:$0xff]  ;;  %v25594_v37 = vmov 0.0   ;;  %vm11457_vm4 = vcmask 523264   ;;  %vm13996_vm5 = vcmask 1040384  }
 0x8a6   : > { %v15489_v63 = vld [vmem:[%s25411_s7 + $0x128] sm:$0xff]  ;;  %v15491_v39 = vld [vmem:[%s25411_s7 + $0x138] sm:$0xff]  ;;  %v15488_v52 = vld [vmem:[%s25411_s7 + $0x120] sm:$0xff]  ;;  %11760 = vmatprep.mubr.f32.mxu0 %v25594_v37  ;;  %11831 = vmatprep.mubr.f32.mxu1 %v25594_v37 }
 0x8a7   : > { %v18691_v3 = vpack.c.bf16 %v15489_v63, %v15485_v6  ;;  %v18707_v9 = vpack.c.bf16 %v15491_v39, %v15487_v29  ;;  %v18693_v14 = vpack.c.bf16 %v15488_v52, %v15484_v42  ;;  %v15486_v58 = vld [vmem:[%s25411_s7 + $0x110] sm:$0xff]  ;;  %v15493_v10 = vld [vmem:[%s25411_s7 + $0x148] sm:$0xff]  ;;  %v15495_v48 = vld [vmem:[%s25411_s7 + $0x158] sm:$0xff] }
 0x8a8   : > { %v15490_v4 = vld [vmem:[%s25411_s7 + $0x130] sm:$0xff]  ;;  %v15497_v46 = vld [vmem:[%s25411_s7 + $0x168] sm:$0xff]  ;;  %v15499_v49 = vld [vmem:[%s25411_s7 + $0x178] sm:$0xff] }
 0x8a9   : > { %18692 = vmatprep.subr.bf16.mxu0 %v18691_v3  ;;  %v18709_v47 = vpack.c.bf16 %v15490_v4, %v15486_v58  ;;  %18708 = vmatprep.subr.bf16.mxu1 %v18707_v9  ;;  %v18695_v54 = vpack.c.bf16 %v15497_v46, %v15493_v10  ;;  %v18711_v23 = vpack.c.bf16 %v15499_v49, %v15495_v48  ;;  %v15492_v30 = vld [vmem:[%s25411_s7 + $0x140] sm:$0xff]  ;;  %v15494_v7 = vld [vmem:[%s25411_s7 + $0x150] sm:$0xff]  ;;  %v15501_v53 = vld [vmem:[%s25411_s7 + $0x188] sm:$0xff] }
 0x8aa   : > { %18694 = vmatpush1.bf16.msra.mxu0 %v18693_v14  ;;  %v15496_v34 = vld [vmem:[%s25411_s7 + $0x160] sm:$0xff]  ;;  %v15498_v55 = vld [vmem:[%s25411_s7 + $0x170] sm:$0xff]  ;;  %v15505_v24 = vld [vmem:[%s25411_s7 + $0x1a8] sm:$0xff] }
 0x8ab   : > { %18710 = vmatpush1.bf16.msra.mxu1 %v18709_v47  ;;  %v18697_v17 = vpack.c.bf16 %v15496_v34, %v15492_v30  ;;  %18696 = vmatprep.subr.bf16.mxu0 %v18695_v54  ;;  %v18713_v22 = vpack.c.bf16 %v15498_v55, %v15494_v7  ;;  %v18699_v25 = vpack.c.bf16 %v15505_v24, %v15501_v53  ;;  %v15503_v56 = vld [vmem:[%s25411_s7 + $0x198] sm:$0xff]  ;;  %v15500_v8 = vld [vmem:[%s25411_s7 + $0x180] sm:$0xff]  ;;  %v15502_v35 = vld [vmem:[%s25411_s7 + $0x190] sm:$0xff] }
 0x8ac   : > { %18712 = vmatprep.subr.bf16.mxu1 %v18711_v23  ;;  %v15507_v5 = vld [vmem:[%s25411_s7 + $0x1b8] sm:$0xff]  ;;  %v15504_v16 = vld [vmem:[%s25411_s7 + $0x1a0] sm:$0xff]  ;;  %v15506_v20 = vld [vmem:[%s25411_s7 + $0x1b0] sm:$0xff] }
 0x8ad   : > { %v18715_v62 = vpack.c.bf16 %v15507_v5, %v15503_v56  ;;  %v18701_v18 = vpack.c.bf16 %v15504_v16, %v15500_v8  ;;  %v15509_v45 = vld [vmem:[%s25411_s7 + $0x1c8] sm:$0xff]  ;;  %v15511_v12 = vld [vmem:[%s25411_s7 + $0x1d8] sm:$0xff]  ;;  %v18717_v31 = vpack.c.bf16 %v15506_v20, %v15502_v35  ;;  %v15508_v1 = vld [vmem:[%s25411_s7 + $0x1c0] sm:$0xff] }
 0x8ae   : > { %18698 = vmatpush1.bf16.msra.mxu0 %v18697_v17  ;;  %v15513_v0 = vld [vmem:[%s25411_s7 + $0x1e8] sm:$0xff]  ;;  %v15515_v50 = vld [vmem:[%s25411_s7 + $0x1f8] sm:$0xff]  ;;  %v15512_v60 = vld [vmem:[%s25411_s7 + $0x1e0] sm:$0xff] }
 0x8af   : > { %18714 = vmatpush1.bf16.msra.mxu1 %v18713_v22  ;;  %18700 = vmatprep.subr.bf16.mxu0 %v18699_v25  ;;  %v18703_v2 = vpack.c.bf16 %v15513_v0, %v15509_v45  ;;  %v18719_v40 = vpack.c.bf16 %v15515_v50, %v15511_v12  ;;  %v15510_v44 = vld [vmem:[%s25411_s7 + $0x1d0] sm:$0xff]  ;;  %v11528_v51 = vld [vmem:[%s25411_s7 + $0x8] sm:$0xff]  ;;  %v11530_v33 = vld [vmem:[%s25411_s7 + $0x18] sm:$0xff]  ;;  %v18705_v32 = vpack.c.bf16 %v15512_v60, %v15508_v1 }
 0x8b0   : > { %18716 = vmatprep.subr.bf16.mxu1 %v18715_v62  ;;  %v15514_v28 = vld [vmem:[%s25411_s7 + $0x1f0] sm:$0xff]  ;;  %v11532_v59 = vld [vmem:[%s25411_s7 + $0x28] sm:$0xff]  ;;  %v11534_v26 = vld [vmem:[%s25411_s7 + $0x38] sm:$0xff] }
 0x8b1   : > { %v18721_v43 = vpack.c.bf16 %v15514_v28, %v15510_v44  ;;  %v11559_v38 = vld [vmem:[#allocation2 + $0x1] sm:$0xff]  ;;  %v11560_v27 = vld [vmem:[#allocation2 + $0x9] sm:$0xff]  ;;  %v11561_v36 = vld [vmem:[#allocation2 + $0x19] sm:$0xff]  ;;  %v18723_v11 = vpack.c.bf16 %v11532_v59, %v11528_v51  ;;  %v18739_v41 = vpack.c.bf16 %v11534_v26, %v11530_v33 }
 0x8b2   : > { %18702 = vmatpush1.bf16.msra.mxu0 %v18701_v18  ;;  %v11562_v15 = vld [vmem:[#allocation2 + $0x21] sm:$0xff]  ;;  %v11591_v61 = vsel %vm11457_vm4, %v11559_v38, 0.0  ;;  %v11592_v21 = vsel %vm11457_vm4, %v11560_v27, 0.0  ;;  %v11594_v57 = vsel %vm11457_vm4, %v11561_v36, 0.0  ;;  %v11563_v19 = vld [vmem:[#allocation2 + $0x31] sm:$0xff]  ;;  %v11564_v63 = vld [vmem:[#allocation2 + $0x39] sm:$0xff] }
 0x8b3   : > { %18718 = vmatpush1.bf16.msra.mxu1 %v18717_v31  ;;  %18704 = vmatprep.subr.bf16.mxu0 %v18703_v2  ;;  %v11593_v13 = vadd.f32 %v11592_v21, %v11591_v61  ;;  %v11596_v6 = vsel %vm11457_vm4, %v11562_v15, 0.0  ;;  %v11598_v3 = vsel %vm11457_vm4, %v11563_v19, 0.0  ;;  %v11565_v39 = vld [vmem:[#allocation2 + $0x49] sm:$0xff]  ;;  %v11600_v52 = vsel %vm11457_vm4, %v11564_v63, 0.0  ;;  %v11566_v9 = vld [vmem:[#allocation2 + $0x51] sm:$0xff]  ;;  %v11567_v4 = vld [vmem:[#allocation2 + $0x61] sm:$0xff] }
 0x8b4   : > { %18720 = vmatprep.subr.bf16.mxu1 %v18719_v40  ;;  %v11602_v58 = vsel %vm11457_vm4, %v11565_v39, 0.0  ;;  %v11604_v47 = vsel %vm11457_vm4, %v11566_v9, 0.0  ;;  %v11568_v46 = vld [vmem:[#allocation2 + $0x69] sm:$0xff]  ;;  %v11606_v49 = vsel %vm11457_vm4, %v11567_v4, 0.0  ;;  %v11569_v54 = vld [vmem:[#allocation2 + $0x79] sm:$0xff]  ;;  %v11570_v34 = vld [vmem:[#allocation2 + $0x81] sm:$0xff] }
 0x8b5   : > { %v11595_v29 = vadd.f32 %v11594_v57, %v11593_v13  ;;  %v11608_v30 = vsel %vm11457_vm4, %v11568_v46, 0.0  ;;  %v11610_v17 = vsel %vm11457_vm4, %v11569_v54, 0.0  ;;  %v11571_v55 = vld [vmem:[#allocation2 + $0x91] sm:$0xff]  ;;  %v11612_v24 = vsel %vm11457_vm4, %v11570_v34, 0.0  ;;  %v11572_v22 = vld [vmem:[#allocation2 + $0x99] sm:$0xff]  ;;  %v11426_v8 = vld [vmem:[#allocation2 + $0x8] sm:$0xff] }
 0x8b6   : > { %18706 = vmatpush1.bf16.msra.mxu0 %v18705_v32  ;;  %v11614_v56 = vsel %vm11457_vm4, %v11571_v55, 0.0  ;;  %v11425_v5 = vld [vmem:[#allocation2] sm:$0xff]  ;;  %v11573_v62 = vld [vmem:[#allocation2 + $0xa9] sm:$0xff]  ;;  %v11427_v35 = vld [vmem:[#allocation2 + $0x18] sm:$0xff]  ;;  %v11459_v45 = vsel %vm11457_vm4, %v11426_v8, 0.0  ;;  %v11616_v0 = vsel %vm11457_vm4, %v11572_v22, 0.0 }
 0x8b7   : > { %18722 = vmatpush1.bf16.msra.mxu1 %v18721_v43  ;;  %18724 = vmatprep.subr.bf16.mxu0 %v18723_v11  ;;  %v11597_v42 = vadd.f32 %v11596_v6, %v11595_v29  ;;  %v11428_v20 = vld [vmem:[#allocation2 + $0x20] sm:$0xff]  ;;  %v11458_v18 = vsel %vm11457_vm4, %v11425_v5, 0.0  ;;  %v11429_v12 = vld [vmem:[#allocation2 + $0x30] sm:$0xff]  ;;  %v11461_v2 = vsel %vm11457_vm4, %v11427_v35, 0.0  ;;  %v11618_v40 = vsel %vm11457_vm4, %v11573_v62, 0.0  ;;  %v11430_v44 = vld [vmem:[#allocation2 + $0x38] sm:$0xff] }
 0x8b8   : > { %18740 = vmatprep.subr.bf16.mxu1 %v18739_v41  ;;  %v11460_v31 = vadd.f32 %v11459_v45, %v11458_v18  ;;  %v11574_v50 = vld [vmem:[#allocation2 + $0xb1] sm:$0xff]  ;;  %v11463_v60 = vsel %vm11457_vm4, %v11428_v20, 0.0  ;;  %v11575_v51 = vld [vmem:[#allocation2 + $0xc1] sm:$0xff]  ;;  %v11465_v33 = vsel %vm11457_vm4, %v11429_v12, 0.0  ;;  %v11576_v38 = vld [vmem:[#allocation2 + $0xc9] sm:$0xff]  ;;  %v11467_v36 = vsel %vm11457_vm4, %v11430_v44, 0.0 }
 0x8b9   : > { %v11599_v14 = vadd.f32 %v11598_v3, %v11597_v42  ;;  %v11620_v26 = vsel %vm11457_vm4, %v11574_v50, 0.0  ;;  %v11431_v32 = vld [vmem:[#allocation2 + $0x48] sm:$0xff]  ;;  %v11622_v11 = vsel %vm11457_vm4, %v11575_v51, 0.0  ;;  %v11432_v15 = vld [vmem:[#allocation2 + $0x50] sm:$0xff]  ;;  %v11577_v21 = vld [vmem:[#allocation2 + $0xd9] sm:$0xff]  ;;  %v11624_v19 = vsel %vm11457_vm4, %v11576_v38, 0.0 }
 0x8ba   : > { %v11462_v28 = vadd.f32 %v11461_v2, %v11460_v31  ;;  %v23434_v41 = vsel %vm11457_vm4, %v11431_v32, 0.0  ;;  %v11433_v13 = vld [vmem:[#allocation2 + $0x60] sm:$0xff]  ;;  %v23438_v3 = vsel %vm11457_vm4, %v11432_v15, 0.0  ;;  %v11626_v39 = vsel %vm11457_vm4, %v11577_v21, 0.0  ;;  %v11434_v42 = vld [vmem:[#allocation2 + $0x68] sm:$0xff]  ;;  %v11579_v9 = vld [vmem:[#allocation2 + $0xf1] sm:$0xff] }
 0x8bb   : > { %v11601_v10 = vadd.f32 %v11600_v52, %v11599_v14  ;;  %v11578_v63 = vld [vmem:[#allocation2 + $0xe1] sm:$0xff]  ;;  %v12301_v46 = vadd.f32 %v11463_v60, %v11461_v2  ;;  %v23448_v54 = vsel %vm11457_vm4, %v11434_v42, 0.0  ;;  %v11984_v50 = vld [vmem:[#allocation2 + $0xa] sm:$0xff]  ;;  %v11585_v15 = vld [vmem:[#allocation2 + $0x139] sm:$0xff] }
 0x8bc   : > { %v11464_v43 = vadd.f32 %v11463_v60, %v11462_v28  ;;  %v11628_v4 = vsel %vm11457_vm4, %v11578_v63, 0.0  ;;  %v11583_v20 = vld [vmem:[#allocation2 + $0x121] sm:$0xff]  ;;  %v11584_v28 = vld [vmem:[#allocation2 + $0x129] sm:$0xff]  ;;  %v11454_v37 = vld [vmem:[#allocation2 + $0x158] sm:$0xff] }
 0x8bd   : > { %v11603_v48 = vadd.f32 %v11602_v58, %v11601_v10  ;;  %v23443_v58 = vsel %vm11457_vm4, %v11433_v13, 0.0  ;;  %v11435_v10 = vld [vmem:[#allocation2 + $0x78] sm:$0xff]  ;;  %v11439_v45 = vld [vmem:[#allocation2 + $0xa8] sm:$0xff]  ;;  %v11638_v32 = vsel %vm11457_vm4, %v11583_v20, 0.0 }
 0x8be   : > { %v11466_v61 = vadd.f32 %v11465_v33, %v11464_v43  ;;  %v23453_v55 = vsel %vm11457_vm4, %v11435_v10, 0.0  ;;  %v11983_v12 = vld [vmem:[#allocation2 + $0x2] sm:$0xff]  ;;  %v11440_v43 = vld [vmem:[#allocation2 + $0xb0] sm:$0xff] }
 0x8bf   : > { %v11605_v23 = vadd.f32 %v11604_v47, %v11603_v48  ;;  %v11580_v48 = vld [vmem:[#allocation2 + $0xf9] sm:$0xff]  ;;  %v11986_v60 = vld [vmem:[#allocation2 + $0x22] sm:$0xff] }
 0x8c0   : > { %v11468_v6 = vadd.f32 %v11467_v36, %v11466_v61  ;;  %v23481_v21 = vsel %vm11457_vm4, %v11986_v60, 0.0  ;;  %v11991_v20 = vld [vmem:[#allocation2 + $0x62] sm:$0xff]  ;;  %v11992_v60 = vld [vmem:[#allocation2 + $0x6a] sm:$0xff] }
 0x8c1   : > { %v11607_v7 = vadd.f32 %v11606_v49, %v11605_v23  ;;  %v11630_v23 = vsel %vm11457_vm4, %v11579_v9, 0.0 }
 0x8c2   : > { %v11470_v52 = vadd.f32 %v23434_v41, %v11468_v6  ;;  %v11988_v6 = vld [vmem:[#allocation2 + $0x3a] sm:$0xff] }
 0x8c3   : > { %v11609_v53 = vadd.f32 %v11608_v30, %v11607_v7  ;;  %v11436_v30 = vld [vmem:[#allocation2 + $0x80] sm:$0xff]  ;;  %v11581_v7 = vld [vmem:[#allocation2 + $0x109] sm:$0xff] }
 0x8c4   : > { %v11472_v47 = vadd.f32 %v23438_v3, %v11470_v52  ;;  %v23458_v8 = vsel %vm11457_vm4, %v11436_v30, 0.0  ;;  %v11634_v62 = vsel %vm11457_vm4, %v11581_v7, 0.0  ;;  %v23488_v52 = vsel %vm11457_vm4, %v11440_v43, 0.0 }
 0x8c5   : > { %v11611_v25 = vadd.f32 %v11610_v17, %v11609_v53  ;;  %v11632_v53 = vsel %vm11457_vm4, %v11580_v48, 0.0  ;;  %v11587_v48 = vld [vmem:[#allocation2 + $0x151] sm:$0xff] }
 0x8c6   : > { %v11474_v34 = vadd.f32 %v23443_v58, %v11472_v47  ;;  %v11989_v47 = vld [vmem:[#allocation2 + $0x4a] sm:$0xff] }
 0x8c7   : > { %v11613_v16 = vadd.f32 %v11612_v24, %v11611_v25  ;;  %v11437_v24 = vld [vmem:[#allocation2 + $0x90] sm:$0xff]  ;;  %v12303_v25 = vadd.f32 %v12301_v46, %v11465_v33  ;;  %v12016_v33 = vsel %vm11457_vm4, %v11984_v50, 0.0 }
 0x8c8   : > { %v11476_v22 = vadd.f32 %v23448_v54, %v11474_v34  ;;  %v11443_v34 = vld [vmem:[#allocation2 + $0xd8] sm:$0xff]  ;;  %v11445_v50 = vld [vmem:[#allocation2 + $0xf0] sm:$0xff] }
 0x8c9   : > { %v11615_v1 = vadd.f32 %v11614_v56, %v11613_v16  ;;  %v11582_v56 = vld [vmem:[#allocation2 + $0x111] sm:$0xff]  ;;  %v12305_v44 = vadd.f32 %v12303_v25, %v11467_v36  ;;  %v23478_v36 = vsel %vm11457_vm4, %v11439_v45, 0.0  ;;  %v11589_v45 = vld [vmem:[#allocation2 + $0x169] sm:$0xff] }
 0x8ca   : > { %v11438_v16 = vld [vmem:[#allocation2 + $0x98] sm:$0xff]  ;;  %v11478_v35 = vadd.f32 %v23453_v55, %v11476_v22  ;;  %v11636_v31 = vsel %vm11457_vm4, %v11582_v56, 0.0  ;;  %v11650_v43 = vsel %vm11457_vm4, %v11589_v45, 0.0 }
 0x8cb   : > { %v11617_v59 = vadd.f32 %v11616_v0, %v11615_v1  ;;  %v23463_v0 = vsel %vm11457_vm4, %v11437_v24, 0.0  ;;  %v11985_v1 = vld [vmem:[#allocation2 + $0x1a] sm:$0xff] }
 0x8cc   : > { %v11480_v2 = vadd.f32 %v23458_v8, %v11478_v35  ;;  %v11588_v22 = vld [vmem:[#allocation2 + $0x159] sm:$0xff] }
 0x8cd   : > { %v11619_v27 = vadd.f32 %v11618_v40, %v11617_v59  ;;  %v12015_v40 = vsel %vm11457_vm4, %v11983_v12, 0.0  ;;  %v23469_v59 = vsel %vm11457_vm4, %v11438_v16, 0.0  ;;  %v11444_v16 = vld [vmem:[#allocation2 + $0xe0] sm:$0xff] }
 0x8ce   : > { %v11482_v38 = vadd.f32 %v23463_v0, %v11480_v2  ;;  %v11648_v2 = vsel %vm11457_vm4, %v11588_v22, 0.0  ;;  %v23586_v22 = vld [vmem:[%s25411_s7 + $0x58] sm:$0xff] }
 0x8cf   : > { %v11621_v57 = vadd.f32 %v11620_v26, %v11619_v27  ;;  %v23473_v26 = vsel %vm11457_vm4, %v11985_v1, 0.0  ;;  %v11987_v27 = vld [vmem:[#allocation2 + $0x32] sm:$0xff] }
 0x8d0   : > { %v11484_v13 = vadd.f32 %v23469_v59, %v11482_v38  ;;  %v23491_v9 = vsel %vm11457_vm4, %v11987_v27, 0.0  ;;  %v11446_v38 = vld [vmem:[#allocation2 + $0xf8] sm:$0xff] }
 0x8d1   : > { %v11623_v29 = vadd.f32 %v11622_v11, %v11621_v57  ;;  %v12017_v11 = vadd.f32 %v12016_v33, %v12015_v40  ;;  %v11640_v57 = vsel %vm11457_vm4, %v11584_v28, 0.0  ;;  %v11590_v28 = vld [vmem:[#allocation2 + $0x171] sm:$0xff]  ;;  %v23526_v33 = vsel %vm11457_vm4, %v11444_v16, 0.0 }
 0x8d2   : > { %v11486_v10 = vadd.f32 %v23478_v36, %v11484_v13  ;;  %v11447_v13 = vld [vmem:[#allocation2 + $0x108] sm:$0xff]  ;;  %v23599_v16 = vld [vmem:[%s25411_s7 + $0x78] sm:$0xff] }
 0x8d3   : > { %v11625_v14 = vadd.f32 %v11624_v19, %v11623_v29  ;;  %v11441_v19 = vld [vmem:[#allocation2 + $0xc0] sm:$0xff]  ;;  %v12019_v63 = vadd.f32 %v23473_v26, %v12017_v11  ;;  %v12307_v29 = vadd.f32 %v12305_v44, %v23434_v41 }
 0x8d4   : > { %v23497_v41 = vsel %vm11457_vm4, %v11441_v19, 0.0  ;;  %v11488_v7 = vadd.f32 %v23488_v52, %v11486_v10  ;;  %v11993_v11 = vld [vmem:[#allocation2 + $0x7a] sm:$0xff]  ;;  %v11652_v19 = vsel %vm11457_vm4, %v11590_v28, 0.0  ;;  %v23557_v10 = vld [vmem:[%s25411_s7 + $0x10] sm:$0xff]  ;;  %v11450_v28 = vld [vmem:[#allocation2 + $0x128] sm:$0xff] }
 0x8d5   : > { %v11627_v49 = vadd.f32 %v11626_v39, %v11625_v14  ;;  %v11586_v39 = vld [vmem:[#allocation2 + $0x141] sm:$0xff]  ;;  %v11642_v14 = vsel %vm11457_vm4, %v11585_v15, 0.0  ;;  %v12021_v46 = vadd.f32 %v23481_v21, %v12019_v63  ;;  %v12309_v24 = vadd.f32 %v12307_v29, %v23438_v3 }
 0x8d6   : > { %v11644_v30 = vsel %vm11457_vm4, %v11586_v39, 0.0  ;;  %v11490_v35 = vadd.f32 %v23497_v41, %v11488_v7  ;;  %v23516_v3 = vsel %vm11457_vm4, %v11443_v34, 0.0  ;;  %v11994_v63 = vld [vmem:[#allocation2 + $0x82] sm:$0xff] }
 0x8d7   : > { %v11629_v17 = vadd.f32 %v11628_v4, %v11627_v49  ;;  %v11442_v4 = vld [vmem:[#allocation2 + $0xc8] sm:$0xff]  ;;  %v12311_v44 = vadd.f32 %v12309_v24, %v23443_v58  ;;  %v23538_v58 = vsel %vm11457_vm4, %v11992_v60, 0.0  ;;  %v23614_v60 = vld [vmem:[%s25411_s7 + $0x60] sm:$0xff] }
 0x8d8   : > { %v23507_v56 = vsel %vm11457_vm4, %v11442_v4, 0.0  ;;  %v23552_v4 = vld [vmem:[%s25411_s7 + $0x20] sm:$0xff]  ;;  %v23581_v24 = vld [vmem:[%s25411_s7 + $0x68] sm:$0xff] }
 0x8d9   : > { %v11631_v5 = vadd.f32 %v11630_v23, %v11629_v17  ;;  %v23500_v23 = vsel %vm11457_vm4, %v11988_v6, 0.0  ;;  %v11990_v17 = vld [vmem:[#allocation2 + $0x52] sm:$0xff]  ;;  %v11492_v1 = vadd.f32 %v23507_v56, %v11490_v35  ;;  %v12313_v39 = vadd.f32 %v12311_v44, %v23448_v54  ;;  %v11449_v35 = vld [vmem:[#allocation2 + $0x120] sm:$0xff] }
 0x8da   : > { %v23563_v54 = vsel %vm11457_vm4, %v11993_v11, 0.0 }
 0x8db   : > { %v11633_v18 = vadd.f32 %v11632_v53, %v11631_v5  ;;  %v12023_v53 = vadd.f32 %v23491_v9, %v12021_v46  ;;  %v23510_v5 = vsel %vm11457_vm4, %v11989_v47, 0.0  ;;  %v11494_v27 = vadd.f32 %v23516_v3, %v11492_v1  ;;  %v23568_v46 = vld [vmem:[%s25411_s7 + $0x30] sm:$0xff]  ;;  %v23609_v1 = vld [vmem:[%s25411_s7 + $0x40] sm:$0xff] }
 0x8dc   : > { %v23560_v47 = vsel %vm11457_vm4, %v11446_v38, 0.0  ;;  %v12315_v7 = vadd.f32 %v12313_v39, %v23453_v55  ;;  %v23592_v55 = vsel %vm11457_vm4, %v11994_v63, 0.0  ;;  %v11451_v39 = vld [vmem:[#allocation2 + $0x138] sm:$0xff] }
 0x8dd   : > { %v11635_v51 = vadd.f32 %v11634_v62, %v11633_v18  ;;  %v11646_v62 = vsel %vm11457_vm4, %v11587_v48, 0.0  ;;  %v12025_v18 = vadd.f32 %v23500_v23, %v12023_v53  ;;  %v11496_v6 = vadd.f32 %v23526_v33, %v11494_v27  ;;  %v11448_v48 = vld [vmem:[#allocation2 + $0x110] sm:$0xff]  ;;  %v23576_v53 = vld [vmem:[%s25411_s7 + $0x48] sm:$0xff] }
 0x8df   : > { %v11637_v61 = vadd.f32 %v11636_v31, %v11635_v51  ;;  %v23519_v31 = vsel %vm11457_vm4, %v11990_v17, 0.0  ;;  %v12027_v40 = vadd.f32 %v23510_v5, %v12025_v18  ;;  %v11996_v18 = vld [vmem:[#allocation2 + $0x9a] sm:$0xff] }
 0x8e1   : > { %v11639_v42 = vadd.f32 %v11638_v32, %v11637_v61  ;;  %v23529_v32 = vsel %vm11457_vm4, %v11991_v20, 0.0  ;;  %v12029_v15 = vadd.f32 %v23519_v31, %v12027_v40  ;;  %v23617_v40 = vsel %vm11457_vm4, %v11448_v48, 0.0  ;;  %v11998_v48 = vld [vmem:[#allocation2 + $0xb2] sm:$0xff] }
 0x8e3   : > { %v11641_v49 = vadd.f32 %v11640_v57, %v11639_v42  ;;  %v23535_v57 = vsel %vm11457_vm4, %v11445_v50, 0.0  ;;  %v12031_v29 = vadd.f32 %v23529_v32, %v12029_v15  ;;  %v12001_v50 = vld [vmem:[#allocation2 + $0xda] sm:$0xff] }
 0x8e5   : > { %v11643_v25 = vadd.f32 %v11642_v14, %v11641_v49  ;;  %v23547_v14 = vld [vmem:[%s25411_s7] sm:$0xff]  ;;  %v11498_v49 = vadd.f32 %v23535_v57, %v11496_v6  ;;  %v12033_v34 = vadd.f32 %v23538_v58, %v12031_v29  ;;  %v23648_v6 = vsel %vm11457_vm4, %v11996_v18, 0.0  ;;  %v23655_v29 = vld [vmem:[%s25411_s7 + $0xa8] sm:$0xff] }
 0x8e7   : > { %v11645_v12 = vadd.f32 %v11644_v30, %v11643_v25  ;;  %v11995_v30 = vld [vmem:[#allocation2 + $0x92] sm:$0xff]  ;;  %v23589_v25 = vsel %vm11457_vm4, %v11447_v13, 0.0  ;;  %v11500_v20 = vadd.f32 %v23560_v47, %v11498_v49  ;;  %v12035_v45 = vadd.f32 %v23563_v54, %v12033_v34  ;;  %v23642_v13 = vld [vmem:[%s25411_s7 + $0x88] sm:$0xff] }
 0x8e8   : > { %v23620_v44 = vsel %vm11457_vm4, %v11995_v30, 0.0 }
 0x8e9   : > { %v11647_v51 = vadd.f32 %v11646_v62, %v11645_v12  ;;  %v12317_v12 = vadd.f32 %v12315_v7, %v23458_v8  ;;  %v12037_v38 = vadd.f32 %v23592_v55, %v12035_v45  ;;  %v23663_v7 = vld [vmem:[%s25411_s7 + $0x98] sm:$0xff]  ;;  %v11452_v45 = vld [vmem:[#allocation2 + $0x140] sm:$0xff] }
 0x8ea   : > { %v12550_v8 = vld [vmem:[#allocation2 + $0x19] sm:$0xff]  ;;  %v12551_v62 = vld [vmem:[#allocation2 + $0x21] sm:$0xff] }
 0x8eb   : > { %v11649_v61 = vadd.f32 %v11648_v2, %v11647_v51  ;;  %v11502_v51 = vadd.f32 %v23589_v25, %v11500_v20  ;;  %v12319_v27 = vadd.f32 %v12317_v12, %v23463_v0  ;;  %v23645_v0 = vsel %vm11457_vm4, %v11449_v35, 0.0 }
 0x8ec   : > { %v12039_v49 = vadd.f32 %v23620_v44, %v12037_v38  ;;  %v23671_v35 = vsel %vm11457_vm4, %v11450_v28, 0.0  ;;  %v12000_v28 = vld [vmem:[#allocation2 + $0xca] sm:$0xff] }
 0x8ed   : > { %v11651_v42 = vadd.f32 %v11650_v43, %v11649_v61  ;;  %v11997_v43 = vld [vmem:[#allocation2 + $0xaa] sm:$0xff]  ;;  %v12321_v30 = vadd.f32 %v12319_v27, %v23469_v59  ;;  %v12867_v59 = vadd.f32 %v23481_v21, %v23473_v26  ;;  %v23693_v26 = vld [vmem:[%s25411_s7 + $0xa0] sm:$0xff] }
 0x8ee   : > { %v23632_v61 = vld [vmem:[%s25411_s7 + $0x50] sm:$0xff]  ;;  %v23674_v20 = vsel %vm11457_vm4, %v11997_v43, 0.0  ;;  %v23688_v43 = vld [vmem:[%s25411_s7 + $0x80] sm:$0xff] }
 0x8ef   : > { %v11653_v17 = vadd.f32 %v11652_v19, %v11651_v42  ;;  %v23637_v19 = vld [vmem:[%s25411_s7 + $0x70] sm:$0xff]  ;;  %v11504_v42 = vadd.f32 %v23617_v40, %v11502_v51  ;;  %25865 = vst [vmem:[#allocation83_spill] sm:$0xff] %v23674_v20  ;;  %v12041_v51 = vadd.f32 %v23648_v6, %v12039_v49  ;;  %v12323_v38 = vadd.f32 %v12321_v30, %v23478_v36 }
 0x8f0   : > { %v23698_v21 = vld [vmem:[%s25411_s7 + $0x90] sm:$0xff]  ;;  %v23701_v36 = vsel %vm11457_vm4, %v11451_v39, 0.0  ;;  %v12869_v15 = vadd.f32 %v12867_v59, %v23491_v9  ;;  %v23738_v9 = vld [vmem:[%s25411_s7 + $0xe8] sm:$0xff] }
 0x8f1   : > { %v11654_v2 = vrot.slane %v11653_v17, 4  ;;  %v11506_v12 = vadd.f32 %v23645_v0, %v11504_v42  ;;  %v23711_v49 = vld [vmem:[%s25411_s7 + $0xb0] sm:$0xff]  ;;  %v12043_v18 = vadd.f32 %v23674_v20, %v12041_v51  ;;  %v12325_v39 = vadd.f32 %v12323_v38, %v23488_v52  ;;  %v11455_v59 = vld [vmem:[#allocation2 + $0x168] sm:$0xff] }
 0x8f2   : > { %v11453_v30 = vld [vmem:[#allocation2 + $0x150] sm:$0xff]  ;;  %v12871_v20 = vadd.f32 %v12869_v15, %v23500_v23  ;;  %v25870_v23 = vpack.c.bf16 %v23581_v24, %v23576_v53  ;;  %v23800_v15 = vld [vmem:[%s25411_s7 + $0xe0] sm:$0xff] }
 0x8f3   : > { %v11655_v11 = vadd.f32 %v11654_v2, %v11653_v17  ;;  %v23668_v17 = vld [vmem:[%s25411_s7 + $0xb8] sm:$0xff]  ;;  %v11999_v2 = vld [vmem:[#allocation2 + $0xc2] sm:$0xff]  ;;  %v12327_v52 = vadd.f32 %v12325_v39, %v23497_v41  ;;  %v23744_v41 = vsel %vm11457_vm4, %v12000_v28, 0.0 }
 0x8f4   : > { %v23720_v42 = vsel %vm11457_vm4, %v11999_v2, 0.0  ;;  %v23733_v2 = vld [vmem:[%s25411_s7 + $0xc8] sm:$0xff]  ;;  %v12552_v28 = vld [vmem:[#allocation2 + $0x31] sm:$0xff] }
 0x8f5   : > { %v11656_v34 = vrot.slane %v11655_v11, 2  ;;  %25867 = vst [vmem:[#allocation85_spill] sm:$0xff] %v23720_v42  ;;  %v12554_v24 = vld [vmem:[#allocation2 + $0x49] sm:$0xff] }
 0x8f7   : > { %v11657_v27 = vadd.f32 %v11656_v34, %v11655_v11  ;;  %v23704_v11 = vsel %vm11457_vm4, %v11998_v48, 0.0  ;;  %v11508_v34 = vadd.f32 %v23671_v35, %v11506_v12  ;;  %v23717_v48 = vsel %vm11457_vm4, %v11452_v45, 0.0 }
 0x8f8   : > { %25866 = vst [vmem:[#allocation84_spill] sm:$0xff] %v23704_v11  ;;  %v12045_v51 = vadd.f32 %v23704_v11, %v12043_v18  ;;  %v23748_v18 = vsel %vm11457_vm4, %v11454_v37, 0.0  ;;  %v12329_v45 = vadd.f32 %v12327_v52, %v23507_v56  ;;  %v12553_v11 = vld [vmem:[#allocation2 + $0x39] sm:$0xff]  ;;  %v12583_v37 = vsel %vm11457_vm4, %v12551_v62, 0.0  ;;  %v11456_v52 = vld [vmem:[#allocation2 + $0x170] sm:$0xff] }
 0x8f9   : > { %v11658_v63 = vrot.slane %v11657_v27, 1  ;;  %v11510_v12 = vadd.f32 %v23701_v36, %v11508_v34  ;;  %v23741_v34 = vsel %vm11457_vm4, %v11453_v30, 0.0  ;;  %v23755_v30 = vsel %vm11457_vm4, %v12001_v50, 0.0 }
 0x8fa   : > { %v12047_v39 = vadd.f32 %v23720_v42, %v12045_v51  ;;  %v25868_v56 = vpack.c.bf16 %v23552_v4, %v23547_v14  ;;  %v25869_v51 = vpack.c.bf16 %v23568_v46, %v23557_v10  ;;  %v23770_v62 = vsel %vm11457_vm4, %v12552_v28, 0.0  ;;  %v11554_v10 = vld [vmem:[%s25411_s7 + $0xd8] sm:$0xff] }
 0x8fb   : > { %v11659_v38 = vadd.f32 %v11658_v63, %v11657_v27  ;;  %v11512_v63 = vadd.f32 %v23717_v48, %v11510_v12  ;;  %v12002_v27 = vld [vmem:[#allocation2 + $0xe2] sm:$0xff]  ;;  %v12582_v12 = vsel %vm11457_vm4, %v12550_v8, 0.0  ;;  %v12331_v8 = vadd.f32 %v12329_v45, %v23516_v3  ;;  %v11558_v3 = vld [vmem:[%s25411_s7 + $0xf8] sm:$0xff] }
 0x8fc   : > { %v12049_v42 = vadd.f32 %v23744_v41, %v12047_v39  ;;  %v25871_v14 = vpack.c.bf16 %v23599_v16, %v23586_v22  ;;  %v18735_v4 = vpack.c.bf16 %v23738_v9, %v23733_v2  ;;  %v23787_v46 = vsel %vm11457_vm4, %v11455_v59, 0.0  ;;  %v23795_v16 = vld [vmem:[%s25411_s7 + $0xc0] sm:$0xff] }
 0x8fd   : > { %15516 = vmatmul.mubr.msk.f32.vlgmr.msra.gmra.mrb[0].mxu0 %vm11457_vm4, %v11659_v38  ;;  %15517 = vmatmul.mubr.msk.f32.vlgmr.msra.gmra.mrb[0].mxu1 %vm11457_vm4, %v11659_v38  ;;  %v11514_v50 = vadd.f32 %v23741_v34, %v11512_v63  ;;  %v12003_v38 = vld [vmem:[#allocation2 + $0xf2] sm:$0xff]  ;;  %v23790_v53 = vsel %vm11457_vm4, %v12002_v27, 0.0  ;;  %v12584_v22 = vadd.f32 %v12583_v37, %v12582_v12  ;;  %v25872_v45 = vmov 0.0   ;;  %v12004_v9 = vld [vmem:[#allocation2 + $0xfa] sm:$0xff] }
 0x8fe   : > { %18726 = vmatpush1.bf16.msra.mxu0 %v25868_v56  ;;  %18742 = vmatpush1.bf16.msra.mxu1 %v25869_v51  ;;  %v12051_v59 = vadd.f32 %v23755_v30, %v12049_v42  ;;  %v12333_v63 = vadd.f32 %v12331_v8, %v23526_v33  ;;  %v23808_v27 = vsel %vm11457_vm4, %v12553_v11, 0.0  ;;  %v23811_v39 = vsel %vm11457_vm4, %v11456_v52, 0.0  ;;  %v12555_v12 = vld [vmem:[#allocation2 + $0x51] sm:$0xff]  ;;  %v15521_v8 = vld [vmem:[%s25411_s7 + $0x208] sm:$0xff] }
 0x8ff   : > { %18728 = vmatprep.subr.bf16.mxu0 %v25870_v23  ;;  %18744 = vmatprep.subr.bf16.mxu1 %v25871_v14  ;;  %v11516_v2 = vadd.f32 %v23748_v18, %v11514_v50  ;;  %v23814_v28 = vsel %vm11457_vm4, %v12003_v38, 0.0  ;;  %v12586_v37 = vadd.f32 %v23770_v62, %v12584_v22  ;;  %v12873_v56 = vadd.f32 %v12871_v20, %v23510_v5  ;;  %v11553_v11 = vld [vmem:[%s25411_s7 + $0xd0] sm:$0xff] }
 0x900   : > { %11905 = vmatprep.mubr.f32.mxu0 %v25872_v45  ;;  %11976 = vmatprep.mubr.f32.mxu1 %v25872_v45  ;;  %v25873_v51 = vpack.c.bf16 %v23614_v60, %v23609_v1  ;;  %v25874_v33 = vpack.c.bf16 %v23637_v19, %v23632_v61  ;;  %v11557_v42 = vld [vmem:[%s25411_s7 + $0xf0] sm:$0xff]  ;;  %v12053_v5 = vadd.f32 %v23790_v53, %v12051_v59  ;;  %v23834_v60 = vsel %vm11457_vm4, %v12554_v24, 0.0 }
 0x901   : > { %v11518_v52 = vadd.f32 %v23787_v46, %v11516_v2  ;;  %v12005_v50 = vld [vmem:[#allocation2 + $0x10a] sm:$0xff]  ;;  %v12335_v1 = vadd.f32 %v12333_v63, %v23535_v57  ;;  %v25875_v61 = vpack.c.bf16 %v23655_v29, %v23642_v13  ;;  %v25876_v19 = vpack.c.bf16 %v23668_v17, %v23663_v7  ;;  %v12556_v13 = vld [vmem:[#allocation2 + $0x61] sm:$0xff]  ;;  %v15523_v7 = vld [vmem:[%s25411_s7 + $0x218] sm:$0xff] }
 0x902   : > { %18730 = vmatpush1.bf16.msra.mxu0 %v25873_v51  ;;  %18746 = vmatpush1.bf16.msra.mxu1 %v25874_v33  ;;  %v18751_v20 = vpack.c.bf16 %v11558_v3, %v11554_v10  ;;  %v18737_v38 = vpack.c.bf16 %v23800_v15, %v23795_v16  ;;  %v15525_v57 = vld [vmem:[%s25411_s7 + $0x228] sm:$0xff]  ;;  %v23851_v23 = vsel %vm11457_vm4, %v12004_v9, 0.0  ;;  %v12588_v29 = vadd.f32 %v23808_v27, %v12586_v37  ;;  %v15527_v17 = vld [vmem:[%s25411_s7 + $0x238] sm:$0xff]  ;;  %v23885_v51 = vld [vmem:[%s25411_s7 + $0x220] sm:$0xff] }
 0x903   : > { %18732 = vmatprep.subr.bf16.mxu0 %v25875_v61  ;;  %18748 = vmatprep.subr.bf16.mxu1 %v25876_v19  ;;  %v11520_v14 = vadd.f32 %v23811_v39, %v11518_v52  ;;  %v12006_v10 = vld [vmem:[#allocation2 + $0x112] sm:$0xff]  ;;  %v12055_v3 = vadd.f32 %v23814_v28, %v12053_v5  ;;  %v12337_v24 = vadd.f32 %v12335_v1, %v23560_v47  ;;  %v23864_v22 = vsel %vm11457_vm4, %v12555_v12, 0.0  ;;  %v12557_v2 = vld [vmem:[#allocation2 + $0x69] sm:$0xff]  ;;  %v23880_v12 = vld [vmem:[%s25411_s7 + $0x200] sm:$0xff] }
 0x904   : > { %25877 = vst [vmem:[#allocation86_spill] sm:$0xff] %v23864_v22  ;;  %v18753_v16 = vpack.c.bf16 %v11557_v42, %v11553_v11  ;;  %v23867_v15 = vsel %vm11457_vm4, %v12005_v50, 0.0  ;;  %v12590_v9 = vadd.f32 %v23834_v60, %v12588_v29  ;;  %v12875_v59 = vadd.f32 %v12873_v56, %v23519_v31  ;;  %v12007_v31 = vld [vmem:[#allocation2 + $0x122] sm:$0xff]  ;;  %v23895_v33 = vld [vmem:[%s25411_s7 + $0x210] sm:$0xff] }
 0x905   : > { %v25878_v63 = vpack.c.bf16 %v23693_v26, %v23688_v43  ;;  %v25879_v37 = vpack.c.bf16 %v23711_v49, %v23698_v21  ;;  %v11521_v47 = vrot.slane %v11520_v14, 4  ;;  %v12057_v56 = vadd.f32 %v23851_v23, %v12055_v3  ;;  %v23900_v11 = vld [vmem:[%s25411_s7 + $0x230] sm:$0xff]  ;;  %v23909_v50 = vld [vmem:[%s25411_s7 + $0x248] sm:$0xff]  ;;  %v23946_v3 = vld [vmem:[%s25411_s7 + $0x260] sm:$0xff] }
 0x906   : > { %v12339_v43 = vadd.f32 %v12337_v24, %v23589_v25  ;;  %v23890_v26 = vsel %vm11457_vm4, %v12556_v13, 0.0  ;;  %v18755_v21 = vpack.c.bf16 %v15525_v57, %v15521_v8  ;;  %v18771_v49 = vpack.c.bf16 %v15527_v17, %v15523_v7  ;;  %v12558_v25 = vld [vmem:[#allocation2 + $0x79] sm:$0xff]  ;;  %v23914_v5 = vld [vmem:[%s25411_s7 + $0x268] sm:$0xff] }
 0x907   : > { %18734 = vmatpush1.bf16.msra.mxu0 %v25878_v63  ;;  %18750 = vmatpush1.bf16.msra.mxu1 %v25879_v37  ;;  %25880 = vst [vmem:[#allocation87_spill] sm:$0xff] %v23890_v26  ;;  %v23903_v42 = vsel %vm11457_vm4, %v12006_v10, 0.0  ;;  %v12592_v52 = vadd.f32 %v23864_v22, %v12590_v9  ;;  %v12008_v1 = vld [vmem:[#allocation2 + $0x12a] sm:$0xff]  ;;  %v12059_v61 = vadd.f32 %v23867_v15, %v12057_v56  ;;  %v23926_v57 = vld [vmem:[%s25411_s7 + $0x258] sm:$0xff]  ;;  %v23934_v29 = vsel %vm11457_vm4, %v12007_v31, 0.0  ;;  %v23941_v10 = vld [vmem:[%s25411_s7 + $0x240] sm:$0xff] }
 0x908   : > { %18736 = vmatprep.subr.bf16.mxu0 %v18735_v4  ;;  %18752 = vmatprep.subr.bf16.mxu1 %v18751_v20  ;;  %v11522_v4 = vadd.f32 %v11521_v47, %v11520_v14  ;;  %v12341_v19 = vadd.f32 %v12339_v43, %v23617_v40  ;;  %v23919_v20 = vsel %vm11457_vm4, %v12557_v2, 0.0  ;;  %v23931_v13 = vld [vmem:[%s25411_s7 + $0x278] sm:$0xff]  ;;  %v12559_v40 = vld [vmem:[#allocation2 + $0x81] sm:$0xff]  ;;  %v12877_v17 = vadd.f32 %v12875_v59, %v23529_v32  ;;  %v23960_v59 = vld [vmem:[%s25411_s7 + $0x250] sm:$0xff] }
 0x909   : > { %25881 = vst [vmem:[#allocation88_spill] sm:$0xff] %v23919_v20  ;;  %v12594_v7 = vadd.f32 %v23890_v26, %v12592_v52  ;;  %v12009_v24 = vld [vmem:[#allocation2 + $0x13a] sm:$0xff]  ;;  %v12061_v2 = vadd.f32 %v23903_v42, %v12059_v61  ;;  %v23951_v32 = vsel %vm11457_vm4, %v12558_v25, 0.0  ;;  %v23968_v63 = vsel %vm11457_vm4, %v12008_v1, 0.0  ;;  %v12560_v37 = vld [vmem:[#allocation2 + $0x91] sm:$0xff]  ;;  %v23974_v56 = vld [vmem:[%s25411_s7 + $0x288] sm:$0xff] }
 0x90a   : > { %v11523_v14 = vrot.slane %v11522_v4, 2  ;;  %v12343_v9 = vadd.f32 %v12341_v19, %v23645_v0  ;;  %25882 = vst [vmem:[#allocation89_spill] sm:$0xff] %v23951_v32  ;;  %v23965_v0 = vld [vmem:[%s25411_s7 + $0x270] sm:$0xff]  ;;  %v23979_v43 = vld [vmem:[%s25411_s7 + $0x2a8] sm:$0xff]  ;;  %v18775_v25 = vpack.c.bf16 %v23931_v13, %v23926_v57  ;;  %v23991_v52 = vld [vmem:[%s25411_s7 + $0x298] sm:$0xff]  ;;  %v23999_v1 = vsel %vm11457_vm4, %v12009_v24, 0.0 }
 0x90b   : > { %18738 = vmatpush1.bf16.msra.mxu0 %v18737_v38  ;;  %18754 = vmatpush1.bf16.msra.mxu1 %v18753_v16  ;;  %v18773_v38 = vpack.c.bf16 %v23900_v11, %v23895_v33  ;;  %v12596_v47 = vadd.f32 %v23919_v20, %v12594_v7  ;;  %v23984_v11 = vsel %vm11457_vm4, %v12559_v40, 0.0  ;;  %v12879_v19 = vadd.f32 %v12877_v17, %v23538_v58  ;;  %v24006_v57 = vld [vmem:[%s25411_s7 + $0x280] sm:$0xff]  ;;  %v12011_v7 = vld [vmem:[#allocation2 + $0x152] sm:$0xff] }
 0x90c   : > { %18756 = vmatprep.subr.bf16.mxu0 %v18755_v21  ;;  %18772 = vmatprep.subr.bf16.mxu1 %v18771_v49  ;;  %v11524_v31 = vadd.f32 %v11523_v14, %v11522_v4  ;;  %v12010_v21 = vld [vmem:[#allocation2 + $0x142] sm:$0xff]  ;;  %v12063_v49 = vadd.f32 %v23934_v29, %v12061_v2  ;;  %v12345_v33 = vadd.f32 %v12343_v9, %v23671_v35  ;;  %v23996_v4 = vld [vmem:[%s25411_s7 + $0x2b8] sm:$0xff]  ;;  %v24016_v2 = vsel %vm11457_vm4, %v12560_v37, 0.0  ;;  %v24025_v9 = vld [vmem:[%s25411_s7 + $0x290] sm:$0xff] }
 0x90d   : > { %25883 = vst [vmem:[#allocation90_spill] sm:$0xff] %v23984_v11  ;;  %v12561_v35 = vld [vmem:[#allocation2 + $0x99] sm:$0xff]  ;;  %v12598_v61 = vadd.f32 %v23951_v32, %v12596_v47  ;;  %25884 = vst [vmem:[#allocation91_spill] sm:$0xff] %v24016_v2  ;;  %v18777_v17 = vpack.c.bf16 %v23965_v0, %v23960_v59  ;;  %v24030_v47 = vld [vmem:[%s25411_s7 + $0x2b0] sm:$0xff] }
 0x90e   : > { %v11525_v40 = vrot.slane %v11524_v31, 1  ;;  %v24011_v13 = vld [vmem:[%s25411_s7 + $0x2a0] sm:$0xff]  ;;  %v12065_v14 = vadd.f32 %v23968_v63, %v12063_v49  ;;  %v12347_v24 = vadd.f32 %v12345_v33, %v23701_v36  ;;  %v24033_v36 = vsel %vm11457_vm4, %v12010_v21, 0.0  ;;  %v12562_v37 = vld [vmem:[#allocation2 + $0xa9] sm:$0xff] }
 0x90f   : > { %v12600_v49 = vadd.f32 %v23984_v11, %v12598_v61  ;;  %v24039_v59 = vld [vmem:[%s25411_s7 + $0x2c8] sm:$0xff]  ;;  %v12012_v58 = vld [vmem:[#allocation2 + $0x15a] sm:$0xff]  ;;  %v24049_v8 = vsel %vm11457_vm4, %v12561_v35, 0.0  ;;  %v18779_v61 = vpack.c.bf16 %v23996_v4, %v23991_v52  ;;  %v12563_v35 = vld [vmem:[#allocation2 + $0xb1] sm:$0xff]  ;;  %v18781_v32 = vpack.c.bf16 %v24030_v47, %v24025_v9 }
 0x910   : > { %v11526_v33 = vadd.f32 %v11525_v40, %v11524_v31  ;;  %v24044_v0 = vld [vmem:[%s25411_s7 + $0x2e8] sm:$0xff]  ;;  %v12067_v16 = vadd.f32 %v23999_v1, %v12065_v14  ;;  %v12349_v21 = vadd.f32 %v12347_v24, %v23717_v48  ;;  %25885 = vst [vmem:[#allocation92_spill] sm:$0xff] %v24049_v8  ;;  %v18763_v31 = vpack.c.bf16 %v23979_v43, %v23974_v56  ;;  %v24058_v40 = vld [vmem:[%s25411_s7 + $0x2d8] sm:$0xff]  ;;  %v24074_v56 = vld [vmem:[%s25411_s7 + $0x2c0] sm:$0xff] }
 0x911   : > { %v24063_v14 = vld [vmem:[%s25411_s7 + $0x2f8] sm:$0xff]  ;;  %v24066_v48 = vsel %vm11457_vm4, %v12011_v7, 0.0  ;;  %v12602_v24 = vadd.f32 %v24016_v2, %v12600_v49  ;;  %v24079_v43 = vld [vmem:[%s25411_s7 + $0x2e0] sm:$0xff]  ;;  %v12013_v52 = vld [vmem:[#allocation2 + $0x16a] sm:$0xff]  ;;  %v24084_v49 = vsel %vm11457_vm4, %v12562_v37, 0.0  ;;  %v25887_v2 = vpack.c.bf16 %v23885_v51, %v23880_v12 }
 0x912   : > { %15518 = vmatmul.mubr.msk.f32.vlgmr.msra.gmra.mrb[0].mxu0 %vm11457_vm4, %v11526_v33  ;;  %15519 = vmatmul.mubr.msk.f32.vlgmr.msra.gmra.mrb[0].mxu1 %vm11457_vm4, %v11526_v33  ;;  %v12069_v4 = vadd.f32 %v24033_v36, %v12067_v16  ;;  %v12351_v7 = vadd.f32 %v12349_v21, %v23741_v34  ;;  %25886 = vst [vmem:[#allocation93_spill] sm:$0xff] %v24084_v49  ;;  %v24097_v34 = vld [vmem:[%s25411_s7 + $0x2d0] sm:$0xff]  ;;  %v24100_v16 = vsel %vm11457_vm4, %v12012_v58, 0.0  ;;  %v12297_v9 = vld [vmem:[#allocation2 + $0x180] sm:$0xff]  ;;  %v24116_v37 = vsel %vm11457_vm4, %v12563_v35, 0.0  ;;  %v24141_v35 = vld [vmem:[%s25411_s7 + $0x318] sm:$0xff] }
 0x913   : > { %v12881_v33 = vadd.f32 %v12879_v19, %v23563_v54  ;;  %18758 = vmatpush1.bf16.msra.mxu0 %v25887_v2  ;;  %18774 = vmatpush1.bf16.msra.mxu1 %v18773_v38  ;;  %25888 = vst [vmem:[#allocation94_spill] sm:$0xff] %v24100_v16  ;;  %v12564_v54 = vld [vmem:[#allocation2 + $0xc1] sm:$0xff]  ;;  %v12604_v19 = vadd.f32 %v24049_v8, %v12602_v24  ;;  %v24111_v38 = vld [vmem:[%s25411_s7 + $0x2f0] sm:$0xff]  ;;  %25890 = vst [vmem:[#allocation95_spill] sm:$0xff] %v24116_v37  ;;  %v24135_v21 = vsel %vm11457_vm4, %v12013_v52, 0.0 }
 0x914   : > { %v25889_v12 = vpack.c.bf16 %v23914_v5, %v23909_v50  ;;  %18776 = vmatprep.subr.bf16.mxu1 %v18775_v25  ;;  %v12014_v2 = vld [vmem:[#allocation2 + $0x172] sm:$0xff]  ;;  %v12071_v58 = vadd.f32 %v24066_v48, %v12069_v4  ;;  %v12353_v47 = vadd.f32 %v12351_v7, %v23748_v18  ;;  %v18783_v50 = vpack.c.bf16 %v24063_v14, %v24058_v40  ;;  %v24127_v25 = vld [vmem:[%s25411_s7 + $0x308] sm:$0xff] }
 0x915   : > { %12184 = vmatprep.mubr.f32.mxu0 %v25872_v45  ;;  %12255 = vmatprep.mubr.f32.mxu1 %v25872_v45  ;;  %v24132_v18 = vld [vmem:[%s25411_s7 + $0x328] sm:$0xff]  ;;  %25891 = vst [vmem:[#allocation96_spill] sm:$0xff] %v24135_v21  ;;  %v12606_v14 = vadd.f32 %v24084_v49, %v12604_v19  ;;  %v24146_v24 = vld [vmem:[%s25411_s7 + $0x338] sm:$0xff]  ;;  %v24151_v52 = vsel %vm11457_vm4, %v12564_v54, 0.0  ;;  %v12883_v19 = vadd.f32 %v12881_v33, %v23592_v55  ;;  %v24160_v11 = vsel %vm11457_vm4, %v12014_v2, 0.0  ;;  %v24170_v55 = vld [vmem:[%s25411_s7 + $0x320] sm:$0xff] }
 0x916   : > { %18760 = vmatprep.subr.bf16.mxu0 %v25889_v12  ;;  %v12565_v40 = vld [vmem:[#allocation2 + $0xc9] sm:$0xff]  ;;  %v12073_v4 = vadd.f32 %v24100_v16, %v12071_v58  ;;  %v12355_v12 = vadd.f32 %v12353_v47, %v23787_v46  ;;  %25892 = vst [vmem:[#allocation97_spill] sm:$0xff] %v24151_v52  ;;  %v25893_v5 = vpack.c.bf16 %v23946_v3, %v23941_v10  ;;  %25894 = vst [vmem:[#allocation98_spill] sm:$0xff] %v24160_v11  ;;  %v24165_v46 = vld [vmem:[%s25411_s7 + $0x300] sm:$0xff] }
 0x917   : > { %v12298_v7 = vld [vmem:[#allocation2 + $0x188] sm:$0xff]  ;;  %18778 = vmatpush1.bf16.msra.mxu1 %v18777_v17  ;;  %v18785_v51 = vpack.c.bf16 %v24111_v38, %v24097_v34  ;;  %v24173_v10 = vsel %vm11457_vm4, %v12297_v9, 0.0  ;;  %v12566_v3 = vld [vmem:[#allocation2 + $0xd9] sm:$0xff]  ;;  %v12608_v17 = vadd.f32 %v24116_v37, %v12606_v14  ;;  %v24180_v34 = vld [vmem:[%s25411_s7 + $0x310] sm:$0xff]  ;;  %v12885_v2 = vadd.f32 %v12883_v19, %v23620_v44 }
 0x918   : > { %18762 = vmatpush1.bf16.msra.mxu0 %v25893_v5  ;;  %25895 = vst [vmem:[#allocation99_spill] sm:$0xff] %v24173_v10  ;;  %18780 = vmatprep.subr.bf16.mxu1 %v18779_v61  ;;  %v12075_v33 = vadd.f32 %v24135_v21, %v12073_v4  ;;  %v24185_v54 = vld [vmem:[%s25411_s7 + $0x330] sm:$0xff]  ;;  %v24190_v38 = vld [vmem:[%s25411_s7 + $0x348] sm:$0xff]  ;;  %v24194_v61 = vsel %vm11457_vm4, %v12565_v40, 0.0  ;;  %v18787_v58 = vpack.c.bf16 %v24132_v18, %v24127_v25  ;;  %v24212_v5 = vsel %vm11457_vm4, %v12298_v7, 0.0  ;;  %v24219_v18 = vld [vmem:[%s25411_s7 + $0x378] sm:$0xff] }
 0x919   : > { %18764 = vmatprep.subr.bf16.mxu0 %v18763_v31  ;;  %v12357_v31 = vadd.f32 %v12355_v12, %v23811_v39  ;;  %25896 = vst [vmem:[#allocation100_spill] sm:$0xff] %v24194_v61  ;;  %v18803_v9 = vpack.c.bf16 %v24146_v24, %v24141_v35  ;;  %v24204_v47 = vld [vmem:[%s25411_s7 + $0x368] sm:$0xff]  ;;  %v24209_v39 = vld [vmem:[%s25411_s7 + $0x358] sm:$0xff]  ;;  %25897 = vst [vmem:[#allocation101_spill] sm:$0xff] %v24212_v5  ;;  %v12610_v40 = vadd.f32 %v24151_v52, %v12608_v17 }
 0x91a   : > { %v12567_v44 = vld [vmem:[#allocation2 + $0xe1] sm:$0xff]  ;;  %v12077_v25 = vadd.f32 %v24160_v11, %v12075_v33  ;;  %v24233_v4 = vsel %vm11457_vm4, %v12566_v3, 0.0  ;;  %v12887_v7 = vadd.f32 %v12885_v2, %v23648_v6  ;;  %v25899_v12 = vpack.c.bf16 %v24011_v13, %v24006_v57  ;;  %v24246_v33 = vld [vmem:[%s25411_s7 + $0x350] sm:$0xff]  ;;  %v12569_v17 = vld [vmem:[#allocation2 + $0xf9] sm:$0xff] }
 0x91b   : > { %v24224_v14 = vld [vmem:[%s25411_s7 + $0x340] sm:$0xff]  ;;  %v12359_v24 = vadd.f32 %v24173_v10, %v12357_v31  ;;  %25898 = vst [vmem:[#allocation102_spill] sm:$0xff] %v24233_v4  ;;  %18782 = vmatpush1.bf16.msra.mxu1 %v18781_v32  ;;  %v24251_v6 = vld [vmem:[%s25411_s7 + $0x370] sm:$0xff]  ;;  %v12612_v57 = vadd.f32 %v24194_v61, %v12610_v40  ;;  %v25900_v32 = vpack.c.bf16 %v24044_v0, %v24039_v59  ;;  %v24260_v31 = vld [vmem:[%s25411_s7 + $0x388] sm:$0xff]  ;;  %v24269_v40 = vsel %vm11457_vm4, %v12567_v44, 0.0 }
 0x91c   : > { %v24229_v35 = vld [vmem:[%s25411_s7 + $0x360] sm:$0xff]  ;;  %18766 = vmatpush1.bf16.msra.mxu0 %v25899_v12  ;;  %v12568_v3 = vld [vmem:[#allocation2 + $0xf1] sm:$0xff]  ;;  %18784 = vmatprep.subr.bf16.mxu1 %v18783_v50  ;;  %v12078_v13 = vrot.slane %v12077_v25, 4  ;;  %v24265_v2 = vld [vmem:[%s25411_s7 + $0x3a8] sm:$0xff]  ;;  %25901 = vst [vmem:[#allocation103_spill] sm:$0xff] %v24269_v40 }
 0x91d   : > { %18768 = vmatprep.subr.bf16.mxu0 %v25900_v32  ;;  %v12361_v12 = vadd.f32 %v24212_v5, %v12359_v24  ;;  %v25902_v59 = vld [vmem:[#allocation83_spill] sm:$0xff]  ;;  %v12614_v10 = vadd.f32 %v24233_v4, %v12612_v57  ;;  %v13117_v61 = vld [vmem:[#allocation2 + $0x30] sm:$0xff]  ;;  %v13118_v52 = vld [vmem:[#allocation2 + $0x38] sm:$0xff]  ;;  %v24292_v19 = vsel %vm11457_vm4, %v12568_v3, 0.0  ;;  %v24302_v4 = vsel %vm11457_vm4, %v12569_v17, 0.0 }
 0x91e   : > { %v12889_v0 = vadd.f32 %v12887_v7, %v25902_v59  ;;  %v12079_v24 = vadd.f32 %v12078_v13, %v12077_v25  ;;  %v24284_v7 = vld [vmem:[%s25411_s7 + $0x398] sm:$0xff]  ;;  %25903 = vst [vmem:[#allocation83_spill] sm:$0xff] %v24292_v19  ;;  %v25904_v57 = vld [vmem:[#allocation84_spill] sm:$0xff]  ;;  %v25905_v25 = vpack.c.bf16 %v24079_v43, %v24074_v56  ;;  %v13149_v3 = vsel %vm11457_vm4, %v13117_v61, 0.0  ;;  %v24308_v56 = vld [vmem:[%s25411_s7 + $0x380] sm:$0xff] }
 0x91f   : > { %v24289_v59 = vld [vmem:[%s25411_s7 + $0x3b8] sm:$0xff]  ;;  %v13119_v50 = vld [vmem:[#allocation2 + $0x48] sm:$0xff]  ;;  %18786 = vmatpush1.bf16.msra.mxu1 %v18785_v51  ;;  %v12616_v5 = vadd.f32 %v24269_v40, %v12614_v10  ;;  %25906 = vst [vmem:[#allocation84_spill] sm:$0xff] %v24302_v4  ;;  %v13120_v37 = vld [vmem:[#allocation2 + $0x50] sm:$0xff]  ;;  %v12362_v51 = vrot.slane %v12361_v12, 4 }
 0x920   : > { %v12891_v32 = vadd.f32 %v12889_v0, %v25904_v57  ;;  %18770 = vmatpush1.bf16.msra.mxu0 %v25905_v25  ;;  %v12570_v44 = vld [vmem:[#allocation2 + $0x109] sm:$0xff]  ;;  %18804 = vmatprep.subr.bf16.mxu1 %v18803_v9  ;;  %v12080_v0 = vrot.slane %v12079_v24, 2  ;;  %v24313_v43 = vld [vmem:[%s25411_s7 + $0x3a0] sm:$0xff]  ;;  %v12571_v10 = vld [vmem:[#allocation2 + $0x111] sm:$0xff]  ;;  %v13150_v25 = vsel %vm11457_vm4, %v13118_v52, 0.0  ;;  %v13152_v49 = vsel %vm11457_vm4, %v13119_v50, 0.0 }
 0x921   : > { %18788 = vmatprep.subr.bf16.mxu0 %v18787_v58  ;;  %v25907_v17 = vld [vmem:[#allocation85_spill] sm:$0xff]  ;;  %v12618_v9 = vadd.f32 %v24292_v19, %v12616_v5  ;;  %v13121_v13 = vld [vmem:[#allocation2 + $0x60] sm:$0xff]  ;;  %v13151_v40 = vadd.f32 %v13150_v25, %v13149_v3  ;;  %v24334_v52 = vld [vmem:[%s25411_s7 + $0x3c8] sm:$0xff]  ;;  %v24342_v5 = vsel %vm11457_vm4, %v12570_v44, 0.0  ;;  %v24355_v19 = vsel %vm11457_vm4, %v12571_v10, 0.0 }
 0x922   : > { %v12893_v57 = vadd.f32 %v12891_v32, %v25907_v17  ;;  %v24322_v58 = vld [vmem:[%s25411_s7 + $0x390] sm:$0xff]  ;;  %v12081_v8 = vadd.f32 %v12080_v0, %v12079_v24  ;;  %v24339_v17 = vld [vmem:[%s25411_s7 + $0x3e8] sm:$0xff]  ;;  %v13154_v24 = vsel %vm11457_vm4, %v13120_v37, 0.0  ;;  %v24351_v0 = vld [vmem:[%s25411_s7 + $0x3d8] sm:$0xff]  ;;  %25908 = vst [vmem:[#allocation85_spill] sm:$0xff] %v24355_v19  ;;  %v12363_v10 = vadd.f32 %v12362_v51, %v12361_v12 }
 0x923   : > { %v24329_v32 = vld [vmem:[%s25411_s7 + $0x3b0] sm:$0xff]  ;;  %v12572_v25 = vld [vmem:[#allocation2 + $0x121] sm:$0xff]  ;;  %v12620_v61 = vadd.f32 %v24302_v4, %v12618_v9  ;;  %v13153_v20 = vadd.f32 %v13152_v49, %v13151_v40  ;;  %v13156_v49 = vsel %vm11457_vm4, %v13121_v13, 0.0  ;;  %v13123_v21 = vld [vmem:[#allocation2 + $0x78] sm:$0xff] }
 0x924   : > { %v12895_v50 = vadd.f32 %v12893_v57, %v23744_v41  ;;  %v13122_v44 = vld [vmem:[#allocation2 + $0x68] sm:$0xff]  ;;  %v12082_v11 = vrot.slane %v12081_v8, 1  ;;  %v24360_v41 = vld [vmem:[%s25411_s7 + $0x3f8] sm:$0xff]  ;;  %v24365_v37 = vld [vmem:[%s25411_s7 + $0x3c0] sm:$0xff]  ;;  %v24395_v51 = vsel %vm11457_vm4, %v12572_v25, 0.0 }
 0x925   : > { %v24370_v57 = vld [vmem:[%s25411_s7 + $0x3e0] sm:$0xff]  ;;  %v12573_v4 = vld [vmem:[#allocation2 + $0x129] sm:$0xff]  ;;  %v12622_v26 = vadd.f32 %v24342_v5, %v12620_v61  ;;  %v13155_v22 = vadd.f32 %v13154_v24, %v13153_v20 }
 0x926   : > { %v12897_v9 = vadd.f32 %v12895_v50, %v23755_v30  ;;  %v12083_v16 = vadd.f32 %v12082_v11, %v12081_v8  ;;  %v24382_v12 = vld [vmem:[%s25411_s7 + $0x3d0] sm:$0xff]  ;;  %v24392_v13 = vld [vmem:[%s25411_s7 + $0x408] sm:$0xff]  ;;  %v13158_v8 = vsel %vm11457_vm4, %v13122_v44, 0.0  ;;  %v12574_v24 = vld [vmem:[#allocation2 + $0x139] sm:$0xff]  ;;  %v24422_v61 = vsel %vm11457_vm4, %v12573_v4, 0.0 }
 0x927   : > { %v24387_v30 = vld [vmem:[%s25411_s7 + $0x3f0] sm:$0xff]  ;;  %v24406_v50 = vld [vmem:[%s25411_s7 + $0x428] sm:$0xff]  ;;  %v12624_v3 = vadd.f32 %v24355_v19, %v12622_v26  ;;  %v13124_v25 = vld [vmem:[#allocation2 + $0x80] sm:$0xff]  ;;  %v13157_v40 = vadd.f32 %v13156_v49, %v13155_v22  ;;  %v13160_v26 = vsel %vm11457_vm4, %v13123_v21, 0.0  ;;  %v25910_v49 = vpack.c.bf16 %v24185_v54, %v24180_v34 }
 0x928   : > { %v12899_v20 = vadd.f32 %v12897_v9, %v23790_v53  ;;  %15552 = vmatmul.mubr.msk.f32.vlgmr.msra.gmra.mrb[0].mxu0 %vm11457_vm4, %v12083_v16  ;;  %15553 = vmatmul.mubr.msk.f32.vlgmr.msra.gmra.mrb[0].mxu1 %vm11457_vm4, %v12083_v16  ;;  %v24414_v53 = vld [vmem:[%s25411_s7 + $0x418] sm:$0xff]  ;;  %v12364_v9 = vrot.slane %v12363_v10, 2  ;;  %v25909_v16 = vpack.c.bf16 %v24170_v55, %v24165_v46  ;;  %v24437_v4 = vld [vmem:[%s25411_s7 + $0x400] sm:$0xff]  ;;  %v13125_v21 = vld [vmem:[#allocation2 + $0x90] sm:$0xff]  ;;  %v25911_v46 = vpack.c.bf16 %v24204_v47, %v24190_v38 }
 0x929   : > { %v24419_v44 = vld [vmem:[%s25411_s7 + $0x438] sm:$0xff]  ;;  %18806 = vmatpush1.bf16.msra.mxu1 %v25910_v49  ;;  %v12575_v19 = vld [vmem:[#allocation2 + $0x141] sm:$0xff]  ;;  %v25912_v55 = vpack.c.bf16 %v24219_v18, %v24209_v39  ;;  %v24461_v38 = vld [vmem:[%s25411_s7 + $0x430] sm:$0xff]  ;;  %v24464_v47 = vsel %vm11457_vm4, %v12574_v24, 0.0  ;;  %v13162_v18 = vsel %vm11457_vm4, %v13124_v25, 0.0  ;;  %12468 = vmatprep.mubr.f32.mxu0 %v25872_v45 }
 0x92a   : > { %v12901_v22 = vadd.f32 %v12899_v20, %v23814_v28  ;;  %18790 = vmatpush1.bf16.msra.mxu0 %v25909_v16  ;;  %v12626_v28 = vadd.f32 %v24395_v51, %v12624_v3  ;;  %v13159_v20 = vadd.f32 %v13158_v8, %v13157_v40  ;;  %v24451_v54 = vld [vmem:[%s25411_s7 + $0x420] sm:$0xff]  ;;  %v24456_v3 = vld [vmem:[%s25411_s7 + $0x410] sm:$0xff]  ;;  %25913 = vst [vmem:[#allocation104_spill] sm:$0xff] %v24464_v47  ;;  %v24475_v8 = vld [vmem:[%s25411_s7 + $0x448] sm:$0xff] }
 0x92b   : > { %18792 = vmatprep.subr.bf16.mxu0 %v25911_v46  ;;  %18808 = vmatprep.subr.bf16.mxu1 %v25912_v55  ;;  %v12576_v16 = vld [vmem:[#allocation2 + $0x151] sm:$0xff]  ;;  %v24481_v25 = vld [vmem:[%s25411_s7 + $0x468] sm:$0xff]  ;;  %v12577_v34 = vld [vmem:[#allocation2 + $0x159] sm:$0xff] }
 0x92c   : > { %v12903_v39 = vadd.f32 %v12901_v22, %v23851_v23  ;;  %12539 = vmatprep.mubr.f32.mxu1 %v25872_v45  ;;  %v12628_v24 = vadd.f32 %v24422_v61, %v12626_v28  ;;  %v13126_v49 = vld [vmem:[#allocation2 + $0x98] sm:$0xff]  ;;  %v13161_v46 = vadd.f32 %v13160_v26, %v13159_v20  ;;  %v12365_v23 = vadd.f32 %v12364_v9, %v12363_v10 }
 0x92d   : > { %v24486_v22 = vld [vmem:[%s25411_s7 + $0x458] sm:$0xff]  ;;  %v24494_v28 = vsel %vm11457_vm4, %v12575_v19, 0.0  ;;  %v13164_v9 = vsel %vm11457_vm4, %v13125_v21, 0.0  ;;  %v25915_v26 = vpack.c.bf16 %v24229_v35, %v24224_v14  ;;  %v25916_v20 = vpack.c.bf16 %v24251_v6, %v24246_v33  ;;  %v24509_v19 = vld [vmem:[%s25411_s7 + $0x440] sm:$0xff]  ;;  %v13127_v21 = vld [vmem:[#allocation2 + $0xa8] sm:$0xff] }
 0x92e   : > { %v24491_v55 = vld [vmem:[%s25411_s7 + $0x478] sm:$0xff]  ;;  %25914 = vst [vmem:[#allocation105_spill] sm:$0xff] %v24494_v28  ;;  %v12905_v10 = vadd.f32 %v12903_v39, %v23867_v15  ;;  %v12630_v15 = vadd.f32 %v24464_v47, %v12628_v24  ;;  %v13163_v39 = vadd.f32 %v13162_v18, %v13161_v46  ;;  %v25917_v14 = vpack.c.bf16 %v24265_v2, %v24260_v31  ;;  %v24523_v6 = vld [vmem:[%s25411_s7 + $0x460] sm:$0xff]  ;;  %v24528_v18 = vld [vmem:[%s25411_s7 + $0x450] sm:$0xff] }
 0x92f   : > { %18794 = vmatpush1.bf16.msra.mxu0 %v25915_v26  ;;  %18810 = vmatpush1.bf16.msra.mxu1 %v25916_v20  ;;  %v25918_v35 = vpack.c.bf16 %v24289_v59, %v24284_v7  ;;  %v24533_v31 = vld [vmem:[%s25411_s7 + $0x470] sm:$0xff]  ;;  %v24536_v2 = vsel %vm11457_vm4, %v12576_v16, 0.0  ;;  %v13166_v59 = vsel %vm11457_vm4, %v13126_v49, 0.0  ;;  %v24547_v26 = vld [vmem:[%s25411_s7 + $0x488] sm:$0xff]  ;;  %v12366_v33 = vrot.slane %v12365_v23, 1  ;;  %v24558_v49 = vld [vmem:[%s25411_s7 + $0x498] sm:$0xff] }
 0x930   : > { %18796 = vmatprep.subr.bf16.mxu0 %v25917_v14  ;;  %v12907_v7 = vadd.f32 %v12905_v10, %v23903_v42  ;;  %v12578_v20 = vld [vmem:[#allocation2 + $0x169] sm:$0xff]  ;;  %v12632_v14 = vadd.f32 %v24494_v28, %v12630_v15  ;;  %v24563_v10 = vld [vmem:[%s25411_s7 + $0x4b8] sm:$0xff]  ;;  %v24566_v15 = vsel %vm11457_vm4, %v12577_v34, 0.0  ;;  %v25919_v46 = vpack.c.bf16 %v24313_v43, %v24308_v56  ;;  %v13129_v34 = vld [vmem:[#allocation2 + $0xc0] sm:$0xff] }
 0x931   : > { %18812 = vmatprep.subr.bf16.mxu1 %v25918_v35  ;;  %v13128_v16 = vld [vmem:[#allocation2 + $0xb0] sm:$0xff]  ;;  %v13165_v35 = vadd.f32 %v13164_v9, %v13163_v39  ;;  %v24553_v42 = vld [vmem:[%s25411_s7 + $0x4a8] sm:$0xff]  ;;  %v13168_v39 = vsel %vm11457_vm4, %v13127_v21, 0.0  ;;  %v25920_v24 = vpack.c.bf16 %v24329_v32, %v24322_v58  ;;  %v18825_v40 = vpack.c.bf16 %v24523_v6, %v24509_v19  ;;  %v24590_v58 = vld [vmem:[%s25411_s7 + $0x480] sm:$0xff] }
 0x932   : > { %v12909_v9 = vadd.f32 %v12907_v7, %v23934_v29  ;;  %v12579_v11 = vld [vmem:[#allocation2 + $0x171] sm:$0xff]  ;;  %v12634_v28 = vadd.f32 %v24536_v2, %v12632_v14  ;;  %v25921_v29 = vpack.c.bf16 %v24339_v17, %v24334_v52  ;;  %v25922_v56 = vpack.c.bf16 %v24360_v41, %v24351_v0  ;;  %v24595_v32 = vld [vmem:[%s25411_s7 + $0x4a0] sm:$0xff] }
 0x933   : > { %18798 = vmatpush1.bf16.msra.mxu0 %v25919_v46  ;;  %18814 = vmatpush1.bf16.msra.mxu1 %v25920_v24  ;;  %v13167_v47 = vadd.f32 %v13166_v59, %v13165_v35  ;;  %v18841_v43 = vpack.c.bf16 %v24533_v31, %v24528_v18  ;;  %v24600_v52 = vld [vmem:[%s25411_s7 + $0x490] sm:$0xff]  ;;  %v24603_v17 = vsel %vm11457_vm4, %v12578_v20, 0.0  ;;  %v13170_v41 = vsel %vm11457_vm4, %v13128_v16, 0.0  ;;  %v12580_v24 = vld [vmem:[#allocation2 + $0x181] sm:$0xff] }
 0x934   : > { %18800 = vmatprep.subr.bf16.mxu0 %v25921_v29  ;;  %18816 = vmatprep.subr.bf16.mxu1 %v25922_v56  ;;  %v12911_v0 = vadd.f32 %v12909_v9, %v23968_v63  ;;  %v18827_v21 = vpack.c.bf16 %v24553_v42, %v24547_v26  ;;  %v18843_v7 = vpack.c.bf16 %v24563_v10, %v24558_v49  ;;  %v24614_v59 = vld [vmem:[%s25411_s7 + $0x4b0] sm:$0xff]  ;;  %v13130_v20 = vld [vmem:[#allocation2 + $0xc8] sm:$0xff]  ;;  %v24630_v9 = vld [vmem:[%s25411_s7 + $0x4d8] sm:$0xff] }
 0x935   : > { %v12636_v46 = vadd.f32 %v24566_v15, %v12634_v28  ;;  %v13169_v14 = vadd.f32 %v13168_v39, %v13167_v47  ;;  %v12367_v35 = vadd.f32 %v12366_v33, %v12365_v23  ;;  %v24620_v63 = vld [vmem:[%s25411_s7 + $0x4c8] sm:$0xff]  ;;  %v24633_v28 = vsel %vm11457_vm4, %v12579_v11, 0.0  ;;  %v24648_v11 = vld [vmem:[%s25411_s7 + $0x4f8] sm:$0xff] }
 0x936   : > { %v24625_v16 = vld [vmem:[%s25411_s7 + $0x4e8] sm:$0xff]  ;;  %v12913_v47 = vadd.f32 %v12911_v0, %v23999_v1  ;;  %v13172_v23 = vsel %vm11457_vm4, %v13129_v34, 0.0  ;;  %v25923_v33 = vpack.c.bf16 %v24370_v57, %v24365_v37  ;;  %v25924_v39 = vpack.c.bf16 %v24387_v30, %v24382_v12  ;;  %v13131_v34 = vld [vmem:[#allocation2 + $0xd8] sm:$0xff]  ;;  %v24662_v30 = vld [vmem:[%s25411_s7 + $0x4c0] sm:$0xff] }
 0x937   : > { %v18829_v29 = vpack.c.bf16 %v24595_v32, %v24590_v58  ;;  %v12581_v56 = vld [vmem:[#allocation2 + $0x189] sm:$0xff]  ;;  %v12638_v1 = vadd.f32 %v24603_v17, %v12636_v46  ;;  %v13171_v0 = vadd.f32 %v13170_v41, %v13169_v14  ;;  %v25925_v37 = vpack.c.bf16 %v24406_v50, %v24392_v13  ;;  %v24667_v41 = vld [vmem:[%s25411_s7 + $0x4e0] sm:$0xff]  ;;  %v13686_v49 = vld [vmem:[#allocation2 + $0x52] sm:$0xff] }
 0x938   : > { %18802 = vmatpush1.bf16.msra.mxu0 %v25923_v33  ;;  %18818 = vmatpush1.bf16.msra.mxu1 %v25924_v39  ;;  %v25926_v57 = vpack.c.bf16 %v24419_v44, %v24414_v53  ;;  %v18845_v12 = vpack.c.bf16 %v24614_v59, %v24600_v52  ;;  %v24670_v13 = vsel %vm11457_vm4, %v12580_v24, 0.0  ;;  %v12915_v50 = vadd.f32 %v12913_v47, %v24033_v36  ;;  %v24679_v46 = vld [vmem:[%s25411_s7 + $0x4d0] sm:$0xff]  ;;  %v13132_v33 = vld [vmem:[#allocation2 + $0xe0] sm:$0xff]  ;;  %v24696_v47 = vld [vmem:[%s25411_s7 + $0x508] sm:$0xff] }
 0x939   : > { %18820 = vmatprep.subr.bf16.mxu0 %v25925_v37  ;;  %v13174_v53 = vsel %vm11457_vm4, %v13130_v20, 0.0  ;;  %v18831_v44 = vpack.c.bf16 %v24625_v16, %v24620_v63  ;;  %v24684_v14 = vld [vmem:[%s25411_s7 + $0x4f0] sm:$0xff]  ;;  %v12640_v24 = vadd.f32 %v24633_v28, %v12638_v1  ;;  %v13173_v39 = vadd.f32 %v13172_v23, %v13171_v0  ;;  %v24701_v1 = vld [vmem:[%s25411_s7 + $0x528] sm:$0xff]  ;;  %v24717_v37 = vld [vmem:[%s25411_s7 + $0x518] sm:$0xff] }
 0x93a   : > { %18836 = vmatprep.subr.bf16.mxu1 %v25926_v57  ;;  %v13434_v36 = vadd.f32 %v23808_v27, %v23770_v62  ;;  %v18847_v20 = vpack.c.bf16 %v24648_v11, %v24630_v9  ;;  %v24704_v23 = vsel %vm11457_vm4, %v12581_v56, 0.0  ;;  %v12917_v62 = vadd.f32 %v12915_v50, %v24066_v48  ;;  %v24722_v56 = vld [vmem:[%s25411_s7 + $0x538] sm:$0xff]  ;;  %v25936_v42 = vld [vmem:[#allocation88_spill] sm:$0xff] }
 0x93b   : > { %15586 = vmatmul.mubr.msk.f32.vlgmr.msra.gmra.mrb[0].mxu0 %vm11457_vm4, %v12367_v35  ;;  %15587 = vmatmul.mubr.msk.f32.vlgmr.msra.gmra.mrb[0].mxu1 %vm11457_vm4, %v12367_v35  ;;  %v13176_v27 = vsel %vm11457_vm4, %v13131_v34, 0.0  ;;  %v25927_v35 = vpack.c.bf16 %v24451_v54, %v24437_v4  ;;  %v25928_v0 = vpack.c.bf16 %v24461_v38, %v24456_v3  ;;  %v12642_v48 = vadd.f32 %v24670_v13, %v12640_v24  ;;  %v13133_v34 = vld [vmem:[#allocation2 + $0xf0] sm:$0xff]  ;;  %v25931_v24 = vld [vmem:[#allocation94_spill] sm:$0xff]  ;;  %v13138_v16 = vld [vmem:[#allocation2 + $0x128] sm:$0xff] }
 0x93c   : > { %v13175_v57 = vadd.f32 %v13174_v53, %v13173_v39  ;;  %v13436_v4 = vadd.f32 %v13434_v36, %v23834_v60  ;;  %v25929_v54 = vpack.c.bf16 %v24481_v25, %v24475_v8  ;;  %v25930_v3 = vpack.c.bf16 %v24491_v55, %v24486_v22  ;;  %v24739_v53 = vld [vmem:[%s25411_s7 + $0x500] sm:$0xff]  ;;  %12751 = vmatprep.mubr.f32.mxu0 %v25872_v45  ;;  %v13134_v55 = vld [vmem:[#allocation2 + $0xf8] sm:$0xff] }
 0x93d   : > { %18822 = vmatpush1.bf16.msra.mxu0 %v25927_v35  ;;  %18838 = vmatpush1.bf16.msra.mxu1 %v25928_v0  ;;  %v12863_v60 = vld [vmem:[#allocation2 + $0x182] sm:$0xff]  ;;  %v12919_v39 = vadd.f32 %v12917_v62, %v25931_v24  ;;  %v13178_v8 = vsel %vm11457_vm4, %v13132_v33, 0.0  ;;  %v12644_v25 = vadd.f32 %v24704_v23, %v12642_v48  ;;  %v25932_v35 = vld [vmem:[#allocation86_spill] sm:$0xff]  ;;  %v18851_v62 = vpack.c.bf16 %v24701_v1, %v24696_v47  ;;  %v24759_v48 = vld [vmem:[%s25411_s7 + $0x510] sm:$0xff] }
 0x93e   : > { %18824 = vmatprep.subr.bf16.mxu0 %v25929_v54  ;;  %18840 = vmatprep.subr.bf16.mxu1 %v25930_v3  ;;  %v24749_v22 = vld [vmem:[%s25411_s7 + $0x520] sm:$0xff]  ;;  %v13177_v36 = vadd.f32 %v13176_v27, %v13175_v57  ;;  %v13438_v0 = vadd.f32 %v13436_v4, %v25932_v35  ;;  %v13683_v54 = vld [vmem:[#allocation2 + $0x32] sm:$0xff]  ;;  %v12864_v3 = vld [vmem:[#allocation2 + $0x18a] sm:$0xff]  ;;  %v13180_v38 = vsel %vm11457_vm4, %v13133_v34, 0.0  ;;  %v24775_v4 = vsel %vm11457_vm4, %v12863_v60, 0.0 }
 0x93f   : > { %12822 = vmatprep.mubr.f32.mxu1 %v25872_v45  ;;  %v25933_v24 = vld [vmem:[#allocation96_spill] sm:$0xff]  ;;  %v12645_v27 = vrot.slane %v12644_v25, 4  ;;  %v25934_v34 = vld [vmem:[#allocation87_spill] sm:$0xff]  ;;  %v13684_v33 = vld [vmem:[#allocation2 + $0x3a] sm:$0xff]  ;;  %v13182_v18 = vsel %vm11457_vm4, %v13134_v55, 0.0  ;;  %v13715_v31 = vsel %vm11457_vm4, %v13683_v54, 0.0 }
 0x940   : > { %v12921_v50 = vadd.f32 %v12919_v39, %v25933_v24  ;;  %v24772_v57 = vld [vmem:[%s25411_s7 + $0x530] sm:$0xff]  ;;  %v13135_v39 = vld [vmem:[#allocation2 + $0x108] sm:$0xff]  ;;  %v13179_v35 = vadd.f32 %v13178_v8, %v13177_v36  ;;  %v13440_v24 = vadd.f32 %v13438_v0, %v25934_v34  ;;  %v25935_v19 = vld [vmem:[#allocation98_spill] sm:$0xff]  ;;  %v24790_v60 = vsel %vm11457_vm4, %v12864_v3, 0.0 }
 0x941   : > { %18826 = vmatpush1.bf16.msra.mxu0 %v18825_v40  ;;  %18842 = vmatpush1.bf16.msra.mxu1 %v18841_v43  ;;  %v18853_v40 = vpack.c.bf16 %v24749_v22, %v24739_v53  ;;  %v12646_v43 = vadd.f32 %v12645_v27, %v12644_v25  ;;  %v13136_v8 = vld [vmem:[#allocation2 + $0x110] sm:$0xff]  ;;  %v18869_v10 = vpack.c.bf16 %v24772_v57, %v24759_v48  ;;  %v13184_v25 = vsel %vm11457_vm4, %v13135_v39, 0.0  ;;  %v24812_v0 = vld [vmem:[%s25411_s7 + $0x568] sm:$0xff]  ;;  %v13137_v54 = vld [vmem:[#allocation2 + $0x120] sm:$0xff] }
 0x942   : > { %18828 = vmatprep.subr.bf16.mxu0 %v18827_v21  ;;  %18844 = vmatprep.subr.bf16.mxu1 %v18843_v7  ;;  %v12923_v6 = vadd.f32 %v12921_v50, %v25935_v19  ;;  %v13181_v26 = vadd.f32 %v13180_v38, %v13179_v35  ;;  %v13442_v21 = vadd.f32 %v13440_v24, %v25936_v42  ;;  %v13685_v36 = vld [vmem:[#allocation2 + $0x4a] sm:$0xff]  ;;  %v13716_v55 = vsel %vm11457_vm4, %v13684_v33, 0.0  ;;  %v25937_v27 = vld [vmem:[#allocation89_spill] sm:$0xff]  ;;  %v13687_v35 = vld [vmem:[#allocation2 + $0x62] sm:$0xff] }
 0x943   : > { %v24798_v7 = vld [vmem:[%s25411_s7 + $0x548] sm:$0xff]  ;;  %v12647_v38 = vrot.slane %v12646_v43, 2  ;;  %v13717_v33 = vadd.f32 %v13716_v55, %v13715_v31  ;;  %v24824_v58 = vld [vmem:[%s25411_s7 + $0x558] sm:$0xff]  ;;  %v13186_v52 = vsel %vm11457_vm4, %v13136_v8, 0.0  ;;  %v13718_v59 = vsel %vm11457_vm4, %v13685_v36, 0.0  ;;  %v24841_v19 = vld [vmem:[%s25411_s7 + $0x540] sm:$0xff] }
 0x944   : > { %v12925_v50 = vadd.f32 %v24775_v4, %v12923_v6  ;;  %v13183_v3 = vadd.f32 %v13182_v18, %v13181_v26  ;;  %v13444_v39 = vadd.f32 %v13442_v21, %v25937_v27  ;;  %v24833_v63 = vld [vmem:[%s25411_s7 + $0x578] sm:$0xff]  ;;  %v18855_v24 = vpack.c.bf16 %v24812_v0, %v24798_v7  ;;  %v24846_v6 = vld [vmem:[%s25411_s7 + $0x560] sm:$0xff]  ;;  %v24851_v18 = vld [vmem:[%s25411_s7 + $0x550] sm:$0xff] }
 0x945   : > { %18830 = vmatpush1.bf16.msra.mxu0 %v18829_v29  ;;  %18846 = vmatpush1.bf16.msra.mxu1 %v18845_v12  ;;  %v13720_v29 = vsel %vm11457_vm4, %v13686_v49, 0.0  ;;  %v12648_v12 = vadd.f32 %v12647_v38, %v12646_v43  ;;  %v25938_v11 = vld [vmem:[#allocation90_spill] sm:$0xff]  ;;  %v13719_v34 = vadd.f32 %v13718_v59, %v13717_v33  ;;  %v13188_v43 = vsel %vm11457_vm4, %v13137_v54, 0.0  ;;  %v24864_v36 = vld [vmem:[%s25411_s7 + $0x570] sm:$0xff]  ;;  %v24945_v53 = vld [vmem:[%s25411_s7 + $0x5e8] sm:$0xff] }
 0x946   : > { %18832 = vmatprep.subr.bf16.mxu0 %v18831_v44  ;;  %18848 = vmatprep.subr.bf16.mxu1 %v18847_v20  ;;  %v12927_v32 = vadd.f32 %v24790_v60, %v12925_v50  ;;  %v13185_v9 = vadd.f32 %v13184_v25, %v13183_v3  ;;  %v13446_v44 = vadd.f32 %v13444_v39, %v25938_v11  ;;  %v13688_v20 = vld [vmem:[#allocation2 + $0x6a] sm:$0xff]  ;;  %v13722_v8 = vsel %vm11457_vm4, %v13687_v35, 0.0  ;;  %v13139_v49 = vld [vmem:[#allocation2 + $0x138] sm:$0xff]  ;;  %v25941_v50 = vld [vmem:[#allocation91_spill] sm:$0xff] }
 0x947   : > { %v25939_v26 = vpack.c.bf16 %v24667_v41, %v24662_v30  ;;  %v25940_v42 = vpack.c.bf16 %v24684_v14, %v24679_v46  ;;  %v12649_v21 = vrot.slane %v12648_v12, 1  ;;  %v13689_v55 = vld [vmem:[#allocation2 + $0x7a] sm:$0xff]  ;;  %v13721_v38 = vadd.f32 %v13720_v29, %v13719_v34  ;;  %v24878_v46 = vld [vmem:[%s25411_s7 + $0x588] sm:$0xff]  ;;  %v24915_v29 = vld [vmem:[%s25411_s7 + $0x590] sm:$0xff] }
 0x948   : > { %v12928_v31 = vrot.slane %v12927_v32, 4  ;;  %v13187_v7 = vadd.f32 %v13186_v52, %v13185_v9  ;;  %v13448_v25 = vadd.f32 %v13446_v44, %v25941_v50  ;;  %v25942_v30 = vpack.c.bf16 %v24722_v56, %v24717_v37  ;;  %v24883_v14 = vld [vmem:[%s25411_s7 + $0x5a8] sm:$0xff]  ;;  %v24888_v47 = vld [vmem:[%s25411_s7 + $0x598] sm:$0xff]  ;;  %v13140_v54 = vld [vmem:[#allocation2 + $0x140] sm:$0xff] }
 0x949   : > { %18834 = vmatpush1.bf16.msra.mxu0 %v25939_v26  ;;  %18850 = vmatpush1.bf16.msra.mxu1 %v25940_v42  ;;  %v18871_v41 = vpack.c.bf16 %v24833_v63, %v24824_v58  ;;  %v13190_v37 = vsel %vm11457_vm4, %v13138_v16, 0.0  ;;  %v13724_v56 = vsel %vm11457_vm4, %v13688_v20, 0.0  ;;  %v24895_v0 = vld [vmem:[%s25411_s7 + $0x5b8] sm:$0xff]  ;;  %v25943_v27 = vld [vmem:[#allocation92_spill] sm:$0xff]  ;;  %v13690_v35 = vld [vmem:[#allocation2 + $0x82] sm:$0xff]  ;;  %v13723_v33 = vadd.f32 %v13722_v8, %v13721_v38 }
 0x94a   : > { %18852 = vmatprep.subr.bf16.mxu0 %v18851_v62  ;;  %18868 = vmatprep.subr.bf16.mxu1 %v25942_v30  ;;  %v12929_v1 = vadd.f32 %v12928_v31, %v12927_v32  ;;  %v12650_v62 = vadd.f32 %v12649_v21, %v12648_v12  ;;  %v13189_v3 = vadd.f32 %v13188_v43, %v13187_v7  ;;  %v24905_v52 = vld [vmem:[%s25411_s7 + $0x580] sm:$0xff]  ;;  %v13192_v12 = vsel %vm11457_vm4, %v13139_v49, 0.0  ;;  %v24924_v16 = vld [vmem:[%s25411_s7 + $0x5b0] sm:$0xff]  ;;  %v24940_v43 = vld [vmem:[%s25411_s7 + $0x5c8] sm:$0xff] }
 0x94b   : > { %v13450_v39 = vadd.f32 %v13448_v25, %v25943_v27  ;;  %v18857_v58 = vpack.c.bf16 %v24846_v6, %v24841_v19  ;;  %v18873_v32 = vpack.c.bf16 %v24864_v36, %v24851_v18  ;;  %v24910_v59 = vld [vmem:[%s25411_s7 + $0x5a0] sm:$0xff]  ;;  %v13726_v63 = vsel %vm11457_vm4, %v13689_v55, 0.0  ;;  %v13141_v11 = vld [vmem:[#allocation2 + $0x150] sm:$0xff]  ;;  %v24950_v22 = vld [vmem:[%s25411_s7 + $0x5d8] sm:$0xff] }
 0x94c   : > { %15620 = vmatmul.mubr.msk.f32.vlgmr.msra.gmra.mrb[0].mxu0 %vm11457_vm4, %v12650_v62  ;;  %15621 = vmatmul.mubr.msk.f32.vlgmr.msra.gmra.mrb[0].mxu1 %vm11457_vm4, %v12650_v62  ;;  %v12930_v9 = vrot.slane %v12929_v1, 2  ;;  %v13191_v44 = vadd.f32 %v13190_v37, %v13189_v3  ;;  %v25944_v20 = vld [vmem:[#allocation93_spill] sm:$0xff]  ;;  %v13725_v6 = vadd.f32 %v13724_v56, %v13723_v33  ;;  %v18859_v18 = vpack.c.bf16 %v24883_v14, %v24878_v46  ;;  %v25945_v26 = vld [vmem:[#allocation95_spill] sm:$0xff]  ;;  %v13692_v21 = vld [vmem:[#allocation2 + $0x9a] sm:$0xff] }
 0x94d   : > { %v13452_v34 = vadd.f32 %v13450_v39, %v25944_v20  ;;  %v13691_v19 = vld [vmem:[#allocation2 + $0x92] sm:$0xff]  ;;  %18854 = vmatpush1.bf16.msra.mxu0 %v18853_v40  ;;  %18870 = vmatpush1.bf16.msra.mxu1 %v18869_v10  ;;  %v18875_v31 = vpack.c.bf16 %v24895_v0, %v24888_v47  ;;  %v13194_v48 = vsel %vm11457_vm4, %v13140_v54, 0.0  ;;  %v13728_v57 = vsel %vm11457_vm4, %v13690_v35, 0.0  ;;  %v24970_v50 = vld [vmem:[%s25411_s7 + $0x5e0] sm:$0xff]  ;;  %v13143_v46 = vld [vmem:[#allocation2 + $0x168] sm:$0xff] }
 0x94e   : > { %18856 = vmatprep.subr.bf16.mxu0 %v18855_v24  ;;  %18872 = vmatprep.subr.bf16.mxu1 %v18871_v41  ;;  %v15653_v40 = vld [vmem:[%s25411_s7 + $0x5f8] sm:$0xff]  ;;  %v13193_v8 = vadd.f32 %v13192_v12, %v13191_v44  ;;  %v13727_v36 = vadd.f32 %v13726_v63, %v13725_v6  ;;  %v18861_v49 = vpack.c.bf16 %v24910_v59, %v24905_v52  ;;  %v24965_v24 = vld [vmem:[%s25411_s7 + $0x5c0] sm:$0xff]  ;;  %v24975_v25 = vld [vmem:[%s25411_s7 + $0x5d0] sm:$0xff]  ;;  %v13196_v55 = vsel %vm11457_vm4, %v13141_v11, 0.0 }
 0x94f   : > { %v13142_v10 = vld [vmem:[#allocation2 + $0x158] sm:$0xff]  ;;  %v13454_v42 = vadd.f32 %v13452_v34, %v25945_v26  ;;  %v18877_v7 = vpack.c.bf16 %v24924_v16, %v24915_v29  ;;  %13034 = vmatprep.mubr.f32.mxu0 %v25872_v45  ;;  %13105 = vmatprep.mubr.f32.mxu1 %v25872_v45  ;;  %v13730_v38 = vsel %vm11457_vm4, %v13691_v19, 0.0  ;;  %v24984_v30 = vld [vmem:[%s25411_s7 + $0x5f0] sm:$0xff]  ;;  %v12931_v41 = vadd.f32 %v12930_v9, %v12929_v1  ;;  %v24993_v3 = vld [vmem:[%s25411_s7 + $0x608] sm:$0xff] }
 0x950   : > { %v13195_v14 = vadd.f32 %v13194_v48, %v13193_v8  ;;  %v25946_v47 = vld [vmem:[#allocation97_spill] sm:$0xff]  ;;  %v13693_v56 = vld [vmem:[#allocation2 + $0xaa] sm:$0xff]  ;;  %v13729_v62 = vadd.f32 %v13728_v57, %v13727_v36  ;;  %v18863_v0 = vpack.c.bf16 %v24945_v53, %v24940_v43  ;;  %v18879_v54 = vpack.c.bf16 %v15653_v40, %v24950_v22  ;;  %v25014_v9 = vld [vmem:[%s25411_s7 + $0x600] sm:$0xff] }
 0x951   : > { %v13456_v37 = vadd.f32 %v13454_v42, %v25946_v47  ;;  %18858 = vmatpush1.bf16.msra.mxu0 %v18857_v58  ;;  %18874 = vmatpush1.bf16.msra.mxu1 %v18873_v32  ;;  %v15661_v1 = vld [vmem:[%s25411_s7 + $0x628] sm:$0xff]  ;;  %v15659_v27 = vld [vmem:[%s25411_s7 + $0x618] sm:$0xff]  ;;  %v13198_v39 = vsel %vm11457_vm4, %v13142_v10, 0.0  ;;  %v13732_v35 = vsel %vm11457_vm4, %v13692_v21, 0.0  ;;  %v13144_v58 = vld [vmem:[#allocation2 + $0x170] sm:$0xff]  ;;  %v18865_v63 = vpack.c.bf16 %v24970_v50, %v24965_v24 }
 0x952   : > { %18860 = vmatprep.subr.bf16.mxu0 %v18859_v18  ;;  %18876 = vmatprep.subr.bf16.mxu1 %v18875_v31  ;;  %v15663_v33 = vld [vmem:[%s25411_s7 + $0x638] sm:$0xff]  ;;  %v13197_v32 = vadd.f32 %v13196_v55, %v13195_v14  ;;  %v25947_v52 = vld [vmem:[#allocation100_spill] sm:$0xff]  ;;  %v13731_v12 = vadd.f32 %v13730_v38, %v13729_v62  ;;  %v18881_v16 = vpack.c.bf16 %v24984_v30, %v24975_v25  ;;  %v13200_v11 = vsel %vm11457_vm4, %v13143_v46, 0.0  ;;  %v25021_v34 = vld [vmem:[%s25411_s7 + $0x620] sm:$0xff] }
 0x953   : > { %v13458_v59 = vadd.f32 %v13456_v37, %v25947_v52  ;;  %v13694_v29 = vld [vmem:[#allocation2 + $0xb2] sm:$0xff]  ;;  %v13734_v44 = vsel %vm11457_vm4, %v13693_v56, 0.0  ;;  %v12932_v20 = vrot.slane %v12931_v41, 1  ;;  %v25948_v18 = vld [vmem:[#allocation102_spill] sm:$0xff]  ;;  %v13695_v43 = vld [vmem:[#allocation2 + $0xc2] sm:$0xff]  ;;  %v18883_v22 = vpack.c.bf16 %v15661_v1, %v24993_v3 }
 0x954   : > { %v25026_v19 = vld [vmem:[%s25411_s7 + $0x610] sm:$0xff]  ;;  %v13199_v6 = vadd.f32 %v13198_v39, %v13197_v32  ;;  %v13733_v53 = vadd.f32 %v13732_v35, %v13731_v12  ;;  %v18899_v48 = vpack.c.bf16 %v15663_v33, %v15659_v27  ;;  %v15665_v40 = vld [vmem:[%s25411_s7 + $0x648] sm:$0xff]  ;;  %v13202_v8 = vsel %vm11457_vm4, %v13144_v58, 0.0  ;;  %v15667_v42 = vld [vmem:[%s25411_s7 + $0x658] sm:$0xff] }
 0x955   : > { %v13460_v31 = vadd.f32 %v13458_v59, %v25948_v18  ;;  %18862 = vmatpush1.bf16.msra.mxu0 %v18861_v49  ;;  %18878 = vmatpush1.bf16.msra.mxu1 %v18877_v7  ;;  %v15662_v57 = vld [vmem:[%s25411_s7 + $0x630] sm:$0xff]  ;;  %v15669_v10 = vld [vmem:[%s25411_s7 + $0x668] sm:$0xff]  ;;  %v13736_v26 = vsel %vm11457_vm4, %v13694_v29, 0.0  ;;  %v15671_v21 = vld [vmem:[%s25411_s7 + $0x678] sm:$0xff]  ;;  %v18885_v25 = vpack.c.bf16 %v25021_v34, %v25014_v9  ;;  %v13738_v46 = vsel %vm11457_vm4, %v13695_v43, 0.0 }
 0x956   : > { %18864 = vmatprep.subr.bf16.mxu0 %v18863_v0  ;;  %18880 = vmatprep.subr.bf16.mxu1 %v18879_v54  ;;  %v13201_v36 = vadd.f32 %v13200_v11, %v13199_v6  ;;  %v25949_v49 = vld [vmem:[#allocation103_spill] sm:$0xff]  ;;  %v13696_v24 = vld [vmem:[#allocation2 + $0xca] sm:$0xff]  ;;  %v13735_v50 = vadd.f32 %v13734_v44, %v13733_v53  ;;  %v12933_v14 = vadd.f32 %v12932_v20, %v12931_v41  ;;  %v13147_v37 = vld [vmem:[#allocation2 + $0x198] sm:$0xff] }
 0x957   : > { %v13462_v7 = vadd.f32 %v13460_v31, %v25949_v49  ;;  %v25053_v55 = vld [vmem:[%s25411_s7 + $0x640] sm:$0xff]  ;;  %v25063_v30 = vld [vmem:[%s25411_s7 + $0x650] sm:$0xff]  ;;  %v18901_v1 = vpack.c.bf16 %v15662_v57, %v25026_v19  ;;  %v18887_v27 = vpack.c.bf16 %v15669_v10, %v15665_v40  ;;  %v18903_v39 = vpack.c.bf16 %v15671_v21, %v15667_v42  ;;  %v15673_v41 = vld [vmem:[%s25411_s7 + $0x688] sm:$0xff] }
 0x958   : > { %v25058_v38 = vld [vmem:[%s25411_s7 + $0x660] sm:$0xff]  ;;  %v15670_v47 = vld [vmem:[%s25411_s7 + $0x670] sm:$0xff]  ;;  %v13203_v56 = vadd.f32 %v13202_v8, %v13201_v36  ;;  %v13737_v3 = vadd.f32 %v13736_v26, %v13735_v50  ;;  %v15677_v35 = vld [vmem:[%s25411_s7 + $0x6a8] sm:$0xff]  ;;  %v13740_v58 = vsel %vm11457_vm4, %v13696_v24, 0.0  ;;  %v13208_v20 = vsel %vm11457_vm4, %v13147_v37, 0.0 }
 0x959   : > { %v25950_v62 = vld [vmem:[#allocation83_spill] sm:$0xff]  ;;  %v13697_v54 = vld [vmem:[#allocation2 + $0xda] sm:$0xff]  ;;  %18866 = vmatpush1.bf16.msra.mxu0 %v18865_v63  ;;  %18882 = vmatpush1.bf16.msra.mxu1 %v18881_v16  ;;  %v25952_v12 = vld [vmem:[#allocation84_spill] sm:$0xff]  ;;  %v18889_v11 = vpack.c.bf16 %v25058_v38, %v25053_v55  ;;  %v18905_v44 = vpack.c.bf16 %v15670_v47, %v25063_v30 }
 0x95a   : > { %v13464_v0 = vadd.f32 %v13462_v7, %v25950_v62  ;;  %v15675_v33 = vld [vmem:[%s25411_s7 + $0x698] sm:$0xff]  ;;  %18884 = vmatprep.subr.bf16.mxu0 %v18883_v22  ;;  %18900 = vmatprep.subr.bf16.mxu1 %v18899_v48  ;;  %v13148_v52 = vld [vmem:[#allocation2 + $0x1a0] sm:$0xff]  ;;  %v13739_v9 = vadd.f32 %v13738_v46, %v13737_v3  ;;  %v13742_v34 = vsel %vm11457_vm4, %v13697_v54, 0.0  ;;  %v18891_v22 = vpack.c.bf16 %v15677_v35, %v15673_v41  ;;  %v15674_v40 = vld [vmem:[%s25411_s7 + $0x690] sm:$0xff] }
 0x95b   : > { %v15679_v32 = vld [vmem:[%s25411_s7 + $0x6b8] sm:$0xff]  ;;  %v25951_v59 = vld [vmem:[#allocation99_spill] sm:$0xff]  ;;  %v15678_v10 = vld [vmem:[%s25411_s7 + $0x6b0] sm:$0xff] }
 0x95c   : > { %v13205_v29 = vadd.f32 %v13203_v56, %v25951_v59  ;;  %v13466_v63 = vadd.f32 %v13464_v0, %v25952_v12  ;;  %v13698_v16 = vld [vmem:[#allocation2 + $0xe2] sm:$0xff]  ;;  %15654 = vmatmul.mubr.msk.f32.vlgmr.msra.gmra.mrb[0].mxu0 %vm11457_vm4, %v12933_v14  ;;  %15655 = vmatmul.mubr.msk.f32.vlgmr.msra.gmra.mrb[0].mxu1 %vm11457_vm4, %v12933_v14  ;;  %v25953_v6 = vld [vmem:[#allocation101_spill] sm:$0xff]  ;;  %v13741_v53 = vadd.f32 %v13740_v58, %v13739_v9  ;;  %v13700_v7 = vld [vmem:[#allocation2 + $0xfa] sm:$0xff] }
 0x95d   : > { %v15672_v19 = vld [vmem:[%s25411_s7 + $0x680] sm:$0xff]  ;;  %v13699_v43 = vld [vmem:[#allocation2 + $0xf2] sm:$0xff]  ;;  %18886 = vmatpush1.bf16.msra.mxu0 %v18885_v25  ;;  %18902 = vmatpush1.bf16.msra.mxu1 %v18901_v1  ;;  %v18907_v48 = vpack.c.bf16 %v15679_v32, %v15675_v33  ;;  %v13744_v8 = vsel %vm11457_vm4, %v13698_v16, 0.0  ;;  %v15681_v26 = vld [vmem:[%s25411_s7 + $0x6c8] sm:$0xff]  ;;  %v18909_v56 = vpack.c.bf16 %v15678_v10, %v15674_v40 }
 0x95e   : > { %v13207_v18 = vadd.f32 %v13205_v29, %v25953_v6  ;;  %v13468_v31 = vadd.f32 %v13466_v63, %v24342_v5  ;;  %v15676_v57 = vld [vmem:[%s25411_s7 + $0x6a0] sm:$0xff]  ;;  %v13210_v5 = vsel %vm11457_vm4, %v13148_v52, 0.0  ;;  %18888 = vmatprep.subr.bf16.mxu0 %v18887_v27  ;;  %18904 = vmatprep.subr.bf16.mxu1 %v18903_v39  ;;  %v15685_v42 = vld [vmem:[%s25411_s7 + $0x6e8] sm:$0xff]  ;;  %v25954_v36 = vld [vmem:[#allocation85_spill] sm:$0xff]  ;;  %v13743_v24 = vadd.f32 %v13742_v34, %v13741_v53 }
 0x95f   : > { %v15683_v50 = vld [vmem:[%s25411_s7 + $0x6d8] sm:$0xff]  ;;  %13318 = vmatprep.mubr.f32.mxu0 %v25872_v45  ;;  %13389 = vmatprep.mubr.f32.mxu1 %v25872_v45  ;;  %v13746_v55 = vsel %vm11457_vm4, %v13699_v43, 0.0  ;;  %v15680_v38 = vld [vmem:[%s25411_s7 + $0x6c0] sm:$0xff]  ;;  %v13701_v14 = vld [vmem:[#allocation2 + $0x10a] sm:$0xff]  ;;  %v18893_v37 = vpack.c.bf16 %v15676_v57, %v15672_v19  ;;  %v18895_v62 = vpack.c.bf16 %v15685_v42, %v15681_v26 }
 0x960   : > { %v13209_v21 = vadd.f32 %v13208_v20, %v13207_v18  ;;  %v13470_v49 = vadd.f32 %v13468_v31, %v25954_v36  ;;  %v15687_v25 = vld [vmem:[%s25411_s7 + $0x6f8] sm:$0xff]  ;;  %v13745_v47 = vadd.f32 %v13744_v8, %v13743_v24  ;;  %v15684_v0 = vld [vmem:[%s25411_s7 + $0x6e0] sm:$0xff]  ;;  %v15682_v54 = vld [vmem:[%s25411_s7 + $0x6d0] sm:$0xff]  ;;  %v13750_v59 = vsel %vm11457_vm4, %v13701_v14, 0.0 }
 0x961   : > { %18890 = vmatpush1.bf16.msra.mxu0 %v18889_v11  ;;  %18906 = vmatpush1.bf16.msra.mxu1 %v18905_v44  ;;  %v15686_v3 = vld [vmem:[%s25411_s7 + $0x6f0] sm:$0xff]  ;;  %v18911_v1 = vpack.c.bf16 %v15687_v25, %v15683_v50  ;;  %v15691_v27 = vld [vmem:[%s25411_s7 + $0x708] sm:$0xff]  ;;  %v15693_v32 = vld [vmem:[%s25411_s7 + $0x718] sm:$0xff] }
 0x962   : > { %v13211_v30 = vadd.f32 %v13210_v5, %v13209_v21  ;;  %v13472_v46 = vadd.f32 %v13470_v49, %v24395_v51  ;;  %v13748_v51 = vsel %vm11457_vm4, %v13700_v7, 0.0  ;;  %18892 = vmatprep.subr.bf16.mxu0 %v18891_v22  ;;  %18908 = vmatprep.subr.bf16.mxu1 %v18907_v48  ;;  %v15695_v39 = vld [vmem:[%s25411_s7 + $0x728] sm:$0xff]  ;;  %v13702_v33 = vld [vmem:[#allocation2 + $0x112] sm:$0xff]  ;;  %v13747_v58 = vadd.f32 %v13746_v55, %v13745_v47  ;;  %v15690_v6 = vld [vmem:[%s25411_s7 + $0x700] sm:$0xff] }
 0x963   : > { %v15697_v52 = vld [vmem:[%s25411_s7 + $0x738] sm:$0xff]  ;;  %v25955_v12 = vld [vmem:[#allocation104_spill] sm:$0xff]  ;;  %v13703_v16 = vld [vmem:[#allocation2 + $0x122] sm:$0xff]  ;;  %v18913_v11 = vpack.c.bf16 %v15686_v3, %v15682_v54  ;;  %v18915_v44 = vpack.c.bf16 %v15695_v39, %v15691_v27  ;;  %v13752_v20 = vsel %vm11457_vm4, %v13702_v33, 0.0 }
 0x964   : > { %v13212_v41 = vrot.slane %v13211_v30, 4  ;;  %v13474_v35 = vadd.f32 %v13472_v46, %v24422_v61  ;;  %v13749_v9 = vadd.f32 %v13748_v51, %v13747_v58  ;;  %v18897_v61 = vpack.c.bf16 %v15684_v0, %v15680_v38  ;;  %v25956_v18 = vld [vmem:[#allocation105_spill] sm:$0xff]  ;;  %v13704_v43 = vld [vmem:[#allocation2 + $0x12a] sm:$0xff]  ;;  %v15694_v22 = vld [vmem:[%s25411_s7 + $0x720] sm:$0xff] }
 0x965   : > { %18894 = vmatpush1.bf16.msra.mxu0 %v18893_v37  ;;  %18910 = vmatpush1.bf16.msra.mxu1 %v18909_v56  ;;  %v18931_v34 = vpack.c.bf16 %v15697_v52, %v15693_v32  ;;  %v15692_v48 = vld [vmem:[%s25411_s7 + $0x710] sm:$0xff]  ;;  %v13754_v40 = vsel %vm11457_vm4, %v13703_v16, 0.0  ;;  %v15699_v5 = vld [vmem:[%s25411_s7 + $0x748] sm:$0xff]  ;;  %v13705_v42 = vld [vmem:[#allocation2 + $0x13a] sm:$0xff]  ;;  %v13756_v7 = vsel %vm11457_vm4, %v13704_v43, 0.0  ;;  %v18917_v38 = vpack.c.bf16 %v15694_v22, %v15690_v6 }
 0x966   : > { %v13213_v29 = vadd.f32 %v13212_v41, %v13211_v30  ;;  %v13476_v63 = vadd.f32 %v13474_v35, %v25955_v12  ;;  %18896 = vmatprep.subr.bf16.mxu0 %v18895_v62  ;;  %18912 = vmatprep.subr.bf16.mxu1 %v18911_v1  ;;  %v13751_v53 = vadd.f32 %v13750_v59, %v13749_v9  ;;  %v15696_v57 = vld [vmem:[%s25411_s7 + $0x730] sm:$0xff]  ;;  %v15703_v8 = vld [vmem:[%s25411_s7 + $0x768] sm:$0xff]  ;;  %v15701_v36 = vld [vmem:[%s25411_s7 + $0x758] sm:$0xff]  ;;  %v13758_v56 = vsel %vm11457_vm4, %v13705_v42, 0.0 }
 0x967   : > { %v15705_v49 = vld [vmem:[%s25411_s7 + $0x778] sm:$0xff]  ;;  %v13706_v25 = vld [vmem:[#allocation2 + $0x142] sm:$0xff]  ;;  %v18933_v30 = vpack.c.bf16 %v15696_v57, %v15692_v48  ;;  %v18919_v46 = vpack.c.bf16 %v15703_v8, %v15699_v5  ;;  %v15700_v47 = vld [vmem:[%s25411_s7 + $0x750] sm:$0xff] }
 0x968   : > { %v13214_v19 = vrot.slane %v13213_v29, 2  ;;  %v13478_v31 = vadd.f32 %v13476_v63, %v25956_v18  ;;  %v13753_v21 = vadd.f32 %v13752_v20, %v13751_v53  ;;  %v15702_v14 = vld [vmem:[%s25411_s7 + $0x760] sm:$0xff]  ;;  %v15704_v37 = vld [vmem:[%s25411_s7 + $0x770] sm:$0xff]  ;;  %v18935_v62 = vpack.c.bf16 %v15705_v49, %v15701_v36  ;;  %v15707_v0 = vld [vmem:[%s25411_s7 + $0x788] sm:$0xff] }
 0x969   : > { %18898 = vmatpush1.bf16.msra.mxu0 %v18897_v61  ;;  %18914 = vmatpush1.bf16.msra.mxu1 %v18913_v11  ;;  %v15711_v54 = vld [vmem:[%s25411_s7 + $0x7a8] sm:$0xff]  ;;  %v13707_v51 = vld [vmem:[#allocation2 + $0x152] sm:$0xff]  ;;  %v15706_v41 = vld [vmem:[%s25411_s7 + $0x780] sm:$0xff]  ;;  %v13760_v35 = vsel %vm11457_vm4, %v13706_v25, 0.0 }
 0x96a   : > { %v13215_v10 = vadd.f32 %v13214_v19, %v13213_v29  ;;  %v13480_v26 = vadd.f32 %v13478_v31, %v24536_v2  ;;  %18916 = vmatprep.subr.bf16.mxu0 %v18915_v44  ;;  %18932 = vmatprep.subr.bf16.mxu1 %v18931_v34  ;;  %v15698_v2 = vld [vmem:[%s25411_s7 + $0x740] sm:$0xff]  ;;  %v13755_v55 = vadd.f32 %v13754_v40, %v13753_v21  ;;  %v15709_v27 = vld [vmem:[%s25411_s7 + $0x798] sm:$0xff]  ;;  %v15708_v63 = vld [vmem:[%s25411_s7 + $0x790] sm:$0xff] }
 0x96b   : > { %v15713_v39 = vld [vmem:[%s25411_s7 + $0x7b8] sm:$0xff]  ;;  %v18921_v59 = vpack.c.bf16 %v15702_v14, %v15698_v2  ;;  %v18937_v29 = vpack.c.bf16 %v15704_v37, %v15700_v47  ;;  %v18923_v12 = vpack.c.bf16 %v15711_v54, %v15707_v0  ;;  %v15712_v16 = vld [vmem:[%s25411_s7 + $0x7b0] sm:$0xff]  ;;  %v15715_v9 = vld [vmem:[%s25411_s7 + $0x7c8] sm:$0xff] }
 0x96c   : > { %v13216_v24 = vrot.slane %v13215_v10, 1  ;;  %v13482_v50 = vadd.f32 %v13480_v26, %v24566_v15  ;;  %v13757_v1 = vadd.f32 %v13756_v7, %v13755_v55  ;;  %v13430_v33 = vld [vmem:[#allocation2 + $0x199] sm:$0xff]  ;;  %v18939_v61 = vpack.c.bf16 %v15713_v39, %v15709_v27  ;;  %v15719_v11 = vld [vmem:[%s25411_s7 + $0x7e8] sm:$0xff]  ;;  %v15716_v42 = vld [vmem:[%s25411_s7 + $0x7d0] sm:$0xff] }
 0x96d   : > { %v13708_v32 = vld [vmem:[#allocation2 + $0x15a] sm:$0xff]  ;;  %v13709_v34 = vld [vmem:[#allocation2 + $0x16a] sm:$0xff]  ;;  %v13491_v31 = vsel %vm11457_vm4, %v13430_v33, 0.0  ;;  %v13710_v22 = vld [vmem:[#allocation2 + $0x172] sm:$0xff]  ;;  %v18941_v57 = vpack.c.bf16 %v15712_v16, %v15708_v63  ;;  %v18927_v40 = vpack.c.bf16 %v15719_v11, %v15715_v9 }
 0x96e   : > { %v13217_v15 = vadd.f32 %v13216_v24, %v13215_v10  ;;  %v13484_v3 = vadd.f32 %v13482_v50, %v24603_v17  ;;  %v15710_v17 = vld [vmem:[%s25411_s7 + $0x7a0] sm:$0xff]  ;;  %v13759_v52 = vadd.f32 %v13758_v56, %v13757_v1  ;;  %v15717_v6 = vld [vmem:[%s25411_s7 + $0x7d8] sm:$0xff]  ;;  %v13764_v43 = vsel %vm11457_vm4, %v13708_v32, 0.0  ;;  %v15720_v21 = vld [vmem:[%s25411_s7 + $0x7f0] sm:$0xff] }
 0x96f   : > { %v13431_v44 = vld [vmem:[#allocation2 + $0x1a1] sm:$0xff]  ;;  %v15721_v18 = vld [vmem:[%s25411_s7 + $0x7f8] sm:$0xff]  ;;  %v18925_v53 = vpack.c.bf16 %v15710_v17, %v15706_v41  ;;  %v13766_v26 = vsel %vm11457_vm4, %v13709_v34, 0.0  ;;  %v13768_v25 = vsel %vm11457_vm4, %v13710_v22, 0.0  ;;  %v15730_v17 = vld [vmem:[%s25411_s7 + $0x830] sm:$0xff] }
 0x970   : > { %15688 = vmatmul.mubr.msk.f32.vlgmr.msra.gmra.mrb[0].mxu0 %vm11457_vm4, %v13217_v15  ;;  %15689 = vmatmul.mubr.msk.f32.vlgmr.msra.gmra.mrb[0].mxu1 %vm11457_vm4, %v13217_v15  ;;  %v13486_v58 = vadd.f32 %v13484_v3, %v24633_v28  ;;  %v13762_v28 = vsel %vm11457_vm4, %v13707_v51, 0.0  ;;  %v13761_v19 = vadd.f32 %v13760_v35, %v13759_v52  ;;  %v15714_v10 = vld [vmem:[%s25411_s7 + $0x7c0] sm:$0xff]  ;;  %v13493_v8 = vsel %vm11457_vm4, %v13431_v44, 0.0  ;;  %v15725_v36 = vld [vmem:[%s25411_s7 + $0x808] sm:$0xff]  ;;  %v15727_v2 = vld [vmem:[%s25411_s7 + $0x818] sm:$0xff] }
 0x971   : > { %18918 = vmatpush1.bf16.msra.mxu0 %v18917_v38  ;;  %18934 = vmatpush1.bf16.msra.mxu1 %v18933_v30  ;;  %v15718_v5 = vld [vmem:[%s25411_s7 + $0x7e0] sm:$0xff]  ;;  %v15729_v24 = vld [vmem:[%s25411_s7 + $0x828] sm:$0xff]  ;;  %v15731_v50 = vld [vmem:[%s25411_s7 + $0x838] sm:$0xff] }
 0x972   : > { %18920 = vmatprep.subr.bf16.mxu0 %v18919_v46  ;;  %18936 = vmatprep.subr.bf16.mxu1 %v18935_v62  ;;  %v13488_v20 = vadd.f32 %v13486_v58, %v24670_v13  ;;  %v13763_v48 = vadd.f32 %v13762_v28, %v13761_v19  ;;  %v18929_v30 = vpack.c.bf16 %v15718_v5, %v15714_v10  ;;  %v13713_v56 = vld [vmem:[#allocation2 + $0x19a] sm:$0xff]  ;;  %v13714_v0 = vld [vmem:[#allocation2 + $0x1a2] sm:$0xff]  ;;  %v15726_v35 = vld [vmem:[%s25411_s7 + $0x810] sm:$0xff] }
 0x973   : > { %13601 = vmatprep.mubr.f32.mxu0 %v25872_v45  ;;  %13672 = vmatprep.mubr.f32.mxu1 %v25872_v45  ;;  %v18945_v46 = vpack.c.bf16 %v15720_v21, %v15716_v42  ;;  %v18947_v14 = vpack.c.bf16 %v15729_v24, %v15725_v36  ;;  %v18963_v47 = vpack.c.bf16 %v15731_v50, %v15727_v2  ;;  %v13774_v3 = vsel %vm11457_vm4, %v13713_v56, 0.0  ;;  %v15724_v27 = vld [vmem:[%s25411_s7 + $0x800] sm:$0xff]  ;;  %v15737_v58 = vld [vmem:[%s25411_s7 + $0x868] sm:$0xff]  ;;  %v15735_v32 = vld [vmem:[%s25411_s7 + $0x858] sm:$0xff] }
 0x974   : > { %v13490_v13 = vadd.f32 %v13488_v20, %v24704_v23  ;;  %v18943_v23 = vpack.c.bf16 %v15721_v18, %v15717_v6  ;;  %v13765_v7 = vadd.f32 %v13764_v43, %v13763_v48  ;;  %v15728_v39 = vld [vmem:[%s25411_s7 + $0x820] sm:$0xff]  ;;  %v13776_v41 = vsel %vm11457_vm4, %v13714_v0, 0.0  ;;  %v15739_v52 = vld [vmem:[%s25411_s7 + $0x878] sm:$0xff]  ;;  %v15734_v44 = vld [vmem:[%s25411_s7 + $0x850] sm:$0xff] }
 0x975   : > { %18922 = vmatpush1.bf16.msra.mxu0 %v18921_v59  ;;  %18938 = vmatpush1.bf16.msra.mxu1 %v18937_v29  ;;  %v18965_v63 = vpack.c.bf16 %v15730_v17, %v15726_v35  ;;  %v15732_v16 = vld [vmem:[%s25411_s7 + $0x840] sm:$0xff]  ;;  %v18967_v11 = vpack.c.bf16 %v15739_v52, %v15735_v32  ;;  %v15738_v20 = vld [vmem:[%s25411_s7 + $0x870] sm:$0xff]  ;;  %v15741_v34 = vld [vmem:[%s25411_s7 + $0x888] sm:$0xff] }
 0x976   : > { %18924 = vmatprep.subr.bf16.mxu0 %v18923_v12  ;;  %18940 = vmatprep.subr.bf16.mxu1 %v18939_v61  ;;  %v13492_v49 = vadd.f32 %v13491_v31, %v13490_v13  ;;  %v13767_v38 = vadd.f32 %v13766_v26, %v13765_v7  ;;  %v18949_v12 = vpack.c.bf16 %v15728_v39, %v15724_v27  ;;  %v15736_v9 = vld [vmem:[%s25411_s7 + $0x860] sm:$0xff]  ;;  %v15745_v6 = vld [vmem:[%s25411_s7 + $0x8a8] sm:$0xff]  ;;  %v15743_v18 = vld [vmem:[%s25411_s7 + $0x898] sm:$0xff] }
 0x977   : > { %v15747_v31 = vld [vmem:[%s25411_s7 + $0x8b8] sm:$0xff]  ;;  %v18969_v13 = vpack.c.bf16 %v15738_v20, %v15734_v44  ;;  %v15740_v22 = vld [vmem:[%s25411_s7 + $0x880] sm:$0xff]  ;;  %v15742_v10 = vld [vmem:[%s25411_s7 + $0x890] sm:$0xff] }
 0x978   : > { %v13494_v55 = vadd.f32 %v13493_v8, %v13492_v49  ;;  %v13769_v15 = vadd.f32 %v13768_v25, %v13767_v38  ;;  %v15744_v48 = vld [vmem:[%s25411_s7 + $0x8a0] sm:$0xff]  ;;  %v15746_v5 = vld [vmem:[%s25411_s7 + $0x8b0] sm:$0xff]  ;;  %v15749_v8 = vld [vmem:[%s25411_s7 + $0x8c8] sm:$0xff] }
 0x979   : > { %18926 = vmatpush1.bf16.msra.mxu0 %v18925_v53  ;;  %18942 = vmatpush1.bf16.msra.mxu1 %v18941_v57  ;;  %v18953_v53 = vpack.c.bf16 %v15736_v9, %v15732_v16  ;;  %v18955_v57 = vpack.c.bf16 %v15745_v6, %v15741_v34  ;;  %v15751_v42 = vld [vmem:[%s25411_s7 + $0x8d8] sm:$0xff]  ;;  %v18957_v49 = vpack.c.bf16 %v15744_v48, %v15740_v22  ;;  %v15748_v24 = vld [vmem:[%s25411_s7 + $0x8c0] sm:$0xff] }
 0x97a   : > { %18928 = vmatprep.subr.bf16.mxu0 %v18927_v40  ;;  %18944 = vmatprep.subr.bf16.mxu1 %v18943_v23  ;;  %v13495_v37 = vrot.slane %v13494_v55, 4  ;;  %v13771_v54 = vadd.f32 %v13769_v15, %v24775_v4  ;;  %v18971_v40 = vpack.c.bf16 %v15747_v31, %v15743_v18  ;;  %v15753_v23 = vld [vmem:[%s25411_s7 + $0x8e8] sm:$0xff]  ;;  %v15755_v21 = vld [vmem:[%s25411_s7 + $0x8f8] sm:$0xff]  ;;  %v18973_v7 = vpack.c.bf16 %v15746_v5, %v15742_v10  ;;  %v15752_v25 = vld [vmem:[%s25411_s7 + $0x8e0] sm:$0xff] }
 0x97b   : > { %v18959_v2 = vpack.c.bf16 %v15753_v23, %v15749_v8  ;;  %v18975_v50 = vpack.c.bf16 %v15755_v21, %v15751_v42 }
 0x97c   : > { %v13496_v62 = vadd.f32 %v13495_v37, %v13494_v55  ;;  %v13773_v1 = vadd.f32 %v13771_v54, %v24790_v60  ;;  %v15733_v60 = vld [vmem:[%s25411_s7 + $0x848] sm:$0xff]  ;;  %v15754_v55 = vld [vmem:[%s25411_s7 + $0x8f0] sm:$0xff] }
 0x97d   : > { %18930 = vmatpush1.bf16.msra.mxu0 %v18929_v30  ;;  %18946 = vmatpush1.bf16.msra.mxu1 %v18945_v46  ;;  %v18951_v61 = vpack.c.bf16 %v15737_v58, %v15733_v60  ;;  %v18961_v30 = vpack.c.bf16 %v15752_v25, %v15748_v24 }
 0x97e   : > { %18948 = vmatprep.subr.bf16.mxu0 %v18947_v14  ;;  %18964 = vmatprep.subr.bf16.mxu1 %v18963_v47  ;;  %v13497_v51 = vrot.slane %v13496_v62, 2  ;;  %v13775_v33 = vadd.f32 %v13774_v3, %v13773_v1  ;;  %v13972_v47 = vlaneseq }
 0x980   : > { %v13498_v4 = vadd.f32 %v13497_v51, %v13496_v62  ;;  %v13777_v29 = vadd.f32 %v13776_v41, %v13775_v33  ;;  %v13973_v37 = vshrl.u32 %v13972_v47, 7  ;;  %v13970_v62 = vld [vmem:[%s25412_s8] sm:$0xf]  ;;  %vm14063_vm6 = vcmp.lt.s32.totalorder %v13972_v47, 512 }
 0x982   : > { %v13499_v59 = vrot.slane %v13498_v4, 1  ;;  %v13778_v19 = vrot.slane %v13777_v29, 4  ;;  %v13974_v56 = vsub.s32 0, %v13973_v37  ;;  %v13982_v15 = vsub.s32 2, %v13973_v37 }
 0x983   : > { %v13978_v0 = vsub.s32 1, %v13973_v37  ;;  %v13986_v54 = vsub.s32 3, %v13973_v37 }
 0x984   : > { %v13500_v28 = vadd.f32 %v13499_v59, %v13498_v4  ;;  %v13779_v43 = vadd.f32 %v13778_v19, %v13777_v29  ;;  %v13975_v3 = vrot.slane %v13970_v62, %v13974_v56  ;;  %v13983_v51 = vrot.slane %v13970_v62, %v13982_v15 }
 0x985   : > { %v13979_v39 = vrot.slane %v13970_v62, %v13978_v0  ;;  %v13987_v41 = vrot.slane %v13970_v62, %v13986_v54 }
 0x986   : > { %15722 = vmatmul.mubr.msk.f32.vlgmr.msra.gmra.mrb[0].mxu0 %vm11457_vm4, %v13500_v28  ;;  %15723 = vmatmul.mubr.msk.f32.vlgmr.msra.gmra.mrb[0].mxu1 %vm11457_vm4, %v13500_v28  ;;  %v13780_v26 = vrot.slane %v13779_v43, 2 }
 0x987   : > { %18950 = vmatpush1.bf16.msra.mxu0 %v18949_v12  ;;  %18966 = vmatpush1.bf16.msra.mxu1 %v18965_v63 }
 0x988   : > { %18952 = vmatprep.subr.bf16.mxu0 %v18951_v61  ;;  %18968 = vmatprep.subr.bf16.mxu1 %v18967_v11  ;;  %v13781_v36 = vadd.f32 %v13780_v26, %v13779_v43 }
 0x989   : > { %13884 = vmatprep.mubr.f32.mxu0 %v25872_v45  ;;  %13955 = vmatprep.mubr.f32.mxu1 %v25872_v45  ;;  %v15750_v45 = vld [vmem:[%s25411_s7 + $0x8d0] sm:$0xff] }
 0x98a   : > { %v13782_v38 = vrot.slane %v13781_v36, 1  ;;  %v18977_v46 = vpack.c.bf16 %v15754_v55, %v15750_v45 }
 0x98b   : > { %18954 = vmatpush1.bf16.msra.mxu0 %v18953_v53  ;;  %18970 = vmatpush1.bf16.msra.mxu1 %v18969_v13 }
 0x98c   : > { %18956 = vmatprep.subr.bf16.mxu0 %v18955_v57  ;;  %18972 = vmatprep.subr.bf16.mxu1 %v18971_v40  ;;  %v13783_v14 = vadd.f32 %v13782_v38, %v13781_v36  ;;  %v20056_v36 = vmov 1966171168  }
 0x98f   : > { %18958 = vmatpush1.bf16.msra.mxu0 %v18957_v49  ;;  %18974 = vmatpush1.bf16.msra.mxu1 %v18973_v7  ;;  %v14039_v49 = vunpack.c.l.s4 %v20056_v36 }
 0x990   : > { %18960 = vmatprep.subr.bf16.mxu0 %v18959_v2  ;;  %18976 = vmatprep.subr.bf16.mxu1 %v18975_v50 }
 0x991   : > { %v14040_v7 = vunpack.c.0.s8 %v14039_v49 }
 0x993   : > { %18962 = vmatpush1.bf16.msra.mxu0 %v18961_v30  ;;  %18978 = vmatpush1.bf16.msra.mxu1 %v18977_v46  ;;  %v14043_v2 = vsub.s32 %v14040_v7, %v13973_v37 }
 0x996   : > { %15756 = vmatmul.mubr.msk.f32.vlgmr.msra.gmra.mrb[0].mxu0 %vm11457_vm4, %v13783_v14  ;;  %15757 = vmatmul.mubr.msk.f32.vlgmr.msra.gmra.mrb[0].mxu1 %vm11457_vm4, %v13783_v14 }
 0xa69   : > { %v13886_v1 = vpop.f32.mrb[0].mxu0  ;;  %v13957_v27 = vpop.f32.mrb[0].mxu1 }
 0xa6a   : > { %v13966_v4 = vmul.f32 0.00390625, %v13886_v1  ;;  %v13968_v35 = vmul.f32 0.00390625, %v13957_v27  ;;  %v13888_v17 = vpop.f32.mrb[1].mxu0  ;;  %v13959_v60 = vpop.f32.mrb[1].mxu1 }
 0xa6b   : > { %v13967_v33 = vmul.f32 0.00390625, %v13888_v17  ;;  %v13969_v58 = vmul.f32 0.00390625, %v13959_v60 }
 0xa6c   : > { %v13992_v32 = vadd.f32 %v13975_v3, %v13966_v4  ;;  %v13994_v52 = vadd.f32 %v13983_v51, %v13968_v35 }
 0xa6d   : > { %v13993_v59 = vadd.f32 %v13979_v39, %v13967_v33  ;;  %v13995_v29 = vadd.f32 %v13987_v41, %v13969_v58 }
 0xa6e   : > { %v13997_v12 = vsel %vm13996_vm5, %v13992_v32, -inf  ;;  %v13999_v63 = vsel %vm13996_vm5, %v13994_v52, -inf }
 0xa6f   : > { %v13998_v16 = vsel %vm13996_vm5, %v13993_v59, -inf  ;;  %v14000_v9 = vsel %vm13996_vm5, %v13995_v29, -inf }
 0xa70   : > { %v14001_v28 = vmax.f32 %v13997_v12, %v13998_v16  ;;  %v14002_v61 = vmax.f32 %v13999_v63, %v14000_v9 }
 0xa72   : > { %v14003_v11 = vmax.f32 %v14001_v28, %v14002_v61 }
 0xa74   : > { %14004 = vmax.xlane.f32.xlu0 %v14003_v11 }
 0xb01   : > { %v14005_v44 = vpop.xlane.xlu0 %14004 }
 0xb02   : > { %v14006_v20 = vsub.f32 %v13992_v32, %v14005_v44  ;;  %v14007_v34 = vsub.f32 %v13993_v59, %v14005_v44  ;;  %v14008_v19 = vsub.f32 %v13994_v52, %v14005_v44  ;;  %v14009_v6 = vsub.f32 %v13995_v29, %v14005_v44 }
 0xb04   : > { %v14010_v18 = vmul.f32 1.442695, %v14006_v20  ;;  %v14012_v31 = vmul.f32 1.442695, %v14007_v34  ;;  %v14014_v43 = vmul.f32 1.442695, %v14008_v19 }
 0xb05   : > { %v14016_v53 = vmul.f32 1.442695, %v14009_v6 }
 0xb06   : > { %19879 = vpow2.f32 %v14010_v18 }
 0xb07   : > { %19881 = vpow2.f32 %v14012_v31 }
 0xb08   : > { %19883 = vpow2.f32 %v14014_v43 }
 0xb09   : > { %19885 = vpow2.f32 %v14016_v53 }
 0xb10   : > { %v19880_v13 = vpop.eup %19879 }
 0xb11   : > { %v19882_v22 = vpop.eup %19881  ;;  %v14018_v48 = vsel %vm13996_vm5, %v19880_v13, 0.0 }
 0xb12   : > { %v19884_v57 = vpop.eup %19883  ;;  %v14019_v40 = vsel %vm13996_vm5, %v19882_v22, 0.0 }
 0xb13   : > { %v19886_v10 = vpop.eup %19885  ;;  %v14020_v5 = vadd.f32 %v14019_v40, %v14018_v48  ;;  %v14021_v8 = vsel %vm13996_vm5, %v19884_v57, 0.0 }
 0xb14   : > { %v14023_v23 = vsel %vm13996_vm5, %v19886_v10, 0.0 }
 0xb15   : > { %v14022_v26 = vadd.f32 %v14021_v8, %v14020_v5 }
 0xb17   : > { %v14024_v42 = vadd.f32 %v14023_v23, %v14022_v26 }
 0xb19   : > { %14025 = vadd.xlane.f32.xlu0 %v14024_v42 }
 0xba6   : > { %v14026_v21 = vpop.xlane.xlu0 %14025 }
 0xba7   : > { %19887 = vrcp.f32 %v14026_v21 }
 0xbb1   : > { %v19888_v24 = vpop.eup %19887 }
 0xbb2   : > { %v14028_v50 = vmul.f32 %v19888_v24, %v19880_v13  ;;  %v14029_v25 = vmul.f32 %v19888_v24, %v19882_v22  ;;  %v14030_v45 = vmul.f32 %v19888_v24, %v19884_v57  ;;  %v14031_v55 = vmul.f32 %v19888_v24, %v19886_v10 }
 0xbb4   : > { %v14036_v38 = vcombine.low %v14028_v50, %v14029_v25  ;;  %v14037_v30 = vcombine.low %v14030_v45, %v14031_v55 }
 0xbb6   : > { %v14044_v46 = vrot.slane %v14036_v38, %v14043_v2  ;;  %v14051_v14 = vrot.slane %v14037_v30, %v14043_v2 }
 0xbb8   : > { %v14052_v56 = vcombine.low %v14044_v46, %v14051_v14 }
 0xbba   : > { %v14059_v15 = vrot.slane %v14052_v56, %v14043_v2 }
 0xbbc   : > { %14065 = vst.msk [vmem:[%s20333_s23] sm:$0xf] %vm14063_vm6, %v14059_v15 }
 0xbbd PF: > { %s23_s16 = sadd.s32 1, %s20047_s16   ;;  %s25957_s21 = sld [smem:[#allocation15_spill]] }
 0xbbe   : > { %p20_p1 = scmp.ge.s32.totalorder %s23_s16, 34   ;;  %s25958_s12 = sld [smem:[#allocation11_spill]] }
 0xbbf   : > { %s25959_s13 = sld [smem:[#allocation12_spill]]  ;;  %s25960_s14 = sld [smem:[#allocation13_spill]] }
 0xbc0   : > { %s25961_s15 = sld [smem:[#allocation14_spill]]  ;;  %s25962_s30 = smov %s20023_s10 }
 0xbc1   : > { %s25963_s10 = smov %s20027_s11  ;;  %22 = sbr.rel (!%p20_p1) target bundleno = 9 (0x9), region = 174 }
 0xbc3   : > { %s25964_s11 = smov %s25957_s21 }
 0xbc8   :  { %14085 = vsyncpa [#allocation5], 1 }
 0xbc9   :  { %14087 = vsyncpa [#allocation5 + $0x1], 1 }
 0xbca   :  { %14088 = vsyncpa [#allocation7], 1 }
 0xbcb   :  { %14090 = vsyncpa [#allocation7 + $0x1], 1 }

</bundles_post_ra>
